<compile_context>
chip_gen: v5e
topology: v5e:2x2
jax: 0.10.0
libtpu: 0.0.40
codegen_flags: <defaults>
</compile_context>

<pallas_src>
import jax
import jax.numpy as jnp
from jax.experimental import pallas as pl
from jax.experimental.pallas import tpu as pltpu


# ---------------- fused Pallas kernel ----------------

def _basic_block_kernel(x_ref, w1_ref, b1_ref, w2_ref, b2_ref, o_ref):
    # x_ref : (H+4, W+4, Cin)   input image zero-padded by 2 (batch dim squeezed)
    # w1_ref: (9*Cin,  Cout)    conv1 weights, BN1 scale folded in, tap-major K
    # b1_ref: (1, Cout)         BN1 folded bias
    # w2_ref: (9*Cout, Cout)    conv2 weights, BN2 scale folded in
    # b2_ref: (1, Cout)         BN2 folded bias
    # o_ref : (H*W, Cout)
    hp, wp, cin = x_ref.shape
    he, we = hp - 2, wp - 2          # extended conv1 output domain = (H+2, W+2)
    h, w = he - 2, we - 2
    cout = o_ref.shape[-1]

    # ---- conv1 + bn1 + relu on the extended (H+2)x(W+2) domain ----
    # Single matmul with K = 9*Cin (taps stacked along the channel axis).
    taps1 = [
        x_ref[dh:dh + he, dw:dw + we, :].reshape(he * we, cin)
        for dh in range(3) for dw in range(3)
    ]
    slab1 = jnp.concatenate(taps1, axis=-1)                        # (He*We, 9*Cin)
    a1 = jnp.dot(slab1, w1_ref[...], preferred_element_type=jnp.float32)
    a1 = jnp.maximum(a1 + b1_ref[...], 0.0).reshape(he, we, cout)

    # Zero the 1-pixel ring: it plays the role of conv2's zero padding of
    # conv1's BN+ReLU output.
    ri = jax.lax.broadcasted_iota(jnp.int32, (he, we, 1), 0)
    ci = jax.lax.broadcasted_iota(jnp.int32, (he, we, 1), 1)
    interior = (ri >= 1) & (ri <= h) & (ci >= 1) & (ci <= w)
    mid = jnp.where(interior, a1, 0.0)                             # (H+2, W+2, Cout)

    # ---- conv2 + bn2 + residual add + relu ----
    taps2 = [
        mid[dh:dh + h, dw:dw + w, :].reshape(h * w, cout)
        for dh in range(3) for dw in range(3)
    ]
    slab2 = jnp.concatenate(taps2, axis=-1)                        # (H*W, 9*Cout)
    a2 = jnp.dot(slab2, w2_ref[...], preferred_element_type=jnp.float32)
    res = x_ref[2:2 + h, 2:2 + w, :].reshape(h * w, cin).astype(jnp.float32)
    o_ref[...] = jnp.maximum(a2 + b2_ref[...] + res, 0.0).astype(o_ref.dtype)


# ---------------- host-side glue ----------------

def fold_bn(gamma, beta, mean, var, eps=1e-5):
    scale = gamma / jnp.sqrt(var + eps)
    return scale, beta - mean * scale


def basic_block_forward(x_nchw, params, stride=1):
    """BasicBlock.forward with downsample (self.right) = None, eval-mode BN."""
    if stride != 1:
        # TODO(synk): stride>1 needs strided tap extraction + a downsample branch.
        raise NotImplementedError("fused BasicBlock kernel supports stride=1 only")

    x = jnp.transpose(x_nchw, (0, 2, 3, 1))                        # NCHW -> NHWC
    n, h, w, cin = x.shape
    cout = params["w1"].shape[-1]
    if cin != cout:
        raise NotImplementedError("Cin != Cout requires a downsample branch")

    # Fold BN scale into the conv weights (host-side, one time).
    s1, b1 = fold_bn(*params["bn1"])
    s2, b2 = fold_bn(*params["bn2"])
    w1 = (params["w1"] * s1[None, :]).astype(jnp.float32)          # (9*Cin,  Cout)
    w2 = (params["w2"] * s2[None, :]).astype(jnp.float32)          # (9*Cout, Cout)
    b1 = b1.reshape(1, cout).astype(jnp.float32)
    b2 = b2.reshape(1, cout).astype(jnp.float32)

    # Pad by 2 so conv1 can be evaluated on the (H+2)x(W+2) extended domain.
    x_pad = jnp.pad(x, ((0, 0), (2, 2), (2, 2), (0, 0)))           # (N, H+4, W+4, Cin)

    out_flat = pl.pallas_call(
        _basic_block_kernel,
        out_shape=jax.ShapeDtypeStruct((n, h * w, cout), x.dtype),
        grid=(n,),
        in_specs=[
            pl.BlockSpec((None, h + 4, w + 4, cin), lambda i: (i, 0, 0, 0)),
            pl.BlockSpec((9 * cin, cout), lambda i: (0, 0)),
            pl.BlockSpec((1, cout), lambda i: (0, 0)),
            pl.BlockSpec((9 * cout, cout), lambda i: (0, 0)),
            pl.BlockSpec((1, cout), lambda i: (0, 0)),
        ],
        out_specs=pl.BlockSpec((None, h * w, cout), lambda i: (i, 0, 0)),
        compiler_params=pltpu.CompilerParams(
            dimension_semantics=("parallel",)),
    )(x_pad, w1, b1, w2, b2)

    out = out_flat.reshape(n, h, w, cout)
    return jnp.transpose(out, (0, 3, 1, 2))                        # NHWC -> NCHW


# ---------------- parameter init (deterministic, synthetic) ----------------

def init_params(key, cin, cout):
    k1, k2 = jax.random.split(key)
    w1_pt = jax.random.normal(k1, (cout, cin, 3, 3), jnp.float32) * 0.1   # OIHW
    w2_pt = jax.random.normal(k2, (cout, cout, 3, 3), jnp.float32) * 0.1  # OIHW

    def to_mat(w_pt):   # (Cout,Cin,3,3) -> (9*Cin, Cout); K index = (dh*3+dw)*Cin + ci
        co, ci = w_pt.shape[0], w_pt.shape[1]
        return jnp.transpose(w_pt, (2, 3, 1, 0)).reshape(9 * ci, co)

    def bn(c, off):
        gamma = jnp.ones((c,), jnp.float32) * (1.0 + off)
        beta = jnp.ones((c,), jnp.float32) * (0.05 * off)
        rmean = jnp.arange(c, dtype=jnp.float32) * 0.01
        rvar = jnp.ones((c,), jnp.float32) + jnp.arange(c, dtype=jnp.float32) * 0.02
        return (gamma, beta, rmean, rvar)

    return {
        "w1": to_mat(w1_pt), "w2": to_mat(w2_pt),
        "w1_pt": w1_pt, "w2_pt": w2_pt,
        "bn1": bn(cout, 0.1), "bn2": bn(cout, 0.2),
    }


# ---------------- pure-JAX reference (numerics sanity check) ----------------

def ref_forward(x_nchw, params, stride=1, eps=1e-5):
    def conv(x, w_pt, s):
        return jax.lax.conv_general_dilated(
            x, w_pt, window_strides=(s, s), padding=((1, 1), (1, 1)),
            dimension_numbers=("NCHW", "OIHW", "NCHW"))

    def bn(x, p):
        g, b, m, v = (t.reshape(1, -1, 1, 1) for t in p)
        return (x - m) / jnp.sqrt(v + eps) * g + b

    out = jnp.maximum(bn(conv(x_nchw, params["w1_pt"], stride), params["bn1"]), 0.0)
    out = bn(conv(out, params["w2_pt"], 1), params["bn2"]) + x_nchw
    return jnp.maximum(out, 0.0)


if __name__ == "__main__":
    key = jax.random.PRNGKey(0)
    kx, kp = jax.random.split(key)
    N, C, H, W = 2, 4, 16, 16                    # inchannel = outchannel = 4, stride = 1
    x = jax.random.normal(kx, (N, C, H, W), jnp.float32)
    params = init_params(kp, C, C)

    out = basic_block_forward(x, params, stride=1)
    out = jax.block_until_ready(out)

    assert out.shape == (N, C, H, W)
    ref = ref_forward(x, params, stride=1)
    if not jnp.allclose(out, ref, atol=1e-3, rtol=1e-3):
        raise AssertionError("Pallas BasicBlock output mismatches JAX reference")
    print("KERNEL_OK")
</pallas_src>

<mosaic_0001>
module attributes {stable_mosaic.version = 11 : i64} {
  func.func @_basic_block_kernel(%arg0: i32, %arg1: memref<1x20x20x4xf32, #tpu.memory_space<vmem>>, %arg2: memref<36x4xf32, #tpu.memory_space<vmem>>, %arg3: memref<1x4xf32, #tpu.memory_space<vmem>>, %arg4: memref<36x4xf32, #tpu.memory_space<vmem>>, %arg5: memref<1x4xf32, #tpu.memory_space<vmem>>, %arg6: memref<1x256x4xf32, #tpu.memory_space<vmem>>) attributes {dimension_semantics = [#tpu.dimension_semantics<parallel>], iteration_bounds = array<i64: 2>, scalar_prefetch = 0 : i64, scratch_operands = 0 : i64, tpu.core_type = #tpu.core_type<tc>, window_params = [{transform_indices = @transform_0, window_bounds = array<i64: 1, 20, 20, 4>}, {pipeline_mode = #tpu.pipeline_mode<synchronous>, transform_indices = @transform_1, window_bounds = array<i64: 36, 4>}, {pipeline_mode = #tpu.pipeline_mode<synchronous>, transform_indices = @transform_2, window_bounds = array<i64: 1, 4>}, {pipeline_mode = #tpu.pipeline_mode<synchronous>, transform_indices = @transform_3, window_bounds = array<i64: 36, 4>}, {pipeline_mode = #tpu.pipeline_mode<synchronous>, transform_indices = @transform_4, window_bounds = array<i64: 1, 4>}, {transform_indices = @transform_5, window_bounds = array<i64: 1, 256, 4>}]} {
    %c0 = arith.constant 0 : index
    %c0_0 = arith.constant 0 : index
    %c0_1 = arith.constant 0 : index
    %c0_2 = arith.constant 0 : index
    %0 = vector.load %arg1[%c0, %c0_0, %c0_1, %c0_2] : memref<1x20x20x4xf32, #tpu.memory_space<vmem>>, vector<1x18x18x4xf32>
    %1 = vector.shape_cast %0 : vector<1x18x18x4xf32> to vector<18x18x4xf32>
    %2 = vector.shape_cast %1 : vector<18x18x4xf32> to vector<324x4xf32>
    %c0_3 = arith.constant 0 : index
    %c0_4 = arith.constant 0 : index
    %c1 = arith.constant 1 : index
    %c0_5 = arith.constant 0 : index
    %3 = vector.load %arg1[%c0_3, %c0_4, %c1, %c0_5] : memref<1x20x20x4xf32, #tpu.memory_space<vmem>>, vector<1x18x18x4xf32>
    %4 = vector.shape_cast %3 : vector<1x18x18x4xf32> to vector<18x18x4xf32>
    %5 = vector.shape_cast %4 : vector<18x18x4xf32> to vector<324x4xf32>
    %c0_6 = arith.constant 0 : index
    %c0_7 = arith.constant 0 : index
    %c2 = arith.constant 2 : index
    %c0_8 = arith.constant 0 : index
    %6 = vector.load %arg1[%c0_6, %c0_7, %c2, %c0_8] : memref<1x20x20x4xf32, #tpu.memory_space<vmem>>, vector<1x18x18x4xf32>
    %7 = vector.shape_cast %6 : vector<1x18x18x4xf32> to vector<18x18x4xf32>
    %8 = vector.shape_cast %7 : vector<18x18x4xf32> to vector<324x4xf32>
    %c0_9 = arith.constant 0 : index
    %c1_10 = arith.constant 1 : index
    %c0_11 = arith.constant 0 : index
    %c0_12 = arith.constant 0 : index
    %9 = vector.load %arg1[%c0_9, %c1_10, %c0_11, %c0_12] : memref<1x20x20x4xf32, #tpu.memory_space<vmem>>, vector<1x18x18x4xf32>
    %10 = vector.shape_cast %9 : vector<1x18x18x4xf32> to vector<18x18x4xf32>
    %11 = vector.shape_cast %10 : vector<18x18x4xf32> to vector<324x4xf32>
    %c0_13 = arith.constant 0 : index
    %c1_14 = arith.constant 1 : index
    %c1_15 = arith.constant 1 : index
    %c0_16 = arith.constant 0 : index
    %12 = vector.load %arg1[%c0_13, %c1_14, %c1_15, %c0_16] : memref<1x20x20x4xf32, #tpu.memory_space<vmem>>, vector<1x18x18x4xf32>
    %13 = vector.shape_cast %12 : vector<1x18x18x4xf32> to vector<18x18x4xf32>
    %14 = vector.shape_cast %13 : vector<18x18x4xf32> to vector<324x4xf32>
    %c0_17 = arith.constant 0 : index
    %c1_18 = arith.constant 1 : index
    %c2_19 = arith.constant 2 : index
    %c0_20 = arith.constant 0 : index
    %15 = vector.load %arg1[%c0_17, %c1_18, %c2_19, %c0_20] : memref<1x20x20x4xf32, #tpu.memory_space<vmem>>, vector<1x18x18x4xf32>
    %16 = vector.shape_cast %15 : vector<1x18x18x4xf32> to vector<18x18x4xf32>
    %17 = vector.shape_cast %16 : vector<18x18x4xf32> to vector<324x4xf32>
    %c0_21 = arith.constant 0 : index
    %c2_22 = arith.constant 2 : index
    %c0_23 = arith.constant 0 : index
    %c0_24 = arith.constant 0 : index
    %18 = vector.load %arg1[%c0_21, %c2_22, %c0_23, %c0_24] : memref<1x20x20x4xf32, #tpu.memory_space<vmem>>, vector<1x18x18x4xf32>
    %19 = vector.shape_cast %18 : vector<1x18x18x4xf32> to vector<18x18x4xf32>
    %20 = vector.shape_cast %19 : vector<18x18x4xf32> to vector<324x4xf32>
    %c0_25 = arith.constant 0 : index
    %c2_26 = arith.constant 2 : index
    %c1_27 = arith.constant 1 : index
    %c0_28 = arith.constant 0 : index
    %21 = vector.load %arg1[%c0_25, %c2_26, %c1_27, %c0_28] : memref<1x20x20x4xf32, #tpu.memory_space<vmem>>, vector<1x18x18x4xf32>
    %22 = vector.shape_cast %21 : vector<1x18x18x4xf32> to vector<18x18x4xf32>
    %23 = vector.shape_cast %22 : vector<18x18x4xf32> to vector<324x4xf32>
    %c0_29 = arith.constant 0 : index
    %c2_30 = arith.constant 2 : index
    %c2_31 = arith.constant 2 : index
    %c0_32 = arith.constant 0 : index
    %24 = vector.load %arg1[%c0_29, %c2_30, %c2_31, %c0_32] : memref<1x20x20x4xf32, #tpu.memory_space<vmem>>, vector<1x18x18x4xf32>
    %25 = vector.shape_cast %24 : vector<1x18x18x4xf32> to vector<18x18x4xf32>
    %26 = vector.shape_cast %25 : vector<18x18x4xf32> to vector<324x4xf32>
    %27 = tpu.concatenate %2, %5, %8, %11, %14, %17, %20, %23, %26 in 1 : vector<324x4xf32>, vector<324x4xf32>, vector<324x4xf32>, vector<324x4xf32>, vector<324x4xf32>, vector<324x4xf32>, vector<324x4xf32>, vector<324x4xf32>, vector<324x4xf32> -> vector<324x36xf32>
    %c0_33 = arith.constant 0 : index
    %c0_34 = arith.constant 0 : index
    %28 = vector.load %arg2[%c0_33, %c0_34] : memref<36x4xf32, #tpu.memory_space<vmem>>, vector<36x4xf32>
    %cst = arith.constant dense<0.000000e+00> : vector<324x4xf32>
    %29 = tpu.matmul %27, %28, %cst {dimension_numbers = #tpu.dot_dimension_numbers<[1], [0], [0], [1], [0, 0, 1, 1], [], []>} : vector<324x36xf32>, vector<36x4xf32>, vector<324x4xf32> -> vector<324x4xf32>
    %c0_35 = arith.constant 0 : index
    %c0_36 = arith.constant 0 : index
    %30 = vector.load %arg3[%c0_35, %c0_36] : memref<1x4xf32, #tpu.memory_space<vmem>>, vector<1x4xf32>
    %31 = vector.broadcast %30 : vector<1x4xf32> to vector<324x4xf32>
    %32 = arith.addf %29, %31 : vector<324x4xf32>
    %cst_37 = arith.constant 0.000000e+00 : f32
    %33 = vector.broadcast %cst_37 : f32 to vector<324x4xf32>
    %34 = arith.maximumf %32, %33 : vector<324x4xf32>
    %35 = vector.shape_cast %34 : vector<324x4xf32> to vector<18x18x4xf32>
    %36 = tpu.iota {dimensions = array<i32: 0>} : vector<18x18x1xi32>
    %37 = tpu.iota {dimensions = array<i32: 1>} : vector<18x18x1xi32>
    %c1_i32 = arith.constant 1 : i32
    %38 = vector.broadcast %c1_i32 : i32 to vector<18x18x1xi32>
    %39 = arith.cmpi sge, %36, %38 : vector<18x18x1xi32>
    %c16_i32 = arith.constant 16 : i32
    %40 = vector.broadcast %c16_i32 : i32 to vector<18x18x1xi32>
    %41 = arith.cmpi sle, %36, %40 : vector<18x18x1xi32>
    %42 = arith.andi %39, %41 : vector<18x18x1xi1>
    %c1_i32_38 = arith.constant 1 : i32
    %43 = vector.broadcast %c1_i32_38 : i32 to vector<18x18x1xi32>
    %44 = arith.cmpi sge, %37, %43 : vector<18x18x1xi32>
    %45 = arith.andi %42, %44 : vector<18x18x1xi1>
    %c16_i32_39 = arith.constant 16 : i32
    %46 = vector.broadcast %c16_i32_39 : i32 to vector<18x18x1xi32>
    %47 = arith.cmpi sle, %37, %46 : vector<18x18x1xi32>
    %48 = arith.andi %45, %47 : vector<18x18x1xi1>
    %cst_40 = arith.constant 0.000000e+00 : f32
    %49 = vector.shape_cast %48 : vector<18x18x1xi1> to vector<18x18x1xi1>
    %50 = vector.broadcast %49 : vector<18x18x1xi1> to vector<18x18x4xi1>
    %51 = vector.broadcast %cst_40 : f32 to vector<18x18x4xf32>
    %52 = arith.select %50, %35, %51 : vector<18x18x4xi1>, vector<18x18x4xf32>
    %53 = vector.extract_strided_slice %52 {offsets = [0, 0, 0], sizes = [16, 16, 4], strides = [1, 1, 1]} : vector<18x18x4xf32> to vector<16x16x4xf32>
    %54 = vector.shape_cast %53 : vector<16x16x4xf32> to vector<256x4xf32>
    %55 = vector.extract_strided_slice %52 {offsets = [0, 1, 0], sizes = [16, 16, 4], strides = [1, 1, 1]} : vector<18x18x4xf32> to vector<16x16x4xf32>
    %56 = vector.shape_cast %55 : vector<16x16x4xf32> to vector<256x4xf32>
    %57 = vector.extract_strided_slice %52 {offsets = [0, 2, 0], sizes = [16, 16, 4], strides = [1, 1, 1]} : vector<18x18x4xf32> to vector<16x16x4xf32>
    %58 = vector.shape_cast %57 : vector<16x16x4xf32> to vector<256x4xf32>
    %59 = vector.extract_strided_slice %52 {offsets = [1, 0, 0], sizes = [16, 16, 4], strides = [1, 1, 1]} : vector<18x18x4xf32> to vector<16x16x4xf32>
    %60 = vector.shape_cast %59 : vector<16x16x4xf32> to vector<256x4xf32>
    %61 = vector.extract_strided_slice %52 {offsets = [1, 1, 0], sizes = [16, 16, 4], strides = [1, 1, 1]} : vector<18x18x4xf32> to vector<16x16x4xf32>
    %62 = vector.shape_cast %61 : vector<16x16x4xf32> to vector<256x4xf32>
    %63 = vector.extract_strided_slice %52 {offsets = [1, 2, 0], sizes = [16, 16, 4], strides = [1, 1, 1]} : vector<18x18x4xf32> to vector<16x16x4xf32>
    %64 = vector.shape_cast %63 : vector<16x16x4xf32> to vector<256x4xf32>
    %65 = vector.extract_strided_slice %52 {offsets = [2, 0, 0], sizes = [16, 16, 4], strides = [1, 1, 1]} : vector<18x18x4xf32> to vector<16x16x4xf32>
    %66 = vector.shape_cast %65 : vector<16x16x4xf32> to vector<256x4xf32>
    %67 = vector.extract_strided_slice %52 {offsets = [2, 1, 0], sizes = [16, 16, 4], strides = [1, 1, 1]} : vector<18x18x4xf32> to vector<16x16x4xf32>
    %68 = vector.shape_cast %67 : vector<16x16x4xf32> to vector<256x4xf32>
    %69 = vector.extract_strided_slice %52 {offsets = [2, 2, 0], sizes = [16, 16, 4], strides = [1, 1, 1]} : vector<18x18x4xf32> to vector<16x16x4xf32>
    %70 = vector.shape_cast %69 : vector<16x16x4xf32> to vector<256x4xf32>
    %71 = tpu.concatenate %54, %56, %58, %60, %62, %64, %66, %68, %70 in 1 : vector<256x4xf32>, vector<256x4xf32>, vector<256x4xf32>, vector<256x4xf32>, vector<256x4xf32>, vector<256x4xf32>, vector<256x4xf32>, vector<256x4xf32>, vector<256x4xf32> -> vector<256x36xf32>
    %c0_41 = arith.constant 0 : index
    %c0_42 = arith.constant 0 : index
    %72 = vector.load %arg4[%c0_41, %c0_42] : memref<36x4xf32, #tpu.memory_space<vmem>>, vector<36x4xf32>
    %cst_43 = arith.constant dense<0.000000e+00> : vector<256x4xf32>
    %73 = tpu.matmul %71, %72, %cst_43 {dimension_numbers = #tpu.dot_dimension_numbers<[1], [0], [0], [1], [0, 0, 1, 1], [], []>} : vector<256x36xf32>, vector<36x4xf32>, vector<256x4xf32> -> vector<256x4xf32>
    %c0_44 = arith.constant 0 : index
    %c2_45 = arith.constant 2 : index
    %c2_46 = arith.constant 2 : index
    %c0_47 = arith.constant 0 : index
    %74 = vector.load %arg1[%c0_44, %c2_45, %c2_46, %c0_47] : memref<1x20x20x4xf32, #tpu.memory_space<vmem>>, vector<1x16x16x4xf32>
    %75 = vector.shape_cast %74 : vector<1x16x16x4xf32> to vector<16x16x4xf32>
    %76 = vector.shape_cast %75 : vector<16x16x4xf32> to vector<256x4xf32>
    %c0_48 = arith.constant 0 : index
    %c0_49 = arith.constant 0 : index
    %77 = vector.load %arg5[%c0_48, %c0_49] : memref<1x4xf32, #tpu.memory_space<vmem>>, vector<1x4xf32>
    %78 = vector.broadcast %77 : vector<1x4xf32> to vector<256x4xf32>
    %79 = arith.addf %73, %78 : vector<256x4xf32>
    %80 = arith.addf %79, %76 : vector<256x4xf32>
    %cst_50 = arith.constant 0.000000e+00 : f32
    %81 = vector.broadcast %cst_50 : f32 to vector<256x4xf32>
    %82 = arith.maximumf %80, %81 : vector<256x4xf32>
    %c0_51 = arith.constant 0 : index
    %c0_52 = arith.constant 0 : index
    %c0_53 = arith.constant 0 : index
    %83 = vector.load %arg6[%c0_51, %c0_52, %c0_53] : memref<1x256x4xf32, #tpu.memory_space<vmem>>, vector<1x256x4xf32>
    %84 = vector.shape_cast %83 : vector<1x256x4xf32> to vector<256x4xf32>
    %85 = vector.shape_cast %82 : vector<256x4xf32> to vector<1x256x4xf32>
    tpu.vector_store %arg6[%c0_51, %c0_52, %c0_53], %85 {strides = array<i32>} : memref<1x256x4xf32, #tpu.memory_space<vmem>>, vector<1x256x4xf32>,
    return
  }
  func.func @transform_0(%arg0: i32) -> (i32, i32, i32, i32) {
    %c0_i32 = arith.constant 0 : i32
    %c0_i32_0 = arith.constant 0 : i32
    %c0_i32_1 = arith.constant 0 : i32
    %c0_i32_2 = arith.constant 0 : i32
    return %arg0, %c0_i32, %c0_i32_0, %c0_i32_1 : i32, i32, i32, i32
  }
  func.func @transform_1(%arg0: i32) -> (i32, i32) {
    %c0_i32 = arith.constant 0 : i32
    %c0_i32_0 = arith.constant 0 : i32
    %c0_i32_1 = arith.constant 0 : i32
    return %c0_i32, %c0_i32_0 : i32, i32
  }
  func.func @transform_2(%arg0: i32) -> (i32, i32) {
    %c0_i32 = arith.constant 0 : i32
    %c0_i32_0 = arith.constant 0 : i32
    %c0_i32_1 = arith.constant 0 : i32
    return %c0_i32, %c0_i32_0 : i32, i32
  }
  func.func @transform_3(%arg0: i32) -> (i32, i32) {
    %c0_i32 = arith.constant 0 : i32
    %c0_i32_0 = arith.constant 0 : i32
    %c0_i32_1 = arith.constant 0 : i32
    return %c0_i32, %c0_i32_0 : i32, i32
  }
  func.func @transform_4(%arg0: i32) -> (i32, i32) {
    %c0_i32 = arith.constant 0 : i32
    %c0_i32_0 = arith.constant 0 : i32
    %c0_i32_1 = arith.constant 0 : i32
    return %c0_i32, %c0_i32_0 : i32, i32
  }
  func.func @transform_5(%arg0: i32) -> (i32, i32, i32) {
    %c0_i32 = arith.constant 0 : i32
    %c0_i32_0 = arith.constant 0 : i32
    %c0_i32_1 = arith.constant 0 : i32
    return %arg0, %c0_i32, %c0_i32_0 : i32, i32, i32
  }
}

</mosaic_0001>

<bundles_post_ra>
// kernel: tpu_custom_call.1
= control target key start
LH: loop header
LB: loop body
LE: loop exit
PB: predicated region body
PF: predicated region fallthrough
CT: control target
= control target key end

     0   :  { %s8472_s18 = smov 0   ;;  %s13933_s0 = inlined_call_operand.vmem [shape: f32[2,20,20,4], index: 0, kind: input, shape index: {}]   ;;  %s13934_s1 = inlined_call_operand.vmem [shape: f32[36,4], index: 1, kind: input, shape index: {}]   ;;  %s13935_s2 = inlined_call_operand.vmem [shape: f32[1,4], index: 2, kind: input, shape index: {}]   ;;  %s13936_s3 = inlined_call_operand.vmem [shape: f32[36,4], index: 3, kind: input, shape index: {}]   ;;  %s13937_s4 = inlined_call_operand.vmem [shape: f32[1,4], index: 4, kind: input, shape index: {}]   ;;  %s13938_s5 = inlined_call_operand.vmem [shape: f32[2,256,4], index: 5, kind: output, shape index: {}]  }
   0x1 LB: > { %s7931_s19 = sadd.s32 4294967295, %s8431_s18   ;;  %p7935_p0 = scmp.ge.s32.totalorder %s8431_s18, 1  ;;  %s8431_s18 = sphi %s8472_s18, %s15_s18  }
   0x2   : > { %p187_p1 = scmp.lt.s32.totalorder %s8431_s18, 3 }
   0x4   : > { %p188_p2 = pnand %p7935_p0, %p187_p1 }
   0x6   : > { %191 = sbr.rel (%p188_p2) target bundleno = 3120 (0xc30), region = 40 }
   0xb   : > { %v8433_v0 = vmov 0.0   ;;  %s8434_s20 = smov 28   ;;  %s8435_s21 = smov 4   ;;  %vm5555_vm0 = vcmask 1043456   ;;  %vm5086_vm1 = vcmask 31744   ;;  %vm5128_vm2 = vcmask 64512  }
   0xc   : > { %v8481_v1 = vrot.slane %v8433_v0, 1  ;;  %p215_p3 = scmp.lt.s32.totalorder %s7931_s19, 1  ;;  %s8436_s22 = smov 24   ;;  %vm5170_vm3 = vcmask 97280   ;;  %vm5212_vm4 = vcmask 130048   ;;  %vm5254_vm5 = vcmask 162816  }
   0xd   : > { %s8437_s27 = smov 8   ;;  %s8438_s28 = smov 12   ;;  %vm5296_vm6 = vcmask 195584   ;;  %vm5338_vm7 = vcmask 228352   ;;  %vm5380_vm8 = vcmask 261120   ;;  %vm5431_vm9 = vcmask 293888  }
   0xe   : > { %13953 = vst [vmem:[#allocation2_spill] sm:$0xff] %v8481_v1  ;;  %v8406_v2 = vpack.i.bf16 %v8481_v1, %v8481_v1  ;;  %7139 = vrot.lane.b32.xlu0 %v8481_v1, %s8434_s20  ;;  %s14572_s19 = smov (!%p215_p3, %s7931_s19), 1  ;;  %s8439_s29 = smov 16   ;;  %vm6396_vm11 = vcmask 1045504   ;;  %vm6315_vm12 = vcmask 1046528  }
   0xf   : > { %s8388_s23 = smul.u32 480, %s14572_s19  ;;  %s8440_s30 = smov 20  }
  0x10   : > { %8407 = vrot.lane.b32.xlu1 %v8406_v2, %s8435_s21  ;;  %s8441_s6 = smov 32   ;;  %s8372_s24 = sshll.u32 %s14572_s19, 8 }
  0x11   : > { %s8496_s26 = scalar_lea.vmem %s13933_s0, %s8388_s23  ;;  %s12966_s8 = scalar_lea.vmem %s13938_s5, %s8372_s24 }
  0x12   : > { %v226_v3 = vld [vmem:[%s8496_s26 + $0x8] sm:$0xff]  ;;  %v228_v7 = vld [vmem:[%s8496_s26 + $0x18] sm:$0xff]  ;;  %v8501_v8 = vld [vmem:[%s8496_s26 + $0x20] sm:$0xff] }
  0x13   : > { %v336_v4 = vrot.slane %v226_v3, 2  ;;  %v337_v5 = vrot.slane %v226_v3, 4  ;;  %v338_v6 = vrot.slane %v226_v3, 6  ;;  %2179 = vst [vmem:[#allocation1 + $0x20] ss:$4 sm:$0xff] %v226_v3  ;;  %v341_v9 = vrot.slane %v228_v7, 6 }
  0x14   : > { %v342_v10 = vrot.slane %v8501_v8, 2  ;;  %v343_v11 = vrot.slane %v8501_v8, 4  ;;  %v8509_v13 = vld [vmem:[%s8496_s26 + $0x30] sm:$0xff]  ;;  %v8512_v14 = vld [vmem:[%s8496_s26 + $0x38] sm:$0xff]  ;;  %v8521_v19 = vld [vmem:[%s8496_s26 + $0x48] sm:$0xff]  ;;  %v339_v35 = vrot.slane %v228_v7, 2 }
  0x15   : > { %2181 = vst [vmem:[#allocation1 + $0x21] ss:$4 sm:$0xff] %v336_v4  ;;  %v346_v15 = vrot.slane %v8509_v13, 4  ;;  %v347_v16 = vrot.slane %v8509_v13, 6  ;;  %v348_v17 = vrot.slane %v8512_v14, 2  ;;  %v351_v20 = vrot.slane %v8521_v19, 2 }
  0x16   : > { %2183 = vst [vmem:[#allocation1 + $0x22] ss:$4 sm:$0xff] %v337_v5  ;;  %v352_v21 = vrot.slane %v8521_v19, 4  ;;  %v353_v22 = vrot.slane %v8521_v19, 6  ;;  %v225_v23 = vld [vmem:[%s8496_s26] sm:$0xff]  ;;  %v8530_v25 = vld [vmem:[%s8496_s26 + $0x50] sm:$0xff] }
  0x17   : > { %2185 = vst [vmem:[#allocation1 + $0x23] ss:$4 sm:$0xff] %v338_v6  ;;  %v333_v26 = vrot.slane %v225_v23, 2  ;;  %v334_v27 = vrot.slane %v225_v23, 4  ;;  %v335_v28 = vrot.slane %v225_v23, 6  ;;  %v237_v29 = vld [vmem:[%s8496_s26 + $0x60] sm:$0xff] }
  0x18   : > { %8417 = vrot.lane.b32.xlu1 %v8433_v0, %s8436_s22  ;;  %2171 = vst [vmem:[#allocation1] ss:$4 sm:$0xff] %v225_v23  ;;  %v357_v30 = vrot.slane %v237_v29, 2  ;;  %v358_v31 = vrot.slane %v237_v29, 4  ;;  %v359_v32 = vrot.slane %v237_v29, 6  ;;  %v340_v36 = vrot.slane %v228_v7, 4 }
  0x19   : > { %2173 = vst [vmem:[#allocation1 + $0x1] ss:$4 sm:$0xff] %v333_v26  ;;  %v227_v34 = vld [vmem:[%s8496_s26 + $0x10] sm:$0x3]  ;;  %v8540_v38 = vld [vmem:[%s8496_s26 + $0x78] sm:$0xff]  ;;  %v344_v43 = vrot.slane %v8501_v8, 6 }
  0x1a   : > { %2175 = vst [vmem:[#allocation1 + $0x2] ss:$4 sm:$0xff] %v334_v27  ;;  %v239_v39 = vld [vmem:[%s8496_s26 + $0x70] sm:$0x3]  ;;  %v363_v40 = vrot.slane %v8540_v38, 2  ;;  %v364_v41 = vrot.slane %v8540_v38, 4 }
  0x1b   : > { %2177 = vst [vmem:[#allocation1 + $0x3] ss:$4 sm:$0xff] %v335_v28  ;;  %v230_v44 = vld [vmem:[%s8496_s26 + $0x28] sm:$0x3]  ;;  %v345_v45 = vrot.slane %v8509_v13, 2  ;;  %v8554_v47 = vld [vmem:[%s8496_s26 + $0x80] sm:$0xff] }
  0x1c   : > { %v8558_v48 = vld [vmem:[%s8496_s26 + $0x90] sm:$0xff]  ;;  %v368_v49 = vrot.slane %v8554_v47, 6  ;;  %v242_v50 = vld [vmem:[%s8496_s26 + $0x88] sm:$0x3]  ;;  %v349_v53 = vrot.slane %v8512_v14, 4  ;;  %v350_v54 = vrot.slane %v8512_v14, 6 }
  0x1d   : > { %v369_v51 = vrot.slane %v8558_v48, 2  ;;  %v233_v55 = vld [vmem:[%s8496_s26 + $0x40] sm:$0x3]  ;;  %v8572_v57 = vld [vmem:[%s8496_s26 + $0x98] sm:$0xff]  ;;  %v8581_v62 = vld [vmem:[%s8496_s26 + $0xa8] sm:$0xff]  ;;  %v354_v63 = vrot.slane %v8530_v25, 2 }
  0x1e   : > { %v8505_v12 = vld.sshfl [vmem:[#allocation1 + $0x20] sm:$0xff pattern:$0x73625140]  ;;  %v373_v58 = vrot.slane %v8572_v57, 4  ;;  %v374_v59 = vrot.slane %v8572_v57, 6  ;;  %v355_v2 = vrot.slane %v8530_v25, 4 }
  0x1f   : > { %2192 = vst [vmem:[#allocation1 + $0x20] ss:$4 sm:$0xff] %v341_v9  ;;  %v245_v60 = vld [vmem:[%s8496_s26 + $0xa0] sm:$0x3]  ;;  %v356_v3 = vrot.slane %v8530_v25, 6  ;;  %v8591_v6 = vld [vmem:[%s8496_s26 + $0xb0] sm:$0xff] }
  0x20   : > { %2193 = vst [vmem:[#allocation1 + $0x21] ss:$4 sm:$0xff] %v8501_v8  ;;  %v236_v5 = vld [vmem:[%s8496_s26 + $0x58] sm:$0x3]  ;;  %v379_v8 = vrot.slane %v8591_v6, 4  ;;  %v238_v9 = vld [vmem:[%s8496_s26 + $0x68] sm:$0xff] }
  0x21   : > { %2194 = vst [vmem:[#allocation1 + $0x22] ss:$4 sm:$0xff] %v342_v10  ;;  %v380_v10 = vrot.slane %v8591_v6, 6  ;;  %v366_v26 = vrot.slane %v8554_v47, 2  ;;  %v367_v27 = vrot.slane %v8554_v47, 4 }
  0x22   : > { %2195 = vst [vmem:[#allocation1 + $0x23] ss:$4 sm:$0xff] %v343_v11  ;;  %v8537_v37 = vld.sshfl [vmem:[#allocation1] sm:$0xff pattern:$0x73625140] }
  0x23   : > { %2188 = vst [vmem:[#allocation1] ss:$4 sm:$0xff] %v227_v34 }
  0x24   : > { %2189 = vst [vmem:[#allocation1 + $0x1] ss:$4 sm:$0xff] %v228_v7  ;;  %v378_v7 = vrot.slane %v8591_v6, 2 }
  0x25   : > { %2190 = vst [vmem:[#allocation1 + $0x2] ss:$4 sm:$0xff] %v339_v35 }
  0x26   : > { %2191 = vst [vmem:[#allocation1 + $0x3] ss:$4 sm:$0xff] %v340_v36  ;;  %v370_v36 = vrot.slane %v8558_v48, 4 }
  0x29   : > { %v8517_v18 = vld.sshfl [vmem:[#allocation1 + $0x20] sm:$0xff pattern:$0x73625140] }
  0x2a   : > { %2202 = vst [vmem:[#allocation1 + $0x20] ss:$4 sm:$0xff] %v346_v15  ;;  %v361_v15 = vrot.slane %v238_v9, 4 }
  0x2b   : > { %2203 = vst [vmem:[#allocation1 + $0x21] ss:$4 sm:$0xff] %v347_v16  ;;  %v362_v16 = vrot.slane %v238_v9, 6 }
  0x2c   : > { %2204 = vst [vmem:[#allocation1 + $0x22] ss:$4 sm:$0xff] %v8512_v14  ;;  %v360_v14 = vrot.slane %v238_v9, 2 }
  0x2d   : > { %2205 = vst [vmem:[#allocation1 + $0x23] ss:$4 sm:$0xff] %v348_v17  ;;  %v8551_v46 = vld.sshfl [vmem:[#allocation1] sm:$0xff pattern:$0x73625140] }
  0x2e   : > { %2198 = vst [vmem:[#allocation1] ss:$4 sm:$0xff] %v344_v43  ;;  %v8633_v43 = vld [vmem:[%s8496_s26 + $0xf8] sm:$0xff] }
  0x2f   : > { %2199 = vst [vmem:[#allocation1 + $0x1] ss:$4 sm:$0xff] %v230_v44 }
  0x30   : > { %2200 = vst [vmem:[#allocation1 + $0x2] ss:$4 sm:$0xff] %v8509_v13  ;;  %v248_v13 = vld [vmem:[%s8496_s26 + $0xb8] sm:$0x3] }
  0x31   : > { %2201 = vst [vmem:[#allocation1 + $0x3] ss:$4 sm:$0xff] %v345_v45 }
  0x34   : > { %v8527_v24 = vld.sshfl [vmem:[#allocation1 + $0x20] sm:$0xff pattern:$0x73625140] }
  0x35   : > { %2212 = vst [vmem:[#allocation1 + $0x20] ss:$4 sm:$0xff] %v351_v20 }
  0x36   : > { %2213 = vst [vmem:[#allocation1 + $0x21] ss:$4 sm:$0xff] %v352_v21 }
  0x37   : > { %2214 = vst [vmem:[#allocation1 + $0x22] ss:$4 sm:$0xff] %v353_v22 }
  0x38   : > { %2215 = vst [vmem:[#allocation1 + $0x23] ss:$4 sm:$0xff] %v8530_v25  ;;  %v8569_v56 = vld.sshfl [vmem:[#allocation1] sm:$0xff pattern:$0x73625140]  ;;  %v365_v25 = vrot.slane %v8540_v38, 6 }
  0x39   : > { %2208 = vst [vmem:[#allocation1] ss:$4 sm:$0xff] %v349_v53 }
  0x3a   : > { %2209 = vst [vmem:[#allocation1 + $0x1] ss:$4 sm:$0xff] %v350_v54  ;;  %v8647_v54 = vld [vmem:[%s8496_s26 + $0x108] sm:$0xff] }
  0x3b   : > { %2210 = vst [vmem:[#allocation1 + $0x2] ss:$4 sm:$0xff] %v233_v55  ;;  %v399_v55 = vrot.slane %v8647_v54, 2 }
  0x3c   : > { %2211 = vst [vmem:[#allocation1 + $0x3] ss:$4 sm:$0xff] %v8521_v19  ;;  %v250_v19 = vld [vmem:[%s8496_s26 + $0xc8] sm:$0xff] }
  0x3d   : > { %v384_v20 = vrot.slane %v250_v19, 2  ;;  %v385_v21 = vrot.slane %v250_v19, 4  ;;  %v386_v22 = vrot.slane %v250_v19, 6 }
  0x3f   : > { %v8534_v33 = vld.sshfl [vmem:[#allocation1 + $0x20] sm:$0xff pattern:$0x73625140] }
  0x40   : > { %13954 = vst [vmem:[#allocation3_spill] sm:$0xff] %v8534_v33 }
  0x41   : > { %2222 = vst [vmem:[#allocation1 + $0x20] ss:$4 sm:$0xff] %v237_v29  ;;  %v8611_v29 = vld [vmem:[%s8496_s26 + $0xd8] sm:$0xff] }
  0x42   : > { %2223 = vst [vmem:[#allocation1 + $0x21] ss:$4 sm:$0xff] %v357_v30  ;;  %v8615_v30 = vld [vmem:[%s8496_s26 + $0xe0] sm:$0xff] }
  0x43   : > { %2224 = vst [vmem:[#allocation1 + $0x22] ss:$4 sm:$0xff] %v358_v31  ;;  %v8587_v4 = vld.sshfl [vmem:[#allocation1] sm:$0xff pattern:$0x73625140]  ;;  %v389_v31 = vrot.slane %v8611_v29, 6 }
  0x44   : > { %2225 = vst [vmem:[#allocation1 + $0x23] ss:$4 sm:$0xff] %v359_v32  ;;  %v390_v32 = vrot.slane %v8615_v30, 2  ;;  %v391_v34 = vrot.slane %v8615_v30, 4 }
  0x45   : > { %13958 = vst [vmem:[#allocation7_spill] sm:$0xff] %v8587_v4 }
  0x46   : > { %2218 = vst [vmem:[#allocation1] ss:$4 sm:$0xff] %v354_v63 }
  0x47   : > { %2219 = vst [vmem:[#allocation1 + $0x1] ss:$4 sm:$0xff] %v355_v2 }
  0x48   : > { %2220 = vst [vmem:[#allocation1 + $0x2] ss:$4 sm:$0xff] %v356_v3 }
  0x49   : > { %2221 = vst [vmem:[#allocation1 + $0x3] ss:$4 sm:$0xff] %v236_v5 }
  0x4b   : > { %v8545_v42 = vld.sshfl [vmem:[#allocation1 + $0x20] sm:$0xff pattern:$0x73625140] }
  0x4c   : > { %13955 = vst [vmem:[#allocation4_spill] sm:$0xff] %v8545_v42 }
  0x4d   : > { %2232 = vst [vmem:[#allocation1 + $0x20] ss:$4 sm:$0xff] %v239_v39  ;;  %v372_v39 = vrot.slane %v8572_v57, 2 }
  0x4e   : > { %2233 = vst [vmem:[#allocation1 + $0x21] ss:$4 sm:$0xff] %v8540_v38  ;;  %v371_v38 = vrot.slane %v8558_v48, 6 }
  0x4f   : > { %2234 = vst [vmem:[#allocation1 + $0x22] ss:$4 sm:$0xff] %v363_v40 }
  0x50   : > { %2235 = vst [vmem:[#allocation1 + $0x23] ss:$4 sm:$0xff] %v364_v41  ;;  %v8600_v17 = vld.sshfl [vmem:[#allocation1] sm:$0xff pattern:$0x73625140]  ;;  %v8629_v41 = vld [vmem:[%s8496_s26 + $0xf0] sm:$0xff] }
  0x51   : > { %13960 = vst [vmem:[#allocation9_spill] sm:$0xff] %v8600_v17  ;;  %v394_v44 = vrot.slane %v8629_v41, 4  ;;  %v395_v45 = vrot.slane %v8629_v41, 6 }
  0x52   : > { %2228 = vst [vmem:[#allocation1] ss:$4 sm:$0xff] %v238_v9 }
  0x53   : > { %2229 = vst [vmem:[#allocation1 + $0x1] ss:$4 sm:$0xff] %v360_v14  ;;  %v387_v14 = vrot.slane %v8611_v29, 2 }
  0x54   : > { %2230 = vst [vmem:[#allocation1 + $0x2] ss:$4 sm:$0xff] %v361_v15  ;;  %v388_v15 = vrot.slane %v8611_v29, 4 }
  0x55   : > { %2231 = vst [vmem:[#allocation1 + $0x3] ss:$4 sm:$0xff] %v362_v16 }
  0x57   : > { %v8563_v52 = vld.sshfl [vmem:[#allocation1 + $0x20] sm:$0xff pattern:$0x73625140] }
  0x58   : > { %13956 = vst [vmem:[#allocation5_spill] sm:$0xff] %v8563_v52 }
  0x59   : > { %2242 = vst [vmem:[#allocation1 + $0x20] ss:$4 sm:$0xff] %v368_v49  ;;  %v375_v49 = vrot.slane %v8581_v62, 2 }
  0x5a   : > { %2243 = vst [vmem:[#allocation1 + $0x21] ss:$4 sm:$0xff] %v242_v50  ;;  %v376_v50 = vrot.slane %v8581_v62, 4 }
  0x5b   : > { %2244 = vst [vmem:[#allocation1 + $0x22] ss:$4 sm:$0xff] %v8558_v48 }
  0x5c   : > { %2245 = vst [vmem:[#allocation1 + $0x23] ss:$4 sm:$0xff] %v369_v51  ;;  %v8608_v28 = vld.sshfl [vmem:[#allocation1] sm:$0xff pattern:$0x73625140]  ;;  %v377_v51 = vrot.slane %v8581_v62, 6 }
  0x5d   : > { %13962 = vst [vmem:[#allocation11_spill] sm:$0xff] %v8608_v28 }
  0x5e   : > { %2238 = vst [vmem:[#allocation1] ss:$4 sm:$0xff] %v365_v25 }
  0x5f   : > { %2239 = vst [vmem:[#allocation1 + $0x1] ss:$4 sm:$0xff] %v8554_v47  ;;  %v396_v47 = vrot.slane %v8633_v43, 2 }
  0x60   : > { %2240 = vst [vmem:[#allocation1 + $0x2] ss:$4 sm:$0xff] %v366_v26  ;;  %v392_v26 = vrot.slane %v8615_v30, 6 }
  0x61   : > { %2241 = vst [vmem:[#allocation1 + $0x3] ss:$4 sm:$0xff] %v367_v27  ;;  %v254_v27 = vld [vmem:[%s8496_s26 + $0xe8] sm:$0x3] }
  0x63   : > { %v8578_v61 = vld.sshfl [vmem:[#allocation1 + $0x20] sm:$0xff pattern:$0x73625140] }
  0x64   : > { %13957 = vst [vmem:[#allocation6_spill] sm:$0xff] %v8578_v61  ;;  %v8083_v61 = vld [vmem:[%s8496_s26 + $0x13a] sm:$0xff] }
  0x65   : > { %2252 = vst [vmem:[#allocation1 + $0x20] ss:$4 sm:$0xff] %v373_v58  ;;  %v249_v58 = vld [vmem:[%s8496_s26 + $0xc0] sm:$0xff] }
  0x66   : > { %2253 = vst [vmem:[#allocation1 + $0x21] ss:$4 sm:$0xff] %v374_v59  ;;  %v401_v59 = vrot.slane %v8647_v54, 6  ;;  %v381_v63 = vrot.slane %v249_v58, 2  ;;  %v382_v2 = vrot.slane %v249_v58, 4  ;;  %v383_v3 = vrot.slane %v249_v58, 6 }
  0x67   : > { %2254 = vst [vmem:[#allocation1 + $0x22] ss:$4 sm:$0xff] %v245_v60 }
  0x68   : > { %2255 = vst [vmem:[#allocation1 + $0x23] ss:$4 sm:$0xff] %v8581_v62  ;;  %v8626_v40 = vld.sshfl [vmem:[#allocation1] sm:$0xff pattern:$0x73625140]  ;;  %v8657_v62 = vld [vmem:[%s8496_s26 + $0x110] sm:$0xff] }
  0x69   : > { %13964 = vst [vmem:[#allocation13_spill] sm:$0xff] %v8626_v40  ;;  %v8096_v40 = vld [vmem:[%s8496_s26 + $0x1a2] sm:$0xff] }
  0x6a   : > { %2248 = vst [vmem:[#allocation1] ss:$4 sm:$0xff] %v370_v36  ;;  %v266_v36 = vld [vmem:[%s8496_s26 + $0x148] sm:$0x3] }
  0x6b   : > { %2249 = vst [vmem:[#allocation1 + $0x1] ss:$4 sm:$0xff] %v371_v38 }
  0x6c   : > { %2250 = vst [vmem:[#allocation1 + $0x2] ss:$4 sm:$0xff] %v8572_v57  ;;  %v400_v57 = vrot.slane %v8647_v54, 4 }
  0x6d   : > { %2251 = vst [vmem:[#allocation1 + $0x3] ss:$4 sm:$0xff] %v372_v39 }
  0x6f   : > { %v8597_v11 = vld.sshfl [vmem:[#allocation1 + $0x20] sm:$0xff pattern:$0x73625140] }
  0x70   : > { %13959 = vst [vmem:[#allocation8_spill] sm:$0xff] %v8597_v11  ;;  %v8055_v11 = vld [vmem:[%s8496_s26 + $0x5a] sm:$0x3] }
  0x71   : > { %2262 = vst [vmem:[#allocation1 + $0x20] ss:$4 sm:$0xff] %v378_v7 }
  0x72   : > { %2263 = vst [vmem:[#allocation1 + $0x21] ss:$4 sm:$0xff] %v379_v8 }
  0x73   : > { %2264 = vst [vmem:[#allocation1 + $0x22] ss:$4 sm:$0xff] %v380_v10 }
  0x74   : > { %2265 = vst [vmem:[#allocation1 + $0x23] ss:$4 sm:$0xff] %v248_v13  ;;  %v8644_v53 = vld.sshfl [vmem:[#allocation1] sm:$0xff pattern:$0x73625140] }
  0x75   : > { %13966 = vst [vmem:[#allocation15_spill] sm:$0xff] %v8644_v53  ;;  %v251_v13 = vld [vmem:[%s8496_s26 + $0xd0] sm:$0x3] }
  0x76   : > { %2258 = vst [vmem:[#allocation1] ss:$4 sm:$0xff] %v375_v49  ;;  %v8704_v49 = vld [vmem:[%s8496_s26 + $0x158] sm:$0xff]  ;;  %v10015_v53 = vld [vmem:[%s8496_s26 + $0x10a] sm:$0xff] }
  0x77   : > { %2259 = vst [vmem:[#allocation1 + $0x1] ss:$4 sm:$0xff] %v376_v50  ;;  %v421_v50 = vrot.slane %v8704_v49, 4 }
  0x78   : > { %2260 = vst [vmem:[#allocation1 + $0x2] ss:$4 sm:$0xff] %v377_v51  ;;  %v269_v51 = vld [vmem:[%s8496_s26 + $0x160] sm:$0x3] }
  0x79   : > { %2261 = vst [vmem:[#allocation1 + $0x3] ss:$4 sm:$0xff] %v8591_v6  ;;  %v261_v6 = vld [vmem:[%s8496_s26 + $0x120] sm:$0xff] }
  0x7a   : > { %v405_v7 = vrot.slane %v261_v6, 2  ;;  %v406_v8 = vrot.slane %v261_v6, 4  ;;  %v407_v9 = vrot.slane %v261_v6, 6 }
  0x7b   : > { %v8603_v23 = vld.sshfl [vmem:[#allocation1 + $0x20] sm:$0xff pattern:$0x73625140] }
  0x7c   : > { %13961 = vst [vmem:[#allocation10_spill] sm:$0xff] %v8603_v23 }
  0x7d   : > { %2272 = vst [vmem:[#allocation1 + $0x20] ss:$4 sm:$0xff] %v250_v19  ;;  %v8672_v19 = vld [vmem:[%s8496_s26 + $0x138] sm:$0xff] }
  0x7e   : > { %2273 = vst [vmem:[#allocation1 + $0x21] ss:$4 sm:$0xff] %v384_v20  ;;  %v263_v20 = vld [vmem:[%s8496_s26 + $0x130] sm:$0x3] }
  0x7f   : > { %2274 = vst [vmem:[#allocation1 + $0x22] ss:$4 sm:$0xff] %v385_v21  ;;  %v411_v21 = vrot.slane %v8672_v19, 2 }
  0x80   : > { %2275 = vst [vmem:[#allocation1 + $0x23] ss:$4 sm:$0xff] %v386_v22  ;;  %v8660_v5 = vld.sshfl [vmem:[#allocation1] sm:$0xff pattern:$0x73625140]  ;;  %v412_v22 = vrot.slane %v8672_v19, 4 }
  0x81   : > { %13968 = vst [vmem:[#allocation17_spill] sm:$0xff] %v8660_v5 }
  0x82   : > { %2268 = vst [vmem:[#allocation1] ss:$4 sm:$0xff] %v249_v58  ;;  %v402_v58 = vrot.slane %v8657_v62, 2 }
  0x83   : > { %2269 = vst [vmem:[#allocation1 + $0x1] ss:$4 sm:$0xff] %v381_v63  ;;  %v404_v63 = vrot.slane %v8657_v62, 6 }
  0x84   : > { %2270 = vst [vmem:[#allocation1 + $0x2] ss:$4 sm:$0xff] %v382_v2  ;;  %v260_v2 = vld [vmem:[%s8496_s26 + $0x118] sm:$0x3] }
  0x85   : > { %2271 = vst [vmem:[#allocation1 + $0x3] ss:$4 sm:$0xff] %v383_v3  ;;  %v8723_v3 = vld [vmem:[%s8496_s26 + $0x170] sm:$0xff] }
  0x87   : > { %v8620_v35 = vld.sshfl [vmem:[#allocation1 + $0x20] sm:$0xff pattern:$0x73625140] }
  0x88   : > { %13963 = vst [vmem:[#allocation12_spill] sm:$0xff] %v8620_v35 }
  0x89   : > { %2282 = vst [vmem:[#allocation1 + $0x20] ss:$4 sm:$0xff] %v389_v31 }
  0x8a   : > { %2283 = vst [vmem:[#allocation1 + $0x21] ss:$4 sm:$0xff] %v8615_v30 }
  0x8b   : > { %2284 = vst [vmem:[#allocation1 + $0x22] ss:$4 sm:$0xff] %v390_v32  ;;  %v8686_v32 = vld [vmem:[%s8496_s26 + $0x140] sm:$0xff] }
  0x8c   : > { %2285 = vst [vmem:[#allocation1 + $0x23] ss:$4 sm:$0xff] %v391_v34  ;;  %v8668_v16 = vld.sshfl [vmem:[#allocation1] sm:$0xff pattern:$0x73625140]  ;;  %v8690_v34 = vld [vmem:[%s8496_s26 + $0x150] sm:$0xff] }
  0x8d   : > { %13970 = vst [vmem:[#allocation19_spill] sm:$0xff] %v8668_v16  ;;  %v416_v30 = vrot.slane %v8686_v32, 6  ;;  %v417_v38 = vrot.slane %v8690_v34, 2 }
  0x8e   : > { %2278 = vst [vmem:[#allocation1] ss:$4 sm:$0xff] %v251_v13  ;;  %v272_v13 = vld [vmem:[%s8496_s26 + $0x178] sm:$0x3] }
  0x8f   : > { %2279 = vst [vmem:[#allocation1 + $0x1] ss:$4 sm:$0xff] %v8611_v29  ;;  %v393_v29 = vrot.slane %v8629_v41, 2 }
  0x90   : > { %2280 = vst [vmem:[#allocation1 + $0x2] ss:$4 sm:$0xff] %v387_v14 }
  0x91   : > { %2281 = vst [vmem:[#allocation1 + $0x3] ss:$4 sm:$0xff] %v388_v15 }
  0x93   : > { %v8638_v48 = vld.sshfl [vmem:[#allocation1 + $0x20] sm:$0xff pattern:$0x73625140] }
  0x94   : > { %13965 = vst [vmem:[#allocation14_spill] sm:$0xff] %v8638_v48 }
  0x95   : > { %2292 = vst [vmem:[#allocation1 + $0x20] ss:$4 sm:$0xff] %v394_v44  ;;  %v397_v44 = vrot.slane %v8633_v43, 4 }
  0x96   : > { %2293 = vst [vmem:[#allocation1 + $0x21] ss:$4 sm:$0xff] %v395_v45  ;;  %v398_v45 = vrot.slane %v8633_v43, 6 }
  0x97   : > { %2294 = vst [vmem:[#allocation1 + $0x22] ss:$4 sm:$0xff] %v8633_v43  ;;  %v422_v43 = vrot.slane %v8704_v49, 6 }
  0x98   : > { %2295 = vst [vmem:[#allocation1 + $0x23] ss:$4 sm:$0xff] %v396_v47  ;;  %v8683_v31 = vld.sshfl [vmem:[#allocation1] sm:$0xff pattern:$0x73625140] }
  0x99   : > { %13972 = vst [vmem:[#allocation21_spill] sm:$0xff] %v8683_v31  ;;  %v257_v47 = vld [vmem:[%s8496_s26 + $0x100] sm:$0x3] }
  0x9a   : > { %2288 = vst [vmem:[#allocation1] ss:$4 sm:$0xff] %v392_v26 }
  0x9b   : > { %2289 = vst [vmem:[#allocation1 + $0x1] ss:$4 sm:$0xff] %v254_v27 }
  0x9c   : > { %2290 = vst [vmem:[#allocation1 + $0x2] ss:$4 sm:$0xff] %v8629_v41 }
  0x9d   : > { %2291 = vst [vmem:[#allocation1 + $0x3] ss:$4 sm:$0xff] %v393_v29 }
  0x9f   : > { %v8654_v60 = vld.sshfl [vmem:[#allocation1 + $0x20] sm:$0xff pattern:$0x73625140] }
  0xa0   : > { %13967 = vst [vmem:[#allocation16_spill] sm:$0xff] %v8654_v60 }
  0xa1   : > { %2302 = vst [vmem:[#allocation1 + $0x20] ss:$4 sm:$0xff] %v399_v55 }
  0xa2   : > { %2303 = vst [vmem:[#allocation1 + $0x21] ss:$4 sm:$0xff] %v400_v57  ;;  %v8713_v57 = vld [vmem:[%s8496_s26 + $0x168] sm:$0xff] }
  0xa3   : > { %2304 = vst [vmem:[#allocation1 + $0x22] ss:$4 sm:$0xff] %v401_v59  ;;  %v403_v59 = vrot.slane %v8657_v62, 4 }
  0xa4   : > { %2305 = vst [vmem:[#allocation1 + $0x23] ss:$4 sm:$0xff] %v8657_v62  ;;  %v8701_v41 = vld.sshfl [vmem:[#allocation1] sm:$0xff pattern:$0x73625140]  ;;  %v428_v62 = vrot.slane %v8723_v3, 6 }
  0xa5   : > { %13974 = vst [vmem:[#allocation23_spill] sm:$0xff] %v8701_v41 }
  0xa6   : > { %2298 = vst [vmem:[#allocation1] ss:$4 sm:$0xff] %v397_v44  ;;  %v415_v44 = vrot.slane %v8686_v32, 4 }
  0xa7   : > { %2299 = vst [vmem:[#allocation1 + $0x1] ss:$4 sm:$0xff] %v398_v45 }
  0xa8   : > { %2300 = vst [vmem:[#allocation1 + $0x2] ss:$4 sm:$0xff] %v257_v47  ;;  %v8743_v47 = vld [vmem:[%s8496_s26 + $0x198] sm:$0xff] }
  0xa9   : > { %2301 = vst [vmem:[#allocation1 + $0x3] ss:$4 sm:$0xff] %v8647_v54 }
  0xab   : > { %v8663_v10 = vld.sshfl [vmem:[#allocation1 + $0x20] sm:$0xff pattern:$0x73625140] }
  0xac   : > { %13969 = vst [vmem:[#allocation18_spill] sm:$0xff] %v8663_v10 }
  0xad   : > { %2312 = vst [vmem:[#allocation1 + $0x20] ss:$4 sm:$0xff] %v261_v6  ;;  %v426_v6 = vrot.slane %v8723_v3, 2 }
  0xae   : > { %2313 = vst [vmem:[#allocation1 + $0x21] ss:$4 sm:$0xff] %v405_v7  ;;  %v427_v7 = vrot.slane %v8723_v3, 4 }
  0xaf   : > { %2314 = vst [vmem:[#allocation1 + $0x22] ss:$4 sm:$0xff] %v406_v8  ;;  %v262_v8 = vld [vmem:[%s8496_s26 + $0x128] sm:$0xff] }
  0xb0   : > { %2315 = vst [vmem:[#allocation1 + $0x23] ss:$4 sm:$0xff] %v407_v9  ;;  %v8719_v54 = vld.sshfl [vmem:[#allocation1] sm:$0xff pattern:$0x73625140]  ;;  %v408_v14 = vrot.slane %v262_v8, 2 }
  0xb1   : > { %13976 = vst [vmem:[#allocation25_spill] sm:$0xff] %v8719_v54  ;;  %v409_v15 = vrot.slane %v262_v8, 4  ;;  %v9864_v54 = vld [vmem:[%s8496_s26 + $0x62] sm:$0xff] }
  0xb2   : > { %2308 = vst [vmem:[#allocation1] ss:$4 sm:$0xff] %v402_v58 }
  0xb3   : > { %2309 = vst [vmem:[#allocation1 + $0x1] ss:$4 sm:$0xff] %v403_v59  ;;  %v418_v59 = vrot.slane %v8690_v34, 4 }
  0xb4   : > { %2310 = vst [vmem:[#allocation1 + $0x2] ss:$4 sm:$0xff] %v404_v63  ;;  %v419_v63 = vrot.slane %v8690_v34, 6 }
  0xb5   : > { %2311 = vst [vmem:[#allocation1 + $0x3] ss:$4 sm:$0xff] %v260_v2 }
  0xb7   : > { %v8677_v25 = vld.sshfl [vmem:[#allocation1 + $0x20] sm:$0xff pattern:$0x73625140] }
  0xb8   : > { %13971 = vst [vmem:[#allocation20_spill] sm:$0xff] %v8677_v25 }
  0xb9   : > { %2322 = vst [vmem:[#allocation1 + $0x20] ss:$4 sm:$0xff] %v263_v20  ;;  %v410_v20 = vrot.slane %v262_v8, 6 }
  0xba   : > { %2323 = vst [vmem:[#allocation1 + $0x21] ss:$4 sm:$0xff] %v8672_v19 }
  0xbb   : > { %2324 = vst [vmem:[#allocation1 + $0x22] ss:$4 sm:$0xff] %v411_v21 }
  0xbc   : > { %2325 = vst [vmem:[#allocation1 + $0x23] ss:$4 sm:$0xff] %v412_v22  ;;  %v8732_v21 = vld.sshfl [vmem:[#allocation1] sm:$0xff pattern:$0x73625140]  ;;  %v274_v22 = vld [vmem:[%s8496_s26 + $0x188] sm:$0xff] }
  0xbd   : > { %13978 = vst [vmem:[#allocation27_spill] sm:$0xff] %v8732_v21  ;;  %v432_v26 = vrot.slane %v274_v22, 2  ;;  %v433_v27 = vrot.slane %v274_v22, 4  ;;  %v434_v29 = vrot.slane %v274_v22, 6  ;;  %v9843_v21 = vld [vmem:[%s8496_s26 + $0x4a] sm:$0xff] }
  0xbe   : > { %2318 = vst [vmem:[#allocation1] ss:$4 sm:$0xff] %v262_v8 }
  0xbf   : > { %2319 = vst [vmem:[#allocation1 + $0x1] ss:$4 sm:$0xff] %v408_v14  ;;  %v424_v14 = vrot.slane %v8713_v57, 4 }
  0xc0   : > { %2320 = vst [vmem:[#allocation1 + $0x2] ss:$4 sm:$0xff] %v409_v15  ;;  %v425_v15 = vrot.slane %v8713_v57, 6 }
  0xc1   : > { %2321 = vst [vmem:[#allocation1 + $0x3] ss:$4 sm:$0xff] %v410_v20 }
  0xc3   : > { %v8695_v39 = vld.sshfl [vmem:[#allocation1 + $0x20] sm:$0xff pattern:$0x73625140] }
  0xc4   : > { %13973 = vst [vmem:[#allocation22_spill] sm:$0xff] %v8695_v39 }
  0xc5   : > { %2332 = vst [vmem:[#allocation1 + $0x20] ss:$4 sm:$0xff] %v416_v30 }
  0xc6   : > { %2333 = vst [vmem:[#allocation1 + $0x21] ss:$4 sm:$0xff] %v266_v36  ;;  %v413_v36 = vrot.slane %v8672_v19, 6  ;;  %v437_v19 = vrot.slane %v8743_v47, 6 }
  0xc7   : > { %2334 = vst [vmem:[#allocation1 + $0x22] ss:$4 sm:$0xff] %v8690_v34 }
  0xc8   : > { %2335 = vst [vmem:[#allocation1 + $0x23] ss:$4 sm:$0xff] %v417_v38  ;;  %v414_v38 = vrot.slane %v8686_v32, 2  ;;  %v8740_v45 = vld.sshfl [vmem:[#allocation1] sm:$0xff pattern:$0x73625140] }
  0xc9   : > { %13980 = vst [vmem:[#allocation29_spill] sm:$0xff] %v8740_v45 }
  0xca   : > { %2328 = vst [vmem:[#allocation1] ss:$4 sm:$0xff] %v413_v36 }
  0xcb   : > { %2329 = vst [vmem:[#allocation1 + $0x1] ss:$4 sm:$0xff] %v8686_v32  ;;  %v420_v32 = vrot.slane %v8704_v49, 2 }
  0xcc   : > { %2330 = vst [vmem:[#allocation1 + $0x2] ss:$4 sm:$0xff] %v414_v38 }
  0xcd   : > { %2331 = vst [vmem:[#allocation1 + $0x3] ss:$4 sm:$0xff] %v415_v44 }
  0xcf   : > { %v8710_v55 = vld.sshfl [vmem:[#allocation1 + $0x20] sm:$0xff pattern:$0x73625140] }
  0xd0   : > { %13975 = vst [vmem:[#allocation24_spill] sm:$0xff] %v8710_v55 }
  0xd1   : > { %2342 = vst [vmem:[#allocation1 + $0x20] ss:$4 sm:$0xff] %v421_v50  ;;  %v8747_v50 = vld [vmem:[%s8496_s26 + $0x1a0] sm:$0xff] }
  0xd2   : > { %2343 = vst [vmem:[#allocation1 + $0x21] ss:$4 sm:$0xff] %v422_v43  ;;  %v438_v43 = vrot.slane %v8747_v50, 2 }
  0xd3   : > { %2344 = vst [vmem:[#allocation1 + $0x22] ss:$4 sm:$0xff] %v269_v51  ;;  %v439_v51 = vrot.slane %v8747_v50, 4 }
  0xd4   : > { %2345 = vst [vmem:[#allocation1 + $0x23] ss:$4 sm:$0xff] %v8713_v57  ;;  %v8758_v2 = vld.sshfl [vmem:[#allocation1] sm:$0xff pattern:$0x73625140] }
  0xd5   : > { %13982 = vst [vmem:[#allocation31_spill] sm:$0xff] %v8758_v2 }
  0xd6   : > { %2338 = vst [vmem:[#allocation1] ss:$4 sm:$0xff] %v418_v59  ;;  %v435_v59 = vrot.slane %v8743_v47, 2 }
  0xd7   : > { %2339 = vst [vmem:[#allocation1 + $0x1] ss:$4 sm:$0xff] %v419_v63  ;;  %v436_v63 = vrot.slane %v8743_v47, 4 }
  0xd8   : > { %2340 = vst [vmem:[#allocation1 + $0x2] ss:$4 sm:$0xff] %v8704_v49  ;;  %v8770_v49 = vld [vmem:[%s8496_s26 + $0x19] sm:$0xff] }
  0xd9   : > { %2341 = vst [vmem:[#allocation1 + $0x3] ss:$4 sm:$0xff] %v420_v32 }
  0xdb   : > { %v8729_v9 = vld.sshfl [vmem:[#allocation1 + $0x20] sm:$0xff pattern:$0x73625140] }
  0xdc   : > { %13977 = vst [vmem:[#allocation26_spill] sm:$0xff] %v8729_v9 }
  0xdd   : > { %2352 = vst [vmem:[#allocation1 + $0x20] ss:$4 sm:$0xff] %v426_v6  ;;  %v442_v6 = vld [vmem:[%s8496_s26 + $0x9] sm:$0xff] }
  0xde   : > { %2353 = vst [vmem:[#allocation1 + $0x21] ss:$4 sm:$0xff] %v427_v7  ;;  %v552_v7 = vrot.slane %v442_v6, 2  ;;  %v553_v8 = vrot.slane %v442_v6, 4 }
  0xdf   : > { %2354 = vst [vmem:[#allocation1 + $0x22] ss:$4 sm:$0xff] %v428_v62  ;;  %v554_v62 = vrot.slane %v442_v6, 6 }
  0xe0   : > { %2355 = vst [vmem:[#allocation1 + $0x23] ss:$4 sm:$0xff] %v272_v13  ;;  %v423_v13 = vrot.slane %v8713_v57, 2  ;;  %v8767_v20 = vld.sshfl [vmem:[#allocation1] sm:$0xff pattern:$0x73625140] }
  0xe1   : > { %13984 = vst [vmem:[#allocation33_spill] sm:$0xff] %v8767_v20 }
  0xe2   : > { %2348 = vst [vmem:[#allocation1] ss:$4 sm:$0xff] %v423_v13 }
  0xe3   : > { %2349 = vst [vmem:[#allocation1 + $0x1] ss:$4 sm:$0xff] %v424_v14  ;;  %v440_v14 = vrot.slane %v8747_v50, 6 }
  0xe4   : > { %2350 = vst [vmem:[#allocation1 + $0x2] ss:$4 sm:$0xff] %v425_v15  ;;  %v8803_v15 = vld [vmem:[%s8496_s26 + $0x49] sm:$0xff] }
  0xe5   : > { %2351 = vst [vmem:[#allocation1 + $0x3] ss:$4 sm:$0xff] %v8723_v3 }
  0xe7   : > { %v8735_v30 = vld.sshfl [vmem:[#allocation1 + $0x20] sm:$0xff pattern:$0x73625140] }
  0xe8   : > { %13979 = vst [vmem:[#allocation28_spill] sm:$0xff] %v8735_v30 }
  0xe9   : > { %2362 = vst [vmem:[#allocation1 + $0x20] ss:$4 sm:$0xff] %v274_v22  ;;  %v8773_v22 = vld [vmem:[%s8496_s26 + $0x21] sm:$0xff] }
  0xea   : > { %2363 = vst [vmem:[#allocation1 + $0x21] ss:$4 sm:$0xff] %v432_v26  ;;  %v557_v26 = vrot.slane %v8770_v49, 6  ;;  %v559_v57 = vrot.slane %v8773_v22, 4 }
  0xeb   : > { %2364 = vst [vmem:[#allocation1 + $0x22] ss:$4 sm:$0xff] %v433_v27  ;;  %v273_v27 = vld [vmem:[%s8496_s26 + $0x180] sm:$0xff] }
  0xec   : > { %2365 = vst [vmem:[#allocation1 + $0x23] ss:$4 sm:$0xff] %v434_v29  ;;  %v558_v29 = vrot.slane %v8773_v22, 2  ;;  %v429_v38 = vrot.slane %v273_v27, 2  ;;  %v430_v44 = vrot.slane %v273_v27, 4 }
  0xed   : > { %v8782_v3 = vld.sshfl [vmem:[#allocation1] sm:$0xff pattern:$0x73625140] }
  0xee   : > { %13985 = vst [vmem:[#allocation34_spill] sm:$0xff] %v8782_v3 }
  0xef   : > { %2358 = vst [vmem:[#allocation1] ss:$4 sm:$0xff] %v273_v27 }
  0xf0   : > { %2359 = vst [vmem:[#allocation1 + $0x1] ss:$4 sm:$0xff] %v429_v38  ;;  %v441_v38 = vld [vmem:[%s8496_s26 + $0x1] sm:$0xff] }
  0xf1   : > { %2360 = vst [vmem:[#allocation1 + $0x2] ss:$4 sm:$0xff] %v430_v44 }
  0xf3   : > { %v8752_v58 = vld.sshfl [vmem:[#allocation1 + $0x20] sm:$0xff pattern:$0x73625140] }
  0xf4   : > { %13981 = vst [vmem:[#allocation30_spill] sm:$0xff] %v8752_v58 }
  0xf5   : > { %2372 = vst [vmem:[#allocation1 + $0x20] ss:$4 sm:$0xff] %v437_v19  ;;  %v431_v19 = vrot.slane %v273_v27, 6 }
  0xf6   : > { %2373 = vst [vmem:[#allocation1 + $0x21] ss:$4 sm:$0xff] %v8747_v50  ;;  %v569_v50 = vrot.slane %v8803_v15, 6 }
  0xf7   : > { %2374 = vst [vmem:[#allocation1 + $0x22] ss:$4 sm:$0xff] %v438_v43 }
  0xf8   : > { %2375 = vst [vmem:[#allocation1 + $0x23] ss:$4 sm:$0xff] %v439_v51  ;;  %v275_v51 = vld [vmem:[%s8496_s26 + $0x190] sm:$0x3] }
  0xf9   : > { %2361 = vst [vmem:[#allocation1 + $0x3] ss:$4 sm:$0xff] %v431_v19  ;;  %v549_v19 = vrot.slane %v441_v38, 2 }
  0xff   : > { %v8762_v34 = vld.sshfl [vmem:[#allocation1 + $0x20] sm:$0xff pattern:$0x73625140] }
 0x100   : > { %13983 = vst [vmem:[#allocation32_spill] sm:$0xff] %v8762_v34  ;;  %v8788_v32 = vld.sshfl [vmem:[#allocation1] sm:$0xff pattern:$0x73625140] }
 0x101   : > { %2430 = vst [vmem:[#allocation1 + $0x20] ss:$4 sm:$0xff] %v442_v6  ;;  %v8791_v6 = vld [vmem:[%s8496_s26 + $0x31] sm:$0xff]  ;;  %v8030_v34 = vld [vmem:[%s8496_s26 + $0x141] sm:$0xff] }
 0x102   : > { %2432 = vst [vmem:[#allocation1 + $0x21] ss:$4 sm:$0xff] %v552_v7  ;;  %v8794_v7 = vld [vmem:[%s8496_s26 + $0x39] sm:$0xff] }
 0x103   : > { %2434 = vst [vmem:[#allocation1 + $0x22] ss:$4 sm:$0xff] %v553_v8  ;;  %v562_v8 = vrot.slane %v8791_v6, 4  ;;  %v564_v13 = vrot.slane %v8794_v7, 2 }
 0x104   : > { %2436 = vst [vmem:[#allocation1 + $0x23] ss:$4 sm:$0xff] %v554_v62  ;;  %v563_v62 = vrot.slane %v8791_v6, 6 }
 0x105   : > { %13986 = vst [vmem:[#allocation35_spill] sm:$0xff] %v8788_v32  ;;  %v8040_v32 = vld [vmem:[%s8496_s26 + $0x191] sm:$0x3] }
 0x106   : > { %2368 = vst [vmem:[#allocation1] ss:$4 sm:$0xff] %v275_v51  ;;  %v551_v51 = vrot.slane %v441_v38, 6 }
 0x107   : > { %2369 = vst [vmem:[#allocation1 + $0x1] ss:$4 sm:$0xff] %v8743_v47  ;;  %v8807_v47 = vrot.slane %v8433_v0, 2  ;;  %v8819_v0 = vld [vmem:[%s8496_s26 + $0x51] sm:$0xff] }
 0x108   : > { %2370 = vst [vmem:[#allocation1 + $0x2] ss:$4 sm:$0xff] %v435_v59 }
 0x109   : > { %2371 = vst [vmem:[#allocation1 + $0x3] ss:$4 sm:$0xff] %v436_v63 }
 0x10a   : > { %13987 = vst [vmem:[#allocation36_spill] sm:$0xff] %v8807_v47 }
 0x10b   : > { %v2438_v36 = vld.sshfl [vmem:[#allocation1 + $0x20] sm:$0xff pattern:$0x73625140] }
 0x10c   : > { %2443 = vst [vmem:[#allocation1 + $0x20] ss:$4 sm:$0xff] %v557_v26  ;;  %2634 = vrot.lane.b32.xlu0 %v2438_v36, %s8435_s21  ;;  %v278_v26 = vld [vmem:[%s8496_s26 + $0x1a8] sm:$0x3]  ;;  %v568_v36 = vrot.slane %v8803_v15, 4 }
 0x10d   : > { %2444 = vst [vmem:[#allocation1 + $0x21] ss:$4 sm:$0xff] %v8773_v22 }
 0x10e   : > { %2445 = vst [vmem:[#allocation1 + $0x22] ss:$4 sm:$0xff] %v558_v29  ;;  %v8411_v29 = vpack.i.bf16 %v8807_v47, %v8807_v47 }
 0x10f   : > { %2446 = vst [vmem:[#allocation1 + $0x23] ss:$4 sm:$0xff] %v559_v57  ;;  %v567_v57 = vrot.slane %v8803_v15, 2 }
 0x110   : > { %v8809_v27 = vld.sshfl [vmem:[#allocation1] sm:$0xff pattern:$0x73625140]  ;;  %8412 = vrot.lane.b32.xlu2 %v8411_v29, %s8437_s27 }
 0x111   : > { %13988 = vst [vmem:[#allocation37_spill] sm:$0xff] %v8809_v27  ;;  %v9787_v27 = vld [vmem:[%s8496_s26 + $0x1b1] sm:$0xff] }
 0x112   : > { %2378 = vst [vmem:[#allocation1] ss:$4 sm:$0xff] %v440_v14  ;;  %v555_v14 = vrot.slane %v8770_v49, 2 }
 0x113   : > { %2379 = vst [vmem:[#allocation1 + $0x1] ss:$4 sm:$0xff] %v278_v26  ;;  %v556_v26 = vrot.slane %v8770_v49, 4 }
 0x116   : > { %v2448_v43 = vld.sshfl [vmem:[#allocation1 + $0x20] sm:$0xff pattern:$0x73625140] }
 0x117   : > { %2638 = vrot.lane.b32.xlu1 %v2448_v43, %s8435_s21  ;;  %2453 = vst [vmem:[#allocation1 + $0x20] ss:$4 sm:$0xff] %v562_v8  ;;  %v550_v43 = vrot.slane %v441_v38, 4  ;;  %v453_v8 = vld [vmem:[%s8496_s26 + $0x61] sm:$0xff] }
 0x118   : > { %2454 = vst [vmem:[#allocation1 + $0x21] ss:$4 sm:$0xff] %v563_v62  ;;  %v443_v62 = vld [vmem:[%s8496_s26 + $0x11] sm:$0x3] }
 0x119   : > { %2455 = vst [vmem:[#allocation1 + $0x22] ss:$4 sm:$0xff] %v8794_v7 }
 0x11a   : > { %2456 = vst [vmem:[#allocation1 + $0x23] ss:$4 sm:$0xff] %v564_v13  ;;  %v8822_v59 = vld.sshfl [vmem:[#allocation1] sm:$0xff pattern:$0x73625140]  ;;  %v573_v13 = vrot.slane %v453_v8, 2 }
 0x11b   : > { %13989 = vst [vmem:[#allocation38_spill] sm:$0xff] %v8822_v59 }
 0x11c   : > { %2422 = vst [vmem:[#allocation1] ss:$4 sm:$0xff] %v441_v38  ;;  %v561_v38 = vrot.slane %v8791_v6, 2 }
 0x11d   : > { %2424 = vst [vmem:[#allocation1 + $0x1] ss:$4 sm:$0xff] %v549_v19  ;;  %v446_v19 = vld [vmem:[%s8496_s26 + $0x29] sm:$0x3] }
 0x11e   : > { %2426 = vst [vmem:[#allocation1 + $0x2] ss:$4 sm:$0xff] %v550_v43  ;;  %v8835_v43 = vld [vmem:[%s8496_s26 + $0x79] sm:$0xff] }
 0x11f   : > { %2428 = vst [vmem:[#allocation1 + $0x3] ss:$4 sm:$0xff] %v551_v51 }
 0x121   : > { %v2458_v44 = vld.sshfl [vmem:[#allocation1 + $0x20] sm:$0xff pattern:$0x73625140] }
 0x122   : > { %2463 = vst [vmem:[#allocation1 + $0x20] ss:$4 sm:$0xff] %v567_v57  ;;  %2642 = vrot.lane.b32.xlu2 %v2458_v44, %s8435_s21  ;;  %v574_v57 = vrot.slane %v453_v8, 4 }
 0x123   : > { %2464 = vst [vmem:[#allocation1 + $0x21] ss:$4 sm:$0xff] %v568_v36  ;;  %v575_v36 = vrot.slane %v453_v8, 6 }
 0x124   : > { %2465 = vst [vmem:[#allocation1 + $0x22] ss:$4 sm:$0xff] %v569_v50  ;;  %v560_v50 = vrot.slane %v8773_v22, 6  ;;  %v580_v22 = vrot.slane %v8835_v43, 4 }
 0x125   : > { %2466 = vst [vmem:[#allocation1 + $0x23] ss:$4 sm:$0xff] %v8819_v0 }
 0x126   : > { %v2437_v29 = vld.sshfl [vmem:[#allocation1] sm:$0xff pattern:$0x73625140] }
 0x127   : > { %2439 = vst [vmem:[#allocation1] ss:$4 sm:$0xff] %v443_v62  ;;  %2632 = vrot.lane.b32.xlu0 %v2437_v29, %s8435_s21  ;;  %v565_v62 = vrot.slane %v8794_v7, 4  ;;  %v8852_v29 = vld [vmem:[%s8496_s26 + $0x91] sm:$0xff] }
 0x128   : > { %2440 = vst [vmem:[#allocation1 + $0x1] ss:$4 sm:$0xff] %v8770_v49  ;;  %v455_v49 = vld [vmem:[%s8496_s26 + $0x71] sm:$0x3] }
 0x129   : > { %2441 = vst [vmem:[#allocation1 + $0x2] ss:$4 sm:$0xff] %v555_v14  ;;  %v449_v14 = vld [vmem:[%s8496_s26 + $0x41] sm:$0x3] }
 0x12a   : > { %2442 = vst [vmem:[#allocation1 + $0x3] ss:$4 sm:$0xff] %v556_v26 }
 0x12c   : > { %v2468_v63 = vld.sshfl [vmem:[#allocation1 + $0x20] sm:$0xff pattern:$0x73625140] }
 0x12d   : > { %2473 = vst [vmem:[#allocation1 + $0x20] ss:$4 sm:$0xff] %v453_v8  ;;  %v579_v8 = vrot.slane %v8835_v43, 2 }
 0x12e   : > { %2474 = vst [vmem:[#allocation1 + $0x21] ss:$4 sm:$0xff] %v573_v13  ;;  %v8847_v13 = vld [vmem:[%s8496_s26 + $0x81] sm:$0xff] }
 0x12f   : > { %2475 = vst [vmem:[#allocation1 + $0x22] ss:$4 sm:$0xff] %v574_v57  ;;  %v584_v57 = vrot.slane %v8847_v13, 6 }
 0x130   : > { %2476 = vst [vmem:[#allocation1 + $0x23] ss:$4 sm:$0xff] %v575_v36 }
 0x131   : > { %v2447_v44 = vld.sshfl [vmem:[#allocation1] sm:$0xff pattern:$0x73625140] }
 0x132   : > { %2636 = vrot.lane.b32.xlu1 %v2447_v44, %s8435_s21  ;;  %2451 = vst [vmem:[#allocation1 + $0x2] ss:$4 sm:$0xff] %v8791_v6  ;;  %v566_v6 = vrot.slane %v8794_v7, 6  ;;  %v458_v7 = vld [vmem:[%s8496_s26 + $0x89] sm:$0x3]  ;;  %v572_v44 = vrot.slane %v8819_v0, 6 }
 0x133   : > { %2449 = vst [vmem:[#allocation1] ss:$4 sm:$0xff] %v560_v50  ;;  %v570_v50 = vrot.slane %v8819_v0, 2 }
 0x134   : > { %2450 = vst [vmem:[#allocation1 + $0x1] ss:$4 sm:$0xff] %v446_v19 }
 0x135   : > { %2452 = vst [vmem:[#allocation1 + $0x3] ss:$4 sm:$0xff] %v561_v38  ;;  %v571_v38 = vrot.slane %v8819_v0, 4  ;;  %v461_v0 = vld [vmem:[%s8496_s26 + $0xa1] sm:$0x3] }
 0x137   : > { %v2478_v51 = vld.sshfl [vmem:[#allocation1 + $0x20] sm:$0xff pattern:$0x73625140] }
 0x138   : > { %2483 = vst [vmem:[#allocation1 + $0x20] ss:$4 sm:$0xff] %v455_v49  ;;  %v452_v49 = vld [vmem:[%s8496_s26 + $0x59] sm:$0x3] }
 0x139   : > { %2484 = vst [vmem:[#allocation1 + $0x21] ss:$4 sm:$0xff] %v8835_v43 }
 0x13a   : > { %2485 = vst [vmem:[#allocation1 + $0x22] ss:$4 sm:$0xff] %v579_v8  ;;  %2646 = vrot.lane.b32.xlu1 %v2468_v63, %s8435_s21  ;;  %v585_v63 = vrot.slane %v8852_v29, 2  ;;  %v8868_v8 = vld [vmem:[%s8496_s26 + $0xa9] sm:$0xff] }
 0x13b   : > { %2486 = vst [vmem:[#allocation1 + $0x23] ss:$4 sm:$0xff] %v580_v22 }
 0x13c   : > { %v2457_v26 = vld.sshfl [vmem:[#allocation1] sm:$0xff pattern:$0x73625140] }
 0x13d   : > { %2459 = vst [vmem:[#allocation1] ss:$4 sm:$0xff] %v565_v62  ;;  %2640 = vrot.lane.b32.xlu2 %v2457_v26, %s8435_s21 }
 0x13e   : > { %2460 = vst [vmem:[#allocation1 + $0x1] ss:$4 sm:$0xff] %v566_v6 }
 0x13f   : > { %2461 = vst [vmem:[#allocation1 + $0x2] ss:$4 sm:$0xff] %v449_v14  ;;  %v454_v14 = vld [vmem:[%s8496_s26 + $0x69] sm:$0xff] }
 0x140   : > { %2462 = vst [vmem:[#allocation1 + $0x3] ss:$4 sm:$0xff] %v8803_v15  ;;  %v8863_v15 = vld [vmem:[%s8496_s26 + $0x99] sm:$0xff]  ;;  %v576_v26 = vrot.slane %v454_v14, 2 }
 0x141   : > { %v589_v22 = vrot.slane %v8863_v15, 4  ;;  %v590_v62 = vrot.slane %v8863_v15, 6 }
 0x142   : > { %v2488_v36 = vld.sshfl [vmem:[#allocation1 + $0x20] sm:$0xff pattern:$0x73625140] }
 0x143   : > { %2493 = vst [vmem:[#allocation1 + $0x20] ss:$4 sm:$0xff] %v584_v57  ;;  %v577_v57 = vrot.slane %v454_v14, 4 }
 0x144   : > { %2494 = vst [vmem:[#allocation1 + $0x21] ss:$4 sm:$0xff] %v458_v7  ;;  %v8877_v7 = vld [vmem:[%s8496_s26 + $0xb1] sm:$0xff] }
 0x145   : > { %2495 = vst [vmem:[#allocation1 + $0x22] ss:$4 sm:$0xff] %v8852_v29 }
 0x146   : > { %2496 = vst [vmem:[#allocation1 + $0x23] ss:$4 sm:$0xff] %v585_v63  ;;  %v578_v63 = vrot.slane %v454_v14, 6 }
 0x147   : > { %v2467_v19 = vld.sshfl [vmem:[#allocation1] sm:$0xff pattern:$0x73625140] }
 0x148   : > { %2469 = vst [vmem:[#allocation1] ss:$4 sm:$0xff] %v570_v50  ;;  %2644 = vrot.lane.b32.xlu0 %v2467_v19, %s8435_s21  ;;  %v596_v19 = vrot.slane %v8877_v7, 6 }
 0x149   : > { %2470 = vst [vmem:[#allocation1 + $0x1] ss:$4 sm:$0xff] %v571_v38  ;;  %v594_v38 = vrot.slane %v8877_v7, 2 }
 0x14a   : > { %2471 = vst [vmem:[#allocation1 + $0x2] ss:$4 sm:$0xff] %v572_v44  ;;  %v595_v44 = vrot.slane %v8877_v7, 4 }
 0x14b   : > { %2472 = vst [vmem:[#allocation1 + $0x3] ss:$4 sm:$0xff] %v452_v49  ;;  %v464_v49 = vld [vmem:[%s8496_s26 + $0xb9] sm:$0x3] }
 0x14d   : > { %v2498_v6 = vld.sshfl [vmem:[#allocation1 + $0x20] sm:$0xff pattern:$0x73625140] }
 0x14e   : > { %2506 = vst [vmem:[#allocation1 + $0x23] ss:$4 sm:$0xff] %v8868_v8 }
 0x14f   : > { %2503 = vst [vmem:[#allocation1 + $0x20] ss:$4 sm:$0xff] %v589_v22  ;;  %v581_v22 = vrot.slane %v8835_v43, 6 }
 0x150   : > { %2504 = vst [vmem:[#allocation1 + $0x21] ss:$4 sm:$0xff] %v590_v62  ;;  %2650 = vrot.lane.b32.xlu0 %v2478_v51, %s8435_s21  ;;  %v582_v62 = vrot.slane %v8847_v13, 2 }
 0x151   : > { %2505 = vst [vmem:[#allocation1 + $0x22] ss:$4 sm:$0xff] %v461_v0  ;;  %v583_v0 = vrot.slane %v8847_v13, 4 }
 0x152   : > { %v2477_v50 = vld.sshfl [vmem:[#allocation1] sm:$0xff pattern:$0x73625140] }
 0x153   : > { %2479 = vst [vmem:[#allocation1] ss:$4 sm:$0xff] %v454_v14  ;;  %2648 = vrot.lane.b32.xlu2 %v2477_v50, %s8435_s21  ;;  %v586_v50 = vrot.slane %v8852_v29, 4 }
 0x154   : > { %2480 = vst [vmem:[#allocation1 + $0x1] ss:$4 sm:$0xff] %v576_v26  ;;  %v466_v26 = vld [vmem:[%s8496_s26 + $0xc9] sm:$0xff] }
 0x155   : > { %2481 = vst [vmem:[#allocation1 + $0x2] ss:$4 sm:$0xff] %v577_v57  ;;  %v600_v57 = vrot.slane %v466_v26, 2  ;;  %v601_v43 = vrot.slane %v466_v26, 4 }
 0x156   : > { %2482 = vst [vmem:[#allocation1 + $0x3] ss:$4 sm:$0xff] %v578_v63  ;;  %v602_v63 = vrot.slane %v466_v26, 6 }
 0x158   : > { %v2508_v51 = vld.sshfl [vmem:[#allocation1 + $0x20] sm:$0xff pattern:$0x73625140] }
 0x159   : > { %2513 = vst [vmem:[#allocation1 + $0x20] ss:$4 sm:$0xff] %v594_v38  ;;  %v587_v38 = vrot.slane %v8852_v29, 6 }
 0x15a   : > { %2514 = vst [vmem:[#allocation1 + $0x21] ss:$4 sm:$0xff] %v595_v44 }
 0x15b   : > { %2515 = vst [vmem:[#allocation1 + $0x22] ss:$4 sm:$0xff] %v596_v19  ;;  %2654 = vrot.lane.b32.xlu2 %v2488_v36, %s8435_s21  ;;  %v8896_v19 = vld [vmem:[%s8496_s26 + $0xd9] sm:$0xff] }
 0x15c   : > { %2516 = vst [vmem:[#allocation1 + $0x23] ss:$4 sm:$0xff] %v464_v49  ;;  %v8900_v49 = vld [vmem:[%s8496_s26 + $0xe1] sm:$0xff] }
 0x15d   : > { %v2487_v14 = vld.sshfl [vmem:[#allocation1] sm:$0xff pattern:$0x73625140]  ;;  %v606_v29 = vrot.slane %v8900_v49, 2 }
 0x15e   : > { %2652 = vrot.lane.b32.xlu1 %v2487_v14, %s8435_s21  ;;  %2489 = vst [vmem:[#allocation1] ss:$4 sm:$0xff] %v581_v22  ;;  %v605_v22 = vrot.slane %v8896_v19, 6  ;;  %v591_v14 = vrot.slane %v8868_v8, 2 }
 0x15f   : > { %2490 = vst [vmem:[#allocation1 + $0x1] ss:$4 sm:$0xff] %v8847_v13  ;;  %v588_v13 = vrot.slane %v8863_v15, 2 }
 0x160   : > { %2491 = vst [vmem:[#allocation1 + $0x2] ss:$4 sm:$0xff] %v582_v62  ;;  %v607_v62 = vrot.slane %v8900_v49, 4 }
 0x161   : > { %2492 = vst [vmem:[#allocation1 + $0x3] ss:$4 sm:$0xff] %v583_v0  ;;  %v592_v0 = vrot.slane %v8868_v8, 4 }
 0x163   : > { %v2518_v36 = vld.sshfl [vmem:[#allocation1 + $0x20] sm:$0xff pattern:$0x73625140] }
 0x164   : > { %2523 = vst [vmem:[#allocation1 + $0x20] ss:$4 sm:$0xff] %v466_v26  ;;  %v8912_v26 = vld [vmem:[%s8496_s26 + $0xf1] sm:$0xff] }
 0x165   : > { %2524 = vst [vmem:[#allocation1 + $0x21] ss:$4 sm:$0xff] %v600_v57 }
 0x166   : > { %2525 = vst [vmem:[#allocation1 + $0x22] ss:$4 sm:$0xff] %v601_v43  ;;  %2658 = vrot.lane.b32.xlu1 %v2498_v6, %s8435_s21  ;;  %v8916_v43 = vld [vmem:[%s8496_s26 + $0xf9] sm:$0xff] }
 0x167   : > { %2526 = vst [vmem:[#allocation1 + $0x23] ss:$4 sm:$0xff] %v602_v63  ;;  %v610_v63 = vrot.slane %v8912_v26, 4 }
 0x168   : > { %v2497_v44 = vld.sshfl [vmem:[#allocation1] sm:$0xff pattern:$0x73625140] }
 0x169   : > { %2499 = vst [vmem:[#allocation1] ss:$4 sm:$0xff] %v586_v50  ;;  %2656 = vrot.lane.b32.xlu0 %v2497_v44, %s8435_s21  ;;  %v611_v50 = vrot.slane %v8912_v26, 6 }
 0x16a   : > { %2500 = vst [vmem:[#allocation1 + $0x1] ss:$4 sm:$0xff] %v587_v38  ;;  %v465_v38 = vld [vmem:[%s8496_s26 + $0xc1] sm:$0xff] }
 0x16b   : > { %2501 = vst [vmem:[#allocation1 + $0x2] ss:$4 sm:$0xff] %v8863_v15  ;;  %v593_v15 = vrot.slane %v8868_v8, 6  ;;  %v612_v8 = vrot.slane %v8916_v43, 2  ;;  %v598_v44 = vrot.slane %v465_v38, 4 }
 0x16c   : > { %2502 = vst [vmem:[#allocation1 + $0x3] ss:$4 sm:$0xff] %v588_v13  ;;  %v597_v13 = vrot.slane %v465_v38, 2 }
 0x16e   : > { %v2528_v6 = vld.sshfl [vmem:[#allocation1 + $0x20] sm:$0xff pattern:$0x73625140] }
 0x16f   : > { %2534 = vst [vmem:[#allocation1 + $0x21] ss:$4 sm:$0xff] %v8900_v49 }
 0x170   : > { %2533 = vst [vmem:[#allocation1 + $0x20] ss:$4 sm:$0xff] %v605_v22  ;;  %v8926_v22 = vld [vmem:[%s8496_s26 + $0x109] sm:$0xff] }
 0x171   : > { %2535 = vst [vmem:[#allocation1 + $0x22] ss:$4 sm:$0xff] %v606_v29  ;;  %2662 = vrot.lane.b32.xlu0 %v2508_v51, %s8435_s21  ;;  %v599_v29 = vrot.slane %v465_v38, 6 }
 0x172   : > { %2536 = vst [vmem:[#allocation1 + $0x23] ss:$4 sm:$0xff] %v607_v62 }
 0x173   : > { %v2507_v57 = vld.sshfl [vmem:[#allocation1] sm:$0xff pattern:$0x73625140] }
 0x174   : > { %2509 = vst [vmem:[#allocation1] ss:$4 sm:$0xff] %v591_v14  ;;  %2660 = vrot.lane.b32.xlu2 %v2507_v57, %s8435_s21  ;;  %v616_v14 = vrot.slane %v8926_v22, 4  ;;  %v467_v57 = vld [vmem:[%s8496_s26 + $0xd1] sm:$0x3] }
 0x175   : > { %2510 = vst [vmem:[#allocation1 + $0x1] ss:$4 sm:$0xff] %v592_v0 }
 0x176   : > { %2511 = vst [vmem:[#allocation1 + $0x2] ss:$4 sm:$0xff] %v593_v15  ;;  %v8933_v15 = vld [vmem:[%s8496_s26 + $0x111] sm:$0xff] }
 0x177   : > { %2512 = vst [vmem:[#allocation1 + $0x3] ss:$4 sm:$0xff] %v8877_v7  ;;  %v615_v7 = vrot.slane %v8926_v22, 2 }
 0x179   : > { %v2538_v51 = vld.sshfl [vmem:[#allocation1 + $0x20] sm:$0xff pattern:$0x73625140] }
 0x17a   : > { %2543 = vst [vmem:[#allocation1 + $0x20] ss:$4 sm:$0xff] %v610_v63  ;;  %v603_v63 = vrot.slane %v8896_v19, 2 }
 0x17b   : > { %2544 = vst [vmem:[#allocation1 + $0x21] ss:$4 sm:$0xff] %v611_v50 }
 0x17c   : > { %2545 = vst [vmem:[#allocation1 + $0x22] ss:$4 sm:$0xff] %v8916_v43  ;;  %2666 = vrot.lane.b32.xlu2 %v2518_v36, %s8435_s21  ;;  %v617_v36 = vrot.slane %v8926_v22, 6 }
 0x17d   : > { %2546 = vst [vmem:[#allocation1 + $0x23] ss:$4 sm:$0xff] %v612_v8  ;;  %v604_v8 = vrot.slane %v8896_v19, 4 }
 0x17e   : > { %v2517_v62 = vld.sshfl [vmem:[#allocation1] sm:$0xff pattern:$0x73625140] }
 0x17f   : > { %2519 = vst [vmem:[#allocation1] ss:$4 sm:$0xff] %v465_v38  ;;  %2664 = vrot.lane.b32.xlu1 %v2517_v62, %s8435_s21  ;;  %v477_v38 = vld [vmem:[%s8496_s26 + $0x121] sm:$0xff]  ;;  %v608_v62 = vrot.slane %v8900_v49, 6 }
 0x180   : > { %2520 = vst [vmem:[#allocation1 + $0x1] ss:$4 sm:$0xff] %v597_v13  ;;  %v621_v13 = vrot.slane %v477_v38, 2 }
 0x181   : > { %2521 = vst [vmem:[#allocation1 + $0x2] ss:$4 sm:$0xff] %v598_v44 }
 0x182   : > { %2522 = vst [vmem:[#allocation1 + $0x3] ss:$4 sm:$0xff] %v599_v29  ;;  %v623_v29 = vrot.slane %v477_v38, 6 }
 0x184   : > { %v2548_v0 = vld.sshfl [vmem:[#allocation1 + $0x20] sm:$0xff pattern:$0x73625140] }
 0x185   : > { %2553 = vst [vmem:[#allocation1 + $0x20] ss:$4 sm:$0xff] %v615_v7  ;;  %v470_v7 = vld [vmem:[%s8496_s26 + $0xe9] sm:$0x3] }
 0x186   : > { %2554 = vst [vmem:[#allocation1 + $0x21] ss:$4 sm:$0xff] %v616_v14  ;;  %v609_v14 = vrot.slane %v8912_v26, 2 }
 0x187   : > { %2555 = vst [vmem:[#allocation1 + $0x22] ss:$4 sm:$0xff] %v617_v36  ;;  %2670 = vrot.lane.b32.xlu1 %v2528_v6, %s8435_s21  ;;  %v622_v6 = vrot.slane %v477_v38, 4  ;;  %v8949_v36 = vld [vmem:[%s8496_s26 + $0x139] sm:$0xff] }
 0x188   : > { %2556 = vst [vmem:[#allocation1 + $0x23] ss:$4 sm:$0xff] %v8933_v15  ;;  %v627_v49 = vrot.slane %v8949_v36, 2 }
 0x189   : > { %v2527_v50 = vld.sshfl [vmem:[#allocation1] sm:$0xff pattern:$0x73625140] }
 0x18a   : > { %2668 = vrot.lane.b32.xlu0 %v2527_v50, %s8435_s21  ;;  %2529 = vst [vmem:[#allocation1] ss:$4 sm:$0xff] %v467_v57  ;;  %v479_v57 = vld [vmem:[%s8496_s26 + $0x131] sm:$0x3]  ;;  %v613_v50 = vrot.slane %v8916_v43, 4 }
 0x18b   : > { %2530 = vst [vmem:[#allocation1 + $0x1] ss:$4 sm:$0xff] %v8896_v19 }
 0x18c   : > { %2531 = vst [vmem:[#allocation1 + $0x2] ss:$4 sm:$0xff] %v603_v63  ;;  %v628_v63 = vrot.slane %v8949_v36, 4 }
 0x18d   : > { %2532 = vst [vmem:[#allocation1 + $0x3] ss:$4 sm:$0xff] %v604_v8  ;;  %v614_v8 = vrot.slane %v8916_v43, 6  ;;  %v482_v43 = vld [vmem:[%s8496_s26 + $0x149] sm:$0x3] }
 0x18f   : > { %v2558_v44 = vld.sshfl [vmem:[#allocation1 + $0x20] sm:$0xff pattern:$0x73625140] }
 0x190   : > { %2563 = vst [vmem:[#allocation1 + $0x20] ss:$4 sm:$0xff] %v477_v38 }
 0x191   : > { %2564 = vst [vmem:[#allocation1 + $0x21] ss:$4 sm:$0xff] %v621_v13  ;;  %v473_v13 = vld [vmem:[%s8496_s26 + $0x101] sm:$0x3] }
 0x192   : > { %2565 = vst [vmem:[#allocation1 + $0x22] ss:$4 sm:$0xff] %v622_v6  ;;  %2674 = vrot.lane.b32.xlu0 %v2538_v51, %s8435_s21  ;;  %v8965_v6 = vld [vmem:[%s8496_s26 + $0x151] sm:$0xff] }
 0x193   : > { %2566 = vst [vmem:[#allocation1 + $0x23] ss:$4 sm:$0xff] %v623_v29 }
 0x194   : > { %v2537_v19 = vld.sshfl [vmem:[#allocation1] sm:$0xff pattern:$0x73625140] }
 0x195   : > { %2539 = vst [vmem:[#allocation1] ss:$4 sm:$0xff] %v608_v62  ;;  %2672 = vrot.lane.b32.xlu2 %v2537_v19, %s8435_s21 }
 0x196   : > { %2540 = vst [vmem:[#allocation1 + $0x1] ss:$4 sm:$0xff] %v470_v7  ;;  %v618_v7 = vrot.slane %v8933_v15, 2 }
 0x197   : > { %2541 = vst [vmem:[#allocation1 + $0x2] ss:$4 sm:$0xff] %v8912_v26  ;;  %v8960_v26 = vld [vmem:[%s8496_s26 + $0x141] sm:$0xff] }
 0x198   : > { %2542 = vst [vmem:[#allocation1 + $0x3] ss:$4 sm:$0xff] %v609_v14  ;;  %v632_v29 = vrot.slane %v8960_v26, 6  ;;  %v619_v14 = vrot.slane %v8933_v15, 4 }
 0x19a   : > { %v2568_v51 = vld.sshfl [vmem:[#allocation1 + $0x20] sm:$0xff pattern:$0x73625140] }
 0x19b   : > { %2573 = vst [vmem:[#allocation1 + $0x20] ss:$4 sm:$0xff] %v479_v57  ;;  %v8977_v57 = vld [vmem:[%s8496_s26 + $0x159] sm:$0xff] }
 0x19c   : > { %2574 = vst [vmem:[#allocation1 + $0x21] ss:$4 sm:$0xff] %v8949_v36 }
 0x19d   : > { %2575 = vst [vmem:[#allocation1 + $0x22] ss:$4 sm:$0xff] %v627_v49  ;;  %2678 = vrot.lane.b32.xlu2 %v2548_v0, %s8435_s21  ;;  %v633_v0 = vrot.slane %v8965_v6, 2  ;;  %v476_v49 = vld [vmem:[%s8496_s26 + $0x119] sm:$0x3] }
 0x19e   : > { %2576 = vst [vmem:[#allocation1 + $0x23] ss:$4 sm:$0xff] %v628_v63  ;;  %v8982_v63 = vld [vmem:[%s8496_s26 + $0x169] sm:$0xff] }
 0x19f   : > { %v2547_v38 = vld.sshfl [vmem:[#allocation1] sm:$0xff pattern:$0x73625140] }
 0x1a0   : > { %2676 = vrot.lane.b32.xlu1 %v2547_v38, %s8435_s21  ;;  %2549 = vst [vmem:[#allocation1] ss:$4 sm:$0xff] %v613_v50  ;;  %v637_v50 = vrot.slane %v8977_v57, 4  ;;  %v478_v38 = vld [vmem:[%s8496_s26 + $0x129] sm:$0xff] }
 0x1a1   : > { %2550 = vst [vmem:[#allocation1 + $0x1] ss:$4 sm:$0xff] %v614_v8 }
 0x1a2   : > { %2551 = vst [vmem:[#allocation1 + $0x2] ss:$4 sm:$0xff] %v473_v13  ;;  %v624_v13 = vrot.slane %v478_v38, 2 }
 0x1a3   : > { %2552 = vst [vmem:[#allocation1 + $0x3] ss:$4 sm:$0xff] %v8926_v22  ;;  %v620_v22 = vrot.slane %v8933_v15, 6  ;;  %v485_v15 = vld [vmem:[%s8496_s26 + $0x161] sm:$0x3] }
 0x1a5   : > { %v2578_v62 = vld.sshfl [vmem:[#allocation1 + $0x20] sm:$0xff pattern:$0x73625140] }
 0x1a6   : > { %2583 = vst [vmem:[#allocation1 + $0x20] ss:$4 sm:$0xff] %v632_v29  ;;  %v625_v29 = vrot.slane %v478_v38, 4 }
 0x1a7   : > { %2584 = vst [vmem:[#allocation1 + $0x21] ss:$4 sm:$0xff] %v482_v43  ;;  %v8991_v43 = vld [vmem:[%s8496_s26 + $0x171] sm:$0xff] }
 0x1a8   : > { %2585 = vst [vmem:[#allocation1 + $0x22] ss:$4 sm:$0xff] %v8965_v6  ;;  %2682 = vrot.lane.b32.xlu1 %v2558_v44, %s8435_s21  ;;  %v638_v44 = vrot.slane %v8977_v57, 6 }
 0x1a9   : > { %2586 = vst [vmem:[#allocation1 + $0x23] ss:$4 sm:$0xff] %v633_v0  ;;  %v626_v0 = vrot.slane %v478_v38, 6 }
 0x1aa   : > { %v2557_v19 = vld.sshfl [vmem:[#allocation1] sm:$0xff pattern:$0x73625140] }
 0x1ab   : > { %2559 = vst [vmem:[#allocation1] ss:$4 sm:$0xff] %v618_v7  ;;  %2680 = vrot.lane.b32.xlu0 %v2557_v19, %s8435_s21  ;;  %v644_v19 = vrot.slane %v8991_v43, 6 }
 0x1ac   : > { %2560 = vst [vmem:[#allocation1 + $0x1] ss:$4 sm:$0xff] %v619_v14  ;;  %v642_v14 = vrot.slane %v8991_v43, 2 }
 0x1ad   : > { %2561 = vst [vmem:[#allocation1 + $0x2] ss:$4 sm:$0xff] %v620_v22  ;;  %v643_v22 = vrot.slane %v8991_v43, 4 }
 0x1ae   : > { %2562 = vst [vmem:[#allocation1 + $0x3] ss:$4 sm:$0xff] %v476_v49  ;;  %v488_v49 = vld [vmem:[%s8496_s26 + $0x179] sm:$0x3] }
 0x1b0   : > { %v2588_v8 = vld.sshfl [vmem:[#allocation1 + $0x20] sm:$0xff pattern:$0x73625140] }
 0x1b1   : > { %2596 = vst [vmem:[#allocation1 + $0x23] ss:$4 sm:$0xff] %v8982_v63 }
 0x1b2   : > { %2593 = vst [vmem:[#allocation1 + $0x20] ss:$4 sm:$0xff] %v637_v50  ;;  %v629_v50 = vrot.slane %v8949_v36, 6 }
 0x1b3   : > { %2594 = vst [vmem:[#allocation1 + $0x21] ss:$4 sm:$0xff] %v638_v44  ;;  %2686 = vrot.lane.b32.xlu0 %v2568_v51, %s8435_s21  ;;  %v630_v44 = vrot.slane %v8960_v26, 2 }
 0x1b4   : > { %2595 = vst [vmem:[#allocation1 + $0x22] ss:$4 sm:$0xff] %v485_v15  ;;  %v631_v15 = vrot.slane %v8960_v26, 4 }
 0x1b5   : > { %v2567_v7 = vld.sshfl [vmem:[#allocation1] sm:$0xff pattern:$0x73625140] }
 0x1b6   : > { %2569 = vst [vmem:[#allocation1] ss:$4 sm:$0xff] %v478_v38  ;;  %2684 = vrot.lane.b32.xlu2 %v2567_v7, %s8435_s21  ;;  %v634_v7 = vrot.slane %v8965_v6, 4 }
 0x1b7   : > { %2570 = vst [vmem:[#allocation1 + $0x1] ss:$4 sm:$0xff] %v624_v13  ;;  %v490_v13 = vld [vmem:[%s8496_s26 + $0x189] sm:$0xff] }
 0x1b8   : > { %2571 = vst [vmem:[#allocation1 + $0x2] ss:$4 sm:$0xff] %v625_v29  ;;  %v648_v29 = vrot.slane %v490_v13, 2  ;;  %v649_v36 = vrot.slane %v490_v13, 4 }
 0x1b9   : > { %2572 = vst [vmem:[#allocation1 + $0x3] ss:$4 sm:$0xff] %v626_v0  ;;  %v650_v0 = vrot.slane %v490_v13, 6 }
 0x1bb   : > { %v2598_v51 = vld.sshfl [vmem:[#allocation1 + $0x20] sm:$0xff pattern:$0x73625140] }
 0x1bc   : > { %2603 = vst [vmem:[#allocation1 + $0x20] ss:$4 sm:$0xff] %v642_v14  ;;  %v635_v14 = vrot.slane %v8965_v6, 6 }
 0x1bd   : > { %2604 = vst [vmem:[#allocation1 + $0x21] ss:$4 sm:$0xff] %v643_v22 }
 0x1be   : > { %2605 = vst [vmem:[#allocation1 + $0x22] ss:$4 sm:$0xff] %v644_v19  ;;  %2690 = vrot.lane.b32.xlu2 %v2578_v62, %s8435_s21  ;;  %v9010_v19 = vld [vmem:[%s8496_s26 + $0x199] sm:$0xff] }
 0x1bf   : > { %2606 = vst [vmem:[#allocation1 + $0x23] ss:$4 sm:$0xff] %v488_v49  ;;  %v9014_v49 = vld [vmem:[%s8496_s26 + $0x1a1] sm:$0xff] }
 0x1c0   : > { %v2577_v38 = vld.sshfl [vmem:[#allocation1] sm:$0xff pattern:$0x73625140]  ;;  %v654_v6 = vrot.slane %v9014_v49, 2 }
 0x1c1   : > { %2688 = vrot.lane.b32.xlu1 %v2577_v38, %s8435_s21  ;;  %2579 = vst [vmem:[#allocation1] ss:$4 sm:$0xff] %v629_v50  ;;  %v653_v50 = vrot.slane %v9010_v19, 6  ;;  %v639_v38 = vrot.slane %v8982_v63, 2 }
 0x1c2   : > { %2580 = vst [vmem:[#allocation1 + $0x1] ss:$4 sm:$0xff] %v8960_v26  ;;  %v636_v26 = vrot.slane %v8977_v57, 2 }
 0x1c3   : > { %2581 = vst [vmem:[#allocation1 + $0x2] ss:$4 sm:$0xff] %v630_v44  ;;  %v655_v44 = vrot.slane %v9014_v49, 4 }
 0x1c4   : > { %2582 = vst [vmem:[#allocation1 + $0x3] ss:$4 sm:$0xff] %v631_v15  ;;  %v640_v15 = vrot.slane %v8982_v63, 4 }
 0x1c6   : > { %v2608_v62 = vld.sshfl [vmem:[#allocation1 + $0x20] sm:$0xff pattern:$0x73625140] }
 0x1c7   : > { %2613 = vst [vmem:[#allocation1 + $0x20] ss:$4 sm:$0xff] %v490_v13 }
 0x1c8   : > { %2614 = vst [vmem:[#allocation1 + $0x21] ss:$4 sm:$0xff] %v648_v29  ;;  %v658_v29 = vld [vmem:[%s8496_s26 + $0xa] sm:$0xff] }
 0x1c9   : > { %2615 = vst [vmem:[#allocation1 + $0x22] ss:$4 sm:$0xff] %v649_v36  ;;  %2694 = vrot.lane.b32.xlu1 %v2588_v8, %s8435_s21  ;;  %v768_v36 = vrot.slane %v658_v29, 2 }
 0x1ca   : > { %2616 = vst [vmem:[#allocation1 + $0x23] ss:$4 sm:$0xff] %v650_v0  ;;  %v769_v0 = vrot.slane %v658_v29, 4 }
 0x1cb   : > { %v2587_v22 = vld.sshfl [vmem:[#allocation1] sm:$0xff pattern:$0x73625140] }
 0x1cc   : > { %2589 = vst [vmem:[#allocation1] ss:$4 sm:$0xff] %v634_v7  ;;  %2692 = vrot.lane.b32.xlu0 %v2587_v22, %s8435_s21  ;;  %v9031_v22 = vld [vmem:[%s8496_s26 + $0x1a] sm:$0xff] }
 0x1cd   : > { %2590 = vst [vmem:[#allocation1 + $0x1] ss:$4 sm:$0xff] %v635_v14  ;;  %v770_v14 = vrot.slane %v658_v29, 6 }
 0x1ce   : > { %2591 = vst [vmem:[#allocation1 + $0x2] ss:$4 sm:$0xff] %v8977_v57  ;;  %v641_v57 = vrot.slane %v8982_v63, 6 }
 0x1cf   : > { %2592 = vst [vmem:[#allocation1 + $0x3] ss:$4 sm:$0xff] %v636_v26  ;;  %v489_v26 = vld [vmem:[%s8496_s26 + $0x181] sm:$0xff] }
 0x1d0   : > { %v645_v63 = vrot.slane %v489_v26, 2 }
 0x1d1   : > { %v2618_v8 = vld.sshfl [vmem:[#allocation1 + $0x20] sm:$0xff pattern:$0x73625140] }
 0x1d2   : > { %2624 = vst [vmem:[#allocation1 + $0x21] ss:$4 sm:$0xff] %v9014_v49 }
 0x1d3   : > { %2623 = vst [vmem:[#allocation1 + $0x20] ss:$4 sm:$0xff] %v653_v50 }
 0x1d4   : > { %2625 = vst [vmem:[#allocation1 + $0x22] ss:$4 sm:$0xff] %v654_v6  ;;  %2698 = vrot.lane.b32.xlu0 %v2598_v51, %s8435_s21  ;;  %v646_v51 = vrot.slane %v489_v26, 4  ;;  %v647_v6 = vrot.slane %v489_v26, 6 }
 0x1d5   : > { %2626 = vst [vmem:[#allocation1 + $0x23] ss:$4 sm:$0xff] %v655_v44  ;;  %v773_v44 = vrot.slane %v9031_v22, 6 }
 0x1d6   : > { %v2597_v13 = vld.sshfl [vmem:[#allocation1] sm:$0xff pattern:$0x73625140] }
 0x1d7   : > { %2599 = vst [vmem:[#allocation1] ss:$4 sm:$0xff] %v639_v38  ;;  %2696 = vrot.lane.b32.xlu2 %v2597_v13, %s8435_s21  ;;  %v651_v13 = vrot.slane %v9010_v19, 2 }
 0x1d8   : > { %2600 = vst [vmem:[#allocation1 + $0x1] ss:$4 sm:$0xff] %v640_v15 }
 0x1d9   : > { %2601 = vst [vmem:[#allocation1 + $0x2] ss:$4 sm:$0xff] %v641_v57  ;;  %v491_v57 = vld [vmem:[%s8496_s26 + $0x191] sm:$0x3] }
 0x1da   : > { %2602 = vst [vmem:[#allocation1 + $0x3] ss:$4 sm:$0xff] %v8991_v43  ;;  %v9035_v43 = vld [vmem:[%s8496_s26 + $0x22] sm:$0xff] }
 0x1db   : > { %v775_v38 = vrot.slane %v9035_v43, 4 }
 0x1dc   : > { %v2628_v7 = vld.sshfl [vmem:[#allocation1 + $0x20] sm:$0xff pattern:$0x73625140] }
 0x1dd   : > { %2763 = vst [vmem:[#allocation1 + $0x20] ss:$4 sm:$0xff] %v658_v29  ;;  %v9045_v29 = vld [vmem:[%s8496_s26 + $0x32] sm:$0xff] }
 0x1de   : > { %2765 = vst [vmem:[#allocation1 + $0x21] ss:$4 sm:$0xff] %v768_v36 }
 0x1df   : > { %2767 = vst [vmem:[#allocation1 + $0x22] ss:$4 sm:$0xff] %v769_v0  ;;  %2702 = vrot.lane.b32.xlu2 %v2608_v62, %s8435_s21  ;;  %v774_v62 = vrot.slane %v9035_v43, 2  ;;  %v652_v0 = vrot.slane %v9010_v19, 4 }
 0x1e0   : > { %2769 = vst [vmem:[#allocation1 + $0x23] ss:$4 sm:$0xff] %v770_v14  ;;  %v9051_v14 = vld [vmem:[%s8496_s26 + $0x3a] sm:$0xff] }
 0x1e1   : > { %v2607_v50 = vld.sshfl [vmem:[#allocation1] sm:$0xff pattern:$0x73625140] }
 0x1e2   : > { %2700 = vrot.lane.b32.xlu1 %v2607_v50, %s8435_s21  ;;  %2609 = vst [vmem:[#allocation1] ss:$4 sm:$0xff] %v489_v26  ;;  %v779_v26 = vrot.slane %v9045_v29, 6  ;;  %v656_v50 = vrot.slane %v9014_v49, 6 }
 0x1e3   : > { %2610 = vst [vmem:[#allocation1 + $0x1] ss:$4 sm:$0xff] %v645_v63  ;;  %v780_v63 = vrot.slane %v9051_v14, 2 }
 0x1e4   : > { %2611 = vst [vmem:[#allocation1 + $0x2] ss:$4 sm:$0xff] %v646_v51 }
 0x1e5   : > { %2612 = vst [vmem:[#allocation1 + $0x3] ss:$4 sm:$0xff] %v647_v6  ;;  %v9061_v6 = vld [vmem:[%s8496_s26 + $0x4a] sm:$0xff] }
 0x1e6   : > { %v785_v49 = vrot.slane %v9061_v6, 6 }
 0x1e7   : > { %v2771_v15 = vld.sshfl [vmem:[#allocation1 + $0x20] sm:$0xff pattern:$0x73625140] }
 0x1e8   : > { %2776 = vst [vmem:[#allocation1 + $0x20] ss:$4 sm:$0xff] %v773_v44 }
 0x1e9   : > { %2777 = vst [vmem:[#allocation1 + $0x21] ss:$4 sm:$0xff] %v9035_v43 }
 0x1ea   : > { %2778 = vst [vmem:[#allocation1 + $0x22] ss:$4 sm:$0xff] %v774_v62  ;;  %2706 = vrot.lane.b32.xlu1 %v2618_v8, %s8435_s21  ;;  %v778_v8 = vrot.slane %v9045_v29, 4  ;;  %v783_v62 = vrot.slane %v9061_v6, 2 }
 0x1eb   : > { %2779 = vst [vmem:[#allocation1 + $0x23] ss:$4 sm:$0xff] %v775_v38  ;;  %v784_v38 = vrot.slane %v9061_v6, 4 }
 0x1ec   : > { %v2617_v36 = vld.sshfl [vmem:[#allocation1] sm:$0xff pattern:$0x73625140] }
 0x1ed   : > { %2704 = vrot.lane.b32.xlu0 %v2617_v36, %s8435_s21  ;;  %2619 = vst [vmem:[#allocation1] ss:$4 sm:$0xff] %v491_v57  ;;  %v657_v57 = vld [vmem:[%s8496_s26 + $0x2] sm:$0xff] }
 0x1ee   : > { %2620 = vst [vmem:[#allocation1 + $0x1] ss:$4 sm:$0xff] %v9010_v19  ;;  %v494_v19 = vld [vmem:[%s8496_s26 + $0x1a9] sm:$0x3]  ;;  %v765_v36 = vrot.slane %v657_v57, 2 }
 0x1ef   : > { %2621 = vst [vmem:[#allocation1 + $0x2] ss:$4 sm:$0xff] %v651_v13 }
 0x1f0   : > { %2622 = vst [vmem:[#allocation1 + $0x3] ss:$4 sm:$0xff] %v652_v0  ;;  %v766_v0 = vrot.slane %v657_v57, 4 }
 0x1f2   : > { %v2781_v51 = vld.sshfl [vmem:[#allocation1 + $0x20] sm:$0xff pattern:$0x73625140] }
 0x1f3   : > { %2786 = vst [vmem:[#allocation1 + $0x20] ss:$4 sm:$0xff] %v778_v8 }
 0x1f4   : > { %2787 = vst [vmem:[#allocation1 + $0x21] ss:$4 sm:$0xff] %v779_v26  ;;  %v767_v26 = vrot.slane %v657_v57, 6 }
 0x1f5   : > { %2788 = vst [vmem:[#allocation1 + $0x22] ss:$4 sm:$0xff] %v9051_v14  ;;  %2710 = vrot.lane.b32.xlu0 %v2628_v7, %s8435_s21  ;;  %v9070_v7 = vld [vmem:[%s8496_s26 + $0x52] sm:$0xff] }
 0x1f6   : > { %2789 = vst [vmem:[#allocation1 + $0x23] ss:$4 sm:$0xff] %v780_v63  ;;  %v669_v63 = vld [vmem:[%s8496_s26 + $0x62] sm:$0xff] }
 0x1f7   : > { %v2627_v44 = vld.sshfl [vmem:[#allocation1] sm:$0xff pattern:$0x73625140] }
 0x1f8   : > { %2629 = vst [vmem:[#allocation1] ss:$4 sm:$0xff] %v656_v50  ;;  %2708 = vrot.lane.b32.xlu2 %v2627_v44, %s8435_s21  ;;  %v790_v50 = vrot.slane %v669_v63, 4  ;;  %v791_v44 = vrot.slane %v669_v63, 6 }
 0x1f9   : > { %2630 = vst [vmem:[#allocation1 + $0x1] ss:$4 sm:$0xff] %v494_v19 }
 0x1fd   : > { %v2791_v13 = vld.sshfl [vmem:[#allocation1 + $0x20] sm:$0xff pattern:$0x73625140]  ;;  %2967 = vrot.lane.b32.xlu0 %v2771_v15, %s8437_s27  ;;  %v789_v15 = vrot.slane %v669_v63, 2 }
 0x1fe   : > { %2796 = vst [vmem:[#allocation1 + $0x20] ss:$4 sm:$0xff] %v783_v62  ;;  %v659_v62 = vld [vmem:[%s8496_s26 + $0x12] sm:$0x3] }
 0x1ff   : > { %2797 = vst [vmem:[#allocation1 + $0x21] ss:$4 sm:$0xff] %v784_v38  ;;  %v772_v38 = vrot.slane %v9031_v22, 4 }
 0x200   : > { %2798 = vst [vmem:[#allocation1 + $0x22] ss:$4 sm:$0xff] %v785_v49  ;;  %v2631_v8 = vld.sshfl [vmem:[#allocation1] sm:$0xff pattern:$0x73625140]  ;;  %2971 = vrot.lane.b32.xlu2 %v2781_v51, %s8437_s27  ;;  %v771_v51 = vrot.slane %v9031_v22, 2 }
 0x201   : > { %2799 = vst [vmem:[#allocation1 + $0x23] ss:$4 sm:$0xff] %v9070_v7  ;;  %2712 = vrot.lane.b32.xlu1 %v2631_v8, %s8435_s21  ;;  %v9084_v49 = vld [vmem:[%s8496_s26 + $0x7a] sm:$0xff] }
 0x202   : > { %2755 = vst [vmem:[#allocation1] ss:$4 sm:$0xff] %v657_v57 }
 0x203   : > { %2757 = vst [vmem:[#allocation1 + $0x1] ss:$4 sm:$0xff] %v765_v36  ;;  %v795_v36 = vrot.slane %v9084_v49, 2 }
 0x204   : > { %2759 = vst [vmem:[#allocation1 + $0x2] ss:$4 sm:$0xff] %v766_v0  ;;  %v796_v0 = vrot.slane %v9084_v49, 4 }
 0x205   : > { %2761 = vst [vmem:[#allocation1 + $0x3] ss:$4 sm:$0xff] %v767_v26  ;;  %v776_v26 = vrot.slane %v9035_v43, 6  ;;  %v9100_v43 = vld [vmem:[%s8496_s26 + $0x92] sm:$0xff] }
 0x208   : > { %v2801_v19 = vld.sshfl [vmem:[#allocation1 + $0x20] sm:$0xff pattern:$0x73625140] }
 0x209   : > { %2979 = vrot.lane.b32.xlu0 %v2801_v19, %s8437_s27  ;;  %2806 = vst [vmem:[#allocation1 + $0x20] ss:$4 sm:$0xff] %v669_v63  ;;  %2975 = vrot.lane.b32.xlu1 %v2791_v13, %s8437_s27  ;;  %v671_v13 = vld [vmem:[%s8496_s26 + $0x72] sm:$0x3] }
 0x20a   : > { %2807 = vst [vmem:[#allocation1 + $0x21] ss:$4 sm:$0xff] %v789_v15  ;;  %v662_v15 = vld [vmem:[%s8496_s26 + $0x2a] sm:$0x3] }
 0x20b   : > { %2808 = vst [vmem:[#allocation1 + $0x22] ss:$4 sm:$0xff] %v790_v50  ;;  %v9097_v50 = vld [vmem:[%s8496_s26 + $0x82] sm:$0xff] }
 0x20c   : > { %v2770_v57 = vld.sshfl [vmem:[#allocation1] sm:$0xff pattern:$0x73625140]  ;;  %2809 = vst [vmem:[#allocation1 + $0x23] ss:$4 sm:$0xff] %v791_v44  ;;  %v800_v19 = vrot.slane %v9097_v50, 6 }
 0x20d   : > { %2772 = vst [vmem:[#allocation1] ss:$4 sm:$0xff] %v659_v62  ;;  %2965 = vrot.lane.b32.xlu2 %v2770_v57, %s8437_s27  ;;  %v674_v44 = vld [vmem:[%s8496_s26 + $0x8a] sm:$0x3]  ;;  %v665_v57 = vld [vmem:[%s8496_s26 + $0x42] sm:$0x3] }
 0x20e   : > { %2773 = vst [vmem:[#allocation1 + $0x1] ss:$4 sm:$0xff] %v9031_v22  ;;  %v777_v22 = vrot.slane %v9045_v29, 2 }
 0x20f   : > { %2774 = vst [vmem:[#allocation1 + $0x2] ss:$4 sm:$0xff] %v771_v51  ;;  %v801_v51 = vrot.slane %v9100_v43, 2 }
 0x210   : > { %2775 = vst [vmem:[#allocation1 + $0x3] ss:$4 sm:$0xff] %v772_v38  ;;  %v782_v38 = vrot.slane %v9051_v14, 6 }
 0x213   : > { %v2811_v8 = vld.sshfl [vmem:[#allocation1 + $0x20] sm:$0xff pattern:$0x73625140] }
 0x214   : > { %2816 = vst [vmem:[#allocation1 + $0x20] ss:$4 sm:$0xff] %v671_v13 }
 0x215   : > { %2817 = vst [vmem:[#allocation1 + $0x21] ss:$4 sm:$0xff] %v9084_v49  ;;  %2983 = vrot.lane.b32.xlu2 %v2811_v8, %s8437_s27 }
 0x216   : > { %2818 = vst [vmem:[#allocation1 + $0x22] ss:$4 sm:$0xff] %v795_v36  ;;  %v9112_v36 = vld [vmem:[%s8496_s26 + $0x9a] sm:$0xff] }
 0x217   : > { %v2780_v63 = vld.sshfl [vmem:[#allocation1] sm:$0xff pattern:$0x73625140]  ;;  %2819 = vst [vmem:[#allocation1 + $0x23] ss:$4 sm:$0xff] %v796_v0  ;;  %v806_v0 = vrot.slane %v9112_v36, 6 }
 0x218   : > { %2784 = vst [vmem:[#allocation1 + $0x2] ss:$4 sm:$0xff] %v9045_v29  ;;  %2969 = vrot.lane.b32.xlu1 %v2780_v63, %s8437_s27  ;;  %v781_v29 = vrot.slane %v9051_v14, 4  ;;  %v805_v14 = vrot.slane %v9112_v36, 4  ;;  %v9120_v63 = vld [vmem:[%s8496_s26 + $0xaa] sm:$0xff] }
 0x219   : > { %2782 = vst [vmem:[#allocation1] ss:$4 sm:$0xff] %v776_v26  ;;  %v677_v26 = vld [vmem:[%s8496_s26 + $0xa2] sm:$0x3] }
 0x21a   : > { %2785 = vst [vmem:[#allocation1 + $0x3] ss:$4 sm:$0xff] %v777_v22  ;;  %v786_v22 = vrot.slane %v9070_v7, 2 }
 0x21b   : > { %2783 = vst [vmem:[#allocation1 + $0x1] ss:$4 sm:$0xff] %v662_v15  ;;  %v787_v15 = vrot.slane %v9070_v7, 4 }
 0x21e   : > { %v2821_v62 = vld.sshfl [vmem:[#allocation1 + $0x20] sm:$0xff pattern:$0x73625140] }
 0x21f   : > { %2826 = vst [vmem:[#allocation1 + $0x20] ss:$4 sm:$0xff] %v800_v19 }
 0x220   : > { %2987 = vrot.lane.b32.xlu1 %v2821_v62, %s8437_s27  ;;  %2827 = vst [vmem:[#allocation1 + $0x21] ss:$4 sm:$0xff] %v674_v44  ;;  %v668_v44 = vld [vmem:[%s8496_s26 + $0x5a] sm:$0x3]  ;;  %v9129_v62 = vld [vmem:[%s8496_s26 + $0xb2] sm:$0xff] }
 0x221   : > { %2828 = vst [vmem:[#allocation1 + $0x22] ss:$4 sm:$0xff] %v9100_v43 }
 0x222   : > { %v2790_v13 = vld.sshfl [vmem:[#allocation1] sm:$0xff pattern:$0x73625140]  ;;  %2829 = vst [vmem:[#allocation1 + $0x23] ss:$4 sm:$0xff] %v801_v51  ;;  %v810_v51 = vrot.slane %v9129_v62, 2 }
 0x223   : > { %2792 = vst [vmem:[#allocation1] ss:$4 sm:$0xff] %v781_v29  ;;  %2973 = vrot.lane.b32.xlu0 %v2790_v13, %s8437_s27  ;;  %v811_v29 = vrot.slane %v9129_v62, 4  ;;  %v680_v13 = vld [vmem:[%s8496_s26 + $0xba] sm:$0x3] }
 0x224   : > { %2793 = vst [vmem:[#allocation1 + $0x1] ss:$4 sm:$0xff] %v782_v38  ;;  %v670_v38 = vld [vmem:[%s8496_s26 + $0x6a] sm:$0xff] }
 0x225   : > { %2794 = vst [vmem:[#allocation1 + $0x2] ss:$4 sm:$0xff] %v665_v57 }
 0x226   : > { %2795 = vst [vmem:[#allocation1 + $0x3] ss:$4 sm:$0xff] %v9061_v6  ;;  %v788_v6 = vrot.slane %v9070_v7, 6  ;;  %v812_v7 = vrot.slane %v9129_v62, 6 }
 0x229   : > { %v2831_v8 = vld.sshfl [vmem:[#allocation1 + $0x20] sm:$0xff pattern:$0x73625140] }
 0x22a   : > { %2836 = vst [vmem:[#allocation1 + $0x20] ss:$4 sm:$0xff] %v805_v14  ;;  %v792_v14 = vrot.slane %v670_v38, 2 }
 0x22b   : > { %2991 = vrot.lane.b32.xlu0 %v2831_v8, %s8437_s27  ;;  %2837 = vst [vmem:[#allocation1 + $0x21] ss:$4 sm:$0xff] %v806_v0  ;;  %v793_v0 = vrot.slane %v670_v38, 4 }
 0x22c   : > { %2838 = vst [vmem:[#allocation1 + $0x22] ss:$4 sm:$0xff] %v677_v26  ;;  %v794_v26 = vrot.slane %v670_v38, 6 }
 0x22d   : > { %v2800_v19 = vld.sshfl [vmem:[#allocation1] sm:$0xff pattern:$0x73625140]  ;;  %2839 = vst [vmem:[#allocation1 + $0x23] ss:$4 sm:$0xff] %v9120_v63 }
 0x22e   : > { %2802 = vst [vmem:[#allocation1] ss:$4 sm:$0xff] %v786_v22  ;;  %2977 = vrot.lane.b32.xlu2 %v2800_v19, %s8437_s27  ;;  %v682_v22 = vld [vmem:[%s8496_s26 + $0xca] sm:$0xff] }
 0x22f   : > { %2803 = vst [vmem:[#allocation1 + $0x1] ss:$4 sm:$0xff] %v787_v15  ;;  %v816_v15 = vrot.slane %v682_v22, 2 }
 0x230   : > { %2804 = vst [vmem:[#allocation1 + $0x2] ss:$4 sm:$0xff] %v788_v6  ;;  %v817_v6 = vrot.slane %v682_v22, 4 }
 0x231   : > { %2805 = vst [vmem:[#allocation1 + $0x3] ss:$4 sm:$0xff] %v668_v44  ;;  %v818_v44 = vrot.slane %v682_v22, 6 }
 0x234   : > { %v2841_v57 = vld.sshfl [vmem:[#allocation1 + $0x20] sm:$0xff pattern:$0x73625140] }
 0x235   : > { %2846 = vst [vmem:[#allocation1 + $0x20] ss:$4 sm:$0xff] %v810_v51  ;;  %v797_v51 = vrot.slane %v9084_v49, 6  ;;  %v9149_v49 = vld [vmem:[%s8496_s26 + $0xe2] sm:$0xff] }
 0x236   : > { %2847 = vst [vmem:[#allocation1 + $0x21] ss:$4 sm:$0xff] %v811_v29  ;;  %2995 = vrot.lane.b32.xlu2 %v2841_v57, %s8437_s27  ;;  %v798_v29 = vrot.slane %v9097_v50, 2  ;;  %v9145_v57 = vld [vmem:[%s8496_s26 + $0xda] sm:$0xff] }
 0x237   : > { %2848 = vst [vmem:[#allocation1 + $0x22] ss:$4 sm:$0xff] %v812_v7 }
 0x238   : > { %v2810_v8 = vld.sshfl [vmem:[#allocation1] sm:$0xff pattern:$0x73625140]  ;;  %2849 = vst [vmem:[#allocation1 + $0x23] ss:$4 sm:$0xff] %v680_v13  ;;  %v821_v13 = vrot.slane %v9145_v57, 6 }
 0x239   : > { %2981 = vrot.lane.b32.xlu1 %v2810_v8, %s8437_s27  ;;  %2812 = vst [vmem:[#allocation1] ss:$4 sm:$0xff] %v670_v38  ;;  %v799_v38 = vrot.slane %v9097_v50, 4  ;;  %v823_v8 = vrot.slane %v9149_v49, 4 }
 0x23a   : > { %2813 = vst [vmem:[#allocation1 + $0x1] ss:$4 sm:$0xff] %v792_v14  ;;  %v822_v14 = vrot.slane %v9149_v49, 2 }
 0x23b   : > { %2814 = vst [vmem:[#allocation1 + $0x2] ss:$4 sm:$0xff] %v793_v0 }
 0x23c   : > { %2815 = vst [vmem:[#allocation1 + $0x3] ss:$4 sm:$0xff] %v794_v26  ;;  %v803_v26 = vrot.slane %v9100_v43, 6 }
 0x23f   : > { %v2851_v19 = vld.sshfl [vmem:[#allocation1 + $0x20] sm:$0xff pattern:$0x73625140] }
 0x240   : > { %2856 = vst [vmem:[#allocation1 + $0x20] ss:$4 sm:$0xff] %v682_v22  ;;  %v802_v22 = vrot.slane %v9100_v43, 4 }
 0x241   : > { %2999 = vrot.lane.b32.xlu1 %v2851_v19, %s8437_s27  ;;  %2857 = vst [vmem:[#allocation1 + $0x21] ss:$4 sm:$0xff] %v816_v15  ;;  %v804_v15 = vrot.slane %v9112_v36, 2  ;;  %v9165_v19 = vld [vmem:[%s8496_s26 + $0xfa] sm:$0xff] }
 0x242   : > { %2858 = vst [vmem:[#allocation1 + $0x22] ss:$4 sm:$0xff] %v817_v6  ;;  %v9161_v6 = vld [vmem:[%s8496_s26 + $0xf2] sm:$0xff] }
 0x243   : > { %v2820_v7 = vld.sshfl [vmem:[#allocation1] sm:$0xff pattern:$0x73625140]  ;;  %2859 = vst [vmem:[#allocation1 + $0x23] ss:$4 sm:$0xff] %v818_v44  ;;  %v826_v43 = vrot.slane %v9161_v6, 4 }
 0x244   : > { %2822 = vst [vmem:[#allocation1] ss:$4 sm:$0xff] %v797_v51  ;;  %2985 = vrot.lane.b32.xlu0 %v2820_v7, %s8437_s27  ;;  %v827_v44 = vrot.slane %v9161_v6, 6  ;;  %v828_v51 = vrot.slane %v9165_v19, 2  ;;  %v808_v7 = vrot.slane %v9120_v63, 4 }
 0x245   : > { %2823 = vst [vmem:[#allocation1 + $0x1] ss:$4 sm:$0xff] %v9097_v50 }
 0x246   : > { %2824 = vst [vmem:[#allocation1 + $0x2] ss:$4 sm:$0xff] %v798_v29 }
 0x247   : > { %2825 = vst [vmem:[#allocation1 + $0x3] ss:$4 sm:$0xff] %v799_v38  ;;  %v807_v38 = vrot.slane %v9120_v63, 2 }
 0x24a   : > { %v2861_v0 = vld.sshfl [vmem:[#allocation1 + $0x20] sm:$0xff pattern:$0x73625140] }
 0x24b   : > { %2866 = vst [vmem:[#allocation1 + $0x20] ss:$4 sm:$0xff] %v821_v13 }
 0x24c   : > { %3003 = vrot.lane.b32.xlu0 %v2861_v0, %s8437_s27  ;;  %2867 = vst [vmem:[#allocation1 + $0x21] ss:$4 sm:$0xff] %v9149_v49 }
 0x24d   : > { %2868 = vst [vmem:[#allocation1 + $0x22] ss:$4 sm:$0xff] %v822_v14  ;;  %v9177_v14 = vld [vmem:[%s8496_s26 + $0x10a] sm:$0xff] }
 0x24e   : > { %v2830_v50 = vld.sshfl [vmem:[#allocation1] sm:$0xff pattern:$0x73625140]  ;;  %2869 = vst [vmem:[#allocation1 + $0x23] ss:$4 sm:$0xff] %v823_v8  ;;  %v831_v0 = vrot.slane %v9177_v14, 2 }
 0x24f   : > { %2833 = vst [vmem:[#allocation1 + $0x1] ss:$4 sm:$0xff] %v803_v26  ;;  %2989 = vrot.lane.b32.xlu2 %v2830_v50, %s8437_s27  ;;  %v832_v8 = vrot.slane %v9177_v14, 4  ;;  %v681_v26 = vld [vmem:[%s8496_s26 + $0xc2] sm:$0xff]  ;;  %v9185_v50 = vld [vmem:[%s8496_s26 + $0x112] sm:$0xff] }
 0x250   : > { %2832 = vst [vmem:[#allocation1] ss:$4 sm:$0xff] %v802_v22 }
 0x251   : > { %2834 = vst [vmem:[#allocation1 + $0x2] ss:$4 sm:$0xff] %v9112_v36  ;;  %v809_v36 = vrot.slane %v9120_v63, 6  ;;  %v833_v63 = vrot.slane %v9177_v14, 6 }
 0x252   : > { %2835 = vst [vmem:[#allocation1 + $0x3] ss:$4 sm:$0xff] %v804_v15  ;;  %v813_v15 = vrot.slane %v681_v26, 2 }
 0x255   : > { %v2871_v29 = vld.sshfl [vmem:[#allocation1 + $0x20] sm:$0xff pattern:$0x73625140] }
 0x256   : > { %2876 = vst [vmem:[#allocation1 + $0x20] ss:$4 sm:$0xff] %v826_v43  ;;  %v814_v43 = vrot.slane %v681_v26, 4 }
 0x257   : > { %2877 = vst [vmem:[#allocation1 + $0x21] ss:$4 sm:$0xff] %v827_v44  ;;  %3007 = vrot.lane.b32.xlu2 %v2871_v29, %s8437_s27 }
 0x258   : > { %2878 = vst [vmem:[#allocation1 + $0x22] ss:$4 sm:$0xff] %v9165_v19 }
 0x259   : > { %v2840_v13 = vld.sshfl [vmem:[#allocation1] sm:$0xff pattern:$0x73625140]  ;;  %2879 = vst [vmem:[#allocation1 + $0x23] ss:$4 sm:$0xff] %v828_v51 }
 0x25a   : > { %2842 = vst [vmem:[#allocation1] ss:$4 sm:$0xff] %v807_v38  ;;  %2993 = vrot.lane.b32.xlu1 %v2840_v13, %s8437_s27  ;;  %v693_v51 = vld [vmem:[%s8496_s26 + $0x122] sm:$0xff]  ;;  %v683_v13 = vld [vmem:[%s8496_s26 + $0xd2] sm:$0x3] }
 0x25b   : > { %2843 = vst [vmem:[#allocation1 + $0x1] ss:$4 sm:$0xff] %v808_v7  ;;  %v837_v29 = vrot.slane %v693_v51, 2  ;;  %v838_v38 = vrot.slane %v693_v51, 4 }
 0x25c   : > { %2844 = vst [vmem:[#allocation1 + $0x2] ss:$4 sm:$0xff] %v809_v36  ;;  %v839_v36 = vrot.slane %v693_v51, 6 }
 0x25d   : > { %2845 = vst [vmem:[#allocation1 + $0x3] ss:$4 sm:$0xff] %v9129_v62  ;;  %v815_v62 = vrot.slane %v681_v26, 6 }
 0x260   : > { %v2881_v22 = vld.sshfl [vmem:[#allocation1 + $0x20] sm:$0xff pattern:$0x73625140] }
 0x261   : > { %2886 = vst [vmem:[#allocation1 + $0x20] ss:$4 sm:$0xff] %v831_v0  ;;  %v819_v0 = vrot.slane %v9145_v57, 2 }
 0x262   : > { %3011 = vrot.lane.b32.xlu1 %v2881_v22, %s8437_s27  ;;  %2887 = vst [vmem:[#allocation1 + $0x21] ss:$4 sm:$0xff] %v832_v8  ;;  %v820_v8 = vrot.slane %v9145_v57, 4  ;;  %v695_v22 = vld [vmem:[%s8496_s26 + $0x132] sm:$0x3] }
 0x263   : > { %2888 = vst [vmem:[#allocation1 + $0x22] ss:$4 sm:$0xff] %v833_v63  ;;  %v9198_v63 = vld [vmem:[%s8496_s26 + $0x13a] sm:$0xff] }
 0x264   : > { %v2850_v44 = vld.sshfl [vmem:[#allocation1] sm:$0xff pattern:$0x73625140]  ;;  %2889 = vst [vmem:[#allocation1 + $0x23] ss:$4 sm:$0xff] %v9185_v50 }
 0x265   : > { %2852 = vst [vmem:[#allocation1] ss:$4 sm:$0xff] %v681_v26  ;;  %2997 = vrot.lane.b32.xlu0 %v2850_v44, %s8437_s27  ;;  %v824_v44 = vrot.slane %v9149_v49, 6  ;;  %v9214_v49 = vld [vmem:[%s8496_s26 + $0x152] sm:$0xff] }
 0x266   : > { %2853 = vst [vmem:[#allocation1 + $0x1] ss:$4 sm:$0xff] %v813_v15  ;;  %v843_v15 = vrot.slane %v9198_v63, 2 }
 0x267   : > { %2854 = vst [vmem:[#allocation1 + $0x2] ss:$4 sm:$0xff] %v814_v43  ;;  %v844_v43 = vrot.slane %v9198_v63, 4 }
 0x268   : > { %2855 = vst [vmem:[#allocation1 + $0x3] ss:$4 sm:$0xff] %v815_v62 }
 0x26b   : > { %v2891_v7 = vld.sshfl [vmem:[#allocation1 + $0x20] sm:$0xff pattern:$0x73625140] }
 0x26c   : > { %2896 = vst [vmem:[#allocation1 + $0x20] ss:$4 sm:$0xff] %v693_v51 }
 0x26d   : > { %3015 = vrot.lane.b32.xlu0 %v2891_v7, %s8437_s27  ;;  %2897 = vst [vmem:[#allocation1 + $0x21] ss:$4 sm:$0xff] %v837_v29  ;;  %v686_v29 = vld [vmem:[%s8496_s26 + $0xea] sm:$0x3] }
 0x26e   : > { %2898 = vst [vmem:[#allocation1 + $0x22] ss:$4 sm:$0xff] %v838_v38  ;;  %v9211_v38 = vld [vmem:[%s8496_s26 + $0x142] sm:$0xff] }
 0x26f   : > { %v2860_v26 = vld.sshfl [vmem:[#allocation1] sm:$0xff pattern:$0x73625140]  ;;  %2899 = vst [vmem:[#allocation1 + $0x23] ss:$4 sm:$0xff] %v839_v36  ;;  %v848_v7 = vrot.slane %v9211_v38, 6 }
 0x270   : > { %2862 = vst [vmem:[#allocation1] ss:$4 sm:$0xff] %v683_v13  ;;  %3001 = vrot.lane.b32.xlu2 %v2860_v26, %s8437_s27  ;;  %v698_v36 = vld [vmem:[%s8496_s26 + $0x14a] sm:$0x3]  ;;  %v689_v26 = vld [vmem:[%s8496_s26 + $0x102] sm:$0x3] }
 0x271   : > { %2863 = vst [vmem:[#allocation1 + $0x1] ss:$4 sm:$0xff] %v9145_v57  ;;  %v825_v57 = vrot.slane %v9161_v6, 2 }
 0x272   : > { %2864 = vst [vmem:[#allocation1 + $0x2] ss:$4 sm:$0xff] %v819_v0  ;;  %v849_v0 = vrot.slane %v9214_v49, 2 }
 0x273   : > { %2865 = vst [vmem:[#allocation1 + $0x3] ss:$4 sm:$0xff] %v820_v8  ;;  %v830_v8 = vrot.slane %v9165_v19, 6 }
 0x276   : > { %v2901_v62 = vld.sshfl [vmem:[#allocation1 + $0x20] sm:$0xff pattern:$0x73625140] }
 0x277   : > { %2906 = vst [vmem:[#allocation1 + $0x20] ss:$4 sm:$0xff] %v695_v22 }
 0x278   : > { %2907 = vst [vmem:[#allocation1 + $0x21] ss:$4 sm:$0xff] %v9198_v63  ;;  %3019 = vrot.lane.b32.xlu2 %v2901_v62, %s8437_s27 }
 0x279   : > { %2908 = vst [vmem:[#allocation1 + $0x22] ss:$4 sm:$0xff] %v843_v15  ;;  %v9226_v15 = vld [vmem:[%s8496_s26 + $0x15a] sm:$0xff] }
 0x27a   : > { %v2870_v51 = vld.sshfl [vmem:[#allocation1] sm:$0xff pattern:$0x73625140]  ;;  %2909 = vst [vmem:[#allocation1 + $0x23] ss:$4 sm:$0xff] %v844_v43  ;;  %v854_v43 = vrot.slane %v9226_v15, 6 }
 0x27b   : > { %2874 = vst [vmem:[#allocation1 + $0x2] ss:$4 sm:$0xff] %v9161_v6  ;;  %3005 = vrot.lane.b32.xlu1 %v2870_v51, %s8437_s27  ;;  %v829_v6 = vrot.slane %v9165_v19, 4  ;;  %v853_v19 = vrot.slane %v9226_v15, 4  ;;  %v9234_v51 = vld [vmem:[%s8496_s26 + $0x16a] sm:$0xff] }
 0x27c   : > { %2872 = vst [vmem:[#allocation1] ss:$4 sm:$0xff] %v824_v44  ;;  %v701_v44 = vld [vmem:[%s8496_s26 + $0x162] sm:$0x3] }
 0x27d   : > { %2875 = vst [vmem:[#allocation1 + $0x3] ss:$4 sm:$0xff] %v825_v57  ;;  %v834_v57 = vrot.slane %v9185_v50, 2 }
 0x27e   : > { %2873 = vst [vmem:[#allocation1 + $0x1] ss:$4 sm:$0xff] %v686_v29  ;;  %v835_v29 = vrot.slane %v9185_v50, 4 }
 0x281   : > { %v2911_v13 = vld.sshfl [vmem:[#allocation1 + $0x20] sm:$0xff pattern:$0x73625140] }
 0x282   : > { %2916 = vst [vmem:[#allocation1 + $0x20] ss:$4 sm:$0xff] %v848_v7 }
 0x283   : > { %3023 = vrot.lane.b32.xlu1 %v2911_v13, %s8437_s27  ;;  %2917 = vst [vmem:[#allocation1 + $0x21] ss:$4 sm:$0xff] %v698_v36  ;;  %v692_v36 = vld [vmem:[%s8496_s26 + $0x11a] sm:$0x3]  ;;  %v9243_v13 = vld [vmem:[%s8496_s26 + $0x172] sm:$0xff] }
 0x284   : > { %2918 = vst [vmem:[#allocation1 + $0x22] ss:$4 sm:$0xff] %v9214_v49 }
 0x285   : > { %v2880_v22 = vld.sshfl [vmem:[#allocation1] sm:$0xff pattern:$0x73625140]  ;;  %2919 = vst [vmem:[#allocation1 + $0x23] ss:$4 sm:$0xff] %v849_v0  ;;  %v858_v0 = vrot.slane %v9243_v13, 2 }
 0x286   : > { %2882 = vst [vmem:[#allocation1] ss:$4 sm:$0xff] %v829_v6  ;;  %3009 = vrot.lane.b32.xlu0 %v2880_v22, %s8437_s27  ;;  %v859_v6 = vrot.slane %v9243_v13, 4  ;;  %v704_v22 = vld [vmem:[%s8496_s26 + $0x17a] sm:$0x3] }
 0x287   : > { %2883 = vst [vmem:[#allocation1 + $0x1] ss:$4 sm:$0xff] %v830_v8  ;;  %v694_v8 = vld [vmem:[%s8496_s26 + $0x12a] sm:$0xff] }
 0x288   : > { %2884 = vst [vmem:[#allocation1 + $0x2] ss:$4 sm:$0xff] %v689_v26 }
 0x289   : > { %2885 = vst [vmem:[#allocation1 + $0x3] ss:$4 sm:$0xff] %v9177_v14  ;;  %v836_v14 = vrot.slane %v9185_v50, 6  ;;  %v860_v50 = vrot.slane %v9243_v13, 6 }
 0x28c   : > { %v2921_v62 = vld.sshfl [vmem:[#allocation1 + $0x20] sm:$0xff pattern:$0x73625140] }
 0x28d   : > { %2926 = vst [vmem:[#allocation1 + $0x20] ss:$4 sm:$0xff] %v853_v19  ;;  %v840_v19 = vrot.slane %v694_v8, 2 }
 0x28e   : > { %3027 = vrot.lane.b32.xlu0 %v2921_v62, %s8437_s27  ;;  %2927 = vst [vmem:[#allocation1 + $0x21] ss:$4 sm:$0xff] %v854_v43  ;;  %v841_v43 = vrot.slane %v694_v8, 4 }
 0x28f   : > { %2928 = vst [vmem:[#allocation1 + $0x22] ss:$4 sm:$0xff] %v701_v44  ;;  %v842_v44 = vrot.slane %v694_v8, 6 }
 0x290   : > { %v2890_v7 = vld.sshfl [vmem:[#allocation1] sm:$0xff pattern:$0x73625140]  ;;  %2929 = vst [vmem:[#allocation1 + $0x23] ss:$4 sm:$0xff] %v9234_v51 }
 0x291   : > { %2892 = vst [vmem:[#allocation1] ss:$4 sm:$0xff] %v834_v57  ;;  %3013 = vrot.lane.b32.xlu2 %v2890_v7, %s8437_s27  ;;  %v706_v57 = vld [vmem:[%s8496_s26 + $0x18a] sm:$0xff] }
 0x292   : > { %2893 = vst [vmem:[#allocation1 + $0x1] ss:$4 sm:$0xff] %v835_v29  ;;  %v864_v29 = vrot.slane %v706_v57, 2 }
 0x293   : > { %2894 = vst [vmem:[#allocation1 + $0x2] ss:$4 sm:$0xff] %v836_v14  ;;  %v865_v14 = vrot.slane %v706_v57, 4 }
 0x294   : > { %2895 = vst [vmem:[#allocation1 + $0x3] ss:$4 sm:$0xff] %v692_v36  ;;  %v866_v36 = vrot.slane %v706_v57, 6 }
 0x297   : > { %v2931_v26 = vld.sshfl [vmem:[#allocation1 + $0x20] sm:$0xff pattern:$0x73625140] }
 0x298   : > { %2936 = vst [vmem:[#allocation1 + $0x20] ss:$4 sm:$0xff] %v858_v0  ;;  %v845_v0 = vrot.slane %v9198_v63, 6 }
 0x299   : > { %2937 = vst [vmem:[#allocation1 + $0x21] ss:$4 sm:$0xff] %v859_v6  ;;  %3031 = vrot.lane.b32.xlu2 %v2931_v26, %s8437_s27  ;;  %v846_v6 = vrot.slane %v9211_v38, 2  ;;  %v9260_v26 = vld [vmem:[%s8496_s26 + $0x19a] sm:$0xff] }
 0x29a   : > { %2938 = vst [vmem:[#allocation1 + $0x22] ss:$4 sm:$0xff] %v860_v50  ;;  %v869_v63 = vrot.slane %v9260_v26, 6 }
 0x29b   : > { %v2900_v62 = vld.sshfl [vmem:[#allocation1] sm:$0xff pattern:$0x73625140]  ;;  %2939 = vst [vmem:[#allocation1 + $0x23] ss:$4 sm:$0xff] %v704_v22 }
 0x29c   : > { %3017 = vrot.lane.b32.xlu1 %v2900_v62, %s8437_s27  ;;  %2902 = vst [vmem:[#allocation1] ss:$4 sm:$0xff] %v694_v8  ;;  %v847_v8 = vrot.slane %v9211_v38, 4  ;;  %v9263_v22 = vld [vmem:[%s8496_s26 + $0x1a2] sm:$0xff] }
 0x29d   : > { %2903 = vst [vmem:[#allocation1 + $0x1] ss:$4 sm:$0xff] %v840_v19  ;;  %v870_v19 = vrot.slane %v9263_v22, 2  ;;  %v871_v62 = vrot.slane %v9263_v22, 4 }
 0x29e   : > { %2904 = vst [vmem:[#allocation1 + $0x2] ss:$4 sm:$0xff] %v841_v43 }
 0x29f   : > { %2905 = vst [vmem:[#allocation1 + $0x3] ss:$4 sm:$0xff] %v842_v44  ;;  %v850_v44 = vrot.slane %v9214_v49, 4 }
 0x2a2   : > { %v2941_v7 = vld.sshfl [vmem:[#allocation1 + $0x20] sm:$0xff pattern:$0x73625140] }
 0x2a3   : > { %2946 = vst [vmem:[#allocation1 + $0x20] ss:$4 sm:$0xff] %v706_v57  ;;  %v852_v57 = vrot.slane %v9226_v15, 2 }
 0x2a4   : > { %3035 = vrot.lane.b32.xlu1 %v2941_v7, %s8437_s27  ;;  %2947 = vst [vmem:[#allocation1 + $0x21] ss:$4 sm:$0xff] %v864_v29 }
 0x2a5   : > { %2948 = vst [vmem:[#allocation1 + $0x22] ss:$4 sm:$0xff] %v865_v14  ;;  %v7940_v14 = vld [vmem:[%s8496_s26 + $0x20] sm:$0xff] }
 0x2a6   : > { %v2910_v50 = vld.sshfl [vmem:[#allocation1] sm:$0xff pattern:$0x73625140]  ;;  %2949 = vst [vmem:[#allocation1 + $0x23] ss:$4 sm:$0xff] %v866_v36  ;;  %v985_v7 = vrot.slane %v7940_v14, 2 }
 0x2a7   : > { %2913 = vst [vmem:[#allocation1 + $0x1] ss:$4 sm:$0xff] %v9211_v38  ;;  %3021 = vrot.lane.b32.xlu0 %v2910_v50, %s8437_s27  ;;  %v851_v38 = vrot.slane %v9214_v49, 6  ;;  %v986_v49 = vrot.slane %v7940_v14, 4  ;;  %v857_v50 = vrot.slane %v9234_v51, 6 }
 0x2a8   : > { %2912 = vst [vmem:[#allocation1] ss:$4 sm:$0xff] %v845_v0  ;;  %v987_v0 = vrot.slane %v7940_v14, 6 }
 0x2a9   : > { %2914 = vst [vmem:[#allocation1 + $0x2] ss:$4 sm:$0xff] %v846_v6  ;;  %v855_v6 = vrot.slane %v9234_v51, 2 }
 0x2aa   : > { %2915 = vst [vmem:[#allocation1 + $0x3] ss:$4 sm:$0xff] %v847_v8  ;;  %v856_v8 = vrot.slane %v9234_v51, 4 }
 0x2ad   : > { %v2951_v43 = vld.sshfl [vmem:[#allocation1 + $0x20] sm:$0xff pattern:$0x73625140] }
 0x2ae   : > { %2956 = vst [vmem:[#allocation1 + $0x20] ss:$4 sm:$0xff] %v869_v63  ;;  %v9282_v63 = vld [vmem:[%s8496_s26 + $0x30] sm:$0xff] }
 0x2af   : > { %3039 = vrot.lane.b32.xlu0 %v2951_v43, %s8437_s27  ;;  %2957 = vst [vmem:[#allocation1 + $0x21] ss:$4 sm:$0xff] %v9263_v22  ;;  %v990_v43 = vrot.slane %v9282_v63, 6 }
 0x2b0   : > { %2958 = vst [vmem:[#allocation1 + $0x22] ss:$4 sm:$0xff] %v870_v19  ;;  %v9285_v19 = vld [vmem:[%s8496_s26 + $0x38] sm:$0xff] }
 0x2b1   : > { %v2920_v29 = vld.sshfl [vmem:[#allocation1] sm:$0xff pattern:$0x73625140]  ;;  %2959 = vst [vmem:[#allocation1 + $0x23] ss:$4 sm:$0xff] %v871_v62  ;;  %v991_v51 = vrot.slane %v9285_v19, 2 }
 0x2b2   : > { %2922 = vst [vmem:[#allocation1] ss:$4 sm:$0xff] %v850_v44  ;;  %3025 = vrot.lane.b32.xlu2 %v2920_v29, %s8437_s27  ;;  %v705_v62 = vld [vmem:[%s8496_s26 + $0x182] sm:$0xff]  ;;  %v992_v44 = vrot.slane %v9285_v19, 4 }
 0x2b3   : > { %2923 = vst [vmem:[#allocation1 + $0x1] ss:$4 sm:$0xff] %v851_v38  ;;  %v862_v29 = vrot.slane %v705_v62, 4 }
 0x2b4   : > { %2924 = vst [vmem:[#allocation1 + $0x2] ss:$4 sm:$0xff] %v9226_v15 }
 0x2b5   : > { %2925 = vst [vmem:[#allocation1 + $0x3] ss:$4 sm:$0xff] %v852_v57  ;;  %v861_v57 = vrot.slane %v705_v62, 2 }
 0x2b8   : > { %v2961_v36 = vld.sshfl [vmem:[#allocation1 + $0x20] sm:$0xff pattern:$0x73625140] }
 0x2b9   : > { %3096 = vst [vmem:[#allocation1 + $0x20] ss:$4 sm:$0xff] %v7940_v14 }
 0x2ba   : > { %3043 = vrot.lane.b32.xlu2 %v2961_v36, %s8437_s27  ;;  %3098 = vst [vmem:[#allocation1 + $0x21] ss:$4 sm:$0xff] %v985_v7  ;;  %v863_v7 = vrot.slane %v705_v62, 6 }
 0x2bb   : > { %3100 = vst [vmem:[#allocation1 + $0x22] ss:$4 sm:$0xff] %v986_v49  ;;  %v9298_v49 = vld [vmem:[%s8496_s26 + $0x50] sm:$0xff] }
 0x2bc   : > { %v2930_v15 = vld.sshfl [vmem:[#allocation1] sm:$0xff pattern:$0x73625140]  ;;  %3102 = vst [vmem:[#allocation1 + $0x23] ss:$4 sm:$0xff] %v987_v0 }
 0x2bd   : > { %2932 = vst [vmem:[#allocation1] ss:$4 sm:$0xff] %v855_v6  ;;  %3029 = vrot.lane.b32.xlu1 %v2930_v15, %s8437_s27  ;;  %v867_v15 = vrot.slane %v9260_v26, 2 }
 0x2be   : > { %2933 = vst [vmem:[#allocation1 + $0x1] ss:$4 sm:$0xff] %v856_v8  ;;  %v997_v8 = vrot.slane %v9298_v49, 2 }
 0x2bf   : > { %2934 = vst [vmem:[#allocation1 + $0x2] ss:$4 sm:$0xff] %v857_v50  ;;  %v707_v50 = vld [vmem:[%s8496_s26 + $0x192] sm:$0x3] }
 0x2c0   : > { %2935 = vst [vmem:[#allocation1 + $0x3] ss:$4 sm:$0xff] %v9243_v13  ;;  %v9295_v13 = vld [vmem:[%s8496_s26 + $0x48] sm:$0xff] }
 0x2c1   : > { %v995_v36 = vrot.slane %v9295_v13, 4  ;;  %v996_v0 = vrot.slane %v9295_v13, 6 }
 0x2c3   : > { %v3104_v38 = vld.sshfl [vmem:[#allocation1 + $0x20] sm:$0xff pattern:$0x73625140] }
 0x2c4   : > { %3109 = vst [vmem:[#allocation1 + $0x20] ss:$4 sm:$0xff] %v990_v43  ;;  %v868_v43 = vrot.slane %v9260_v26, 4 }
 0x2c5   : > { %3110 = vst [vmem:[#allocation1 + $0x21] ss:$4 sm:$0xff] %v9285_v19 }
 0x2c6   : > { %3111 = vst [vmem:[#allocation1 + $0x22] ss:$4 sm:$0xff] %v991_v51  ;;  %v9309_v51 = vld [vmem:[%s8496_s26 + $0x60] sm:$0xff] }
 0x2c7   : > { %v2940_v14 = vld.sshfl [vmem:[#allocation1] sm:$0xff pattern:$0x73625140]  ;;  %3112 = vst [vmem:[#allocation1 + $0x23] ss:$4 sm:$0xff] %v992_v44  ;;  %v1000_v44 = vrot.slane %v9309_v51, 2 }
 0x2c8   : > { %2942 = vst [vmem:[#allocation1] ss:$4 sm:$0xff] %v705_v62  ;;  %3033 = vrot.lane.b32.xlu0 %v2940_v14, %s8437_s27 }
 0x2c9   : > { %2943 = vst [vmem:[#allocation1 + $0x1] ss:$4 sm:$0xff] %v861_v57  ;;  %v1001_v57 = vrot.slane %v9309_v51, 4 }
 0x2ca   : > { %2944 = vst [vmem:[#allocation1 + $0x2] ss:$4 sm:$0xff] %v862_v29  ;;  %v1002_v29 = vrot.slane %v9309_v51, 6 }
 0x2cb   : > { %2945 = vst [vmem:[#allocation1 + $0x3] ss:$4 sm:$0xff] %v863_v7  ;;  %v872_v7 = vrot.slane %v9263_v22, 6 }
 0x2ce   : > { %v3114_v6 = vld.sshfl [vmem:[#allocation1 + $0x20] sm:$0xff pattern:$0x73625140] }
 0x2cf   : > { %3119 = vst [vmem:[#allocation1 + $0x20] ss:$4 sm:$0xff] %v995_v36  ;;  %v710_v36 = vld [vmem:[%s8496_s26 + $0x1aa] sm:$0x3] }
 0x2d0   : > { %3120 = vst [vmem:[#allocation1 + $0x21] ss:$4 sm:$0xff] %v996_v0  ;;  %v9319_v0 = vld [vmem:[%s8496_s26 + $0x68] sm:$0xff] }
 0x2d1   : > { %3121 = vst [vmem:[#allocation1 + $0x22] ss:$4 sm:$0xff] %v9298_v49 }
 0x2d2   : > { %v2950_v62 = vld.sshfl [vmem:[#allocation1] sm:$0xff pattern:$0x73625140]  ;;  %3122 = vst [vmem:[#allocation1 + $0x23] ss:$4 sm:$0xff] %v997_v8  ;;  %v7939_v8 = vld [vmem:[%s8496_s26 + $0x18] sm:$0xff] }
 0x2d3   : > { %2952 = vst [vmem:[#allocation1] ss:$4 sm:$0xff] %v707_v50  ;;  %3037 = vrot.lane.b32.xlu2 %v2950_v62, %s8437_s27  ;;  %v982_v50 = vrot.slane %v7939_v8, 2  ;;  %v983_v22 = vrot.slane %v7939_v8, 4 }
 0x2d4   : > { %2953 = vst [vmem:[#allocation1 + $0x1] ss:$4 sm:$0xff] %v9260_v26 }
 0x2d5   : > { %2954 = vst [vmem:[#allocation1 + $0x2] ss:$4 sm:$0xff] %v867_v15  ;;  %v7951_v15 = vld [vmem:[%s8496_s26 + $0x78] sm:$0xff] }
 0x2d6   : > { %2955 = vst [vmem:[#allocation1 + $0x3] ss:$4 sm:$0xff] %v868_v43  ;;  %v984_v43 = vrot.slane %v7939_v8, 6 }
 0x2d9   : > { %v3124_v14 = vld.sshfl [vmem:[#allocation1 + $0x20] sm:$0xff pattern:$0x73625140] }
 0x2da   : > { %3129 = vst [vmem:[#allocation1 + $0x20] ss:$4 sm:$0xff] %v1000_v44  ;;  %v1006_v44 = vrot.slane %v7951_v15, 2 }
 0x2db   : > { %3300 = vrot.lane.b32.xlu2 %v3104_v38, %s8438_s28  ;;  %3130 = vst [vmem:[#allocation1 + $0x21] ss:$4 sm:$0xff] %v1001_v57  ;;  %v1007_v57 = vrot.slane %v7951_v15, 4 }
 0x2dc   : > { %3131 = vst [vmem:[#allocation1 + $0x22] ss:$4 sm:$0xff] %v1002_v29  ;;  %v1008_v29 = vrot.slane %v7951_v15, 6 }
 0x2dd   : > { %v2960_v26 = vld.sshfl [vmem:[#allocation1] sm:$0xff pattern:$0x73625140]  ;;  %3132 = vst [vmem:[#allocation1 + $0x23] ss:$4 sm:$0xff] %v9319_v0 }
 0x2de   : > { %3041 = vrot.lane.b32.xlu1 %v2960_v26, %s8437_s27  ;;  %2962 = vst [vmem:[#allocation1] ss:$4 sm:$0xff] %v872_v7  ;;  %v988_v7 = vrot.slane %v9282_v63, 2 }
 0x2df   : > { %2963 = vst [vmem:[#allocation1 + $0x1] ss:$4 sm:$0xff] %v710_v36  ;;  %v989_v36 = vrot.slane %v9282_v63, 4 }
 0x2e4   : > { %v3134_v62 = vld.sshfl [vmem:[#allocation1 + $0x20] sm:$0xff pattern:$0x73625140] }
 0x2e5   : > { %3312 = vrot.lane.b32.xlu2 %v3134_v62, %s8438_s28  ;;  %3139 = vst [vmem:[#allocation1 + $0x20] ss:$4 sm:$0xff] %v7951_v15 }
 0x2e6   : > { %3304 = vrot.lane.b32.xlu1 %v3114_v6, %s8438_s28  ;;  %v2964_v38 = vld.sshfl [vmem:[#allocation1] sm:$0xff pattern:$0x73625140]  ;;  %3140 = vst [vmem:[#allocation1 + $0x21] ss:$4 sm:$0xff] %v1006_v44  ;;  %v994_v44 = vrot.slane %v9295_v13, 2 }
 0x2e7   : > { %3088 = vst [vmem:[#allocation1] ss:$4 sm:$0xff] %v7939_v8  ;;  %3045 = vrot.lane.b32.xlu0 %v2964_v38, %s8437_s27  ;;  %v7941_v6 = vld [vmem:[%s8496_s26 + $0x28] sm:$0x3]  ;;  %v9333_v8 = vld [vmem:[%s8496_s26 + $0x90] sm:$0xff] }
 0x2e8   : > { %3090 = vst [vmem:[#allocation1 + $0x1] ss:$4 sm:$0xff] %v982_v50  ;;  %v7953_v50 = vld [vmem:[%s8496_s26 + $0x88] sm:$0x3]  ;;  %v1013_v15 = vrot.slane %v9333_v8, 4 }
 0x2e9   : > { %3092 = vst [vmem:[#allocation1 + $0x2] ss:$4 sm:$0xff] %v983_v22  ;;  %v1012_v22 = vrot.slane %v9333_v8, 2  ;;  %v7944_v38 = vld [vmem:[%s8496_s26 + $0x40] sm:$0x3] }
 0x2ea   : > { %3094 = vst [vmem:[#allocation1 + $0x3] ss:$4 sm:$0xff] %v984_v43  ;;  %v993_v43 = vrot.slane %v9285_v19, 6  ;;  %v7956_v19 = vld [vmem:[%s8496_s26 + $0xa0] sm:$0x3] }
 0x2eb   : > { %3141 = vst [vmem:[#allocation1 + $0x22] ss:$4 sm:$0xff] %v1007_v57  ;;  %v9350_v57 = vld [vmem:[%s8496_s26 + $0xa8] sm:$0xff] }
 0x2ec   : > { %3142 = vst [vmem:[#allocation1 + $0x23] ss:$4 sm:$0xff] %v1008_v29 }
 0x2ef   : > { %3308 = vrot.lane.b32.xlu0 %v3124_v14, %s8438_s28 }
 0x2f1   : > { %v3103_v26 = vld.sshfl [vmem:[#allocation1] sm:$0xff pattern:$0x73625140] }
 0x2f2   : > { %3105 = vst [vmem:[#allocation1] ss:$4 sm:$0xff] %v7941_v6  ;;  %3298 = vrot.lane.b32.xlu1 %v3103_v26, %s8438_s28  ;;  %v999_v26 = vrot.slane %v9298_v49, 6 }
 0x2f3   : > { %3106 = vst [vmem:[#allocation1 + $0x1] ss:$4 sm:$0xff] %v9282_v63  ;;  %v3144_v14 = vld.sshfl [vmem:[#allocation1 + $0x20] sm:$0xff pattern:$0x73625140]  ;;  %v9344_v63 = vld [vmem:[%s8496_s26 + $0x98] sm:$0xff] }
 0x2f4   : > { %3107 = vst [vmem:[#allocation1 + $0x2] ss:$4 sm:$0xff] %v988_v7  ;;  %v1017_v29 = vrot.slane %v9344_v63, 6  ;;  %v1018_v7 = vrot.slane %v9350_v57, 2 }
 0x2f5   : > { %3108 = vst [vmem:[#allocation1 + $0x3] ss:$4 sm:$0xff] %v989_v36  ;;  %v998_v36 = vrot.slane %v9298_v49, 4 }
 0x2f6   : > { %3149 = vst [vmem:[#allocation1 + $0x20] ss:$4 sm:$0xff] %v7953_v50  ;;  %v9361_v50 = vld [vmem:[%s8496_s26 + $0xb0] sm:$0xff] }
 0x2f7   : > { %3150 = vst [vmem:[#allocation1 + $0x21] ss:$4 sm:$0xff] %v9333_v8 }
 0x2f8   : > { %3151 = vst [vmem:[#allocation1 + $0x22] ss:$4 sm:$0xff] %v1012_v22  ;;  %v7947_v22 = vld [vmem:[%s8496_s26 + $0x58] sm:$0x3] }
 0x2f9   : > { %3152 = vst [vmem:[#allocation1 + $0x23] ss:$4 sm:$0xff] %v1013_v15  ;;  %v1023_v15 = vrot.slane %v9361_v50, 6 }
 0x2fa   : > { %3316 = vrot.lane.b32.xlu1 %v3144_v14, %s8438_s28  ;;  %v1022_v14 = vrot.slane %v9361_v50, 4 }
 0x2fc   : > { %v3113_v62 = vld.sshfl [vmem:[#allocation1] sm:$0xff pattern:$0x73625140] }
 0x2fd   : > { %3115 = vst [vmem:[#allocation1] ss:$4 sm:$0xff] %v993_v43  ;;  %3302 = vrot.lane.b32.xlu0 %v3113_v62, %s8438_s28  ;;  %v7959_v43 = vld [vmem:[%s8496_s26 + $0xb8] sm:$0x3]  ;;  %v1003_v62 = vrot.slane %v9319_v0, 2 }
 0x2fe   : > { %3116 = vst [vmem:[#allocation1 + $0x1] ss:$4 sm:$0xff] %v7944_v38  ;;  %v9370_v38 = vld [vmem:[%s8496_s26 + $0xc0] sm:$0xff] }
 0x2ff   : > { %3117 = vst [vmem:[#allocation1 + $0x2] ss:$4 sm:$0xff] %v9295_v13 }
 0x300   : > { %3118 = vst [vmem:[#allocation1 + $0x3] ss:$4 sm:$0xff] %v994_v44  ;;  %v3154_v6 = vld.sshfl [vmem:[#allocation1 + $0x20] sm:$0xff pattern:$0x73625140]  ;;  %v1004_v44 = vrot.slane %v9319_v0, 4 }
 0x301   : > { %3159 = vst [vmem:[#allocation1 + $0x20] ss:$4 sm:$0xff] %v1017_v29  ;;  %v1005_v29 = vrot.slane %v9319_v0, 6 }
 0x302   : > { %3160 = vst [vmem:[#allocation1 + $0x21] ss:$4 sm:$0xff] %v7956_v19 }
 0x303   : > { %3161 = vst [vmem:[#allocation1 + $0x22] ss:$4 sm:$0xff] %v9350_v57 }
 0x304   : > { %3162 = vst [vmem:[#allocation1 + $0x23] ss:$4 sm:$0xff] %v1018_v7 }
 0x305   : > { %3320 = vrot.lane.b32.xlu0 %v3154_v6, %s8438_s28  ;;  %v7950_v6 = vld [vmem:[%s8496_s26 + $0x70] sm:$0x3] }
 0x307   : > { %v3123_v13 = vld.sshfl [vmem:[#allocation1] sm:$0xff pattern:$0x73625140] }
 0x308   : > { %3125 = vst [vmem:[#allocation1] ss:$4 sm:$0xff] %v998_v36  ;;  %3306 = vrot.lane.b32.xlu2 %v3123_v13, %s8438_s28 }
 0x309   : > { %3126 = vst [vmem:[#allocation1 + $0x1] ss:$4 sm:$0xff] %v999_v26 }
 0x30a   : > { %3128 = vst [vmem:[#allocation1 + $0x3] ss:$4 sm:$0xff] %v9309_v51  ;;  %v9377_v51 = vld [vmem:[%s8496_s26 + $0xc8] sm:$0xff] }
 0x30b   : > { %3127 = vst [vmem:[#allocation1 + $0x2] ss:$4 sm:$0xff] %v7947_v22  ;;  %v3164_v49 = vld.sshfl [vmem:[#allocation1 + $0x20] sm:$0xff pattern:$0x73625140]  ;;  %v1027_v7 = vrot.slane %v9377_v51, 2 }
 0x30c   : > { %3169 = vst [vmem:[#allocation1 + $0x20] ss:$4 sm:$0xff] %v1022_v14  ;;  %v1028_v36 = vrot.slane %v9377_v51, 4  ;;  %v1029_v26 = vrot.slane %v9377_v51, 6  ;;  %v7962_v22 = vld [vmem:[%s8496_s26 + $0xd0] sm:$0x3] }
 0x30d   : > { %3170 = vst [vmem:[#allocation1 + $0x21] ss:$4 sm:$0xff] %v1023_v15  ;;  %v7952_v14 = vld [vmem:[%s8496_s26 + $0x80] sm:$0xff] }
 0x30e   : > { %3171 = vst [vmem:[#allocation1 + $0x22] ss:$4 sm:$0xff] %v7959_v43  ;;  %v1009_v0 = vrot.slane %v7952_v14, 2  ;;  %v1010_v15 = vrot.slane %v7952_v14, 4  ;;  %v7964_v43 = vld [vmem:[%s8496_s26 + $0xe0] sm:$0xff] }
 0x30f   : > { %3172 = vst [vmem:[#allocation1 + $0x23] ss:$4 sm:$0xff] %v9370_v38 }
 0x310   : > { %3324 = vrot.lane.b32.xlu2 %v3164_v49, %s8438_s28 }
 0x312   : > { %v3133_v19 = vld.sshfl [vmem:[#allocation1] sm:$0xff pattern:$0x73625140] }
 0x313   : > { %3310 = vrot.lane.b32.xlu1 %v3133_v19, %s8438_s28  ;;  %3135 = vst [vmem:[#allocation1] ss:$4 sm:$0xff] %v1003_v62  ;;  %v1011_v62 = vrot.slane %v7952_v14, 6 }
 0x314   : > { %3136 = vst [vmem:[#allocation1 + $0x1] ss:$4 sm:$0xff] %v1004_v44  ;;  %v1033_v44 = vrot.slane %v7964_v43, 2 }
 0x315   : > { %3137 = vst [vmem:[#allocation1 + $0x2] ss:$4 sm:$0xff] %v1005_v29  ;;  %v1034_v29 = vrot.slane %v7964_v43, 4 }
 0x316   : > { %v3174_v13 = vld.sshfl [vmem:[#allocation1 + $0x20] sm:$0xff pattern:$0x73625140]  ;;  %3138 = vst [vmem:[#allocation1 + $0x3] ss:$4 sm:$0xff] %v7950_v6  ;;  %v1035_v6 = vrot.slane %v7964_v43, 6 }
 0x317   : > { %3179 = vst [vmem:[#allocation1 + $0x20] ss:$4 sm:$0xff] %v1027_v7  ;;  %v1014_v7 = vrot.slane %v9333_v8, 6 }
 0x318   : > { %3180 = vst [vmem:[#allocation1 + $0x21] ss:$4 sm:$0xff] %v1028_v36  ;;  %v9393_v36 = vld [vmem:[%s8496_s26 + $0xf0] sm:$0xff] }
 0x319   : > { %3181 = vst [vmem:[#allocation1 + $0x22] ss:$4 sm:$0xff] %v1029_v26  ;;  %v1015_v26 = vrot.slane %v9344_v63, 2 }
 0x31a   : > { %3182 = vst [vmem:[#allocation1 + $0x23] ss:$4 sm:$0xff] %v7962_v22 }
 0x31b   : > { %3328 = vrot.lane.b32.xlu1 %v3174_v13, %s8438_s28  ;;  %v1016_v13 = vrot.slane %v9344_v63, 4 }
 0x31d   : > { %v3143_v49 = vld.sshfl [vmem:[#allocation1] sm:$0xff pattern:$0x73625140] }
 0x31e   : > { %3314 = vrot.lane.b32.xlu0 %v3143_v49, %s8438_s28  ;;  %3145 = vst [vmem:[#allocation1] ss:$4 sm:$0xff] %v7952_v14  ;;  %v9398_v14 = vld [vmem:[%s8496_s26 + $0xf8] sm:$0xff]  ;;  %v1019_v49 = vrot.slane %v9350_v57, 4 }
 0x31f   : > { %3146 = vst [vmem:[#allocation1 + $0x1] ss:$4 sm:$0xff] %v1009_v0  ;;  %v1038_v0 = vrot.slane %v9393_v36, 6  ;;  %v1039_v8 = vrot.slane %v9398_v14, 2 }
 0x320   : > { %3147 = vst [vmem:[#allocation1 + $0x2] ss:$4 sm:$0xff] %v1010_v15  ;;  %v1040_v15 = vrot.slane %v9398_v14, 4 }
 0x321   : > { %3148 = vst [vmem:[#allocation1 + $0x3] ss:$4 sm:$0xff] %v1011_v62  ;;  %v3184_v19 = vld.sshfl [vmem:[#allocation1 + $0x20] sm:$0xff pattern:$0x73625140]  ;;  %v1020_v62 = vrot.slane %v9350_v57, 6 }
 0x322   : > { %3189 = vst [vmem:[#allocation1 + $0x20] ss:$4 sm:$0xff] %v7964_v43 }
 0x323   : > { %3190 = vst [vmem:[#allocation1 + $0x21] ss:$4 sm:$0xff] %v1033_v44  ;;  %v1021_v44 = vrot.slane %v9361_v50, 2 }
 0x324   : > { %3191 = vst [vmem:[#allocation1 + $0x22] ss:$4 sm:$0xff] %v1034_v29 }
 0x325   : > { %3192 = vst [vmem:[#allocation1 + $0x23] ss:$4 sm:$0xff] %v1035_v6 }
 0x326   : > { %3332 = vrot.lane.b32.xlu0 %v3184_v19, %s8438_s28  ;;  %v9415_v19 = vld [vmem:[%s8496_s26 + $0x110] sm:$0xff] }
 0x328   : > { %v3153_v22 = vld.sshfl [vmem:[#allocation1] sm:$0xff pattern:$0x73625140] }
 0x329   : > { %3155 = vst [vmem:[#allocation1] ss:$4 sm:$0xff] %v1014_v7  ;;  %3318 = vrot.lane.b32.xlu2 %v3153_v22, %s8438_s28  ;;  %v1025_v22 = vrot.slane %v9370_v38, 4 }
 0x32a   : > { %3156 = vst [vmem:[#allocation1 + $0x1] ss:$4 sm:$0xff] %v9344_v63  ;;  %v9410_v63 = vld [vmem:[%s8496_s26 + $0x108] sm:$0xff] }
 0x32b   : > { %3157 = vst [vmem:[#allocation1 + $0x2] ss:$4 sm:$0xff] %v1015_v26  ;;  %v1043_v6 = vrot.slane %v9410_v63, 4  ;;  %v1044_v7 = vrot.slane %v9410_v63, 6  ;;  %v1045_v26 = vrot.slane %v9415_v19, 2 }
 0x32c   : > { %3158 = vst [vmem:[#allocation1 + $0x3] ss:$4 sm:$0xff] %v1016_v13  ;;  %v3194_v43 = vld.sshfl [vmem:[#allocation1 + $0x20] sm:$0xff pattern:$0x73625140]  ;;  %v1024_v13 = vrot.slane %v9370_v38, 2 }
 0x32d   : > { %3199 = vst [vmem:[#allocation1 + $0x20] ss:$4 sm:$0xff] %v1038_v0  ;;  %v9426_v0 = vld [vmem:[%s8496_s26 + $0x120] sm:$0xff] }
 0x32e   : > { %3200 = vst [vmem:[#allocation1 + $0x21] ss:$4 sm:$0xff] %v9398_v14 }
 0x32f   : > { %3201 = vst [vmem:[#allocation1 + $0x22] ss:$4 sm:$0xff] %v1039_v8 }
 0x330   : > { %3202 = vst [vmem:[#allocation1 + $0x23] ss:$4 sm:$0xff] %v1040_v15  ;;  %v1048_v15 = vrot.slane %v9426_v0, 2 }
 0x331   : > { %3336 = vrot.lane.b32.xlu2 %v3194_v43, %s8438_s28  ;;  %v1049_v43 = vrot.slane %v9426_v0, 4 }
 0x333   : > { %v3163_v29 = vld.sshfl [vmem:[#allocation1] sm:$0xff pattern:$0x73625140] }
 0x334   : > { %3322 = vrot.lane.b32.xlu1 %v3163_v29, %s8438_s28  ;;  %3165 = vst [vmem:[#allocation1] ss:$4 sm:$0xff] %v1019_v49  ;;  %v1050_v49 = vrot.slane %v9426_v0, 6 }
 0x335   : > { %3166 = vst [vmem:[#allocation1 + $0x1] ss:$4 sm:$0xff] %v1020_v62 }
 0x336   : > { %3167 = vst [vmem:[#allocation1 + $0x2] ss:$4 sm:$0xff] %v9361_v50  ;;  %v1026_v50 = vrot.slane %v9370_v38, 6  ;;  %v7963_v38 = vld [vmem:[%s8496_s26 + $0xd8] sm:$0xff] }
 0x337   : > { %3168 = vst [vmem:[#allocation1 + $0x3] ss:$4 sm:$0xff] %v1021_v44  ;;  %v3204_v57 = vld.sshfl [vmem:[#allocation1 + $0x20] sm:$0xff pattern:$0x73625140]  ;;  %v9435_v44 = vld [vmem:[%s8496_s26 + $0x128] sm:$0xff] }
 0x338   : > { %3209 = vst [vmem:[#allocation1 + $0x20] ss:$4 sm:$0xff] %v1043_v6  ;;  %v1030_v29 = vrot.slane %v7963_v38, 2  ;;  %v1031_v6 = vrot.slane %v7963_v38, 4 }
 0x339   : > { %3210 = vst [vmem:[#allocation1 + $0x21] ss:$4 sm:$0xff] %v1044_v7  ;;  %v7975_v7 = vld [vmem:[%s8496_s26 + $0x138] sm:$0xff] }
 0x33a   : > { %3211 = vst [vmem:[#allocation1 + $0x22] ss:$4 sm:$0xff] %v9415_v19 }
 0x33b   : > { %3212 = vst [vmem:[#allocation1 + $0x23] ss:$4 sm:$0xff] %v1045_v26 }
 0x33c   : > { %3340 = vrot.lane.b32.xlu1 %v3204_v57, %s8438_s28  ;;  %v1032_v57 = vrot.slane %v7963_v38, 6 }
 0x33e   : > { %v3173_v8 = vld.sshfl [vmem:[#allocation1] sm:$0xff pattern:$0x73625140] }
 0x33f   : > { %3326 = vrot.lane.b32.xlu0 %v3173_v8, %s8438_s28  ;;  %3175 = vst [vmem:[#allocation1] ss:$4 sm:$0xff] %v1024_v13  ;;  %v1055_v13 = vrot.slane %v7975_v7, 4  ;;  %v1036_v8 = vrot.slane %v9393_v36, 2 }
 0x340   : > { %3176 = vst [vmem:[#allocation1 + $0x1] ss:$4 sm:$0xff] %v1025_v22  ;;  %v1056_v22 = vrot.slane %v7975_v7, 6 }
 0x341   : > { %3177 = vst [vmem:[#allocation1 + $0x2] ss:$4 sm:$0xff] %v1026_v50 }
 0x342   : > { %3178 = vst [vmem:[#allocation1 + $0x3] ss:$4 sm:$0xff] %v9377_v51  ;;  %v3214_v62 = vld.sshfl [vmem:[#allocation1 + $0x20] sm:$0xff pattern:$0x73625140]  ;;  %v1054_v51 = vrot.slane %v7975_v7, 2 }
 0x343   : > { %3219 = vst [vmem:[#allocation1 + $0x20] ss:$4 sm:$0xff] %v1048_v15  ;;  %v1037_v15 = vrot.slane %v9393_v36, 4 }
 0x344   : > { %3220 = vst [vmem:[#allocation1 + $0x21] ss:$4 sm:$0xff] %v1049_v43 }
 0x345   : > { %3221 = vst [vmem:[#allocation1 + $0x22] ss:$4 sm:$0xff] %v1050_v49  ;;  %v9446_v49 = vld [vmem:[%s8496_s26 + $0x150] sm:$0xff] }
 0x346   : > { %3222 = vst [vmem:[#allocation1 + $0x23] ss:$4 sm:$0xff] %v9435_v44 }
 0x347   : > { %3344 = vrot.lane.b32.xlu0 %v3214_v62, %s8438_s28  ;;  %v7965_v62 = vld [vmem:[%s8496_s26 + $0xe8] sm:$0x3] }
 0x349   : > { %v3183_v26 = vld.sshfl [vmem:[#allocation1] sm:$0xff pattern:$0x73625140] }
 0x34a   : > { %3185 = vst [vmem:[#allocation1] ss:$4 sm:$0xff] %v7963_v38  ;;  %3330 = vrot.lane.b32.xlu2 %v3183_v26, %s8438_s28  ;;  %v7977_v38 = vld [vmem:[%s8496_s26 + $0x148] sm:$0x3]  ;;  %v1042_v26 = vrot.slane %v9410_v63, 2 }
 0x34b   : > { %3186 = vst [vmem:[#allocation1 + $0x1] ss:$4 sm:$0xff] %v1030_v29  ;;  %v1060_v29 = vrot.slane %v9446_v49, 2 }
 0x34c   : > { %3187 = vst [vmem:[#allocation1 + $0x2] ss:$4 sm:$0xff] %v1031_v6 }
 0x34d   : > { %3188 = vst [vmem:[#allocation1 + $0x3] ss:$4 sm:$0xff] %v1032_v57  ;;  %v3224_v50 = vld.sshfl [vmem:[#allocation1 + $0x20] sm:$0xff pattern:$0x73625140]  ;;  %v1041_v57 = vrot.slane %v9398_v14, 6 }
 0x34e   : > { %3229 = vst [vmem:[#allocation1 + $0x20] ss:$4 sm:$0xff] %v7975_v7  ;;  %v1061_v7 = vrot.slane %v9446_v49, 4  ;;  %v7980_v14 = vld [vmem:[%s8496_s26 + $0x160] sm:$0x3] }
 0x34f   : > { %3230 = vst [vmem:[#allocation1 + $0x21] ss:$4 sm:$0xff] %v1054_v51 }
 0x350   : > { %3231 = vst [vmem:[#allocation1 + $0x22] ss:$4 sm:$0xff] %v1055_v13  ;;  %v7968_v13 = vld [vmem:[%s8496_s26 + $0x100] sm:$0x3] }
 0x351   : > { %3232 = vst [vmem:[#allocation1 + $0x23] ss:$4 sm:$0xff] %v1056_v22  ;;  %v9464_v22 = vld [vmem:[%s8496_s26 + $0x168] sm:$0xff] }
 0x352   : > { %3348 = vrot.lane.b32.xlu2 %v3224_v50, %s8438_s28 }
 0x354   : > { %v3193_v43 = vld.sshfl [vmem:[#allocation1] sm:$0xff pattern:$0x73625140] }
 0x355   : > { %3334 = vrot.lane.b32.xlu1 %v3193_v43, %s8438_s28  ;;  %3196 = vst [vmem:[#allocation1 + $0x1] ss:$4 sm:$0xff] %v9393_v36  ;;  %v9458_v36 = vld [vmem:[%s8496_s26 + $0x158] sm:$0xff]  ;;  %v1046_v43 = vrot.slane %v9415_v19, 4 }
 0x356   : > { %3197 = vst [vmem:[#allocation1 + $0x2] ss:$4 sm:$0xff] %v1036_v8  ;;  %v1065_v50 = vrot.slane %v9458_v36, 6 }
 0x357   : > { %3198 = vst [vmem:[#allocation1 + $0x3] ss:$4 sm:$0xff] %v1037_v15  ;;  %v1066_v15 = vrot.slane %v9464_v22, 2 }
 0x358   : > { %v3234_v6 = vld.sshfl [vmem:[#allocation1 + $0x20] sm:$0xff pattern:$0x73625140]  ;;  %3195 = vst [vmem:[#allocation1] ss:$4 sm:$0xff] %v7965_v62  ;;  %v1047_v62 = vrot.slane %v9415_v19, 6 }
 0x359   : > { %3239 = vst [vmem:[#allocation1 + $0x20] ss:$4 sm:$0xff] %v7977_v38  ;;  %v7971_v38 = vld [vmem:[%s8496_s26 + $0x118] sm:$0x3] }
 0x35a   : > { %3240 = vst [vmem:[#allocation1 + $0x21] ss:$4 sm:$0xff] %v9446_v49 }
 0x35b   : > { %3241 = vst [vmem:[#allocation1 + $0x22] ss:$4 sm:$0xff] %v1060_v29 }
 0x35c   : > { %3242 = vst [vmem:[#allocation1 + $0x23] ss:$4 sm:$0xff] %v1061_v7 }
 0x35d   : > { %3352 = vrot.lane.b32.xlu1 %v3234_v6, %s8438_s28 }
 0x35f   : > { %v3203_v51 = vld.sshfl [vmem:[#allocation1] sm:$0xff pattern:$0x73625140] }
 0x360   : > { %3338 = vrot.lane.b32.xlu0 %v3203_v51, %s8438_s28  ;;  %3205 = vst [vmem:[#allocation1] ss:$4 sm:$0xff] %v1041_v57  ;;  %v7983_v57 = vld [vmem:[%s8496_s26 + $0x178] sm:$0x3]  ;;  %v1051_v51 = vrot.slane %v9435_v44, 2 }
 0x361   : > { %3207 = vst [vmem:[#allocation1 + $0x2] ss:$4 sm:$0xff] %v9410_v63  ;;  %v9475_v63 = vld [vmem:[%s8496_s26 + $0x170] sm:$0xff] }
 0x362   : > { %3208 = vst [vmem:[#allocation1 + $0x3] ss:$4 sm:$0xff] %v1042_v26  ;;  %v1070_v6 = vrot.slane %v9475_v63, 4  ;;  %v1071_v7 = vrot.slane %v9475_v63, 6  ;;  %v9484_v26 = vld [vmem:[%s8496_s26 + $0x180] sm:$0xff] }
 0x363   : > { %3206 = vst [vmem:[#allocation1 + $0x1] ss:$4 sm:$0xff] %v7968_v13  ;;  %v3244_v8 = vld.sshfl [vmem:[#allocation1 + $0x20] sm:$0xff pattern:$0x73625140]  ;;  %v1052_v13 = vrot.slane %v9435_v44, 4 }
 0x364   : > { %3249 = vst [vmem:[#allocation1 + $0x20] ss:$4 sm:$0xff] %v1065_v50  ;;  %v9491_v50 = vld [vmem:[%s8496_s26 + $0x188] sm:$0xff] }
 0x365   : > { %3250 = vst [vmem:[#allocation1 + $0x21] ss:$4 sm:$0xff] %v7980_v14 }
 0x366   : > { %3251 = vst [vmem:[#allocation1 + $0x22] ss:$4 sm:$0xff] %v9464_v22 }
 0x367   : > { %3252 = vst [vmem:[#allocation1 + $0x23] ss:$4 sm:$0xff] %v1066_v15  ;;  %v1075_v15 = vrot.slane %v9491_v50, 2 }
 0x368   : > { %3356 = vrot.lane.b32.xlu0 %v3244_v8, %s8438_s28  ;;  %v7974_v8 = vld [vmem:[%s8496_s26 + $0x130] sm:$0x3] }
 0x36a   : > { %v3213_v29 = vld.sshfl [vmem:[#allocation1] sm:$0xff pattern:$0x73625140] }
 0x36b   : > { %3215 = vst [vmem:[#allocation1] ss:$4 sm:$0xff] %v1046_v43  ;;  %3342 = vrot.lane.b32.xlu2 %v3213_v29, %s8438_s28  ;;  %v1076_v43 = vrot.slane %v9491_v50, 4  ;;  %v7986_v29 = vld [vmem:[%s8496_s26 + $0x190] sm:$0x3] }
 0x36c   : > { %3216 = vst [vmem:[#allocation1 + $0x1] ss:$4 sm:$0xff] %v1047_v62  ;;  %v1077_v62 = vrot.slane %v9491_v50, 6 }
 0x36d   : > { %3217 = vst [vmem:[#allocation1 + $0x2] ss:$4 sm:$0xff] %v7971_v38 }
 0x36e   : > { %3218 = vst [vmem:[#allocation1 + $0x3] ss:$4 sm:$0xff] %v9426_v0  ;;  %v3254_v19 = vld.sshfl [vmem:[#allocation1 + $0x20] sm:$0xff pattern:$0x73625140]  ;;  %v1053_v0 = vrot.slane %v9435_v44, 6 }
 0x36f   : > { %3259 = vst [vmem:[#allocation1 + $0x20] ss:$4 sm:$0xff] %v1070_v6  ;;  %v7976_v6 = vld [vmem:[%s8496_s26 + $0x140] sm:$0xff] }
 0x370   : > { %3260 = vst [vmem:[#allocation1 + $0x21] ss:$4 sm:$0xff] %v1071_v7  ;;  %v1057_v44 = vrot.slane %v7976_v6, 2  ;;  %v1058_v7 = vrot.slane %v7976_v6, 4 }
 0x371   : > { %3261 = vst [vmem:[#allocation1 + $0x22] ss:$4 sm:$0xff] %v7983_v57  ;;  %v7988_v57 = vld [vmem:[%s8496_s26 + $0x1a0] sm:$0xff] }
 0x372   : > { %3262 = vst [vmem:[#allocation1 + $0x23] ss:$4 sm:$0xff] %v9484_v26 }
 0x373   : > { %3360 = vrot.lane.b32.xlu2 %v3254_v19, %s8438_s28 }
 0x375   : > { %v3223_v14 = vld.sshfl [vmem:[#allocation1] sm:$0xff pattern:$0x73625140] }
 0x376   : > { %3346 = vrot.lane.b32.xlu1 %v3223_v14, %s8438_s28  ;;  %3225 = vst [vmem:[#allocation1] ss:$4 sm:$0xff] %v1051_v51  ;;  %v1059_v51 = vrot.slane %v7976_v6, 6 }
 0x377   : > { %3226 = vst [vmem:[#allocation1 + $0x1] ss:$4 sm:$0xff] %v1052_v13  ;;  %v1081_v13 = vrot.slane %v7988_v57, 2 }
 0x378   : > { %3227 = vst [vmem:[#allocation1 + $0x2] ss:$4 sm:$0xff] %v1053_v0  ;;  %v1082_v0 = vrot.slane %v7988_v57, 4 }
 0x379   : > { %v3264_v38 = vld.sshfl [vmem:[#allocation1 + $0x20] sm:$0xff pattern:$0x73625140]  ;;  %3228 = vst [vmem:[#allocation1 + $0x3] ss:$4 sm:$0xff] %v7974_v8  ;;  %v1083_v8 = vrot.slane %v7988_v57, 6 }
 0x37a   : > { %3269 = vst [vmem:[#allocation1 + $0x20] ss:$4 sm:$0xff] %v1075_v15  ;;  %v1062_v15 = vrot.slane %v9446_v49, 6 }
 0x37b   : > { %3270 = vst [vmem:[#allocation1 + $0x21] ss:$4 sm:$0xff] %v1076_v43  ;;  %v9507_v43 = vld [vmem:[%s8496_s26 + $0x1b0] sm:$0xff] }
 0x37c   : > { %3271 = vst [vmem:[#allocation1 + $0x22] ss:$4 sm:$0xff] %v1077_v62  ;;  %v1063_v62 = vrot.slane %v9458_v36, 2 }
 0x37d   : > { %3272 = vst [vmem:[#allocation1 + $0x23] ss:$4 sm:$0xff] %v7986_v29 }
 0x37e   : > { %3364 = vrot.lane.b32.xlu1 %v3264_v38, %s8438_s28  ;;  %v1064_v38 = vrot.slane %v9458_v36, 4 }
 0x380   : > { %v3233_v19 = vld.sshfl [vmem:[#allocation1] sm:$0xff pattern:$0x73625140] }
 0x381   : > { %3350 = vrot.lane.b32.xlu0 %v3233_v19, %s8438_s28  ;;  %3235 = vst [vmem:[#allocation1] ss:$4 sm:$0xff] %v7976_v6  ;;  %v9512_v6 = vld [vmem:[%s8496_s26 + $0x1b8] sm:$0xff]  ;;  %v1067_v19 = vrot.slane %v9464_v22, 4 }
 0x382   : > { %3236 = vst [vmem:[#allocation1 + $0x1] ss:$4 sm:$0xff] %v1057_v44  ;;  %v1086_v44 = vrot.slane %v9507_v43, 6  ;;  %v1087_v49 = vrot.slane %v9512_v6, 2 }
 0x383   : > { %3237 = vst [vmem:[#allocation1 + $0x2] ss:$4 sm:$0xff] %v1058_v7  ;;  %v1088_v7 = vrot.slane %v9512_v6, 4 }
 0x384   : > { %3238 = vst [vmem:[#allocation1 + $0x3] ss:$4 sm:$0xff] %v1059_v51  ;;  %v3274_v14 = vld.sshfl [vmem:[#allocation1 + $0x20] sm:$0xff pattern:$0x73625140]  ;;  %v1068_v51 = vrot.slane %v9464_v22, 6 }
 0x385   : > { %3279 = vst [vmem:[#allocation1 + $0x20] ss:$4 sm:$0xff] %v7988_v57  ;;  %v1072_v22 = vrot.slane %v9484_v26, 2 }
 0x386   : > { %3280 = vst [vmem:[#allocation1 + $0x21] ss:$4 sm:$0xff] %v1081_v13  ;;  %v7994_v13 = vld [vmem:[%s8496_s26 + $0x21] sm:$0xff] }
 0x387   : > { %3281 = vst [vmem:[#allocation1 + $0x22] ss:$4 sm:$0xff] %v1082_v0 }
 0x388   : > { %3282 = vst [vmem:[#allocation1 + $0x23] ss:$4 sm:$0xff] %v1083_v8  ;;  %v1202_v8 = vrot.slane %v7994_v13, 4 }
 0x389   : > { %3368 = vrot.lane.b32.xlu0 %v3274_v14, %s8438_s28  ;;  %v1201_v14 = vrot.slane %v7994_v13, 2 }
 0x38b   : > { %v3243_v29 = vld.sshfl [vmem:[#allocation1] sm:$0xff pattern:$0x73625140] }
 0x38c   : > { %3245 = vst [vmem:[#allocation1] ss:$4 sm:$0xff] %v1062_v15  ;;  %3354 = vrot.lane.b32.xlu2 %v3243_v29, %s8438_s28  ;;  %v9531_v29 = vld [vmem:[%s8496_s26 + $0x31] sm:$0xff] }
 0x38d   : > { %3246 = vst [vmem:[#allocation1 + $0x1] ss:$4 sm:$0xff] %v9458_v36  ;;  %v1069_v36 = vrot.slane %v9475_v63, 2 }
 0x38e   : > { %3247 = vst [vmem:[#allocation1 + $0x2] ss:$4 sm:$0xff] %v1063_v62  ;;  %v1203_v62 = vrot.slane %v7994_v13, 6 }
 0x38f   : > { %3248 = vst [vmem:[#allocation1 + $0x3] ss:$4 sm:$0xff] %v1064_v38  ;;  %v3284_v57 = vld.sshfl [vmem:[#allocation1 + $0x20] sm:$0xff pattern:$0x73625140]  ;;  %v1073_v38 = vrot.slane %v9484_v26, 4 }
 0x390   : > { %3289 = vst [vmem:[#allocation1 + $0x20] ss:$4 sm:$0xff] %v1086_v44  ;;  %v1074_v44 = vrot.slane %v9484_v26, 6 }
 0x391   : > { %3290 = vst [vmem:[#allocation1 + $0x21] ss:$4 sm:$0xff] %v9512_v6 }
 0x392   : > { %3291 = vst [vmem:[#allocation1 + $0x22] ss:$4 sm:$0xff] %v1087_v49  ;;  %v9535_v49 = vld [vmem:[%s8496_s26 + $0x39] sm:$0xff] }
 0x393   : > { %3292 = vst [vmem:[#allocation1 + $0x23] ss:$4 sm:$0xff] %v1088_v7  ;;  %v1206_v7 = vrot.slane %v9531_v29, 6  ;;  %v1208_v26 = vrot.slane %v9535_v49, 4 }
 0x394   : > { %3372 = vrot.lane.b32.xlu2 %v3284_v57, %s8438_s28  ;;  %v1207_v57 = vrot.slane %v9535_v49, 2 }
 0x396   : > { %v3253_v0 = vld.sshfl [vmem:[#allocation1] sm:$0xff pattern:$0x73625140] }
 0x397   : > { %3358 = vrot.lane.b32.xlu1 %v3253_v0, %s8438_s28  ;;  %3255 = vst [vmem:[#allocation1] ss:$4 sm:$0xff] %v1067_v19 }
 0x398   : > { %3256 = vst [vmem:[#allocation1 + $0x1] ss:$4 sm:$0xff] %v1068_v51  ;;  %v7987_v51 = vld [vmem:[%s8496_s26 + $0x198] sm:$0xff] }
 0x399   : > { %3257 = vst [vmem:[#allocation1 + $0x2] ss:$4 sm:$0xff] %v9475_v63  ;;  %v1079_v0 = vrot.slane %v7987_v51, 4 }
 0x39a   : > { %3258 = vst [vmem:[#allocation1 + $0x3] ss:$4 sm:$0xff] %v1069_v36  ;;  %v3294_v15 = vld.sshfl [vmem:[#allocation1 + $0x20] sm:$0xff pattern:$0x73625140]  ;;  %v1078_v36 = vrot.slane %v7987_v51, 2 }
 0x39b   : > { %3429 = vst [vmem:[#allocation1 + $0x20] ss:$4 sm:$0xff] %v7994_v13  ;;  %v9546_v13 = vld [vmem:[%s8496_s26 + $0x49] sm:$0xff] }
 0x39c   : > { %3431 = vst [vmem:[#allocation1 + $0x21] ss:$4 sm:$0xff] %v1201_v14 }
 0x39d   : > { %3433 = vst [vmem:[#allocation1 + $0x22] ss:$4 sm:$0xff] %v1202_v8  ;;  %v1080_v8 = vrot.slane %v7987_v51, 6 }
 0x39e   : > { %3435 = vst [vmem:[#allocation1 + $0x23] ss:$4 sm:$0xff] %v1203_v62  ;;  %v1212_v62 = vrot.slane %v9546_v13, 6 }
 0x39f   : > { %3376 = vrot.lane.b32.xlu1 %v3294_v15, %s8438_s28  ;;  %v1211_v15 = vrot.slane %v9546_v13, 4 }
 0x3a1   : > { %v3263_v63 = vld.sshfl [vmem:[#allocation1] sm:$0xff pattern:$0x73625140] }
 0x3a2   : > { %3362 = vrot.lane.b32.xlu0 %v3263_v63, %s8438_s28  ;;  %3265 = vst [vmem:[#allocation1] ss:$4 sm:$0xff] %v1072_v22  ;;  %v9559_v63 = vld [vmem:[%s8496_s26 + $0x61] sm:$0xff] }
 0x3a3   : > { %3266 = vst [vmem:[#allocation1 + $0x1] ss:$4 sm:$0xff] %v1073_v38 }
 0x3a4   : > { %3267 = vst [vmem:[#allocation1 + $0x2] ss:$4 sm:$0xff] %v1074_v44  ;;  %v1084_v44 = vrot.slane %v9507_v43, 2 }
 0x3a5   : > { %3268 = vst [vmem:[#allocation1 + $0x3] ss:$4 sm:$0xff] %v9491_v50  ;;  %v3437_v19 = vld.sshfl [vmem:[#allocation1 + $0x20] sm:$0xff pattern:$0x73625140]  ;;  %v9550_v50 = vld [vmem:[%s8496_s26 + $0x51] sm:$0xff] }
 0x3a6   : > { %3442 = vst [vmem:[#allocation1 + $0x20] ss:$4 sm:$0xff] %v1206_v7  ;;  %v1213_v38 = vrot.slane %v9550_v50, 2  ;;  %v1085_v7 = vrot.slane %v9507_v43, 4 }
 0x3a7   : > { %3633 = vrot.lane.b32.xlu1 %v3437_v19, %s8439_s29  ;;  %3443 = vst [vmem:[#allocation1 + $0x21] ss:$4 sm:$0xff] %v9535_v49  ;;  %v7989_v19 = vld [vmem:[%s8496_s26 + $0x1a8] sm:$0x3] }
 0x3a8   : > { %3444 = vst [vmem:[#allocation1 + $0x22] ss:$4 sm:$0xff] %v1207_v57 }
 0x3a9   : > { %3445 = vst [vmem:[#allocation1 + $0x23] ss:$4 sm:$0xff] %v1208_v26  ;;  %v1216_v26 = vrot.slane %v9559_v63, 2 }
 0x3ac   : > { %v3273_v14 = vld.sshfl [vmem:[#allocation1] sm:$0xff pattern:$0x73625140] }
 0x3ad   : > { %3366 = vrot.lane.b32.xlu2 %v3273_v14, %s8438_s28  ;;  %3275 = vst [vmem:[#allocation1] ss:$4 sm:$0xff] %v7987_v51  ;;  %v1217_v51 = vrot.slane %v9559_v63, 4  ;;  %v9570_v14 = vld [vmem:[%s8496_s26 + $0x69] sm:$0xff] }
 0x3ae   : > { %3276 = vst [vmem:[#allocation1 + $0x1] ss:$4 sm:$0xff] %v1078_v36  ;;  %v1218_v36 = vrot.slane %v9559_v63, 6 }
 0x3af   : > { %3277 = vst [vmem:[#allocation1 + $0x2] ss:$4 sm:$0xff] %v1079_v0 }
 0x3b0   : > { %v3447_v22 = vld.sshfl [vmem:[#allocation1 + $0x20] sm:$0xff pattern:$0x73625140]  ;;  %3278 = vst [vmem:[#allocation1 + $0x3] ss:$4 sm:$0xff] %v1080_v8 }
 0x3b1   : > { %3637 = vrot.lane.b32.xlu0 %v3447_v22, %s8439_s29  ;;  %3452 = vst [vmem:[#allocation1 + $0x20] ss:$4 sm:$0xff] %v1211_v15  ;;  %v7992_v8 = vld [vmem:[%s8496_s26 + $0x1c0] sm:$0x3] }
 0x3b2   : > { %3453 = vst [vmem:[#allocation1 + $0x21] ss:$4 sm:$0xff] %v1212_v62  ;;  %v8005_v15 = vld [vmem:[%s8496_s26 + $0x79] sm:$0xff] }
 0x3b3   : > { %3454 = vst [vmem:[#allocation1 + $0x22] ss:$4 sm:$0xff] %v9550_v50  ;;  %v1222_v22 = vrot.slane %v8005_v15, 2 }
 0x3b4   : > { %3455 = vst [vmem:[#allocation1 + $0x23] ss:$4 sm:$0xff] %v1213_v38  ;;  %v1223_v38 = vrot.slane %v8005_v15, 4 }
 0x3b7   : > { %v3283_v57 = vld.sshfl [vmem:[#allocation1] sm:$0xff pattern:$0x73625140] }
 0x3b8   : > { %3370 = vrot.lane.b32.xlu1 %v3283_v57, %s8438_s28  ;;  %3286 = vst [vmem:[#allocation1 + $0x1] ss:$4 sm:$0xff] %v9507_v43  ;;  %v1089_v43 = vrot.slane %v9512_v6, 6  ;;  %v1224_v57 = vrot.slane %v8005_v15, 6 }
 0x3b9   : > { %3287 = vst [vmem:[#allocation1 + $0x2] ss:$4 sm:$0xff] %v1084_v44 }
 0x3ba   : > { %3288 = vst [vmem:[#allocation1 + $0x3] ss:$4 sm:$0xff] %v1085_v7  ;;  %v7993_v7 = vld [vmem:[%s8496_s26 + $0x19] sm:$0xff] }
 0x3bb   : > { %v3457_v0 = vld.sshfl [vmem:[#allocation1 + $0x20] sm:$0xff pattern:$0x73625140]  ;;  %3285 = vst [vmem:[#allocation1] ss:$4 sm:$0xff] %v7989_v19  ;;  %v1198_v6 = vrot.slane %v7993_v7, 2 }
 0x3bc   : > { %3641 = vrot.lane.b32.xlu2 %v3457_v0, %s8439_s29  ;;  %3462 = vst [vmem:[#allocation1 + $0x20] ss:$4 sm:$0xff] %v1216_v26  ;;  %v1199_v19 = vrot.slane %v7993_v7, 4  ;;  %v8007_v0 = vld [vmem:[%s8496_s26 + $0x89] sm:$0x3] }
 0x3bd   : > { %3463 = vst [vmem:[#allocation1 + $0x21] ss:$4 sm:$0xff] %v1217_v51  ;;  %v1200_v51 = vrot.slane %v7993_v7, 6 }
 0x3be   : > { %3464 = vst [vmem:[#allocation1 + $0x22] ss:$4 sm:$0xff] %v1218_v36  ;;  %v9581_v36 = vld [vmem:[%s8496_s26 + $0x91] sm:$0xff] }
 0x3bf   : > { %3465 = vst [vmem:[#allocation1 + $0x23] ss:$4 sm:$0xff] %v9570_v14 }
 0x3c2   : > { %v3293_v62 = vld.sshfl [vmem:[#allocation1] sm:$0xff pattern:$0x73625140] }
 0x3c3   : > { %3374 = vrot.lane.b32.xlu0 %v3293_v62, %s8438_s28  ;;  %3295 = vst [vmem:[#allocation1] ss:$4 sm:$0xff] %v1089_v43  ;;  %v1228_v43 = vrot.slane %v9581_v36, 2  ;;  %v1204_v62 = vrot.slane %v9531_v29, 2 }
 0x3c4   : > { %3296 = vst [vmem:[#allocation1 + $0x1] ss:$4 sm:$0xff] %v7992_v8 }
 0x3c6   : > { %v3467_v44 = vld.sshfl [vmem:[#allocation1 + $0x20] sm:$0xff pattern:$0x73625140] }
 0x3c7   : > { %3645 = vrot.lane.b32.xlu1 %v3467_v44, %s8439_s29  ;;  %3472 = vst [vmem:[#allocation1 + $0x20] ss:$4 sm:$0xff] %v8005_v15  ;;  %v1229_v15 = vrot.slane %v9581_v36, 4  ;;  %v9590_v44 = vld [vmem:[%s8496_s26 + $0x99] sm:$0xff] }
 0x3c8   : > { %3473 = vst [vmem:[#allocation1 + $0x21] ss:$4 sm:$0xff] %v1222_v22  ;;  %v1205_v22 = vrot.slane %v9531_v29, 4 }
 0x3c9   : > { %3474 = vst [vmem:[#allocation1 + $0x22] ss:$4 sm:$0xff] %v1223_v38 }
 0x3ca   : > { %3475 = vst [vmem:[#allocation1 + $0x23] ss:$4 sm:$0xff] %v1224_v57  ;;  %v9596_v57 = vld [vmem:[%s8496_s26 + $0xa9] sm:$0xff] }
 0x3cb   : > { %v3297_v26 = vld.sshfl [vmem:[#allocation1] sm:$0xff pattern:$0x73625140] }
 0x3cc   : > { %3378 = vrot.lane.b32.xlu2 %v3297_v26, %s8438_s28  ;;  %3421 = vst [vmem:[#allocation1] ss:$4 sm:$0xff] %v7993_v7  ;;  %v7995_v7 = vld [vmem:[%s8496_s26 + $0x29] sm:$0x3] }
 0x3cd   : > { %3423 = vst [vmem:[#allocation1 + $0x1] ss:$4 sm:$0xff] %v1198_v6  ;;  %v1233_v6 = vrot.slane %v9590_v44, 6 }
 0x3ce   : > { %3425 = vst [vmem:[#allocation1 + $0x2] ss:$4 sm:$0xff] %v1199_v19  ;;  %v8010_v19 = vld [vmem:[%s8496_s26 + $0xa1] sm:$0x3] }
 0x3cf   : > { %3427 = vst [vmem:[#allocation1 + $0x3] ss:$4 sm:$0xff] %v1200_v51  ;;  %v1234_v51 = vrot.slane %v9596_v57, 2 }
 0x3d1   : > { %v3477_v8 = vld.sshfl [vmem:[#allocation1 + $0x20] sm:$0xff pattern:$0x73625140] }
 0x3d2   : > { %3482 = vst [vmem:[#allocation1 + $0x20] ss:$4 sm:$0xff] %v8007_v0  ;;  %v1209_v0 = vrot.slane %v9535_v49, 6 }
 0x3d3   : > { %3483 = vst [vmem:[#allocation1 + $0x21] ss:$4 sm:$0xff] %v9581_v36 }
 0x3d4   : > { %3484 = vst [vmem:[#allocation1 + $0x22] ss:$4 sm:$0xff] %v1228_v43 }
 0x3d5   : > { %3485 = vst [vmem:[#allocation1 + $0x23] ss:$4 sm:$0xff] %v1229_v15  ;;  %v9606_v15 = vld [vmem:[%s8496_s26 + $0xb1] sm:$0xff] }
 0x3d6   : > { %v3436_v38 = vld.sshfl [vmem:[#allocation1] sm:$0xff pattern:$0x73625140]  ;;  %v1238_v49 = vrot.slane %v9606_v15, 4 }
 0x3d7   : > { %3631 = vrot.lane.b32.xlu0 %v3436_v38, %s8439_s29  ;;  %3439 = vst [vmem:[#allocation1 + $0x1] ss:$4 sm:$0xff] %v9531_v29  ;;  %v1210_v29 = vrot.slane %v9546_v13, 2  ;;  %v8013_v38 = vld [vmem:[%s8496_s26 + $0xb9] sm:$0x3] }
 0x3d8   : > { %3440 = vst [vmem:[#allocation1 + $0x2] ss:$4 sm:$0xff] %v1204_v62  ;;  %v7998_v62 = vld [vmem:[%s8496_s26 + $0x41] sm:$0x3] }
 0x3d9   : > { %3441 = vst [vmem:[#allocation1 + $0x3] ss:$4 sm:$0xff] %v1205_v22 }
 0x3da   : > { %3438 = vst [vmem:[#allocation1] ss:$4 sm:$0xff] %v7995_v7  ;;  %v9615_v7 = vld [vmem:[%s8496_s26 + $0xc1] sm:$0xff] }
 0x3dc   : > { %v3487_v26 = vld.sshfl [vmem:[#allocation1 + $0x20] sm:$0xff pattern:$0x73625140] }
 0x3dd   : > { %3492 = vst [vmem:[#allocation1 + $0x20] ss:$4 sm:$0xff] %v1233_v6  ;;  %v1214_v6 = vrot.slane %v9550_v50, 4 }
 0x3de   : > { %3493 = vst [vmem:[#allocation1 + $0x21] ss:$4 sm:$0xff] %v8010_v19  ;;  %v1215_v19 = vrot.slane %v9550_v50, 6 }
 0x3df   : > { %3649 = vrot.lane.b32.xlu0 %v3477_v8, %s8439_s29  ;;  %3494 = vst [vmem:[#allocation1 + $0x22] ss:$4 sm:$0xff] %v9596_v57  ;;  %v1239_v8 = vrot.slane %v9606_v15, 6 }
 0x3e0   : > { %3495 = vst [vmem:[#allocation1 + $0x23] ss:$4 sm:$0xff] %v1234_v51  ;;  %v9622_v51 = vld [vmem:[%s8496_s26 + $0xc9] sm:$0xff] }
 0x3e1   : > { %v3446_v43 = vld.sshfl [vmem:[#allocation1] sm:$0xff pattern:$0x73625140]  ;;  %v1244_v50 = vrot.slane %v9622_v51, 4 }
 0x3e2   : > { %3635 = vrot.lane.b32.xlu2 %v3446_v43, %s8439_s29  ;;  %3448 = vst [vmem:[#allocation1] ss:$4 sm:$0xff] %v1209_v0  ;;  %v8001_v0 = vld [vmem:[%s8496_s26 + $0x59] sm:$0x3] }
 0x3e3   : > { %3450 = vst [vmem:[#allocation1 + $0x2] ss:$4 sm:$0xff] %v9546_v13 }
 0x3e4   : > { %3451 = vst [vmem:[#allocation1 + $0x3] ss:$4 sm:$0xff] %v1210_v29  ;;  %v1243_v29 = vrot.slane %v9622_v51, 2 }
 0x3e5   : > { %3449 = vst [vmem:[#allocation1 + $0x1] ss:$4 sm:$0xff] %v7998_v62  ;;  %v8016_v62 = vld [vmem:[%s8496_s26 + $0xd1] sm:$0x3] }
 0x3e7   : > { %v3497_v22 = vld.sshfl [vmem:[#allocation1 + $0x20] sm:$0xff pattern:$0x73625140] }
 0x3e8   : > { %3502 = vst [vmem:[#allocation1 + $0x20] ss:$4 sm:$0xff] %v1238_v49  ;;  %v1219_v49 = vrot.slane %v9570_v14, 2 }
 0x3e9   : > { %3503 = vst [vmem:[#allocation1 + $0x21] ss:$4 sm:$0xff] %v1239_v8  ;;  %v1220_v8 = vrot.slane %v9570_v14, 4 }
 0x3ea   : > { %3653 = vrot.lane.b32.xlu2 %v3487_v26, %s8439_s29  ;;  %3504 = vst [vmem:[#allocation1 + $0x22] ss:$4 sm:$0xff] %v8013_v38  ;;  %v1245_v26 = vrot.slane %v9622_v51, 6 }
 0x3eb   : > { %3505 = vst [vmem:[#allocation1 + $0x23] ss:$4 sm:$0xff] %v9615_v7 }
 0x3ec   : > { %v3456_v13 = vld.sshfl [vmem:[#allocation1] sm:$0xff pattern:$0x73625140] }
 0x3ed   : > { %3639 = vrot.lane.b32.xlu1 %v3456_v13, %s8439_s29  ;;  %3458 = vst [vmem:[#allocation1] ss:$4 sm:$0xff] %v1214_v6  ;;  %v8004_v6 = vld [vmem:[%s8496_s26 + $0x71] sm:$0x3] }
 0x3ee   : > { %3459 = vst [vmem:[#allocation1 + $0x1] ss:$4 sm:$0xff] %v1215_v19  ;;  %v8018_v19 = vld [vmem:[%s8496_s26 + $0xe1] sm:$0xff] }
 0x3ef   : > { %3461 = vst [vmem:[#allocation1 + $0x3] ss:$4 sm:$0xff] %v9559_v63  ;;  %v1221_v63 = vrot.slane %v9570_v14, 6  ;;  %v1249_v13 = vrot.slane %v8018_v19, 2 }
 0x3f0   : > { %3460 = vst [vmem:[#allocation1 + $0x2] ss:$4 sm:$0xff] %v8001_v0  ;;  %v1250_v0 = vrot.slane %v8018_v19, 4 }
 0x3f2   : > { %v3507_v43 = vld.sshfl [vmem:[#allocation1 + $0x20] sm:$0xff pattern:$0x73625140] }
 0x3f3   : > { %3512 = vst [vmem:[#allocation1 + $0x20] ss:$4 sm:$0xff] %v1243_v29 }
 0x3f4   : > { %3513 = vst [vmem:[#allocation1 + $0x21] ss:$4 sm:$0xff] %v1244_v50  ;;  %v8006_v50 = vld [vmem:[%s8496_s26 + $0x81] sm:$0xff] }
 0x3f5   : > { %3657 = vrot.lane.b32.xlu1 %v3497_v22, %s8439_s29  ;;  %3514 = vst [vmem:[#allocation1 + $0x22] ss:$4 sm:$0xff] %v1245_v26  ;;  %v1251_v22 = vrot.slane %v8018_v19, 6  ;;  %v1225_v14 = vrot.slane %v8006_v50, 2  ;;  %v1226_v26 = vrot.slane %v8006_v50, 4 }
 0x3f6   : > { %3515 = vst [vmem:[#allocation1 + $0x23] ss:$4 sm:$0xff] %v8016_v62 }
 0x3f7   : > { %v3466_v38 = vld.sshfl [vmem:[#allocation1] sm:$0xff pattern:$0x73625140] }
 0x3f8   : > { %3643 = vrot.lane.b32.xlu0 %v3466_v38, %s8439_s29  ;;  %3468 = vst [vmem:[#allocation1] ss:$4 sm:$0xff] %v1219_v49  ;;  %v1227_v49 = vrot.slane %v8006_v50, 6 }
 0x3f9   : > { %3469 = vst [vmem:[#allocation1 + $0x1] ss:$4 sm:$0xff] %v1220_v8  ;;  %v9641_v8 = vld [vmem:[%s8496_s26 + $0xf1] sm:$0xff] }
 0x3fa   : > { %3470 = vst [vmem:[#allocation1 + $0x2] ss:$4 sm:$0xff] %v1221_v63  ;;  %v9645_v63 = vld [vmem:[%s8496_s26 + $0xf9] sm:$0xff]  ;;  %v1254_v38 = vrot.slane %v9641_v8, 6 }
 0x3fb   : > { %3471 = vst [vmem:[#allocation1 + $0x3] ss:$4 sm:$0xff] %v8004_v6 }
 0x3fd   : > { %v3517_v29 = vld.sshfl [vmem:[#allocation1 + $0x20] sm:$0xff pattern:$0x73625140] }
 0x3fe   : > { %3522 = vst [vmem:[#allocation1 + $0x20] ss:$4 sm:$0xff] %v8018_v19  ;;  %v1256_v19 = vrot.slane %v9645_v63, 4 }
 0x3ff   : > { %3523 = vst [vmem:[#allocation1 + $0x21] ss:$4 sm:$0xff] %v1249_v13  ;;  %v1230_v13 = vrot.slane %v9581_v36, 6  ;;  %v9661_v36 = vld [vmem:[%s8496_s26 + $0x111] sm:$0xff] }
 0x400   : > { %3661 = vrot.lane.b32.xlu0 %v3507_v43, %s8439_s29  ;;  %3524 = vst [vmem:[#allocation1 + $0x22] ss:$4 sm:$0xff] %v1250_v0  ;;  %v1255_v43 = vrot.slane %v9645_v63, 2  ;;  %v1231_v0 = vrot.slane %v9590_v44, 2 }
 0x401   : > { %3525 = vst [vmem:[#allocation1 + $0x23] ss:$4 sm:$0xff] %v1251_v22 }
 0x402   : > { %v3476_v62 = vld.sshfl [vmem:[#allocation1] sm:$0xff pattern:$0x73625140] }
 0x403   : > { %3647 = vrot.lane.b32.xlu2 %v3476_v62, %s8439_s29  ;;  %3478 = vst [vmem:[#allocation1] ss:$4 sm:$0xff] %v8006_v50  ;;  %v1232_v50 = vrot.slane %v9590_v44, 4 }
 0x404   : > { %3479 = vst [vmem:[#allocation1 + $0x1] ss:$4 sm:$0xff] %v1225_v14  ;;  %v9656_v14 = vld [vmem:[%s8496_s26 + $0x109] sm:$0xff] }
 0x405   : > { %3480 = vst [vmem:[#allocation1 + $0x2] ss:$4 sm:$0xff] %v1226_v26  ;;  %v1260_v26 = vrot.slane %v9656_v14, 6 }
 0x406   : > { %3481 = vst [vmem:[#allocation1 + $0x3] ss:$4 sm:$0xff] %v1227_v49  ;;  %v1261_v49 = vrot.slane %v9661_v36, 2 }
 0x408   : > { %v3527_v6 = vld.sshfl [vmem:[#allocation1 + $0x20] sm:$0xff pattern:$0x73625140] }
 0x409   : > { %3532 = vst [vmem:[#allocation1 + $0x20] ss:$4 sm:$0xff] %v1254_v38  ;;  %v1235_v38 = vrot.slane %v9596_v57, 4 }
 0x40a   : > { %3533 = vst [vmem:[#allocation1 + $0x21] ss:$4 sm:$0xff] %v9645_v63 }
 0x40b   : > { %3665 = vrot.lane.b32.xlu2 %v3517_v29, %s8439_s29  ;;  %3534 = vst [vmem:[#allocation1 + $0x22] ss:$4 sm:$0xff] %v1255_v43  ;;  %v1259_v29 = vrot.slane %v9656_v14, 4  ;;  %v1236_v43 = vrot.slane %v9596_v57, 6 }
 0x40c   : > { %3535 = vst [vmem:[#allocation1 + $0x23] ss:$4 sm:$0xff] %v1256_v19 }
 0x40d   : > { %v3486_v22 = vld.sshfl [vmem:[#allocation1] sm:$0xff pattern:$0x73625140] }
 0x40e   : > { %3651 = vrot.lane.b32.xlu1 %v3486_v22, %s8439_s29  ;;  %3488 = vst [vmem:[#allocation1] ss:$4 sm:$0xff] %v1230_v13  ;;  %v9672_v13 = vld [vmem:[%s8496_s26 + $0x121] sm:$0xff]  ;;  %v9680_v22 = vld [vmem:[%s8496_s26 + $0x129] sm:$0xff] }
 0x40f   : > { %3489 = vst [vmem:[#allocation1 + $0x1] ss:$4 sm:$0xff] %v9590_v44  ;;  %v1237_v44 = vrot.slane %v9606_v15, 2  ;;  %v1265_v57 = vrot.slane %v9672_v13, 4  ;;  %v1267_v30 = vrot.slane %v9680_v22, 2 }
 0x410   : > { %3490 = vst [vmem:[#allocation1 + $0x2] ss:$4 sm:$0xff] %v1231_v0  ;;  %v1264_v0 = vrot.slane %v9672_v13, 2 }
 0x411   : > { %3491 = vst [vmem:[#allocation1 + $0x3] ss:$4 sm:$0xff] %v1232_v50 }
 0x413   : > { %v3537_v62 = vld.sshfl [vmem:[#allocation1 + $0x20] sm:$0xff pattern:$0x73625140] }
 0x414   : > { %3542 = vst [vmem:[#allocation1 + $0x20] ss:$4 sm:$0xff] %v1259_v29  ;;  %v1240_v29 = vrot.slane %v9615_v7, 2 }
 0x415   : > { %3543 = vst [vmem:[#allocation1 + $0x21] ss:$4 sm:$0xff] %v1260_v26  ;;  %v1241_v26 = vrot.slane %v9615_v7, 4 }
 0x416   : > { %3669 = vrot.lane.b32.xlu1 %v3527_v6, %s8439_s29  ;;  %3544 = vst [vmem:[#allocation1 + $0x22] ss:$4 sm:$0xff] %v9661_v36  ;;  %v1266_v6 = vrot.slane %v9672_v13, 6 }
 0x417   : > { %3545 = vst [vmem:[#allocation1 + $0x23] ss:$4 sm:$0xff] %v1261_v49 }
 0x418   : > { %v3496_v19 = vld.sshfl [vmem:[#allocation1] sm:$0xff pattern:$0x73625140] }
 0x419   : > { %3655 = vrot.lane.b32.xlu0 %v3496_v19, %s8439_s29  ;;  %3498 = vst [vmem:[#allocation1] ss:$4 sm:$0xff] %v1235_v38  ;;  %v8029_v38 = vld [vmem:[%s8496_s26 + $0x139] sm:$0xff] }
 0x41a   : > { %3499 = vst [vmem:[#allocation1 + $0x1] ss:$4 sm:$0xff] %v1236_v43  ;;  %v1270_v43 = vrot.slane %v8029_v38, 2  ;;  %v1271_v19 = vrot.slane %v8029_v38, 4 }
 0x41b   : > { %3500 = vst [vmem:[#allocation1 + $0x2] ss:$4 sm:$0xff] %v9606_v15  ;;  %v1242_v15 = vrot.slane %v9615_v7, 6 }
 0x41c   : > { %3501 = vst [vmem:[#allocation1 + $0x3] ss:$4 sm:$0xff] %v1237_v44  ;;  %v9690_v44 = vpop.permute.xlu2 %8412 }
 0x41d   : > { %13990 = vst [vmem:[#allocation39_spill] sm:$0xff] %v9690_v44  ;;  %v9745_v44 = vld [vmem:[%s8496_s26 + $0x181] sm:$0xff] }
 0x41e   : > { %v3547_v50 = vld.sshfl [vmem:[#allocation1 + $0x20] sm:$0xff pattern:$0x73625140] }
 0x41f   : > { %3552 = vst [vmem:[#allocation1 + $0x20] ss:$4 sm:$0xff] %v1264_v0 }
 0x420   : > { %3553 = vst [vmem:[#allocation1 + $0x21] ss:$4 sm:$0xff] %v1265_v57  ;;  %v1272_v57 = vrot.slane %v8029_v38, 6 }
 0x421   : > { %3673 = vrot.lane.b32.xlu0 %v3537_v62, %s8439_s29  ;;  %3554 = vst [vmem:[#allocation1 + $0x22] ss:$4 sm:$0xff] %v1266_v6  ;;  %v8017_v62 = vld [vmem:[%s8496_s26 + $0xd9] sm:$0xff]  ;;  %v9694_v6 = vpop.permute.xlu1 %8407 }
 0x422   : > { %3555 = vst [vmem:[#allocation1 + $0x23] ss:$4 sm:$0xff] %v9680_v22  ;;  %v1246_v7 = vrot.slane %v8017_v62, 2 }
 0x423   : > { %v3506_v49 = vld.sshfl [vmem:[#allocation1] sm:$0xff pattern:$0x73625140]  ;;  %13991 = vst [vmem:[#allocation40_spill] sm:$0xff] %v9694_v6 }
 0x424   : > { %3659 = vrot.lane.b32.xlu2 %v3506_v49, %s8439_s29  ;;  %3508 = vst [vmem:[#allocation1] ss:$4 sm:$0xff] %v1240_v29  ;;  %v1247_v29 = vrot.slane %v8017_v62, 4  ;;  %v9700_v49 = vpop.permute.xlu2 %2642 }
 0x425   : > { %3509 = vst [vmem:[#allocation1 + $0x1] ss:$4 sm:$0xff] %v1241_v26  ;;  %v1248_v26 = vrot.slane %v8017_v62, 6 }
 0x426   : > { %3510 = vst [vmem:[#allocation1 + $0x2] ss:$4 sm:$0xff] %v1242_v15  ;;  %v9698_v15 = vld [vmem:[%s8496_s26 + $0x151] sm:$0xff] }
 0x427   : > { %3511 = vst [vmem:[#allocation1 + $0x3] ss:$4 sm:$0xff] %v9622_v51  ;;  %v1278_v55 = vrot.slane %v9698_v15, 6 }
 0x429   : > { %v3557_v0 = vld.sshfl [vmem:[#allocation1 + $0x20] sm:$0xff pattern:$0x73625140] }
 0x42a   : > { %3562 = vst [vmem:[#allocation1 + $0x20] ss:$4 sm:$0xff] %v8029_v38  ;;  %v1276_v38 = vrot.slane %v9698_v15, 2 }
 0x42b   : > { %3563 = vst [vmem:[#allocation1 + $0x21] ss:$4 sm:$0xff] %v1270_v43 }
 0x42c   : > { %3677 = vrot.lane.b32.xlu2 %v3547_v50, %s8439_s29  ;;  %3564 = vst [vmem:[#allocation1 + $0x22] ss:$4 sm:$0xff] %v1271_v19  ;;  %v8031_v50 = vld [vmem:[%s8496_s26 + $0x149] sm:$0x3]  ;;  %v1277_v19 = vrot.slane %v9698_v15, 4 }
 0x42d   : > { %3565 = vst [vmem:[#allocation1 + $0x23] ss:$4 sm:$0xff] %v1272_v57  ;;  %v1252_v57 = vrot.slane %v9641_v8, 2 }
 0x42e   : > { %v3516_v51 = vld.sshfl [vmem:[#allocation1] sm:$0xff pattern:$0x73625140] }
 0x42f   : > { %3663 = vrot.lane.b32.xlu1 %v3516_v51, %s8439_s29  ;;  %3518 = vst [vmem:[#allocation1] ss:$4 sm:$0xff] %v8017_v62  ;;  %v9706_v62 = vpop.permute.xlu1 %8417 }
 0x430   : > { %3519 = vst [vmem:[#allocation1 + $0x1] ss:$4 sm:$0xff] %v1246_v7  ;;  %v9710_v7 = vpop.permute.xlu0 %7139 }
 0x431   : > { %3520 = vst [vmem:[#allocation1 + $0x2] ss:$4 sm:$0xff] %v1247_v29  ;;  %v1253_v29 = vrot.slane %v9641_v8, 4 }
 0x432   : > { %3521 = vst [vmem:[#allocation1 + $0x3] ss:$4 sm:$0xff] %v1248_v26  ;;  %v9714_v26 = vld [vmem:[%s8496_s26 + $0x159] sm:$0xff] }
 0x433   : > { %13992 = vst [vmem:[#allocation41_spill] sm:$0xff] %v9706_v62  ;;  %v9719_v62 = vpop.permute.xlu2 %2640 }
 0x434   : > { %v3567_v43 = vld.sshfl [vmem:[#allocation1 + $0x20] sm:$0xff pattern:$0x73625140]  ;;  %13993 = vst [vmem:[#allocation42_spill] sm:$0xff] %v9710_v7 }
 0x435   : > { %3572 = vst [vmem:[#allocation1 + $0x20] ss:$4 sm:$0xff] %v8031_v50  ;;  %v8019_v50 = vld [vmem:[%s8496_s26 + $0xe9] sm:$0x3] }
 0x436   : > { %3573 = vst [vmem:[#allocation1 + $0x21] ss:$4 sm:$0xff] %v9698_v15 }
 0x437   : > { %3681 = vrot.lane.b32.xlu1 %v3557_v0, %s8439_s29  ;;  %3574 = vst [vmem:[#allocation1 + $0x22] ss:$4 sm:$0xff] %v1276_v38  ;;  %v9722_v0 = vld [vmem:[%s8496_s26 + $0x169] sm:$0xff]  ;;  %v1281_v38 = vrot.slane %v9714_v26, 6 }
 0x438   : > { %3575 = vst [vmem:[#allocation1 + $0x23] ss:$4 sm:$0xff] %v1277_v19  ;;  %v8034_v19 = vld [vmem:[%s8496_s26 + $0x161] sm:$0x3]  ;;  %v1282_v1 = vrot.slane %v9722_v0, 2  ;;  %v1283_v45 = vrot.slane %v9722_v0, 4 }
 0x439   : > { %v3526_v51 = vld.sshfl [vmem:[#allocation1] sm:$0xff pattern:$0x73625140] }
 0x43a   : > { %3667 = vrot.lane.b32.xlu0 %v3526_v51, %s8439_s29  ;;  %3529 = vst [vmem:[#allocation1 + $0x1] ss:$4 sm:$0xff] %v9641_v8  ;;  %v1257_v51 = vrot.slane %v9645_v63, 6  ;;  %v9728_v8 = vpop.permute.xlu0 %2634 }
 0x43b   : > { %3530 = vst [vmem:[#allocation1 + $0x2] ss:$4 sm:$0xff] %v1252_v57  ;;  %v1258_v57 = vrot.slane %v9656_v14, 2  ;;  %v9738_v63 = vpop.permute.xlu2 %2648 }
 0x43c   : > { %3531 = vst [vmem:[#allocation1 + $0x3] ss:$4 sm:$0xff] %v1253_v29 }
 0x43d   : > { %3528 = vst [vmem:[#allocation1] ss:$4 sm:$0xff] %v8019_v50  ;;  %v9734_v50 = vld [vmem:[%s8496_s26 + $0x171] sm:$0xff] }
 0x43e   : > { %13994 = vst [vmem:[#allocation43_spill] sm:$0xff] %v9738_v63 }
 0x43f   : > { %v3577_v7 = vld.sshfl [vmem:[#allocation1 + $0x20] sm:$0xff pattern:$0x73625140] }
 0x440   : > { %3582 = vst [vmem:[#allocation1 + $0x20] ss:$4 sm:$0xff] %v1281_v38  ;;  %v8022_v38 = vld [vmem:[%s8496_s26 + $0x101] sm:$0x3] }
 0x441   : > { %3583 = vst [vmem:[#allocation1 + $0x21] ss:$4 sm:$0xff] %v8034_v19  ;;  %v1287_v19 = vrot.slane %v9734_v50, 6 }
 0x442   : > { %3685 = vrot.lane.b32.xlu0 %v3567_v43, %s8439_s29  ;;  %3584 = vst [vmem:[#allocation1 + $0x22] ss:$4 sm:$0xff] %v9722_v0  ;;  %v1286_v43 = vrot.slane %v9734_v50, 4 }
 0x443   : > { %3585 = vst [vmem:[#allocation1 + $0x23] ss:$4 sm:$0xff] %v1282_v1  ;;  %v8037_v1 = vld [vmem:[%s8496_s26 + $0x179] sm:$0x3]  ;;  %v9756_v6 = vpop.permute.xlu2 %2654 }
 0x444   : > { %v3536_v29 = vld.sshfl [vmem:[#allocation1] sm:$0xff pattern:$0x73625140]  ;;  %13995 = vst [vmem:[#allocation44_spill] sm:$0xff] %v9756_v6  ;;  %v10244_v6 = vld [vmem:[%s8496_s26 + $0x78] sm:$0xff] }
 0x445   : > { %3671 = vrot.lane.b32.xlu2 %v3536_v29, %s8439_s29  ;;  %3538 = vst [vmem:[#allocation1] ss:$4 sm:$0xff] %v1257_v51  ;;  %v1262_v51 = vrot.slane %v9661_v36, 4  ;;  %v1263_v29 = vrot.slane %v9661_v36, 6 }
 0x446   : > { %3540 = vst [vmem:[#allocation1 + $0x2] ss:$4 sm:$0xff] %v9656_v14  ;;  %v9750_v14 = vpop.permute.xlu1 %2638 }
 0x447   : > { %3541 = vst [vmem:[#allocation1 + $0x3] ss:$4 sm:$0xff] %v1258_v57 }
 0x448   : > { %3539 = vst [vmem:[#allocation1 + $0x1] ss:$4 sm:$0xff] %v8022_v38  ;;  %v9754_v38 = vld [vmem:[%s8496_s26 + $0x189] sm:$0xff] }
 0x449   : > { %v1291_v36 = vrot.slane %v9754_v38, 2 }
 0x44a   : > { %v3587_v47 = vld.sshfl [vmem:[#allocation1 + $0x20] sm:$0xff pattern:$0x73625140] }
 0x44b   : > { %3592 = vst [vmem:[#allocation1 + $0x20] ss:$4 sm:$0xff] %v1286_v43  ;;  %v8025_v43 = vld [vmem:[%s8496_s26 + $0x119] sm:$0x3] }
 0x44c   : > { %3593 = vst [vmem:[#allocation1 + $0x21] ss:$4 sm:$0xff] %v1287_v19  ;;  %v1293_v19 = vrot.slane %v9754_v38, 6 }
 0x44d   : > { %3689 = vrot.lane.b32.xlu2 %v3577_v7, %s8439_s29  ;;  %3594 = vst [vmem:[#allocation1 + $0x22] ss:$4 sm:$0xff] %v8037_v1  ;;  %v1292_v7 = vrot.slane %v9754_v38, 4 }
 0x44e   : > { %3595 = vst [vmem:[#allocation1 + $0x23] ss:$4 sm:$0xff] %v9745_v44 }
 0x44f   : > { %v3546_v57 = vld.sshfl [vmem:[#allocation1] sm:$0xff pattern:$0x73625140] }
 0x450   : > { %3675 = vrot.lane.b32.xlu1 %v3546_v57, %s8439_s29  ;;  %3548 = vst [vmem:[#allocation1] ss:$4 sm:$0xff] %v1262_v51  ;;  %v9766_v51 = vpop.permute.xlu1 %2636  ;;  %v1269_v57 = vrot.slane %v9680_v22, 6 }
 0x451   : > { %3549 = vst [vmem:[#allocation1 + $0x1] ss:$4 sm:$0xff] %v1263_v29  ;;  %v1268_v29 = vrot.slane %v9680_v22, 4 }
 0x452   : > { %3551 = vst [vmem:[#allocation1 + $0x3] ss:$4 sm:$0xff] %v9672_v13  ;;  %v9770_v13 = vpop.permute.xlu0 %2632 }
 0x453   : > { %3550 = vst [vmem:[#allocation1 + $0x2] ss:$4 sm:$0xff] %v8025_v43  ;;  %v9773_v43 = vpop.permute.xlu2 %2660 }
 0x454   : > { %13996 = vst [vmem:[#allocation45_spill] sm:$0xff] %v9773_v43 }
 0x455   : > { %v3597_v1 = vld.sshfl [vmem:[#allocation1 + $0x20] sm:$0xff pattern:$0x73625140] }
 0x456   : > { %3602 = vst [vmem:[#allocation1 + $0x20] ss:$4 sm:$0xff] %v1291_v36  ;;  %v8028_v36 = vld [vmem:[%s8496_s26 + $0x131] sm:$0x3] }
 0x457   : > { %3603 = vst [vmem:[#allocation1 + $0x21] ss:$4 sm:$0xff] %v1292_v7  ;;  %v8042_v7 = vld [vmem:[%s8496_s26 + $0x1a1] sm:$0xff] }
 0x458   : > { %3693 = vrot.lane.b32.xlu1 %v3587_v47, %s8439_s29  ;;  %3604 = vst [vmem:[#allocation1 + $0x22] ss:$4 sm:$0xff] %v1293_v19  ;;  %v1297_v3 = vrot.slane %v8042_v7, 2  ;;  %v1298_v47 = vrot.slane %v8042_v7, 4  ;;  %v1299_v9 = vrot.slane %v8042_v7, 6 }
 0x459   : > { %3605 = vst [vmem:[#allocation1 + $0x23] ss:$4 sm:$0xff] %v8040_v32  ;;  %v9779_v32 = vpop.permute.xlu1 %2646 }
 0x45a   : > { %v3556_v59 = vld.sshfl [vmem:[#allocation1] sm:$0xff pattern:$0x73625140]  ;;  %13997 = vst [vmem:[#allocation46_spill] sm:$0xff] %v9779_v32  ;;  %v9781_v22 = vpop.permute.xlu0 %2644 }
 0x45b   : > { %3679 = vrot.lane.b32.xlu0 %v3556_v59, %s8439_s29  ;;  %3558 = vst [vmem:[#allocation1] ss:$4 sm:$0xff] %v1267_v30  ;;  %v1273_v30 = vrot.slane %v8030_v34, 2  ;;  %v9784_v59 = vpop.permute.xlu2 %2666  ;;  %v8180_v32 = vld [vmem:[%s8496_s26 + $0xf9] sm:$0xff] }
 0x45c   : > { %3559 = vst [vmem:[#allocation1 + $0x1] ss:$4 sm:$0xff] %v1268_v29  ;;  %v1274_v29 = vrot.slane %v8030_v34, 4 }
 0x45d   : > { %3560 = vst [vmem:[#allocation1 + $0x2] ss:$4 sm:$0xff] %v1269_v57 }
 0x45e   : > { %3561 = vst [vmem:[#allocation1 + $0x3] ss:$4 sm:$0xff] %v8028_v36  ;;  %v1275_v36 = vrot.slane %v8030_v34, 6 }
 0x45f   : > { %13998 = vst [vmem:[#allocation47_spill] sm:$0xff] %v9781_v22 }
 0x460   : > { %v3607_v19 = vld.sshfl [vmem:[#allocation1 + $0x20] sm:$0xff pattern:$0x73625140]  ;;  %13999 = vst [vmem:[#allocation48_spill] sm:$0xff] %v9784_v59 }
 0x461   : > { %3612 = vst [vmem:[#allocation1 + $0x20] ss:$4 sm:$0xff] %v8042_v7  ;;  %v9791_v7 = vld [vmem:[%s8496_s26 + $0x1b9] sm:$0xff]  ;;  %v9796_v20 = vpop.permute.xlu1 %2652 }
 0x462   : > { %3613 = vst [vmem:[#allocation1 + $0x21] ss:$4 sm:$0xff] %v1297_v3  ;;  %v1302_v3 = vrot.slane %v9787_v27, 6 }
 0x463   : > { %3697 = vrot.lane.b32.xlu0 %v3597_v1, %s8439_s29  ;;  %3614 = vst [vmem:[#allocation1 + $0x22] ss:$4 sm:$0xff] %v1298_v47  ;;  %v1303_v1 = vrot.slane %v9791_v7, 2 }
 0x464   : > { %3615 = vst [vmem:[#allocation1 + $0x23] ss:$4 sm:$0xff] %v1299_v9  ;;  %v1304_v9 = vrot.slane %v9791_v7, 4 }
 0x465   : > { %v3566_v57 = vld.sshfl [vmem:[#allocation1] sm:$0xff pattern:$0x73625140]  ;;  %14000 = vst [vmem:[#allocation49_spill] sm:$0xff] %v9796_v20  ;;  %v10315_v20 = vld [vmem:[%s8496_s26 + $0xc8] sm:$0xff] }
 0x466   : > { %3683 = vrot.lane.b32.xlu2 %v3566_v57, %s8439_s29  ;;  %3568 = vst [vmem:[#allocation1] ss:$4 sm:$0xff] %v8030_v34  ;;  %v9800_v34 = vpop.permute.xlu2 %2672  ;;  %v1280_v57 = vrot.slane %v9714_v26, 4 }
 0x467   : > { %3569 = vst [vmem:[#allocation1 + $0x1] ss:$4 sm:$0xff] %v1273_v30  ;;  %v1279_v30 = vrot.slane %v9714_v26, 2 }
 0x468   : > { %3570 = vst [vmem:[#allocation1 + $0x2] ss:$4 sm:$0xff] %v1274_v29  ;;  %v9804_v29 = vpop.permute.xlu0 %2650 }
 0x469   : > { %3571 = vst [vmem:[#allocation1 + $0x3] ss:$4 sm:$0xff] %v1275_v36 }
 0x46a   : > { %14001 = vst [vmem:[#allocation50_spill] sm:$0xff] %v9800_v34 }
 0x46b   : > { %v3617_v47 = vld.sshfl [vmem:[#allocation1 + $0x20] sm:$0xff pattern:$0x73625140]  ;;  %14002 = vst [vmem:[#allocation51_spill] sm:$0xff] %v9804_v29 }
 0x46c   : > { %3622 = vst [vmem:[#allocation1 + $0x20] ss:$4 sm:$0xff] %v1302_v3  ;;  %v8048_v3 = vld [vmem:[%s8496_s26 + $0x22] sm:$0xff] }
 0x46d   : > { %3623 = vst [vmem:[#allocation1 + $0x21] ss:$4 sm:$0xff] %v9791_v7  ;;  %v1417_v15 = vrot.slane %v8048_v3, 2 }
 0x46e   : > { %3701 = vrot.lane.b32.xlu2 %v3607_v19, %s8439_s29  ;;  %3624 = vst [vmem:[#allocation1 + $0x22] ss:$4 sm:$0xff] %v1303_v1  ;;  %v1418_v19 = vrot.slane %v8048_v3, 4  ;;  %v9810_v1 = vpop.permute.xlu1 %2658  ;;  %v9812_v39 = vpop.permute.xlu2 %2678 }
 0x46f   : > { %3625 = vst [vmem:[#allocation1 + $0x23] ss:$4 sm:$0xff] %v1304_v9  ;;  %v1419_v9 = vrot.slane %v8048_v3, 6 }
 0x470   : > { %v3576_v36 = vld.sshfl [vmem:[#allocation1] sm:$0xff pattern:$0x73625140]  ;;  %14003 = vst [vmem:[#allocation52_spill] sm:$0xff] %v9810_v1 }
 0x471   : > { %3687 = vrot.lane.b32.xlu1 %v3576_v36, %s8439_s29  ;;  %3578 = vst [vmem:[#allocation1] ss:$4 sm:$0xff] %v1278_v55  ;;  %v1284_v55 = vrot.slane %v9722_v0, 6  ;;  %v9821_v36 = vld [vmem:[%s8496_s26 + $0x32] sm:$0xff] }
 0x472   : > { %3579 = vst [vmem:[#allocation1 + $0x1] ss:$4 sm:$0xff] %v9714_v26  ;;  %v9817_v26 = vpop.permute.xlu0 %2656  ;;  %v1422_v0 = vrot.slane %v9821_v36, 6 }
 0x473   : > { %3580 = vst [vmem:[#allocation1 + $0x2] ss:$4 sm:$0xff] %v1279_v30  ;;  %v1285_v30 = vrot.slane %v9734_v50, 2 }
 0x474   : > { %3581 = vst [vmem:[#allocation1 + $0x3] ss:$4 sm:$0xff] %v1280_v57 }
 0x475   : > { %14004 = vst [vmem:[#allocation53_spill] sm:$0xff] %v9812_v39 }
 0x476   : > { %v3627_v2 = vld.sshfl [vmem:[#allocation1 + $0x20] sm:$0xff pattern:$0x73625140]  ;;  %14005 = vst [vmem:[#allocation54_spill] sm:$0xff] %v9817_v26  ;;  %v9833_v25 = vpop.permute.xlu2 %2684 }
 0x477   : > { %3762 = vst [vmem:[#allocation1 + $0x20] ss:$4 sm:$0xff] %v8048_v3  ;;  %v9825_v3 = vld [vmem:[%s8496_s26 + $0x3a] sm:$0xff] }
 0x478   : > { %3764 = vst [vmem:[#allocation1 + $0x21] ss:$4 sm:$0xff] %v1417_v15  ;;  %v1423_v15 = vrot.slane %v9825_v3, 2 }
 0x479   : > { %3705 = vrot.lane.b32.xlu1 %v3617_v47, %s8439_s29  ;;  %3766 = vst [vmem:[#allocation1 + $0x22] ss:$4 sm:$0xff] %v1418_v19  ;;  %v9829_v47 = vpop.permute.xlu1 %2664 }
 0x47a   : > { %3768 = vst [vmem:[#allocation1 + $0x23] ss:$4 sm:$0xff] %v1419_v9  ;;  %v1424_v9 = vrot.slane %v9825_v3, 4 }
 0x47b   : > { %v3586_v57 = vld.sshfl [vmem:[#allocation1] sm:$0xff pattern:$0x73625140]  ;;  %14006 = vst [vmem:[#allocation55_spill] sm:$0xff] %v9829_v47 }
 0x47c   : > { %3691 = vrot.lane.b32.xlu0 %v3586_v57, %s8439_s29  ;;  %3588 = vst [vmem:[#allocation1] ss:$4 sm:$0xff] %v1283_v45  ;;  %v1288_v45 = vrot.slane %v9745_v44, 2  ;;  %v9950_v47 = vld [vmem:[%s8496_s26 + $0xc2] sm:$0xff] }
 0x47d   : > { %3589 = vst [vmem:[#allocation1 + $0x1] ss:$4 sm:$0xff] %v1284_v55  ;;  %v1289_v55 = vrot.slane %v9745_v44, 4 }
 0x47e   : > { %3590 = vst [vmem:[#allocation1 + $0x2] ss:$4 sm:$0xff] %v9734_v50  ;;  %v9837_v50 = vpop.permute.xlu0 %2662 }
 0x47f   : > { %3591 = vst [vmem:[#allocation1 + $0x3] ss:$4 sm:$0xff] %v1285_v30  ;;  %v1290_v30 = vrot.slane %v9745_v44, 6  ;;  %v9854_v44 = vpop.permute.xlu2 %2690 }
 0x480   : > { %14007 = vst [vmem:[#allocation56_spill] sm:$0xff] %v9833_v25  ;;  %v1427_v25 = vrot.slane %v9843_v21, 4 }
 0x481   : > { %v3770_v19 = vld.sshfl [vmem:[#allocation1 + $0x20] sm:$0xff pattern:$0x73625140]  ;;  %14008 = vst [vmem:[#allocation57_spill] sm:$0xff] %v9837_v50  ;;  %v9850_v10 = vpop.permute.xlu1 %2670 }
 0x482   : > { %3775 = vst [vmem:[#allocation1 + $0x20] ss:$4 sm:$0xff] %v1422_v0  ;;  %v9847_v0 = vld [vmem:[%s8496_s26 + $0x52] sm:$0xff] }
 0x483   : > { %3776 = vst [vmem:[#allocation1 + $0x21] ss:$4 sm:$0xff] %v9825_v3 }
 0x484   : > { %3709 = vrot.lane.b32.xlu0 %v3627_v2, %s8439_s29  ;;  %3777 = vst [vmem:[#allocation1 + $0x22] ss:$4 sm:$0xff] %v1423_v15  ;;  %v1428_v2 = vrot.slane %v9843_v21, 6 }
 0x485   : > { %3778 = vst [vmem:[#allocation1 + $0x23] ss:$4 sm:$0xff] %v1424_v9  ;;  %v1429_v9 = vrot.slane %v9847_v0, 2 }
 0x486   : > { %v3596_v57 = vld.sshfl [vmem:[#allocation1] sm:$0xff pattern:$0x73625140]  ;;  %14009 = vst [vmem:[#allocation58_spill] sm:$0xff] %v9850_v10 }
 0x487   : > { %3695 = vrot.lane.b32.xlu2 %v3596_v57, %s8439_s29  ;;  %3598 = vst [vmem:[#allocation1] ss:$4 sm:$0xff] %v1288_v45  ;;  %v8041_v45 = vld [vmem:[%s8496_s26 + $0x199] sm:$0xff] }
 0x488   : > { %3599 = vst [vmem:[#allocation1 + $0x1] ss:$4 sm:$0xff] %v1289_v55  ;;  %v9859_v55 = vpop.permute.xlu0 %2668 }
 0x489   : > { %3600 = vst [vmem:[#allocation1 + $0x2] ss:$4 sm:$0xff] %v1290_v30  ;;  %v1295_v30 = vrot.slane %v8041_v45, 4 }
 0x48a   : > { %3601 = vst [vmem:[#allocation1 + $0x3] ss:$4 sm:$0xff] %v9754_v38  ;;  %v1294_v38 = vrot.slane %v8041_v45, 2 }
 0x48b   : > { %14010 = vst [vmem:[#allocation59_spill] sm:$0xff] %v9854_v44  ;;  %v1296_v44 = vrot.slane %v8041_v45, 6 }
 0x48c   : > { %3966 = vrot.lane.b32.xlu0 %v3770_v19, %s8440_s30  ;;  %v3780_v15 = vld.sshfl [vmem:[#allocation1 + $0x20] sm:$0xff pattern:$0x73625140]  ;;  %14011 = vst [vmem:[#allocation60_spill] sm:$0xff] %v9859_v55  ;;  %v1432_v19 = vrot.slane %v9864_v54, 2 }
 0x48d   : > { %3785 = vst [vmem:[#allocation1 + $0x20] ss:$4 sm:$0xff] %v1427_v25  ;;  %v9867_v25 = vpop.permute.xlu1 %2676 }
 0x48e   : > { %3786 = vst [vmem:[#allocation1 + $0x21] ss:$4 sm:$0xff] %v1428_v2  ;;  %v1433_v2 = vrot.slane %v9864_v54, 4 }
 0x48f   : > { %3970 = vrot.lane.b32.xlu2 %v3780_v15, %s8440_s30  ;;  %3787 = vst [vmem:[#allocation1 + $0x22] ss:$4 sm:$0xff] %v9847_v0  ;;  %v9871_v15 = vpop.permute.xlu2 %2696 }
 0x490   : > { %3788 = vst [vmem:[#allocation1 + $0x23] ss:$4 sm:$0xff] %v1429_v9  ;;  %v1434_v9 = vrot.slane %v9864_v54, 6  ;;  %v9874_v59 = vpop.permute.xlu0 %2674 }
 0x491   : > { %v3606_v57 = vld.sshfl [vmem:[#allocation1] sm:$0xff pattern:$0x73625140]  ;;  %14012 = vst [vmem:[#allocation61_spill] sm:$0xff] %v9867_v25 }
 0x492   : > { %3699 = vrot.lane.b32.xlu1 %v3606_v57, %s8439_s29  ;;  %3608 = vst [vmem:[#allocation1] ss:$4 sm:$0xff] %v8041_v45  ;;  %v9877_v57 = vld [vmem:[%s8496_s26 + $0x6a] sm:$0xff]  ;;  %v1300_v45 = vrot.slane %v9787_v27, 2 }
 0x493   : > { %3609 = vst [vmem:[#allocation1 + $0x1] ss:$4 sm:$0xff] %v1294_v38 }
 0x494   : > { %3610 = vst [vmem:[#allocation1 + $0x2] ss:$4 sm:$0xff] %v1295_v30  ;;  %v8043_v30 = vld [vmem:[%s8496_s26 + $0x1a9] sm:$0x3] }
 0x495   : > { %3611 = vst [vmem:[#allocation1 + $0x3] ss:$4 sm:$0xff] %v1296_v44  ;;  %v1301_v44 = vrot.slane %v9787_v27, 4  ;;  %v9887_v60 = vpop.permute.xlu1 %2682 }
 0x496   : > { %14013 = vst [vmem:[#allocation62_spill] sm:$0xff] %v9871_v15  ;;  %v8059_v15 = vld [vmem:[%s8496_s26 + $0x7a] sm:$0xff] }
 0x497   : > { %v3790_v23 = vld.sshfl [vmem:[#allocation1 + $0x20] sm:$0xff pattern:$0x73625140]  ;;  %14014 = vst [vmem:[#allocation63_spill] sm:$0xff] %v9874_v59 }
 0x498   : > { %3795 = vst [vmem:[#allocation1 + $0x20] ss:$4 sm:$0xff] %v1432_v19  ;;  %v9889_v19 = vpop.permute.xlu2 %2702 }
 0x499   : > { %3796 = vst [vmem:[#allocation1 + $0x21] ss:$4 sm:$0xff] %v1433_v2  ;;  %v1439_v2 = vrot.slane %v8059_v15, 4 }
 0x49a   : > { %3974 = vrot.lane.b32.xlu1 %v3790_v23, %s8440_s30  ;;  %3797 = vst [vmem:[#allocation1 + $0x22] ss:$4 sm:$0xff] %v1434_v9  ;;  %v1438_v23 = vrot.slane %v8059_v15, 2  ;;  %v9891_v9 = vpop.permute.xlu0 %2680 }
 0x49b   : > { %3798 = vst [vmem:[#allocation1 + $0x23] ss:$4 sm:$0xff] %v9877_v57 }
 0x49c   : > { %v3616_v38 = vld.sshfl [vmem:[#allocation1] sm:$0xff pattern:$0x73625140]  ;;  %14015 = vst [vmem:[#allocation64_spill] sm:$0xff] %v9887_v60 }
 0x49d   : > { %3703 = vrot.lane.b32.xlu0 %v3616_v38, %s8439_s29  ;;  %3619 = vst [vmem:[#allocation1 + $0x1] ss:$4 sm:$0xff] %v9787_v27  ;;  %v1440_v38 = vrot.slane %v8059_v15, 6  ;;  %v1305_v27 = vrot.slane %v9791_v7, 6 }
 0x49e   : > { %3620 = vst [vmem:[#allocation1 + $0x2] ss:$4 sm:$0xff] %v1300_v45  ;;  %v8046_v45 = vld [vmem:[%s8496_s26 + $0x1c1] sm:$0x3] }
 0x49f   : > { %3621 = vst [vmem:[#allocation1 + $0x3] ss:$4 sm:$0xff] %v1301_v44 }
 0x4a0   : > { %14016 = vst [vmem:[#allocation65_spill] sm:$0xff] %v9889_v19  ;;  %v9900_v19 = vld [vmem:[%s8496_s26 + $0x92] sm:$0xff]  ;;  %v9902_v60 = vpop.permute.xlu2 %2708 }
 0x4a1   : > { %3618 = vst [vmem:[#allocation1] ss:$4 sm:$0xff] %v8043_v30  ;;  %v9896_v30 = vpop.permute.xlu1 %2688 }
 0x4a2   : > { %14017 = vst [vmem:[#allocation66_spill] sm:$0xff] %v9891_v9  ;;  %v3800_v39 = vld.sshfl [vmem:[#allocation1 + $0x20] sm:$0xff pattern:$0x73625140]  ;;  %v9905_v7 = vpop.permute.xlu0 %2686  ;;  %v9921_v9 = vld [vmem:[%s8496_s26 + $0xaa] sm:$0xff] }
 0x4a3   : > { %3805 = vst [vmem:[#allocation1 + $0x20] ss:$4 sm:$0xff] %v8059_v15  ;;  %v8061_v15 = vld [vmem:[%s8496_s26 + $0x8a] sm:$0x3] }
 0x4a4   : > { %3806 = vst [vmem:[#allocation1 + $0x21] ss:$4 sm:$0xff] %v1438_v23  ;;  %v1444_v23 = vrot.slane %v9900_v19, 2 }
 0x4a5   : > { %3978 = vrot.lane.b32.xlu0 %v3800_v39, %s8440_s30  ;;  %3807 = vst [vmem:[#allocation1 + $0x22] ss:$4 sm:$0xff] %v1439_v2  ;;  %v8047_v39 = vld [vmem:[%s8496_s26 + $0x1a] sm:$0xff] }
 0x4a6   : > { %3808 = vst [vmem:[#allocation1 + $0x23] ss:$4 sm:$0xff] %v1440_v38  ;;  %v1445_v38 = vrot.slane %v9900_v19, 4 }
 0x4a7   : > { %14018 = vst [vmem:[#allocation67_spill] sm:$0xff] %v9896_v30 }
 0x4a8   : > { %v3626_v44 = vld.sshfl [vmem:[#allocation1] sm:$0xff pattern:$0x73625140]  ;;  %14019 = vst [vmem:[#allocation68_spill] sm:$0xff] %v9902_v60  ;;  %v1416_v60 = vrot.slane %v8047_v39, 6 }
 0x4a9   : > { %3707 = vrot.lane.b32.xlu2 %v3626_v44, %s8439_s29  ;;  %3628 = vst [vmem:[#allocation1] ss:$4 sm:$0xff] %v1305_v27  ;;  %v1414_v27 = vrot.slane %v8047_v39, 2  ;;  %v1415_v44 = vrot.slane %v8047_v39, 4  ;;  %v9913_v30 = vpop.permute.xlu1 %2694 }
 0x4aa   : > { %3629 = vst [vmem:[#allocation1 + $0x1] ss:$4 sm:$0xff] %v8046_v45 }
 0x4ab   : > { %14020 = vst [vmem:[#allocation69_spill] sm:$0xff] %v9905_v7  ;;  %v9916_v7 = vld [vmem:[%s8496_s26 + $0x9a] sm:$0xff] }
 0x4ac   : > { %14021 = vst [vmem:[#allocation70_spill] sm:$0xff] %v9913_v30  ;;  %v1450_v30 = vrot.slane %v9921_v9, 2 }
 0x4ad   : > { %v3810_v2 = vld.sshfl [vmem:[#allocation1 + $0x20] sm:$0xff pattern:$0x73625140] }
 0x4ae   : > { %3815 = vst [vmem:[#allocation1 + $0x20] ss:$4 sm:$0xff] %v8061_v15  ;;  %v9918_v15 = vpop.permute.xlu2 %2971 }
 0x4af   : > { %3816 = vst [vmem:[#allocation1 + $0x21] ss:$4 sm:$0xff] %v9900_v19 }
 0x4b0   : > { %3817 = vst [vmem:[#allocation1 + $0x22] ss:$4 sm:$0xff] %v1444_v23  ;;  %v9924_v23 = vpop.permute.xlu0 %2692 }
 0x4b1   : > { %3982 = vrot.lane.b32.xlu2 %v3810_v2, %s8440_s30  ;;  %v3630_v45 = vld.sshfl [vmem:[#allocation1] sm:$0xff pattern:$0x73625140]  ;;  %3818 = vst [vmem:[#allocation1 + $0x23] ss:$4 sm:$0xff] %v1445_v38  ;;  %v1449_v2 = vrot.slane %v9916_v7, 6 }
 0x4b2   : > { %3711 = vrot.lane.b32.xlu1 %v3630_v45, %s8439_s29  ;;  %3754 = vst [vmem:[#allocation1] ss:$4 sm:$0xff] %v8047_v39  ;;  %v8064_v38 = vld [vmem:[%s8496_s26 + $0xa2] sm:$0x3]  ;;  %v1420_v39 = vrot.slane %v9821_v36, 2 }
 0x4b3   : > { %3756 = vst [vmem:[#allocation1 + $0x1] ss:$4 sm:$0xff] %v1414_v27  ;;  %v9932_v27 = vpop.permute.xlu1 %2700 }
 0x4b4   : > { %3758 = vst [vmem:[#allocation1 + $0x2] ss:$4 sm:$0xff] %v1415_v44 }
 0x4b5   : > { %3760 = vst [vmem:[#allocation1 + $0x3] ss:$4 sm:$0xff] %v1416_v60  ;;  %v1421_v60 = vrot.slane %v9821_v36, 4 }
 0x4b6   : > { %14022 = vst [vmem:[#allocation71_spill] sm:$0xff] %v9924_v23  ;;  %v8049_v23 = vld [vmem:[%s8496_s26 + $0x2a] sm:$0x3] }
 0x4b7   : > { %14023 = vst [vmem:[#allocation72_spill] sm:$0xff] %v9932_v27 }
 0x4b8   : > { %v3820_v45 = vld.sshfl [vmem:[#allocation1 + $0x20] sm:$0xff pattern:$0x73625140] }
 0x4b9   : > { %3825 = vst [vmem:[#allocation1 + $0x20] ss:$4 sm:$0xff] %v1449_v2  ;;  %v9940_v2 = vpop.permute.xlu2 %2965 }
 0x4ba   : > { %3986 = vrot.lane.b32.xlu1 %v3820_v45, %s8440_s30  ;;  %3826 = vst [vmem:[#allocation1 + $0x21] ss:$4 sm:$0xff] %v8064_v38  ;;  %v9938_v45 = vld [vmem:[%s8496_s26 + $0xb2] sm:$0xff]  ;;  %v9942_v38 = vpop.permute.xlu0 %2698 }
 0x4bb   : > { %3827 = vst [vmem:[#allocation1 + $0x22] ss:$4 sm:$0xff] %v9921_v9  ;;  %v1454_v5 = vrot.slane %v9938_v45, 4  ;;  %v1455_v27 = vrot.slane %v9938_v45, 6 }
 0x4bc   : > { %v3769_v44 = vld.sshfl [vmem:[#allocation1] sm:$0xff pattern:$0x73625140]  ;;  %3828 = vst [vmem:[#allocation1 + $0x23] ss:$4 sm:$0xff] %v1450_v30 }
 0x4bd   : > { %3964 = vrot.lane.b32.xlu2 %v3769_v44, %s8440_s30  ;;  %3772 = vst [vmem:[#allocation1 + $0x1] ss:$4 sm:$0xff] %v9821_v36  ;;  %v8067_v44 = vld [vmem:[%s8496_s26 + $0xba] sm:$0x3]  ;;  %v1425_v36 = vrot.slane %v9825_v3, 6 }
 0x4be   : > { %3773 = vst [vmem:[#allocation1 + $0x2] ss:$4 sm:$0xff] %v1420_v39  ;;  %v9952_v39 = vpop.permute.xlu1 %2706  ;;  %v8052_v3 = vld [vmem:[%s8496_s26 + $0x42] sm:$0x3] }
 0x4bf   : > { %3774 = vst [vmem:[#allocation1 + $0x3] ss:$4 sm:$0xff] %v1421_v60 }
 0x4c0   : > { %14024 = vst [vmem:[#allocation73_spill] sm:$0xff] %v9942_v38 }
 0x4c1   : > { %3771 = vst [vmem:[#allocation1] ss:$4 sm:$0xff] %v8049_v23  ;;  %v1426_v23 = vrot.slane %v9843_v21, 2  ;;  %v9956_v38 = vpop.permute.xlu2 %2983 }
 0x4c2   : > { %14025 = vst [vmem:[#allocation74_spill] sm:$0xff] %v9952_v39 }
 0x4c3   : > { %v3830_v30 = vld.sshfl [vmem:[#allocation1 + $0x20] sm:$0xff pattern:$0x73625140]  ;;  %14026 = vst [vmem:[#allocation75_spill] sm:$0xff] %v9956_v38 }
 0x4c4   : > { %3990 = vrot.lane.b32.xlu0 %v3830_v30, %s8440_s30  ;;  %3835 = vst [vmem:[#allocation1 + $0x20] ss:$4 sm:$0xff] %v1454_v5  ;;  %v9961_v30 = vld [vmem:[%s8496_s26 + $0xca] sm:$0xff]  ;;  %v9964_v5 = vpop.permute.xlu0 %2704 }
 0x4c5   : > { %3836 = vst [vmem:[#allocation1 + $0x21] ss:$4 sm:$0xff] %v1455_v27  ;;  %v1459_v27 = vrot.slane %v9961_v30, 2  ;;  %v1461_v41 = vrot.slane %v9961_v30, 6 }
 0x4c6   : > { %3837 = vst [vmem:[#allocation1 + $0x22] ss:$4 sm:$0xff] %v8067_v44  ;;  %v1460_v44 = vrot.slane %v9961_v30, 4 }
 0x4c7   : > { %3838 = vst [vmem:[#allocation1 + $0x23] ss:$4 sm:$0xff] %v9950_v47 }
 0x4c8   : > { %v3779_v60 = vld.sshfl [vmem:[#allocation1] sm:$0xff pattern:$0x73625140]  ;;  %14027 = vst [vmem:[#allocation76_spill] sm:$0xff] %v9964_v5 }
 0x4c9   : > { %3968 = vrot.lane.b32.xlu1 %v3779_v60, %s8440_s30  ;;  %3781 = vst [vmem:[#allocation1] ss:$4 sm:$0xff] %v1425_v36  ;;  %v1430_v60 = vrot.slane %v9847_v0, 4  ;;  %v8070_v36 = vld [vmem:[%s8496_s26 + $0xd2] sm:$0x3] }
 0x4ca   : > { %3783 = vst [vmem:[#allocation1 + $0x2] ss:$4 sm:$0xff] %v9843_v21  ;;  %v9972_v21 = vpop.permute.xlu1 %2712 }
 0x4cb   : > { %3784 = vst [vmem:[#allocation1 + $0x3] ss:$4 sm:$0xff] %v1426_v23  ;;  %v1431_v23 = vrot.slane %v9847_v0, 6 }
 0x4cc   : > { %3782 = vst [vmem:[#allocation1 + $0x1] ss:$4 sm:$0xff] %v8052_v3  ;;  %v9975_v3 = vpop.permute.xlu2 %2977  ;;  %v9979_v50 = vpop.permute.xlu0 %2710 }
 0x4cd   : > { %14028 = vst [vmem:[#allocation77_spill] sm:$0xff] %v9972_v21 }
 0x4ce   : > { %v3840_v25 = vld.sshfl [vmem:[#allocation1 + $0x20] sm:$0xff pattern:$0x73625140]  ;;  %14029 = vst [vmem:[#allocation78_spill] sm:$0xff] %v9975_v3 }
 0x4cf   : > { %3994 = vrot.lane.b32.xlu2 %v3840_v25, %s8440_s30  ;;  %3845 = vst [vmem:[#allocation1 + $0x20] ss:$4 sm:$0xff] %v1459_v27  ;;  %v8072_v25 = vld [vmem:[%s8496_s26 + $0xe2] sm:$0xff]  ;;  %v10905_v3 = vld [vmem:[%s8496_s26 + $0x199] sm:$0xff] }
 0x4d0   : > { %3846 = vst [vmem:[#allocation1 + $0x21] ss:$4 sm:$0xff] %v1460_v44  ;;  %v1465_v27 = vrot.slane %v8072_v25, 2  ;;  %v1466_v21 = vrot.slane %v8072_v25, 4 }
 0x4d1   : > { %3847 = vst [vmem:[#allocation1 + $0x22] ss:$4 sm:$0xff] %v1461_v41  ;;  %v1467_v41 = vrot.slane %v8072_v25, 6 }
 0x4d2   : > { %3848 = vst [vmem:[#allocation1 + $0x23] ss:$4 sm:$0xff] %v8070_v36  ;;  %v9983_v44 = vpop.permute.xlu1 %2975  ;;  %v1435_v36 = vrot.slane %v9877_v57, 2 }
 0x4d3   : > { %v3789_v5 = vld.sshfl [vmem:[#allocation1] sm:$0xff pattern:$0x73625140]  ;;  %14030 = vst [vmem:[#allocation79_spill] sm:$0xff] %v9979_v50  ;;  %v8058_v50 = vld [vmem:[%s8496_s26 + $0x72] sm:$0x3] }
 0x4d4   : > { %3972 = vrot.lane.b32.xlu0 %v3789_v5, %s8440_s30  ;;  %3791 = vst [vmem:[#allocation1] ss:$4 sm:$0xff] %v1430_v60  ;;  %v1436_v5 = vrot.slane %v9877_v57, 4  ;;  %v9988_v60 = vpop.permute.xlu2 %2995 }
 0x4d5   : > { %3792 = vst [vmem:[#allocation1 + $0x1] ss:$4 sm:$0xff] %v1431_v23  ;;  %v9991_v23 = vpop.permute.xlu0 %2967 }
 0x4d6   : > { %3794 = vst [vmem:[#allocation1 + $0x3] ss:$4 sm:$0xff] %v9864_v54 }
 0x4d7   : > { %3793 = vst [vmem:[#allocation1 + $0x2] ss:$4 sm:$0xff] %v8055_v11  ;;  %v1437_v11 = vrot.slane %v9877_v57, 6 }
 0x4d8   : > { %14031 = vst [vmem:[#allocation80_spill] sm:$0xff] %v9983_v44  ;;  %v8211_v44 = vld [vmem:[%s8496_s26 + $0x42] sm:$0x3] }
 0x4d9   : > { %v3850_v0 = vld.sshfl [vmem:[#allocation1 + $0x20] sm:$0xff pattern:$0x73625140]  ;;  %14032 = vst [vmem:[#allocation81_spill] sm:$0xff] %v9988_v60 }
 0x4da   : > { %3998 = vrot.lane.b32.xlu1 %v3850_v0, %s8440_s30  ;;  %3855 = vst [vmem:[#allocation1 + $0x20] ss:$4 sm:$0xff] %v8072_v25  ;;  %v9996_v0 = vld [vmem:[%s8496_s26 + $0xf2] sm:$0xff]  ;;  %v9999_v25 = vld [vmem:[%s8496_s26 + $0xfa] sm:$0xff]  ;;  %v10004_v60 = vpop.permute.xlu1 %2969 }
 0x4db   : > { %3856 = vst [vmem:[#allocation1 + $0x21] ss:$4 sm:$0xff] %v1465_v27  ;;  %v1470_v27 = vrot.slane %v9996_v0, 6  ;;  %v1471_v57 = vrot.slane %v9999_v25, 2 }
 0x4dc   : > { %3857 = vst [vmem:[#allocation1 + $0x22] ss:$4 sm:$0xff] %v1466_v21  ;;  %v8060_v21 = vld [vmem:[%s8496_s26 + $0x82] sm:$0xff] }
 0x4dd   : > { %3858 = vst [vmem:[#allocation1 + $0x23] ss:$4 sm:$0xff] %v1467_v41  ;;  %v1443_v59 = vrot.slane %v8060_v21, 6 }
 0x4de   : > { %v3799_v54 = vld.sshfl [vmem:[#allocation1] sm:$0xff pattern:$0x73625140] }
 0x4df   : > { %3976 = vrot.lane.b32.xlu2 %v3799_v54, %s8440_s30  ;;  %3801 = vst [vmem:[#allocation1] ss:$4 sm:$0xff] %v1435_v36  ;;  %v1472_v54 = vrot.slane %v9999_v25, 4  ;;  %v10008_v36 = vpop.permute.xlu2 %2989 }
 0x4e0   : > { %3802 = vst [vmem:[#allocation1 + $0x1] ss:$4 sm:$0xff] %v1436_v5  ;;  %v1442_v5 = vrot.slane %v8060_v21, 4 }
 0x4e1   : > { %3803 = vst [vmem:[#allocation1 + $0x2] ss:$4 sm:$0xff] %v1437_v11  ;;  %v10011_v11 = vpop.permute.xlu0 %2979 }
 0x4e2   : > { %3804 = vst [vmem:[#allocation1 + $0x3] ss:$4 sm:$0xff] %v8058_v50  ;;  %v1441_v50 = vrot.slane %v8060_v21, 2  ;;  %v10022_v43 = vpop.permute.xlu1 %2987 }
 0x4e3   : > { %14033 = vst [vmem:[#allocation82_spill] sm:$0xff] %v10008_v36  ;;  %v1456_v36 = vrot.slane %v9950_v47, 2 }
 0x4e4   : > { %v3860_v41 = vld.sshfl [vmem:[#allocation1 + $0x20] sm:$0xff pattern:$0x73625140]  ;;  %14034 = vst [vmem:[#allocation83_spill] sm:$0xff] %v10011_v11 }
 0x4e5   : > { %4002 = vrot.lane.b32.xlu0 %v3860_v41, %s8440_s30  ;;  %3865 = vst [vmem:[#allocation1 + $0x20] ss:$4 sm:$0xff] %v1470_v27  ;;  %v10018_v27 = vld [vmem:[%s8496_s26 + $0x112] sm:$0xff]  ;;  %v1475_v41 = vrot.slane %v10015_v53, 4 }
 0x4e6   : > { %3866 = vst [vmem:[#allocation1 + $0x21] ss:$4 sm:$0xff] %v9999_v25 }
 0x4e7   : > { %3867 = vst [vmem:[#allocation1 + $0x22] ss:$4 sm:$0xff] %v1471_v57  ;;  %v1476_v57 = vrot.slane %v10015_v53, 6  ;;  %v10025_v39 = vpop.permute.xlu2 %3007 }
 0x4e8   : > { %3868 = vst [vmem:[#allocation1 + $0x23] ss:$4 sm:$0xff] %v1472_v54  ;;  %v1477_v54 = vrot.slane %v10018_v27, 2 }
 0x4e9   : > { %v3809_v48 = vld.sshfl [vmem:[#allocation1] sm:$0xff pattern:$0x73625140]  ;;  %14035 = vst [vmem:[#allocation84_spill] sm:$0xff] %v10022_v43 }
 0x4ea   : > { %3980 = vrot.lane.b32.xlu1 %v3809_v48, %s8440_s30  ;;  %3811 = vst [vmem:[#allocation1] ss:$4 sm:$0xff] %v8060_v21  ;;  %v1446_v48 = vrot.slane %v9900_v19, 6  ;;  %v1447_v21 = vrot.slane %v9916_v7, 2  ;;  %v10040_v19 = vpop.permute.xlu1 %2981 }
 0x4eb   : > { %3812 = vst [vmem:[#allocation1 + $0x1] ss:$4 sm:$0xff] %v1441_v50  ;;  %v1448_v50 = vrot.slane %v9916_v7, 4 }
 0x4ec   : > { %3813 = vst [vmem:[#allocation1 + $0x2] ss:$4 sm:$0xff] %v1442_v5 }
 0x4ed   : > { %3814 = vst [vmem:[#allocation1 + $0x3] ss:$4 sm:$0xff] %v1443_v59  ;;  %v10029_v59 = vpop.permute.xlu0 %2973 }
 0x4ee   : > { %14036 = vst [vmem:[#allocation85_spill] sm:$0xff] %v10025_v39  ;;  %v10036_v39 = vld [vmem:[%s8496_s26 + $0x122] sm:$0xff] }
 0x4ef   : > { %v3870_v58 = vld.sshfl [vmem:[#allocation1 + $0x20] sm:$0xff pattern:$0x73625140]  ;;  %14037 = vst [vmem:[#allocation86_spill] sm:$0xff] %v10040_v19  ;;  %v10044_v31 = vpop.permute.xlu2 %3001 }
 0x4f0   : > { %4006 = vrot.lane.b32.xlu2 %v3870_v58, %s8440_s30  ;;  %3875 = vst [vmem:[#allocation1 + $0x20] ss:$4 sm:$0xff] %v1475_v41  ;;  %v1480_v58 = vrot.slane %v10036_v39, 2  ;;  %v1481_v41 = vrot.slane %v10036_v39, 4 }
 0x4f1   : > { %3876 = vst [vmem:[#allocation1 + $0x21] ss:$4 sm:$0xff] %v1476_v57  ;;  %v1482_v57 = vrot.slane %v10036_v39, 6 }
 0x4f2   : > { %3877 = vst [vmem:[#allocation1 + $0x22] ss:$4 sm:$0xff] %v10018_v27 }
 0x4f3   : > { %3878 = vst [vmem:[#allocation1 + $0x23] ss:$4 sm:$0xff] %v1477_v54 }
 0x4f4   : > { %v3819_v5 = vld.sshfl [vmem:[#allocation1] sm:$0xff pattern:$0x73625140]  ;;  %14038 = vst [vmem:[#allocation87_spill] sm:$0xff] %v10044_v31 }
 0x4f5   : > { %3984 = vrot.lane.b32.xlu0 %v3819_v5, %s8440_s30  ;;  %3821 = vst [vmem:[#allocation1] ss:$4 sm:$0xff] %v1446_v48  ;;  %v1451_v48 = vrot.slane %v9921_v9, 4  ;;  %v10049_v5 = vld [vmem:[%s8496_s26 + $0x12a] sm:$0xff] }
 0x4f6   : > { %3822 = vst [vmem:[#allocation1 + $0x1] ss:$4 sm:$0xff] %v9916_v7  ;;  %v10051_v7 = vpop.permute.xlu0 %2991 }
 0x4f7   : > { %3823 = vst [vmem:[#allocation1 + $0x2] ss:$4 sm:$0xff] %v1447_v21  ;;  %v1452_v21 = vrot.slane %v9921_v9, 6  ;;  %v1487_v9 = vrot.slane %v8083_v61, 4 }
 0x4f8   : > { %3824 = vst [vmem:[#allocation1 + $0x3] ss:$4 sm:$0xff] %v1448_v50  ;;  %v1453_v50 = vrot.slane %v9938_v45, 2 }
 0x4f9   : > { %14039 = vst [vmem:[#allocation88_spill] sm:$0xff] %v10051_v7  ;;  %v10061_v7 = vpop.permute.xlu2 %3019 }
 0x4fa   : > { %v3880_v54 = vld.sshfl [vmem:[#allocation1 + $0x20] sm:$0xff pattern:$0x73625140]  ;;  %14041 = vst [vmem:[#allocation90_spill] sm:$0xff] %v10061_v7 }
 0x4fb   : > { %4010 = vrot.lane.b32.xlu1 %v3880_v54, %s8440_s30  ;;  %3885 = vst [vmem:[#allocation1 + $0x20] ss:$4 sm:$0xff] %v1480_v58  ;;  %v10059_v54 = vpop.permute.xlu1 %2999  ;;  %v1486_v58 = vrot.slane %v8083_v61, 2  ;;  %v10088_v7 = vld [vmem:[%s8496_s26 + $0x15a] sm:$0xff] }
 0x4fc   : > { %3886 = vst [vmem:[#allocation1 + $0x21] ss:$4 sm:$0xff] %v1481_v41 }
 0x4fd   : > { %3887 = vst [vmem:[#allocation1 + $0x22] ss:$4 sm:$0xff] %v1482_v57  ;;  %v1488_v57 = vrot.slane %v8083_v61, 6 }
 0x4fe   : > { %3888 = vst [vmem:[#allocation1 + $0x23] ss:$4 sm:$0xff] %v10049_v5  ;;  %v10063_v1 = vpop.permute.xlu0 %2985 }
 0x4ff   : > { %v3829_v34 = vld.sshfl [vmem:[#allocation1] sm:$0xff pattern:$0x73625140]  ;;  %14040 = vst [vmem:[#allocation89_spill] sm:$0xff] %v10059_v54 }
 0x500   : > { %3988 = vrot.lane.b32.xlu2 %v3829_v34, %s8440_s30  ;;  %3831 = vst [vmem:[#allocation1] ss:$4 sm:$0xff] %v1451_v48  ;;  %v1457_v34 = vrot.slane %v9950_v47, 4 }
 0x501   : > { %3832 = vst [vmem:[#allocation1 + $0x1] ss:$4 sm:$0xff] %v1452_v21 }
 0x502   : > { %3833 = vst [vmem:[#allocation1 + $0x2] ss:$4 sm:$0xff] %v9938_v45  ;;  %v1458_v45 = vrot.slane %v9950_v47, 6  ;;  %v8071_v47 = vld [vmem:[%s8496_s26 + $0xda] sm:$0xff] }
 0x503   : > { %3834 = vst [vmem:[#allocation1 + $0x3] ss:$4 sm:$0xff] %v1453_v50  ;;  %v10070_v21 = vpop.permute.xlu1 %2993  ;;  %v10073_v50 = vld [vmem:[%s8496_s26 + $0x152] sm:$0xff] }
 0x504   : > { %14042 = vst [vmem:[#allocation91_spill] sm:$0xff] %v10063_v1  ;;  %v1494_v52 = vrot.slane %v10073_v50, 6 }
 0x505   : > { %v3890_v41 = vld.sshfl [vmem:[#allocation1 + $0x20] sm:$0xff pattern:$0x73625140]  ;;  %14043 = vst [vmem:[#allocation92_spill] sm:$0xff] %v10070_v21 }
 0x506   : > { %4014 = vrot.lane.b32.xlu0 %v3890_v41, %s8440_s30  ;;  %3895 = vst [vmem:[#allocation1 + $0x20] ss:$4 sm:$0xff] %v8083_v61  ;;  %v10076_v61 = vpop.permute.xlu2 %3013  ;;  %v8085_v41 = vld [vmem:[%s8496_s26 + $0x14a] sm:$0x3] }
 0x507   : > { %3896 = vst [vmem:[#allocation1 + $0x21] ss:$4 sm:$0xff] %v1486_v58  ;;  %v1492_v58 = vrot.slane %v10073_v50, 2 }
 0x508   : > { %3897 = vst [vmem:[#allocation1 + $0x22] ss:$4 sm:$0xff] %v1487_v9  ;;  %v10081_v9 = vpop.permute.xlu0 %3003 }
 0x509   : > { %3898 = vst [vmem:[#allocation1 + $0x23] ss:$4 sm:$0xff] %v1488_v57 }
 0x50a   : > { %v3839_v48 = vld.sshfl [vmem:[#allocation1] sm:$0xff pattern:$0x73625140]  ;;  %14044 = vst [vmem:[#allocation93_spill] sm:$0xff] %v10076_v61 }
 0x50b   : > { %3992 = vrot.lane.b32.xlu1 %v3839_v48, %s8440_s30  ;;  %3841 = vst [vmem:[#allocation1] ss:$4 sm:$0xff] %v1456_v36  ;;  %v1493_v36 = vrot.slane %v10073_v50, 4  ;;  %v1464_v48 = vrot.slane %v8071_v47, 6  ;;  %v10090_v61 = vpop.permute.xlu1 %3011 }
 0x50c   : > { %3842 = vst [vmem:[#allocation1 + $0x1] ss:$4 sm:$0xff] %v1457_v34  ;;  %v1462_v34 = vrot.slane %v8071_v47, 2 }
 0x50d   : > { %3843 = vst [vmem:[#allocation1 + $0x2] ss:$4 sm:$0xff] %v1458_v45 }
 0x50e   : > { %3844 = vst [vmem:[#allocation1 + $0x3] ss:$4 sm:$0xff] %v9961_v30  ;;  %v1463_v30 = vrot.slane %v8071_v47, 4 }
 0x50f   : > { %14045 = vst [vmem:[#allocation94_spill] sm:$0xff] %v10081_v9  ;;  %v10258_v9 = vld [vmem:[%s8496_s26 + $0x80] sm:$0xff] }
 0x510   : > { %v3900_v57 = vld.sshfl [vmem:[#allocation1 + $0x20] sm:$0xff pattern:$0x73625140]  ;;  %14046 = vst [vmem:[#allocation95_spill] sm:$0xff] %v10090_v61  ;;  %v10098_v54 = vpop.permute.xlu0 %2997  ;;  %v8073_v61 = vld [vmem:[%s8496_s26 + $0xea] sm:$0x3] }
 0x511   : > { %4018 = vrot.lane.b32.xlu2 %v3900_v57, %s8440_s30  ;;  %3905 = vst [vmem:[#allocation1 + $0x20] ss:$4 sm:$0xff] %v8085_v41  ;;  %v10092_v41 = vpop.permute.xlu2 %3031  ;;  %v10095_v57 = vld [vmem:[%s8496_s26 + $0x16a] sm:$0xff] }
 0x512   : > { %3906 = vst [vmem:[#allocation1 + $0x21] ss:$4 sm:$0xff] %v10073_v50  ;;  %v10201_v50 = vld [vmem:[%s8496_s26 + $0x48] sm:$0xff] }
 0x513   : > { %3907 = vst [vmem:[#allocation1 + $0x22] ss:$4 sm:$0xff] %v1492_v58  ;;  %v1497_v58 = vrot.slane %v10088_v7, 6 }
 0x514   : > { %3908 = vst [vmem:[#allocation1 + $0x23] ss:$4 sm:$0xff] %v1493_v36  ;;  %v8088_v36 = vld [vmem:[%s8496_s26 + $0x162] sm:$0x3] }
 0x515   : > { %v3849_v45 = vld.sshfl [vmem:[#allocation1] sm:$0xff pattern:$0x73625140]  ;;  %14047 = vst [vmem:[#allocation96_spill] sm:$0xff] %v10092_v41  ;;  %v10106_v41 = vpop.permute.xlu1 %3005 }
 0x516   : > { %3996 = vrot.lane.b32.xlu0 %v3849_v45, %s8440_s30  ;;  %3851 = vst [vmem:[#allocation1] ss:$4 sm:$0xff] %v8071_v47  ;;  %v1498_v47 = vrot.slane %v10095_v57, 2 }
 0x517   : > { %3852 = vst [vmem:[#allocation1 + $0x1] ss:$4 sm:$0xff] %v1462_v34  ;;  %v1468_v34 = vrot.slane %v9996_v0, 2 }
 0x518   : > { %3853 = vst [vmem:[#allocation1 + $0x2] ss:$4 sm:$0xff] %v1463_v30  ;;  %v1469_v30 = vrot.slane %v9996_v0, 4 }
 0x519   : > { %3854 = vst [vmem:[#allocation1 + $0x3] ss:$4 sm:$0xff] %v1464_v48 }
 0x51a   : > { %14048 = vst [vmem:[#allocation97_spill] sm:$0xff] %v10098_v54  ;;  %v10117_v54 = vpop.permute.xlu0 %3015 }
 0x51b   : > { %v3910_v45 = vld.sshfl [vmem:[#allocation1 + $0x20] sm:$0xff pattern:$0x73625140]  ;;  %14049 = vst [vmem:[#allocation98_spill] sm:$0xff] %v10106_v41 }
 0x51c   : > { %4022 = vrot.lane.b32.xlu1 %v3910_v45, %s8440_s30  ;;  %3915 = vst [vmem:[#allocation1 + $0x20] ss:$4 sm:$0xff] %v1497_v58  ;;  %v10112_v45 = vld [vmem:[%s8496_s26 + $0x172] sm:$0xff]  ;;  %v10114_v58 = vpop.permute.xlu2 %3025  ;;  %v10124_v41 = vld [vmem:[%s8496_s26 + $0x182] sm:$0xff] }
 0x51d   : > { %3916 = vst [vmem:[#allocation1 + $0x21] ss:$4 sm:$0xff] %v8088_v36  ;;  %v1502_v36 = vrot.slane %v10112_v45, 4 }
 0x51e   : > { %3917 = vst [vmem:[#allocation1 + $0x22] ss:$4 sm:$0xff] %v10095_v57 }
 0x51f   : > { %3918 = vst [vmem:[#allocation1 + $0x23] ss:$4 sm:$0xff] %v1498_v47  ;;  %v1503_v47 = vrot.slane %v10112_v45, 6 }
 0x520   : > { %v3859_v48 = vld.sshfl [vmem:[#allocation1] sm:$0xff pattern:$0x73625140]  ;;  %14050 = vst [vmem:[#allocation99_spill] sm:$0xff] %v10114_v58 }
 0x521   : > { %4000 = vrot.lane.b32.xlu2 %v3859_v48, %s8440_s30  ;;  %3862 = vst [vmem:[#allocation1 + $0x1] ss:$4 sm:$0xff] %v9996_v0  ;;  %v8091_v48 = vld [vmem:[%s8496_s26 + $0x17a] sm:$0x3]  ;;  %v1473_v0 = vrot.slane %v9999_v25, 6  ;;  %v10133_v25 = vld [vmem:[%s8496_s26 + $0x18a] sm:$0xff] }
 0x522   : > { %3863 = vst [vmem:[#allocation1 + $0x2] ss:$4 sm:$0xff] %v1468_v34  ;;  %v10127_v34 = vpop.permute.xlu1 %3023  ;;  %v8076_v58 = vld [vmem:[%s8496_s26 + $0x102] sm:$0x3] }
 0x523   : > { %3864 = vst [vmem:[#allocation1 + $0x3] ss:$4 sm:$0xff] %v1469_v30 }
 0x524   : > { %3861 = vst [vmem:[#allocation1] ss:$4 sm:$0xff] %v8073_v61  ;;  %v1474_v61 = vrot.slane %v10015_v53, 2 }
 0x525   : > { %14051 = vst [vmem:[#allocation100_spill] sm:$0xff] %v10117_v54 }
 0x526   : > { %v3920_v21 = vld.sshfl [vmem:[#allocation1 + $0x20] sm:$0xff pattern:$0x73625140]  ;;  %14052 = vst [vmem:[#allocation101_spill] sm:$0xff] %v10127_v34  ;;  %v1509_v34 = vrot.slane %v10133_v25, 6 }
 0x527   : > { %4026 = vrot.lane.b32.xlu0 %v3920_v21, %s8440_s30  ;;  %3925 = vst [vmem:[#allocation1 + $0x20] ss:$4 sm:$0xff] %v1502_v36  ;;  %v10135_v21 = vpop.permute.xlu2 %3043  ;;  %v10138_v36 = vpop.permute.xlu0 %3009 }
 0x528   : > { %3926 = vst [vmem:[#allocation1 + $0x21] ss:$4 sm:$0xff] %v1503_v47  ;;  %v1507_v47 = vrot.slane %v10133_v25, 2 }
 0x529   : > { %3927 = vst [vmem:[#allocation1 + $0x22] ss:$4 sm:$0xff] %v8091_v48  ;;  %v1508_v48 = vrot.slane %v10133_v25, 4 }
 0x52a   : > { %3928 = vst [vmem:[#allocation1 + $0x23] ss:$4 sm:$0xff] %v10124_v41 }
 0x52b   : > { %v3869_v30 = vld.sshfl [vmem:[#allocation1] sm:$0xff pattern:$0x73625140]  ;;  %14053 = vst [vmem:[#allocation102_spill] sm:$0xff] %v10135_v21  ;;  %v8094_v21 = vld [vmem:[%s8496_s26 + $0x192] sm:$0x3] }
 0x52c   : > { %4004 = vrot.lane.b32.xlu1 %v3869_v30, %s8440_s30  ;;  %3871 = vst [vmem:[#allocation1] ss:$4 sm:$0xff] %v1473_v0  ;;  %v1478_v0 = vrot.slane %v10018_v27, 4 }
 0x52d   : > { %3873 = vst [vmem:[#allocation1 + $0x2] ss:$4 sm:$0xff] %v10015_v53  ;;  %v1479_v53 = vrot.slane %v10018_v27, 6  ;;  %v1513_v27 = vrot.slane %v8096_v40, 2 }
 0x52e   : > { %3874 = vst [vmem:[#allocation1 + $0x3] ss:$4 sm:$0xff] %v1474_v61  ;;  %v10147_v61 = vpop.permute.xlu1 %3017 }
 0x52f   : > { %14054 = vst [vmem:[#allocation103_spill] sm:$0xff] %v10138_v36  ;;  %v10149_v54 = vpop.permute.xlu2 %3037  ;;  %v8079_v36 = vld [vmem:[%s8496_s26 + $0x11a] sm:$0x3]  ;;  %v10154_v26 = vpop.permute.xlu0 %3027 }
 0x530   : > { %3872 = vst [vmem:[#allocation1 + $0x1] ss:$4 sm:$0xff] %v8076_v58 }
 0x531   : > { %v3930_v30 = vld.sshfl [vmem:[#allocation1 + $0x20] sm:$0xff pattern:$0x73625140]  ;;  %14055 = vst [vmem:[#allocation104_spill] sm:$0xff] %v10147_v61 }
 0x532   : > { %4030 = vrot.lane.b32.xlu2 %v3930_v30, %s8440_s30  ;;  %3935 = vst [vmem:[#allocation1 + $0x20] ss:$4 sm:$0xff] %v1507_v47  ;;  %v1514_v47 = vrot.slane %v8096_v40, 4 }
 0x533   : > { %3936 = vst [vmem:[#allocation1 + $0x21] ss:$4 sm:$0xff] %v1508_v48 }
 0x534   : > { %3937 = vst [vmem:[#allocation1 + $0x22] ss:$4 sm:$0xff] %v1509_v34  ;;  %v1515_v34 = vrot.slane %v8096_v40, 6 }
 0x535   : > { %3938 = vst [vmem:[#allocation1 + $0x23] ss:$4 sm:$0xff] %v8094_v21  ;;  %v1483_v21 = vrot.slane %v10049_v5, 2 }
 0x536   : > { %14056 = vst [vmem:[#allocation105_spill] sm:$0xff] %v10149_v54  ;;  %v10159_v30 = vpop.permute.xlu1 %3035  ;;  %v10173_v54 = vld [vmem:[%s8496_s26 + $0x1ba] sm:$0xff] }
 0x537   : > { %v3879_v58 = vld.sshfl [vmem:[#allocation1] sm:$0xff pattern:$0x73625140]  ;;  %14057 = vst [vmem:[#allocation106_spill] sm:$0xff] %v10154_v26 }
 0x538   : > { %4008 = vrot.lane.b32.xlu0 %v3879_v58, %s8440_s30  ;;  %3881 = vst [vmem:[#allocation1] ss:$4 sm:$0xff] %v1478_v0  ;;  %v1484_v0 = vrot.slane %v10049_v5, 4  ;;  %v8082_v58 = vld [vmem:[%s8496_s26 + $0x132] sm:$0x3] }
 0x539   : > { %3882 = vst [vmem:[#allocation1 + $0x1] ss:$4 sm:$0xff] %v1479_v53 }
 0x53a   : > { %3884 = vst [vmem:[#allocation1 + $0x3] ss:$4 sm:$0xff] %v10036_v39  ;;  %v1485_v39 = vrot.slane %v10049_v5, 6 }
 0x53b   : > { %3883 = vst [vmem:[#allocation1 + $0x2] ss:$4 sm:$0xff] %v8079_v36  ;;  %v10163_v36 = vpop.permute.xlu2 %3300 }
 0x53c   : > { %v3940_v48 = vld.sshfl [vmem:[#allocation1 + $0x20] sm:$0xff pattern:$0x73625140]  ;;  %14058 = vst [vmem:[#allocation107_spill] sm:$0xff] %v10159_v30 }
 0x53d   : > { %4034 = vrot.lane.b32.xlu1 %v3940_v48, %s8440_s30  ;;  %3945 = vst [vmem:[#allocation1 + $0x20] ss:$4 sm:$0xff] %v8096_v40  ;;  %v10168_v48 = vld [vmem:[%s8496_s26 + $0x1b2] sm:$0xff]  ;;  %v10170_v40 = vpop.permute.xlu0 %3021 }
 0x53e   : > { %3946 = vst [vmem:[#allocation1 + $0x21] ss:$4 sm:$0xff] %v1513_v27  ;;  %v1518_v5 = vrot.slane %v10168_v48, 6  ;;  %v1519_v27 = vrot.slane %v10173_v54, 2 }
 0x53f   : > { %3947 = vst [vmem:[#allocation1 + $0x22] ss:$4 sm:$0xff] %v1514_v47  ;;  %v8084_v47 = vld [vmem:[%s8496_s26 + $0x142] sm:$0xff] }
 0x540   : > { %3948 = vst [vmem:[#allocation1 + $0x23] ss:$4 sm:$0xff] %v1515_v34  ;;  %v1520_v34 = vrot.slane %v10173_v54, 4  ;;  %v1491_v26 = vrot.slane %v8084_v47, 6 }
 0x541   : > { %14059 = vst [vmem:[#allocation108_spill] sm:$0xff] %v10170_v40 }
 0x542   : > { %v3889_v53 = vld.sshfl [vmem:[#allocation1] sm:$0xff pattern:$0x73625140] }
 0x543   : > { %4012 = vrot.lane.b32.xlu2 %v3889_v53, %s8440_s30  ;;  %3891 = vst [vmem:[#allocation1] ss:$4 sm:$0xff] %v1483_v21  ;;  %v10179_v21 = vpop.permute.xlu1 %3029  ;;  %v1490_v53 = vrot.slane %v8084_v47, 4 }
 0x544   : > { %3892 = vst [vmem:[#allocation1 + $0x1] ss:$4 sm:$0xff] %v1484_v0  ;;  %v1489_v0 = vrot.slane %v8084_v47, 2 }
 0x545   : > { %3893 = vst [vmem:[#allocation1 + $0x2] ss:$4 sm:$0xff] %v1485_v39  ;;  %v10183_v39 = vpop.permute.xlu2 %3312  ;;  %v10185_v40 = vpop.permute.xlu0 %3039 }
 0x546   : > { %3894 = vst [vmem:[#allocation1 + $0x3] ss:$4 sm:$0xff] %v8082_v58 }
 0x547   : > { %v3950_v30 = vld.sshfl [vmem:[#allocation1 + $0x20] sm:$0xff pattern:$0x73625140]  ;;  %14060 = vst [vmem:[#allocation109_spill] sm:$0xff] %v10179_v21  ;;  %v8102_v21 = vld [vmem:[%s8496_s26 + $0x38] sm:$0xff] }
 0x548   : > { %4038 = vrot.lane.b32.xlu0 %v3950_v30, %s8440_s30  ;;  %3955 = vst [vmem:[#allocation1 + $0x20] ss:$4 sm:$0xff] %v1518_v5  ;;  %v1634_v30 = vrot.slane %v8102_v21, 2  ;;  %v1635_v5 = vrot.slane %v8102_v21, 4 }
 0x549   : > { %3956 = vst [vmem:[#allocation1 + $0x21] ss:$4 sm:$0xff] %v10173_v54 }
 0x54a   : > { %14061 = vst [vmem:[#allocation110_spill] sm:$0xff] %v10183_v39 }
 0x54b   : > { %3957 = vst [vmem:[#allocation1 + $0x22] ss:$4 sm:$0xff] %v1519_v27  ;;  %v10189_v61 = vpop.permute.xlu1 %3041  ;;  %v1636_v27 = vrot.slane %v8102_v21, 6 }
 0x54c   : > { %3958 = vst [vmem:[#allocation1 + $0x23] ss:$4 sm:$0xff] %v1520_v34 }
 0x54d   : > { %v3899_v58 = vld.sshfl [vmem:[#allocation1] sm:$0xff pattern:$0x73625140]  ;;  %14062 = vst [vmem:[#allocation111_spill] sm:$0xff] %v10185_v40  ;;  %v10193_v34 = vpop.permute.xlu2 %3306 }
 0x54e   : > { %4016 = vrot.lane.b32.xlu1 %v3899_v58, %s8440_s30  ;;  %3901 = vst [vmem:[#allocation1] ss:$4 sm:$0xff] %v8084_v47  ;;  %v1495_v47 = vrot.slane %v10088_v7, 2 }
 0x54f   : > { %3902 = vst [vmem:[#allocation1 + $0x1] ss:$4 sm:$0xff] %v1489_v0  ;;  %v1496_v0 = vrot.slane %v10088_v7, 4 }
 0x550   : > { %3903 = vst [vmem:[#allocation1 + $0x2] ss:$4 sm:$0xff] %v1490_v53 }
 0x551   : > { %3904 = vst [vmem:[#allocation1 + $0x3] ss:$4 sm:$0xff] %v1491_v26  ;;  %v10196_v26 = vpop.permute.xlu0 %3033 }
 0x552   : > { %14063 = vst [vmem:[#allocation112_spill] sm:$0xff] %v10189_v61  ;;  %v10222_v61 = vld [vmem:[%s8496_s26 + $0x60] sm:$0xff] }
 0x553   : > { %v3960_v43 = vld.sshfl [vmem:[#allocation1 + $0x20] sm:$0xff pattern:$0x73625140]  ;;  %14064 = vst [vmem:[#allocation113_spill] sm:$0xff] %v10196_v26  ;;  %v10208_v58 = vpop.permute.xlu1 %3304 }
 0x554   : > { %4042 = vrot.lane.b32.xlu2 %v3960_v43, %s8440_s30  ;;  %4095 = vst [vmem:[#allocation1 + $0x20] ss:$4 sm:$0xff] %v8102_v21  ;;  %v10205_v43 = vld [vmem:[%s8496_s26 + $0x50] sm:$0xff]  ;;  %v1639_v21 = vrot.slane %v10201_v50, 6 }
 0x555   : > { %4097 = vst [vmem:[#allocation1 + $0x21] ss:$4 sm:$0xff] %v1634_v30  ;;  %v1640_v30 = vrot.slane %v10205_v43, 2 }
 0x556   : > { %4099 = vst [vmem:[#allocation1 + $0x22] ss:$4 sm:$0xff] %v1635_v5 }
 0x557   : > { %4101 = vst [vmem:[#allocation1 + $0x23] ss:$4 sm:$0xff] %v1636_v27  ;;  %v1641_v27 = vrot.slane %v10205_v43, 4 }
 0x558   : > { %v3909_v53 = vld.sshfl [vmem:[#allocation1] sm:$0xff pattern:$0x73625140] }
 0x559   : > { %4020 = vrot.lane.b32.xlu0 %v3909_v53, %s8440_s30  ;;  %3911 = vst [vmem:[#allocation1] ss:$4 sm:$0xff] %v1494_v52  ;;  %v10212_v53 = vpop.permute.xlu2 %3324  ;;  %v1499_v52 = vrot.slane %v10095_v57, 4 }
 0x55a   : > { %3912 = vst [vmem:[#allocation1 + $0x1] ss:$4 sm:$0xff] %v10088_v7  ;;  %v1500_v7 = vrot.slane %v10095_v57, 6  ;;  %v1644_v57 = vrot.slane %v10222_v61, 4 }
 0x55b   : > { %3913 = vst [vmem:[#allocation1 + $0x2] ss:$4 sm:$0xff] %v1495_v47  ;;  %v10217_v47 = vpop.permute.xlu0 %3045  ;;  %v10229_v40 = vpop.permute.xlu1 %3298 }
 0x55c   : > { %3914 = vst [vmem:[#allocation1 + $0x3] ss:$4 sm:$0xff] %v1496_v0  ;;  %v1501_v0 = vrot.slane %v10112_v45, 2 }
 0x55d   : > { %14065 = vst [vmem:[#allocation114_spill] sm:$0xff] %v10212_v53 }
 0x55e   : > { %v4103_v5 = vld.sshfl [vmem:[#allocation1 + $0x20] sm:$0xff pattern:$0x73625140]  ;;  %14066 = vst [vmem:[#allocation115_spill] sm:$0xff] %v10217_v47 }
 0x55f   : > { %4108 = vst [vmem:[#allocation1 + $0x20] ss:$4 sm:$0xff] %v1639_v21  ;;  %v10226_v21 = vld [vmem:[%s8496_s26 + $0x68] sm:$0xff] }
 0x560   : > { %4109 = vst [vmem:[#allocation1 + $0x21] ss:$4 sm:$0xff] %v10205_v43 }
 0x561   : > { %4110 = vst [vmem:[#allocation1 + $0x22] ss:$4 sm:$0xff] %v1640_v30  ;;  %v1645_v30 = vrot.slane %v10222_v61, 6  ;;  %v10232_v47 = vpop.permute.xlu2 %3318 }
 0x562   : > { %4111 = vst [vmem:[#allocation1 + $0x23] ss:$4 sm:$0xff] %v1641_v27 }
 0x563   : > { %v3919_v26 = vld.sshfl [vmem:[#allocation1] sm:$0xff pattern:$0x73625140]  ;;  %14067 = vst [vmem:[#allocation116_spill] sm:$0xff] %v10232_v47 }
 0x564   : > { %4024 = vrot.lane.b32.xlu2 %v3919_v26, %s8440_s30  ;;  %3921 = vst [vmem:[#allocation1] ss:$4 sm:$0xff] %v1499_v52  ;;  %v1646_v26 = vrot.slane %v10226_v21, 2  ;;  %v1504_v52 = vrot.slane %v10124_v41, 2  ;;  %v8095_v47 = vld [vmem:[%s8496_s26 + $0x19a] sm:$0xff] }
 0x565   : > { %3922 = vst [vmem:[#allocation1 + $0x1] ss:$4 sm:$0xff] %v1500_v7  ;;  %v10236_v7 = vpop.permute.xlu0 %3308  ;;  %v1512_v1 = vrot.slane %v8095_v47, 6 }
 0x566   : > { %3923 = vst [vmem:[#allocation1 + $0x2] ss:$4 sm:$0xff] %v10112_v45  ;;  %v1505_v45 = vrot.slane %v10124_v41, 4 }
 0x567   : > { %3924 = vst [vmem:[#allocation1 + $0x3] ss:$4 sm:$0xff] %v1501_v0  ;;  %v1506_v0 = vrot.slane %v10124_v41, 6  ;;  %v1650_v41 = vrot.slane %v10244_v6, 4 }
 0x568   : > { %14068 = vst [vmem:[#allocation117_spill] sm:$0xff] %v10236_v7 }
 0x569   : > { %v4113_v27 = vld.sshfl [vmem:[#allocation1 + $0x20] sm:$0xff pattern:$0x73625140] }
 0x56a   : > { %4118 = vst [vmem:[#allocation1 + $0x20] ss:$4 sm:$0xff] %v1644_v57  ;;  %v10246_v57 = vpop.permute.xlu1 %3316 }
 0x56b   : > { %4119 = vst [vmem:[#allocation1 + $0x21] ss:$4 sm:$0xff] %v1645_v30  ;;  %v10251_v30 = vpop.permute.xlu2 %3336 }
 0x56c   : > { %4299 = vrot.lane.b32.xlu2 %v4103_v5, %s8436_s22  ;;  %4120 = vst [vmem:[#allocation1 + $0x22] ss:$4 sm:$0xff] %v10226_v21  ;;  %v1649_v5 = vrot.slane %v10244_v6, 2 }
 0x56d   : > { %4121 = vst [vmem:[#allocation1 + $0x23] ss:$4 sm:$0xff] %v1646_v26  ;;  %v1651_v26 = vrot.slane %v10244_v6, 6 }
 0x56e   : > { %v3929_v53 = vld.sshfl [vmem:[#allocation1] sm:$0xff pattern:$0x73625140]  ;;  %14069 = vst [vmem:[#allocation118_spill] sm:$0xff] %v10246_v57 }
 0x56f   : > { %4028 = vrot.lane.b32.xlu1 %v3929_v53, %s8440_s30  ;;  %3931 = vst [vmem:[#allocation1] ss:$4 sm:$0xff] %v1504_v52  ;;  %v10255_v52 = vpop.permute.xlu0 %3302 }
 0x570   : > { %3932 = vst [vmem:[#allocation1 + $0x1] ss:$4 sm:$0xff] %v1505_v45  ;;  %v1510_v45 = vrot.slane %v8095_v47, 2 }
 0x571   : > { %3933 = vst [vmem:[#allocation1 + $0x2] ss:$4 sm:$0xff] %v1506_v0 }
 0x572   : > { %3934 = vst [vmem:[#allocation1 + $0x3] ss:$4 sm:$0xff] %v10133_v25  ;;  %v1511_v25 = vrot.slane %v8095_v47, 4  ;;  %v10264_v35 = vpop.permute.xlu1 %3310 }
 0x573   : > { %14070 = vst [vmem:[#allocation119_spill] sm:$0xff] %v10251_v30  ;;  %v8113_v30 = vld [vmem:[%s8496_s26 + $0x90] sm:$0xff] }
 0x574   : > { %v4123_v53 = vld.sshfl [vmem:[#allocation1 + $0x20] sm:$0xff pattern:$0x73625140]  ;;  %14071 = vst [vmem:[#allocation120_spill] sm:$0xff] %v10264_v35  ;;  %v1657_v28 = vrot.slane %v8113_v30, 6 }
 0x575   : > { %4128 = vst [vmem:[#allocation1 + $0x20] ss:$4 sm:$0xff] %v1649_v5  ;;  %v10266_v5 = vpop.permute.xlu2 %3330 }
 0x576   : > { %4129 = vst [vmem:[#allocation1 + $0x21] ss:$4 sm:$0xff] %v1650_v41  ;;  %v1656_v41 = vrot.slane %v8113_v30, 4 }
 0x577   : > { %4303 = vrot.lane.b32.xlu1 %v4113_v27, %s8436_s22  ;;  %4130 = vst [vmem:[#allocation1 + $0x22] ss:$4 sm:$0xff] %v1651_v26  ;;  %v1655_v27 = vrot.slane %v8113_v30, 2  ;;  %v10268_v10 = vpop.permute.xlu0 %3320 }
 0x578   : > { %4131 = vst [vmem:[#allocation1 + $0x23] ss:$4 sm:$0xff] %v10258_v9 }
 0x579   : > { %v3939_v0 = vld.sshfl [vmem:[#allocation1] sm:$0xff pattern:$0x73625140]  ;;  %14072 = vst [vmem:[#allocation121_spill] sm:$0xff] %v10266_v5 }
 0x57a   : > { %4032 = vrot.lane.b32.xlu0 %v3939_v0, %s8440_s30  ;;  %3941 = vst [vmem:[#allocation1] ss:$4 sm:$0xff] %v8095_v47  ;;  %v1516_v0 = vrot.slane %v10168_v48, 2  ;;  %v1517_v47 = vrot.slane %v10168_v48, 4 }
 0x57b   : > { %3942 = vst [vmem:[#allocation1 + $0x1] ss:$4 sm:$0xff] %v1510_v45  ;;  %v8097_v45 = vld [vmem:[%s8496_s26 + $0x1aa] sm:$0x3] }
 0x57c   : > { %3943 = vst [vmem:[#allocation1 + $0x2] ss:$4 sm:$0xff] %v1511_v25  ;;  %v10276_v25 = vpop.permute.xlu1 %3328 }
 0x57d   : > { %3944 = vst [vmem:[#allocation1 + $0x3] ss:$4 sm:$0xff] %v1512_v1  ;;  %v10281_v5 = vpop.permute.xlu2 %3348 }
 0x57e   : > { %14073 = vst [vmem:[#allocation122_spill] sm:$0xff] %v10268_v10  ;;  %v8118_v10 = vld [vmem:[%s8496_s26 + $0xb8] sm:$0x3] }
 0x57f   : > { %v4133_v26 = vld.sshfl [vmem:[#allocation1 + $0x20] sm:$0xff pattern:$0x73625140]  ;;  %14074 = vst [vmem:[#allocation123_spill] sm:$0xff] %v10276_v25 }
 0x580   : > { %4138 = vst [vmem:[#allocation1 + $0x20] ss:$4 sm:$0xff] %v8113_v30  ;;  %v10279_v30 = vld [vmem:[%s8496_s26 + $0xa8] sm:$0xff] }
 0x581   : > { %4139 = vst [vmem:[#allocation1 + $0x21] ss:$4 sm:$0xff] %v1655_v27  ;;  %v10284_v27 = vpop.permute.xlu0 %3314 }
 0x582   : > { %4307 = vrot.lane.b32.xlu0 %v4123_v53, %s8436_s22  ;;  %4140 = vst [vmem:[#allocation1 + $0x22] ss:$4 sm:$0xff] %v1656_v41  ;;  %v8115_v53 = vld [vmem:[%s8496_s26 + $0xa0] sm:$0x3] }
 0x583   : > { %4141 = vst [vmem:[#allocation1 + $0x23] ss:$4 sm:$0xff] %v1657_v28  ;;  %v1661_v28 = vrot.slane %v10279_v30, 2 }
 0x584   : > { %v3949_v1 = vld.sshfl [vmem:[#allocation1] sm:$0xff pattern:$0x73625140]  ;;  %14075 = vst [vmem:[#allocation124_spill] sm:$0xff] %v10281_v5  ;;  %v10296_v5 = vld [vmem:[%s8496_s26 + $0xb0] sm:$0xff] }
 0x585   : > { %4036 = vrot.lane.b32.xlu2 %v3949_v1, %s8440_s30  ;;  %3952 = vst [vmem:[#allocation1 + $0x1] ss:$4 sm:$0xff] %v10168_v48  ;;  %v1662_v48 = vrot.slane %v10279_v30, 4  ;;  %v1521_v1 = vrot.slane %v10173_v54, 6  ;;  %v10298_v54 = vpop.permute.xlu2 %3342 }
 0x586   : > { %3953 = vst [vmem:[#allocation1 + $0x2] ss:$4 sm:$0xff] %v1516_v0  ;;  %v8100_v0 = vld [vmem:[%s8496_s26 + $0x1c2] sm:$0x3] }
 0x587   : > { %3954 = vst [vmem:[#allocation1 + $0x3] ss:$4 sm:$0xff] %v1517_v47 }
 0x588   : > { %3951 = vst [vmem:[#allocation1] ss:$4 sm:$0xff] %v8097_v45  ;;  %v10292_v45 = vpop.permute.xlu1 %3322 }
 0x589   : > { %14076 = vst [vmem:[#allocation125_spill] sm:$0xff] %v10284_v27  ;;  %v10304_v25 = vpop.permute.xlu0 %3332  ;;  %v10504_v27 = vld [vmem:[%s8496_s26 + $0x198] sm:$0xff] }
 0x58a   : > { %v4143_v41 = vld.sshfl [vmem:[#allocation1 + $0x20] sm:$0xff pattern:$0x73625140]  ;;  %14077 = vst [vmem:[#allocation126_spill] sm:$0xff] %v10292_v45 }
 0x58b   : > { %4148 = vst [vmem:[#allocation1 + $0x20] ss:$4 sm:$0xff] %v8115_v53  ;;  %v10301_v53 = vld [vmem:[%s8496_s26 + $0xc0] sm:$0xff] }
 0x58c   : > { %4149 = vst [vmem:[#allocation1 + $0x21] ss:$4 sm:$0xff] %v10279_v30  ;;  %v1668_v55 = vrot.slane %v10301_v53, 4 }
 0x58d   : > { %4311 = vrot.lane.b32.xlu2 %v4133_v26, %s8436_s22  ;;  %4150 = vst [vmem:[#allocation1 + $0x22] ss:$4 sm:$0xff] %v1661_v28  ;;  %v1666_v26 = vrot.slane %v10296_v5, 6  ;;  %v8101_v28 = vld [vmem:[%s8496_s26 + $0x30] sm:$0xff] }
 0x58e   : > { %4151 = vst [vmem:[#allocation1 + $0x23] ss:$4 sm:$0xff] %v1662_v48  ;;  %v1667_v48 = vrot.slane %v10301_v53, 2 }
 0x58f   : > { %v3959_v47 = vld.sshfl [vmem:[#allocation1] sm:$0xff pattern:$0x73625140]  ;;  %14078 = vst [vmem:[#allocation127_spill] sm:$0xff] %v10298_v54 }
 0x590   : > { %4040 = vrot.lane.b32.xlu1 %v3959_v47, %s8440_s30  ;;  %3961 = vst [vmem:[#allocation1] ss:$4 sm:$0xff] %v1521_v1  ;;  %v1632_v47 = vrot.slane %v8101_v28, 4  ;;  %v10312_v54 = vpop.permute.xlu1 %3340 }
 0x591   : > { %3962 = vst [vmem:[#allocation1 + $0x1] ss:$4 sm:$0xff] %v8100_v0  ;;  %v1631_v0 = vrot.slane %v8101_v28, 2 }
 0x592   : > { %14079 = vst [vmem:[#allocation128_spill] sm:$0xff] %v10304_v25  ;;  %v1633_v25 = vrot.slane %v8101_v28, 6 }
 0x593   : > { %14080 = vst [vmem:[#allocation129_spill] sm:$0xff] %v10312_v54 }
 0x595   : > { %v4153_v45 = vld.sshfl [vmem:[#allocation1 + $0x20] sm:$0xff pattern:$0x73625140] }
 0x596   : > { %4158 = vst [vmem:[#allocation1 + $0x20] ss:$4 sm:$0xff] %v1666_v26  ;;  %v10317_v26 = vpop.permute.xlu2 %3360 }
 0x597   : > { %4159 = vst [vmem:[#allocation1 + $0x21] ss:$4 sm:$0xff] %v8118_v10  ;;  %v10319_v10 = vpop.permute.xlu0 %3326 }
 0x598   : > { %4315 = vrot.lane.b32.xlu1 %v4143_v41, %s8436_s22  ;;  %v3963_v1 = vld.sshfl [vmem:[#allocation1] sm:$0xff pattern:$0x73625140]  ;;  %4160 = vst [vmem:[#allocation1 + $0x22] ss:$4 sm:$0xff] %v10301_v53  ;;  %v1671_v41 = vrot.slane %v10315_v20, 4 }
 0x599   : > { %4044 = vrot.lane.b32.xlu0 %v3963_v1, %s8440_s30  ;;  %4161 = vst [vmem:[#allocation1 + $0x23] ss:$4 sm:$0xff] %v1667_v48  ;;  %v1672_v1 = vrot.slane %v10315_v20, 6  ;;  %v8121_v48 = vld [vmem:[%s8496_s26 + $0xd0] sm:$0x3] }
 0x59a   : > { %4087 = vst [vmem:[#allocation1] ss:$4 sm:$0xff] %v8101_v28  ;;  %v10327_v28 = vld [vmem:[%s8496_s26 + $0xd8] sm:$0xff] }
 0x59b   : > { %14081 = vst [vmem:[#allocation130_spill] sm:$0xff] %v10317_v26 }
 0x59c   : > { %4089 = vst [vmem:[#allocation1 + $0x1] ss:$4 sm:$0xff] %v1631_v0  ;;  %v1637_v0 = vrot.slane %v10201_v50, 2 }
 0x59d   : > { %4091 = vst [vmem:[#allocation1 + $0x2] ss:$4 sm:$0xff] %v1632_v47  ;;  %v10330_v47 = vpop.permute.xlu1 %3334 }
 0x59e   : > { %14082 = vst [vmem:[#allocation131_spill] sm:$0xff] %v10319_v10 }
 0x59f   : > { %4093 = vst [vmem:[#allocation1 + $0x3] ss:$4 sm:$0xff] %v1633_v25  ;;  %v1638_v25 = vrot.slane %v10201_v50, 4 }
 0x5a0   : > { %v4163_v57 = vld.sshfl [vmem:[#allocation1 + $0x20] sm:$0xff pattern:$0x73625140]  ;;  %14083 = vst [vmem:[#allocation132_spill] sm:$0xff] %v10330_v47 }
 0x5a1   : > { %4319 = vrot.lane.b32.xlu0 %v4153_v45, %s8436_s22  ;;  %4323 = vrot.lane.b32.xlu2 %v4163_v57, %s8436_s22  ;;  %4168 = vst [vmem:[#allocation1 + $0x20] ss:$4 sm:$0xff] %v1671_v41  ;;  %v10334_v45 = vpop.permute.xlu2 %3354  ;;  %v8103_v57 = vld [vmem:[%s8496_s26 + $0x40] sm:$0x3] }
 0x5a2   : > { %4169 = vst [vmem:[#allocation1 + $0x21] ss:$4 sm:$0xff] %v1672_v1  ;;  %v10340_v41 = vld [vmem:[%s8496_s26 + $0xe0] sm:$0xff]  ;;  %v10342_v1 = vpop.permute.xlu0 %3344 }
 0x5a3   : > { %4170 = vst [vmem:[#allocation1 + $0x22] ss:$4 sm:$0xff] %v8121_v48  ;;  %v1676_v48 = vrot.slane %v10340_v41, 2  ;;  %v1677_v54 = vrot.slane %v10340_v41, 4  ;;  %v1678_v10 = vrot.slane %v10340_v41, 6 }
 0x5a4   : > { %4171 = vst [vmem:[#allocation1 + $0x23] ss:$4 sm:$0xff] %v10327_v28 }
 0x5a5   : > { %14084 = vst [vmem:[#allocation133_spill] sm:$0xff] %v10334_v45  ;;  %v10349_v47 = vpop.permute.xlu1 %3352 }
 0x5a6   : > { %v4102_v26 = vld.sshfl [vmem:[#allocation1] sm:$0xff pattern:$0x73625140]  ;;  %14085 = vst [vmem:[#allocation134_spill] sm:$0xff] %v10342_v1  ;;  %v8106_v1 = vld [vmem:[%s8496_s26 + $0x58] sm:$0x3] }
 0x5a7   : > { %4297 = vrot.lane.b32.xlu1 %v4102_v26, %s8436_s22  ;;  %4105 = vst [vmem:[#allocation1 + $0x1] ss:$4 sm:$0xff] %v10201_v50  ;;  %v1642_v26 = vrot.slane %v10205_v43, 6  ;;  %v8124_v50 = vld [vmem:[%s8496_s26 + $0xe8] sm:$0x3] }
 0x5a8   : > { %4106 = vst [vmem:[#allocation1 + $0x2] ss:$4 sm:$0xff] %v1637_v0  ;;  %v1643_v0 = vrot.slane %v10222_v61, 2 }
 0x5a9   : > { %4107 = vst [vmem:[#allocation1 + $0x3] ss:$4 sm:$0xff] %v1638_v25  ;;  %v10353_v25 = vpop.permute.xlu2 %3372 }
 0x5aa   : > { %4104 = vst [vmem:[#allocation1] ss:$4 sm:$0xff] %v8103_v57  ;;  %v10357_v43 = vpop.permute.xlu0 %3338 }
 0x5ab   : > { %v4173_v45 = vld.sshfl [vmem:[#allocation1 + $0x20] sm:$0xff pattern:$0x73625140]  ;;  %14086 = vst [vmem:[#allocation135_spill] sm:$0xff] %v10349_v47 }
 0x5ac   : > { %4178 = vst [vmem:[#allocation1 + $0x20] ss:$4 sm:$0xff] %v1676_v48  ;;  %v8126_v48 = vld [vmem:[%s8496_s26 + $0xf8] sm:$0xff] }
 0x5ad   : > { %4179 = vst [vmem:[#allocation1 + $0x21] ss:$4 sm:$0xff] %v1677_v54  ;;  %v1683_v54 = vrot.slane %v8126_v48, 4 }
 0x5ae   : > { %4180 = vst [vmem:[#allocation1 + $0x22] ss:$4 sm:$0xff] %v1678_v10  ;;  %v1684_v10 = vrot.slane %v8126_v48, 6 }
 0x5af   : > { %4327 = vrot.lane.b32.xlu1 %v4173_v45, %s8436_s22  ;;  %14087 = vst [vmem:[#allocation136_spill] sm:$0xff] %v10353_v25  ;;  %v1682_v45 = vrot.slane %v8126_v48, 2  ;;  %v10361_v25 = vpop.permute.xlu1 %3346 }
 0x5b0   : > { %4181 = vst [vmem:[#allocation1 + $0x23] ss:$4 sm:$0xff] %v8124_v50  ;;  %v1647_v50 = vrot.slane %v10226_v21, 4 }
 0x5b1   : > { %v4112_v57 = vld.sshfl [vmem:[#allocation1] sm:$0xff pattern:$0x73625140]  ;;  %14088 = vst [vmem:[#allocation137_spill] sm:$0xff] %v10357_v43 }
 0x5b2   : > { %4301 = vrot.lane.b32.xlu0 %v4112_v57, %s8436_s22  ;;  %4114 = vst [vmem:[#allocation1] ss:$4 sm:$0xff] %v1642_v26  ;;  %v1648_v26 = vrot.slane %v10226_v21, 6  ;;  %v8109_v57 = vld [vmem:[%s8496_s26 + $0x70] sm:$0x3] }
 0x5b3   : > { %4116 = vst [vmem:[#allocation1 + $0x2] ss:$4 sm:$0xff] %v10222_v61  ;;  %v10366_v61 = vpop.permute.xlu2 %3366  ;;  %v10377_v21 = vld [vmem:[%s8496_s26 + $0x110] sm:$0xff] }
 0x5b4   : > { %4117 = vst [vmem:[#allocation1 + $0x3] ss:$4 sm:$0xff] %v1643_v0  ;;  %v10368_v0 = vpop.permute.xlu0 %3356  ;;  %v1690_v19 = vrot.slane %v10377_v21, 6 }
 0x5b5   : > { %4115 = vst [vmem:[#allocation1 + $0x1] ss:$4 sm:$0xff] %v8106_v1 }
 0x5b6   : > { %14089 = vst [vmem:[#allocation138_spill] sm:$0xff] %v10361_v25  ;;  %v10373_v25 = vld [vmem:[%s8496_s26 + $0x108] sm:$0xff] }
 0x5b7   : > { %v4183_v47 = vld.sshfl [vmem:[#allocation1 + $0x20] sm:$0xff pattern:$0x73625140]  ;;  %14090 = vst [vmem:[#allocation139_spill] sm:$0xff] %v10366_v61 }
 0x5b8   : > { %4188 = vst [vmem:[#allocation1 + $0x20] ss:$4 sm:$0xff] %v8126_v48  ;;  %v1688_v48 = vrot.slane %v10377_v21, 2 }
 0x5b9   : > { %4189 = vst [vmem:[#allocation1 + $0x21] ss:$4 sm:$0xff] %v1682_v45  ;;  %v10381_v45 = vpop.permute.xlu1 %3364 }
 0x5ba   : > { %4331 = vrot.lane.b32.xlu0 %v4183_v47, %s8436_s22  ;;  %4190 = vst [vmem:[#allocation1 + $0x22] ss:$4 sm:$0xff] %v1683_v54  ;;  %v1687_v47 = vrot.slane %v10373_v25, 6 }
 0x5bb   : > { %4191 = vst [vmem:[#allocation1 + $0x23] ss:$4 sm:$0xff] %v1684_v10  ;;  %v1689_v10 = vrot.slane %v10377_v21, 4 }
 0x5bc   : > { %v4122_v1 = vld.sshfl [vmem:[#allocation1] sm:$0xff pattern:$0x73625140]  ;;  %14091 = vst [vmem:[#allocation140_spill] sm:$0xff] %v10368_v0 }
 0x5bd   : > { %4305 = vrot.lane.b32.xlu2 %v4122_v1, %s8436_s22  ;;  %4124 = vst [vmem:[#allocation1] ss:$4 sm:$0xff] %v1647_v50  ;;  %v1652_v50 = vrot.slane %v10258_v9, 2  ;;  %v1654_v1 = vrot.slane %v10258_v9, 6 }
 0x5be   : > { %4125 = vst [vmem:[#allocation1 + $0x1] ss:$4 sm:$0xff] %v1648_v26  ;;  %v10385_v26 = vpop.permute.xlu2 %3641 }
 0x5bf   : > { %4127 = vst [vmem:[#allocation1 + $0x3] ss:$4 sm:$0xff] %v10244_v6  ;;  %v1653_v6 = vrot.slane %v10258_v9, 4 }
 0x5c0   : > { %4126 = vst [vmem:[#allocation1 + $0x2] ss:$4 sm:$0xff] %v8109_v57  ;;  %v10391_v57 = vpop.permute.xlu0 %3350 }
 0x5c1   : > { %14092 = vst [vmem:[#allocation141_spill] sm:$0xff] %v10381_v45  ;;  %v10396_v45 = vld [vmem:[%s8496_s26 + $0x120] sm:$0xff] }
 0x5c2   : > { %v4193_v54 = vld.sshfl [vmem:[#allocation1 + $0x20] sm:$0xff pattern:$0x73625140]  ;;  %14093 = vst [vmem:[#allocation142_spill] sm:$0xff] %v10385_v26  ;;  %v1692_v0 = vrot.slane %v10396_v45, 4  ;;  %v1693_v9 = vrot.slane %v10396_v45, 6 }
 0x5c3   : > { %4198 = vst [vmem:[#allocation1 + $0x20] ss:$4 sm:$0xff] %v1687_v47  ;;  %v8112_v47 = vld [vmem:[%s8496_s26 + $0x88] sm:$0x3] }
 0x5c4   : > { %4199 = vst [vmem:[#allocation1 + $0x21] ss:$4 sm:$0xff] %v10377_v21  ;;  %v11128_v26 = vld [vmem:[%s8496_s26 + $0xe2] sm:$0xff] }
 0x5c5   : > { %4335 = vrot.lane.b32.xlu2 %v4193_v54, %s8436_s22  ;;  %4200 = vst [vmem:[#allocation1 + $0x22] ss:$4 sm:$0xff] %v1688_v48  ;;  %v10399_v54 = vld [vmem:[%s8496_s26 + $0x128] sm:$0xff]  ;;  %v10403_v48 = vpop.permute.xlu1 %3358 }
 0x5c6   : > { %14094 = vst [vmem:[#allocation143_spill] sm:$0xff] %v10391_v57  ;;  %v10405_v57 = vpop.permute.xlu2 %3378 }
 0x5c7   : > { %v4132_v61 = vld.sshfl [vmem:[#allocation1] sm:$0xff pattern:$0x73625140]  ;;  %4201 = vst [vmem:[#allocation1 + $0x23] ss:$4 sm:$0xff] %v1689_v10  ;;  %v8114_v10 = vld [vmem:[%s8496_s26 + $0x98] sm:$0xff] }
 0x5c8   : > { %4309 = vrot.lane.b32.xlu1 %v4132_v61, %s8436_s22  ;;  %4134 = vst [vmem:[#allocation1] ss:$4 sm:$0xff] %v1652_v50  ;;  %v1694_v50 = vrot.slane %v10399_v54, 2 }
 0x5c9   : > { %4135 = vst [vmem:[#allocation1 + $0x1] ss:$4 sm:$0xff] %v1653_v6  ;;  %v1658_v6 = vrot.slane %v8114_v10, 2 }
 0x5ca   : > { %4136 = vst [vmem:[#allocation1 + $0x2] ss:$4 sm:$0xff] %v1654_v1  ;;  %v10410_v1 = vpop.permute.xlu0 %3368 }
 0x5cb   : > { %4137 = vst [vmem:[#allocation1 + $0x3] ss:$4 sm:$0xff] %v8112_v47  ;;  %v1659_v47 = vrot.slane %v8114_v10, 4 }
 0x5cc   : > { %14095 = vst [vmem:[#allocation144_spill] sm:$0xff] %v10403_v48  ;;  %v1660_v48 = vrot.slane %v8114_v10, 6 }
 0x5cd   : > { %14096 = vst [vmem:[#allocation145_spill] sm:$0xff] %v10405_v57  ;;  %v10415_v57 = vld [vmem:[%s8496_s26 + $0x138] sm:$0xff] }
 0x5ce   : > { %v4203_v61 = vld.sshfl [vmem:[#allocation1 + $0x20] sm:$0xff pattern:$0x73625140]  ;;  %14097 = vst [vmem:[#allocation146_spill] sm:$0xff] %v10410_v1  ;;  %v1698_v1 = vrot.slane %v10415_v57, 4  ;;  %v1699_v31 = vrot.slane %v10415_v57, 6 }
 0x5cf   : > { %4208 = vst [vmem:[#allocation1 + $0x20] ss:$4 sm:$0xff] %v1692_v0  ;;  %v1697_v0 = vrot.slane %v10415_v57, 2 }
 0x5d0   : > { %4339 = vrot.lane.b32.xlu1 %v4203_v61, %s8436_s22  ;;  %4209 = vst [vmem:[#allocation1 + $0x21] ss:$4 sm:$0xff] %v1693_v9  ;;  %v10418_v9 = vpop.permute.xlu1 %3376  ;;  %v10420_v61 = vpop.permute.xlu2 %3635 }
 0x5d1   : > { %4210 = vst [vmem:[#allocation1 + $0x22] ss:$4 sm:$0xff] %v10399_v54 }
 0x5d2   : > { %v4142_v43 = vld.sshfl [vmem:[#allocation1] sm:$0xff pattern:$0x73625140]  ;;  %4211 = vst [vmem:[#allocation1 + $0x23] ss:$4 sm:$0xff] %v1694_v50 }
 0x5d3   : > { %4313 = vrot.lane.b32.xlu0 %v4142_v43, %s8436_s22  ;;  %4144 = vst [vmem:[#allocation1] ss:$4 sm:$0xff] %v8114_v10  ;;  %v1663_v43 = vrot.slane %v10279_v30, 6  ;;  %v10426_v10 = vld [vmem:[%s8496_s26 + $0x140] sm:$0xff]  ;;  %v8137_v30 = vld [vmem:[%s8496_s26 + $0x150] sm:$0xff] }
 0x5d4   : > { %4145 = vst [vmem:[#allocation1 + $0x1] ss:$4 sm:$0xff] %v1658_v6  ;;  %v10428_v6 = vpop.permute.xlu0 %3362  ;;  %v1705_v16 = vrot.slane %v8137_v30, 6 }
 0x5d5   : > { %4146 = vst [vmem:[#allocation1 + $0x2] ss:$4 sm:$0xff] %v1659_v47  ;;  %v1665_v47 = vrot.slane %v10296_v5, 4 }
 0x5d6   : > { %4147 = vst [vmem:[#allocation1 + $0x3] ss:$4 sm:$0xff] %v1660_v48  ;;  %v1664_v48 = vrot.slane %v10296_v5, 2 }
 0x5d7   : > { %14098 = vst [vmem:[#allocation147_spill] sm:$0xff] %v10418_v9 }
 0x5d8   : > { %14099 = vst [vmem:[#allocation148_spill] sm:$0xff] %v10428_v6  ;;  %v10439_v6 = vpop.permute.xlu2 %3653 }
 0x5d9   : > { %v4213_v50 = vld.sshfl [vmem:[#allocation1 + $0x20] sm:$0xff pattern:$0x73625140]  ;;  %14100 = vst [vmem:[#allocation149_spill] sm:$0xff] %v10439_v6  ;;  %v8125_v6 = vld [vmem:[%s8496_s26 + $0xf0] sm:$0xff] }
 0x5da   : > { %4218 = vst [vmem:[#allocation1 + $0x20] ss:$4 sm:$0xff] %v1697_v0  ;;  %v10437_v0 = vpop.permute.xlu1 %3633  ;;  %v1681_v42 = vrot.slane %v8125_v6, 6 }
 0x5db   : > { %4343 = vrot.lane.b32.xlu0 %v4213_v50, %s8436_s22  ;;  %4219 = vst [vmem:[#allocation1 + $0x21] ss:$4 sm:$0xff] %v1698_v1  ;;  %v1703_v1 = vrot.slane %v8137_v30, 2 }
 0x5dc   : > { %4220 = vst [vmem:[#allocation1 + $0x22] ss:$4 sm:$0xff] %v1699_v31  ;;  %v10441_v50 = vpop.permute.xlu0 %3637  ;;  %v1704_v31 = vrot.slane %v8137_v30, 4 }
 0x5dd   : > { %v4152_v9 = vld.sshfl [vmem:[#allocation1] sm:$0xff pattern:$0x73625140]  ;;  %4221 = vst [vmem:[#allocation1 + $0x23] ss:$4 sm:$0xff] %v10426_v10 }
 0x5de   : > { %4317 = vrot.lane.b32.xlu2 %v4152_v9, %s8436_s22  ;;  %4154 = vst [vmem:[#allocation1] ss:$4 sm:$0xff] %v1663_v43  ;;  %v1669_v9 = vrot.slane %v10301_v53, 6  ;;  %v10454_v53 = vld [vmem:[%s8496_s26 + $0x168] sm:$0xff] }
 0x5df   : > { %4155 = vst [vmem:[#allocation1 + $0x1] ss:$4 sm:$0xff] %v10296_v5  ;;  %v1670_v5 = vrot.slane %v10315_v20, 2 }
 0x5e0   : > { %4156 = vst [vmem:[#allocation1 + $0x2] ss:$4 sm:$0xff] %v1664_v48 }
 0x5e1   : > { %4157 = vst [vmem:[#allocation1 + $0x3] ss:$4 sm:$0xff] %v1665_v47  ;;  %v10449_v47 = vpop.permute.xlu2 %3647 }
 0x5e2   : > { %v10447_v48 = vpop.permute.xlu1 %3370  ;;  %14102 = vst [vmem:[#allocation151_spill] sm:$0xff] %v10449_v47  ;;  %v10494_v47 = vld [vmem:[%s8496_s26 + $0x188] sm:$0xff] }
 0x5e3   : > { %14101 = vst [vmem:[#allocation150_spill] sm:$0xff] %v10447_v48  ;;  %v1673_v48 = vrot.slane %v10327_v28, 2 }
 0x5e4   : > { %v4223_v38 = vld.sshfl [vmem:[#allocation1 + $0x20] sm:$0xff pattern:$0x73625140] }
 0x5e5   : > { %4228 = vst [vmem:[#allocation1 + $0x20] ss:$4 sm:$0xff] %v8137_v30  ;;  %v8139_v30 = vld [vmem:[%s8496_s26 + $0x160] sm:$0x3] }
 0x5e6   : > { %4347 = vrot.lane.b32.xlu2 %v4223_v38, %s8436_s22  ;;  %4229 = vst [vmem:[#allocation1 + $0x21] ss:$4 sm:$0xff] %v1703_v1  ;;  %v10456_v38 = vpop.permute.xlu0 %3374  ;;  %v1709_v1 = vrot.slane %v10454_v53, 2 }
 0x5e7   : > { %4230 = vst [vmem:[#allocation1 + $0x22] ss:$4 sm:$0xff] %v1704_v31  ;;  %v1710_v31 = vrot.slane %v10454_v53, 4 }
 0x5e8   : > { %v4162_v43 = vld.sshfl [vmem:[#allocation1] sm:$0xff pattern:$0x73625140]  ;;  %4231 = vst [vmem:[#allocation1 + $0x23] ss:$4 sm:$0xff] %v1705_v16 }
 0x5e9   : > { %4321 = vrot.lane.b32.xlu1 %v4162_v43, %s8436_s22  ;;  %4164 = vst [vmem:[#allocation1] ss:$4 sm:$0xff] %v1668_v55  ;;  %v1674_v55 = vrot.slane %v10327_v28, 4 }
 0x5ea   : > { %4165 = vst [vmem:[#allocation1 + $0x1] ss:$4 sm:$0xff] %v1669_v9  ;;  %v10466_v9 = vpop.permute.xlu1 %3645 }
 0x5eb   : > { %4166 = vst [vmem:[#allocation1 + $0x2] ss:$4 sm:$0xff] %v10315_v20  ;;  %v1675_v20 = vrot.slane %v10327_v28, 6  ;;  %v10478_v28 = vld [vmem:[%s8496_s26 + $0x180] sm:$0xff] }
 0x5ec   : > { %4167 = vst [vmem:[#allocation1 + $0x3] ss:$4 sm:$0xff] %v1670_v5  ;;  %v10468_v5 = vpop.permute.xlu2 %3665 }
 0x5ed   : > { %14103 = vst [vmem:[#allocation152_spill] sm:$0xff] %v10456_v38 }
 0x5ee   : > { %14104 = vst [vmem:[#allocation153_spill] sm:$0xff] %v10466_v9  ;;  %v10474_v38 = vpop.permute.xlu0 %3631 }
 0x5ef   : > { %v4233_v16 = vld.sshfl [vmem:[#allocation1 + $0x20] sm:$0xff pattern:$0x73625140]  ;;  %14105 = vst [vmem:[#allocation154_spill] sm:$0xff] %v10468_v5 }
 0x5f0   : > { %4238 = vst [vmem:[#allocation1 + $0x20] ss:$4 sm:$0xff] %v8139_v30  ;;  %v10472_v30 = vld [vmem:[%s8496_s26 + $0x170] sm:$0xff] }
 0x5f1   : > { %4351 = vrot.lane.b32.xlu1 %v4233_v16, %s8436_s22  ;;  %4239 = vst [vmem:[#allocation1 + $0x21] ss:$4 sm:$0xff] %v10454_v53  ;;  %v8142_v16 = vld [vmem:[%s8496_s26 + $0x178] sm:$0x3] }
 0x5f2   : > { %4240 = vst [vmem:[#allocation1 + $0x22] ss:$4 sm:$0xff] %v1709_v1  ;;  %v1714_v1 = vrot.slane %v10472_v30, 6 }
 0x5f3   : > { %v4172_v43 = vld.sshfl [vmem:[#allocation1] sm:$0xff pattern:$0x73625140]  ;;  %4241 = vst [vmem:[#allocation1 + $0x23] ss:$4 sm:$0xff] %v1710_v31  ;;  %v1715_v31 = vrot.slane %v10478_v28, 2 }
 0x5f4   : > { %4325 = vrot.lane.b32.xlu0 %v4172_v43, %s8436_s22  ;;  %4174 = vst [vmem:[#allocation1] ss:$4 sm:$0xff] %v1673_v48  ;;  %v10484_v43 = vpop.permute.xlu1 %3639  ;;  %v10486_v48 = vpop.permute.xlu2 %3659 }
 0x5f5   : > { %4175 = vst [vmem:[#allocation1 + $0x1] ss:$4 sm:$0xff] %v1674_v55  ;;  %v1679_v55 = vrot.slane %v8125_v6, 2 }
 0x5f6   : > { %4176 = vst [vmem:[#allocation1 + $0x2] ss:$4 sm:$0xff] %v1675_v20  ;;  %v10490_v29 = vpop.permute.xlu0 %3649 }
 0x5f7   : > { %4177 = vst [vmem:[#allocation1 + $0x3] ss:$4 sm:$0xff] %v10340_v41  ;;  %v1680_v41 = vrot.slane %v8125_v6, 4 }
 0x5f8   : > { %14106 = vst [vmem:[#allocation155_spill] sm:$0xff] %v10486_v48 }
 0x5f9   : > { %14107 = vst [vmem:[#allocation156_spill] sm:$0xff] %v10490_v29  ;;  %v8145_v29 = vld [vmem:[%s8496_s26 + $0x190] sm:$0x3] }
 0x5fa   : > { %v4243_v5 = vld.sshfl [vmem:[#allocation1 + $0x20] sm:$0xff pattern:$0x73625140] }
 0x5fb   : > { %4248 = vst [vmem:[#allocation1 + $0x20] ss:$4 sm:$0xff] %v1714_v1  ;;  %v1720_v1 = vrot.slane %v10494_v47, 6 }
 0x5fc   : > { %4355 = vrot.lane.b32.xlu0 %v4243_v5, %s8436_s22  ;;  %4249 = vst [vmem:[#allocation1 + $0x21] ss:$4 sm:$0xff] %v8142_v16  ;;  %v1719_v5 = vrot.slane %v10494_v47, 4  ;;  %v10498_v16 = vpop.permute.xlu1 %3657  ;;  %v10500_v48 = vpop.permute.xlu2 %3677 }
 0x5fd   : > { %4250 = vst [vmem:[#allocation1 + $0x22] ss:$4 sm:$0xff] %v10478_v28 }
 0x5fe   : > { %v4182_v20 = vld.sshfl [vmem:[#allocation1] sm:$0xff pattern:$0x73625140]  ;;  %4251 = vst [vmem:[#allocation1 + $0x23] ss:$4 sm:$0xff] %v1715_v31 }
 0x5ff   : > { %4329 = vrot.lane.b32.xlu2 %v4182_v20, %s8436_s22  ;;  %4184 = vst [vmem:[#allocation1] ss:$4 sm:$0xff] %v8125_v6  ;;  %v10506_v6 = vpop.permute.xlu0 %3643  ;;  %v8127_v20 = vld [vmem:[%s8496_s26 + $0x100] sm:$0x3] }
 0x600   : > { %4185 = vst [vmem:[#allocation1 + $0x1] ss:$4 sm:$0xff] %v1679_v55  ;;  %v1685_v55 = vrot.slane %v10373_v25, 2 }
 0x601   : > { %4186 = vst [vmem:[#allocation1 + $0x2] ss:$4 sm:$0xff] %v1680_v41 }
 0x602   : > { %4187 = vst [vmem:[#allocation1 + $0x3] ss:$4 sm:$0xff] %v1681_v42  ;;  %v1686_v42 = vrot.slane %v10373_v25, 4 }
 0x603   : > { %14108 = vst [vmem:[#allocation157_spill] sm:$0xff] %v10498_v16 }
 0x604   : > { %14109 = vst [vmem:[#allocation158_spill] sm:$0xff] %v10500_v48  ;;  %v10518_v48 = vpop.permute.xlu1 %3651 }
 0x605   : > { %v4253_v31 = vld.sshfl [vmem:[#allocation1 + $0x20] sm:$0xff pattern:$0x73625140]  ;;  %14110 = vst [vmem:[#allocation159_spill] sm:$0xff] %v10506_v6 }
 0x606   : > { %4258 = vst [vmem:[#allocation1 + $0x20] ss:$4 sm:$0xff] %v1719_v5  ;;  %v10516_v5 = vld [vmem:[%s8496_s26 + $0x1a0] sm:$0xff] }
 0x607   : > { %4359 = vrot.lane.b32.xlu2 %v4253_v31, %s8436_s22  ;;  %4259 = vst [vmem:[#allocation1 + $0x21] ss:$4 sm:$0xff] %v1720_v1  ;;  %v10520_v31 = vpop.permute.xlu2 %3671  ;;  %v1725_v1 = vrot.slane %v10516_v5, 4  ;;  %v1726_v16 = vrot.slane %v10516_v5, 6 }
 0x608   : > { %4260 = vst [vmem:[#allocation1 + $0x22] ss:$4 sm:$0xff] %v8145_v29  ;;  %v1724_v29 = vrot.slane %v10516_v5, 2 }
 0x609   : > { %v4192_v41 = vld.sshfl [vmem:[#allocation1] sm:$0xff pattern:$0x73625140]  ;;  %4261 = vst [vmem:[#allocation1 + $0x23] ss:$4 sm:$0xff] %v10504_v27 }
 0x60a   : > { %4333 = vrot.lane.b32.xlu1 %v4192_v41, %s8436_s22  ;;  %4195 = vst [vmem:[#allocation1 + $0x1] ss:$4 sm:$0xff] %v10373_v25  ;;  %v10525_v25 = vpop.permute.xlu0 %3661 }
 0x60b   : > { %4196 = vst [vmem:[#allocation1 + $0x2] ss:$4 sm:$0xff] %v1685_v55  ;;  %v8148_v55 = vld [vmem:[%s8496_s26 + $0x1a8] sm:$0x3] }
 0x60c   : > { %4197 = vst [vmem:[#allocation1 + $0x3] ss:$4 sm:$0xff] %v1686_v42  ;;  %v1691_v42 = vrot.slane %v10396_v45, 2 }
 0x60d   : > { %14111 = vst [vmem:[#allocation160_spill] sm:$0xff] %v10518_v48  ;;  %v8150_v48 = vld [vmem:[%s8496_s26 + $0x1b8] sm:$0xff] }
 0x60e   : > { %14112 = vst [vmem:[#allocation161_spill] sm:$0xff] %v10520_v31  ;;  %v8130_v31 = vld [vmem:[%s8496_s26 + $0x118] sm:$0x3] }
 0x60f   : > { %4194 = vst [vmem:[#allocation1] ss:$4 sm:$0xff] %v8127_v20  ;;  %v10537_v21 = vpop.permute.xlu2 %3689 }
 0x610   : > { %v4263_v41 = vld.sshfl [vmem:[#allocation1 + $0x20] sm:$0xff pattern:$0x73625140]  ;;  %14113 = vst [vmem:[#allocation162_spill] sm:$0xff] %v10525_v25  ;;  %v10535_v25 = vpop.permute.xlu1 %3669 }
 0x611   : > { %4268 = vst [vmem:[#allocation1 + $0x20] ss:$4 sm:$0xff] %v1724_v29 }
 0x612   : > { %4363 = vrot.lane.b32.xlu1 %v4263_v41, %s8436_s22  ;;  %4269 = vst [vmem:[#allocation1 + $0x21] ss:$4 sm:$0xff] %v1725_v1  ;;  %v10539_v29 = vpop.permute.xlu0 %3655  ;;  %v1730_v1 = vrot.slane %v8150_v48, 2 }
 0x613   : > { %4270 = vst [vmem:[#allocation1 + $0x22] ss:$4 sm:$0xff] %v1726_v16  ;;  %v1731_v16 = vrot.slane %v8150_v48, 4 }
 0x614   : > { %4271 = vst [vmem:[#allocation1 + $0x23] ss:$4 sm:$0xff] %v8148_v55  ;;  %v1732_v55 = vrot.slane %v8150_v48, 6 }
 0x615   : > { %14114 = vst [vmem:[#allocation163_spill] sm:$0xff] %v10535_v25  ;;  %v8138_v25 = vld [vmem:[%s8496_s26 + $0x158] sm:$0xff] }
 0x616   : > { %v4202_v20 = vld.sshfl [vmem:[#allocation1] sm:$0xff pattern:$0x73625140]  ;;  %14115 = vst [vmem:[#allocation164_spill] sm:$0xff] %v10537_v21  ;;  %v8133_v21 = vld [vmem:[%s8496_s26 + $0x130] sm:$0x3] }
 0x617   : > { %4337 = vrot.lane.b32.xlu0 %v4202_v20, %s8436_s22  ;;  %4204 = vst [vmem:[#allocation1] ss:$4 sm:$0xff] %v1690_v19  ;;  %v1695_v19 = vrot.slane %v10399_v54, 4 }
 0x618   : > { %4206 = vst [vmem:[#allocation1 + $0x2] ss:$4 sm:$0xff] %v10396_v45  ;;  %v1696_v45 = vrot.slane %v10399_v54, 6  ;;  %v10555_v54 = vld [vmem:[%s8496_s26 + $0x1d0] sm:$0xff] }
 0x619   : > { %4207 = vst [vmem:[#allocation1 + $0x3] ss:$4 sm:$0xff] %v1691_v42  ;;  %v10544_v42 = vpop.permute.xlu1 %3663  ;;  %v1738_v9 = vrot.slane %v10555_v54, 6 }
 0x61a   : > { %4205 = vst [vmem:[#allocation1 + $0x1] ss:$4 sm:$0xff] %v8130_v31  ;;  %v10546_v31 = vpop.permute.xlu2 %3683 }
 0x61b   : > { %14116 = vst [vmem:[#allocation165_spill] sm:$0xff] %v10539_v29  ;;  %v4273_v41 = vld.sshfl [vmem:[#allocation1 + $0x20] sm:$0xff pattern:$0x73625140]  ;;  %v10551_v29 = vld [vmem:[%s8496_s26 + $0x1c8] sm:$0xff] }
 0x61c   : > { %4278 = vst [vmem:[#allocation1 + $0x20] ss:$4 sm:$0xff] %v8150_v48  ;;  %v10557_v48 = vpop.permute.xlu0 %3673 }
 0x61d   : > { %4279 = vst [vmem:[#allocation1 + $0x21] ss:$4 sm:$0xff] %v1730_v1  ;;  %v1735_v1 = vrot.slane %v10551_v29, 6 }
 0x61e   : > { %4280 = vst [vmem:[#allocation1 + $0x22] ss:$4 sm:$0xff] %v1731_v16  ;;  %v1736_v16 = vrot.slane %v10555_v54, 2 }
 0x61f   : > { %4367 = vrot.lane.b32.xlu0 %v4273_v41, %s8436_s22  ;;  %14117 = vst [vmem:[#allocation166_spill] sm:$0xff] %v10544_v42 }
 0x620   : > { %14118 = vst [vmem:[#allocation167_spill] sm:$0xff] %v10546_v31 }
 0x621   : > { %v4212_v20 = vld.sshfl [vmem:[#allocation1] sm:$0xff pattern:$0x73625140]  ;;  %4281 = vst [vmem:[#allocation1 + $0x23] ss:$4 sm:$0xff] %v1732_v55  ;;  %v1737_v55 = vrot.slane %v10555_v54, 4 }
 0x622   : > { %4341 = vrot.lane.b32.xlu2 %v4212_v20, %s8436_s22  ;;  %4214 = vst [vmem:[#allocation1] ss:$4 sm:$0xff] %v1695_v19  ;;  %v1700_v19 = vrot.slane %v10426_v10, 2  ;;  %v1702_v20 = vrot.slane %v10426_v10, 6 }
 0x623   : > { %4215 = vst [vmem:[#allocation1 + $0x1] ss:$4 sm:$0xff] %v1696_v45  ;;  %v1701_v45 = vrot.slane %v10426_v10, 4 }
 0x624   : > { %4217 = vst [vmem:[#allocation1 + $0x3] ss:$4 sm:$0xff] %v10415_v57  ;;  %v10566_v57 = vpop.permute.xlu1 %3681  ;;  %v10571_v42 = vpop.permute.xlu0 %3667 }
 0x625   : > { %14119 = vst [vmem:[#allocation168_spill] sm:$0xff] %v10557_v48 }
 0x626   : > { %4216 = vst [vmem:[#allocation1 + $0x2] ss:$4 sm:$0xff] %v8133_v21  ;;  %v10568_v21 = vpop.permute.xlu2 %3701 }
 0x627   : > { %14120 = vst [vmem:[#allocation169_spill] sm:$0xff] %v10566_v57 }
 0x628   : > { %v4283_v41 = vld.sshfl [vmem:[#allocation1 + $0x20] sm:$0xff pattern:$0x73625140]  ;;  %14121 = vst [vmem:[#allocation170_spill] sm:$0xff] %v10568_v21  ;;  %v10586_v21 = vld [vmem:[%s8496_s26 + $0x49] sm:$0xff] }
 0x629   : > { %4288 = vst [vmem:[#allocation1 + $0x20] ss:$4 sm:$0xff] %v1735_v1  ;;  %v8136_v1 = vld [vmem:[%s8496_s26 + $0x148] sm:$0x3] }
 0x62a   : > { %4371 = vrot.lane.b32.xlu2 %v4283_v41, %s8436_s22  ;;  %4289 = vst [vmem:[#allocation1 + $0x21] ss:$4 sm:$0xff] %v10555_v54  ;;  %v8156_v41 = vld [vmem:[%s8496_s26 + $0x39] sm:$0xff] }
 0x62b   : > { %4290 = vst [vmem:[#allocation1 + $0x22] ss:$4 sm:$0xff] %v1736_v16  ;;  %v1850_v48 = vrot.slane %v8156_v41, 2  ;;  %v1851_v57 = vrot.slane %v8156_v41, 4 }
 0x62c   : > { %4291 = vst [vmem:[#allocation1 + $0x23] ss:$4 sm:$0xff] %v1737_v55  ;;  %v10577_v17 = vpop.permute.xlu1 %3675  ;;  %v1852_v55 = vrot.slane %v8156_v41, 6 }
 0x62d   : > { %v4222_v31 = vld.sshfl [vmem:[#allocation1] sm:$0xff pattern:$0x73625140]  ;;  %14122 = vst [vmem:[#allocation171_spill] sm:$0xff] %v10571_v42 }
 0x62e   : > { %4345 = vrot.lane.b32.xlu1 %v4222_v31, %s8436_s22  ;;  %4224 = vst [vmem:[#allocation1] ss:$4 sm:$0xff] %v1700_v19  ;;  %v10579_v10 = vpop.permute.xlu2 %3695  ;;  %v1706_v31 = vrot.slane %v8138_v25, 2  ;;  %v1707_v19 = vrot.slane %v8138_v25, 4 }
 0x62f   : > { %4225 = vst [vmem:[#allocation1 + $0x1] ss:$4 sm:$0xff] %v1701_v45  ;;  %v10582_v45 = vpop.permute.xlu0 %3685 }
 0x630   : > { %4226 = vst [vmem:[#allocation1 + $0x2] ss:$4 sm:$0xff] %v1702_v20 }
 0x631   : > { %4227 = vst [vmem:[#allocation1 + $0x3] ss:$4 sm:$0xff] %v8136_v1  ;;  %v1708_v1 = vrot.slane %v8138_v25, 6 }
 0x632   : > { %14123 = vst [vmem:[#allocation172_spill] sm:$0xff] %v10577_v17 }
 0x633   : > { %14124 = vst [vmem:[#allocation173_spill] sm:$0xff] %v10579_v10  ;;  %v4293_v16 = vld.sshfl [vmem:[#allocation1 + $0x20] sm:$0xff pattern:$0x73625140]  ;;  %v10589_v10 = vld [vmem:[%s8496_s26 + $0x51] sm:$0xff] }
 0x634   : > { %4428 = vst [vmem:[#allocation1 + $0x20] ss:$4 sm:$0xff] %v8156_v41  ;;  %v10592_v41 = vpop.permute.xlu1 %3693 }
 0x635   : > { %4430 = vst [vmem:[#allocation1 + $0x21] ss:$4 sm:$0xff] %v1850_v48  ;;  %v1855_v48 = vrot.slane %v10586_v21, 6 }
 0x636   : > { %4375 = vrot.lane.b32.xlu1 %v4293_v16, %s8436_s22  ;;  %4432 = vst [vmem:[#allocation1 + $0x22] ss:$4 sm:$0xff] %v1851_v57  ;;  %v10594_v57 = vpop.permute.xlu2 %3970  ;;  %v1856_v16 = vrot.slane %v10589_v10, 2 }
 0x637   : > { %14125 = vst [vmem:[#allocation174_spill] sm:$0xff] %v10582_v45  ;;  %v10607_v45 = vld [vmem:[%s8496_s26 + $0x61] sm:$0xff] }
 0x638   : > { %v4232_v20 = vld.sshfl [vmem:[#allocation1] sm:$0xff pattern:$0x73625140]  ;;  %4434 = vst [vmem:[#allocation1 + $0x23] ss:$4 sm:$0xff] %v1852_v55 }
 0x639   : > { %4349 = vrot.lane.b32.xlu0 %v4232_v20, %s8436_s22  ;;  %4234 = vst [vmem:[#allocation1] ss:$4 sm:$0xff] %v8138_v25  ;;  %v1857_v20 = vrot.slane %v10589_v10, 4  ;;  %v10598_v25 = vpop.permute.xlu0 %3679 }
 0x63a   : > { %4235 = vst [vmem:[#allocation1 + $0x1] ss:$4 sm:$0xff] %v1706_v31  ;;  %v1711_v31 = vrot.slane %v10454_v53, 6 }
 0x63b   : > { %4236 = vst [vmem:[#allocation1 + $0x2] ss:$4 sm:$0xff] %v1707_v19  ;;  %v1712_v19 = vrot.slane %v10472_v30, 2 }
 0x63c   : > { %4237 = vst [vmem:[#allocation1 + $0x3] ss:$4 sm:$0xff] %v1708_v1  ;;  %v1713_v1 = vrot.slane %v10472_v30, 4  ;;  %v10610_v53 = vpop.permute.xlu1 %3687 }
 0x63d   : > { %14126 = vst [vmem:[#allocation175_spill] sm:$0xff] %v10592_v41 }
 0x63e   : > { %14127 = vst [vmem:[#allocation176_spill] sm:$0xff] %v10598_v25 }
 0x63f   : > { %v4436_v55 = vld.sshfl [vmem:[#allocation1 + $0x20] sm:$0xff pattern:$0x73625140]  ;;  %14128 = vst [vmem:[#allocation177_spill] sm:$0xff] %v10610_v53 }
 0x640   : > { %4632 = vrot.lane.b32.xlu1 %v4436_v55, %s8434_s20  ;;  %4441 = vst [vmem:[#allocation1 + $0x20] ss:$4 sm:$0xff] %v1855_v48  ;;  %v10612_v55 = vpop.permute.xlu2 %3707  ;;  %v10615_v48 = vld [vmem:[%s8496_s26 + $0x69] sm:$0xff] }
 0x641   : > { %4442 = vst [vmem:[#allocation1 + $0x21] ss:$4 sm:$0xff] %v10589_v10  ;;  %v10619_v25 = vpop.permute.xlu0 %3697 }
 0x642   : > { %4443 = vst [vmem:[#allocation1 + $0x22] ss:$4 sm:$0xff] %v1856_v16  ;;  %v1860_v16 = vrot.slane %v10607_v45, 4 }
 0x643   : > { %v4242_v41 = vld.sshfl [vmem:[#allocation1] sm:$0xff pattern:$0x73625140]  ;;  %4444 = vst [vmem:[#allocation1 + $0x23] ss:$4 sm:$0xff] %v1857_v20  ;;  %v1861_v20 = vrot.slane %v10607_v45, 6 }
 0x644   : > { %4353 = vrot.lane.b32.xlu2 %v4242_v41, %s8436_s22  ;;  %4244 = vst [vmem:[#allocation1] ss:$4 sm:$0xff] %v1711_v31  ;;  %v1862_v31 = vrot.slane %v10615_v48, 2  ;;  %v10631_v53 = vpop.permute.xlu1 %3705 }
 0x645   : > { %4245 = vst [vmem:[#allocation1 + $0x1] ss:$4 sm:$0xff] %v10472_v30  ;;  %v1716_v30 = vrot.slane %v10478_v28, 4 }
 0x646   : > { %14129 = vst [vmem:[#allocation178_spill] sm:$0xff] %v10612_v55 }
 0x647   : > { %4246 = vst [vmem:[#allocation1 + $0x2] ss:$4 sm:$0xff] %v1712_v19  ;;  %v1717_v19 = vrot.slane %v10478_v28, 6 }
 0x648   : > { %4247 = vst [vmem:[#allocation1 + $0x3] ss:$4 sm:$0xff] %v1713_v1  ;;  %v1718_v1 = vrot.slane %v10494_v47, 2  ;;  %v10633_v17 = vpop.permute.xlu2 %3982 }
 0x649   : > { %14130 = vst [vmem:[#allocation179_spill] sm:$0xff] %v10619_v25  ;;  %v10629_v25 = vld [vmem:[%s8496_s26 + $0x79] sm:$0xff]  ;;  %v10636_v28 = vpop.permute.xlu0 %3691 }
 0x64a   : > { %v4446_v41 = vld.sshfl [vmem:[#allocation1 + $0x20] sm:$0xff pattern:$0x73625140]  ;;  %14131 = vst [vmem:[#allocation180_spill] sm:$0xff] %v10631_v53 }
 0x64b   : > { %4636 = vrot.lane.b32.xlu0 %v4446_v41, %s8434_s20  ;;  %4451 = vst [vmem:[#allocation1 + $0x20] ss:$4 sm:$0xff] %v1860_v16  ;;  %v1865_v16 = vrot.slane %v10629_v25, 2  ;;  %v1867_v41 = vrot.slane %v10629_v25, 6 }
 0x64c   : > { %4452 = vst [vmem:[#allocation1 + $0x21] ss:$4 sm:$0xff] %v1861_v20  ;;  %v1866_v20 = vrot.slane %v10629_v25, 4 }
 0x64d   : > { %4453 = vst [vmem:[#allocation1 + $0x22] ss:$4 sm:$0xff] %v10615_v48 }
 0x64e   : > { %4454 = vst [vmem:[#allocation1 + $0x23] ss:$4 sm:$0xff] %v1862_v31  ;;  %v1721_v31 = vrot.slane %v10504_v27, 2 }
 0x64f   : > { %v4252_v55 = vld.sshfl [vmem:[#allocation1] sm:$0xff pattern:$0x73625140]  ;;  %14132 = vst [vmem:[#allocation181_spill] sm:$0xff] %v10633_v17  ;;  %v8149_v17 = vld [vmem:[%s8496_s26 + $0x1b0] sm:$0xff] }
 0x650   : > { %4357 = vrot.lane.b32.xlu1 %v4252_v55, %s8436_s22  ;;  %4254 = vst [vmem:[#allocation1] ss:$4 sm:$0xff] %v1716_v30  ;;  %v10644_v30 = vld [vmem:[%s8496_s26 + $0x81] sm:$0xff]  ;;  %v10651_v53 = vpop.permute.xlu2 %3964 }
 0x651   : > { %4255 = vst [vmem:[#allocation1 + $0x1] ss:$4 sm:$0xff] %v1717_v19  ;;  %v10647_v19 = vpop.permute.xlu1 %3699 }
 0x652   : > { %4256 = vst [vmem:[#allocation1 + $0x2] ss:$4 sm:$0xff] %v10494_v47  ;;  %v1722_v47 = vrot.slane %v10504_v27, 4 }
 0x653   : > { %14133 = vst [vmem:[#allocation182_spill] sm:$0xff] %v10636_v28 }
 0x654   : > { %4257 = vst [vmem:[#allocation1 + $0x3] ss:$4 sm:$0xff] %v1718_v1  ;;  %v1723_v1 = vrot.slane %v10504_v27, 6 }
 0x655   : > { %v4456_v55 = vld.sshfl [vmem:[#allocation1 + $0x20] sm:$0xff pattern:$0x73625140]  ;;  %14134 = vst [vmem:[#allocation183_spill] sm:$0xff] %v10647_v19 }
 0x656   : > { %4640 = vrot.lane.b32.xlu2 %v4456_v55, %s8434_s20  ;;  %4461 = vst [vmem:[#allocation1 + $0x20] ss:$4 sm:$0xff] %v1865_v16  ;;  %v8167_v55 = vld [vmem:[%s8496_s26 + $0x91] sm:$0xff]  ;;  %v10655_v16 = vpop.permute.xlu0 %3709 }
 0x657   : > { %4462 = vst [vmem:[#allocation1 + $0x21] ss:$4 sm:$0xff] %v1866_v20  ;;  %v1871_v20 = vrot.slane %v8167_v55, 2  ;;  %v1872_v19 = vrot.slane %v8167_v55, 4 }
 0x658   : > { %4463 = vst [vmem:[#allocation1 + $0x22] ss:$4 sm:$0xff] %v1867_v41  ;;  %v1873_v41 = vrot.slane %v8167_v55, 6 }
 0x659   : > { %4464 = vst [vmem:[#allocation1 + $0x23] ss:$4 sm:$0xff] %v10644_v30  ;;  %v10660_v42 = vpop.permute.xlu1 %3974 }
 0x65a   : > { %14135 = vst [vmem:[#allocation184_spill] sm:$0xff] %v10655_v16 }
 0x65b   : > { %v4262_v28 = vld.sshfl [vmem:[#allocation1] sm:$0xff pattern:$0x73625140]  ;;  %14136 = vst [vmem:[#allocation185_spill] sm:$0xff] %v10660_v42 }
 0x65c   : > { %4361 = vrot.lane.b32.xlu0 %v4262_v28, %s8436_s22  ;;  %4264 = vst [vmem:[#allocation1] ss:$4 sm:$0xff] %v1721_v31  ;;  %v10662_v28 = vpop.permute.xlu2 %3994  ;;  %v1727_v31 = vrot.slane %v8149_v17, 2 }
 0x65d   : > { %4265 = vst [vmem:[#allocation1 + $0x1] ss:$4 sm:$0xff] %v1722_v47  ;;  %v1728_v47 = vrot.slane %v8149_v17, 4 }
 0x65e   : > { %4266 = vst [vmem:[#allocation1 + $0x2] ss:$4 sm:$0xff] %v1723_v1  ;;  %v10665_v16 = vpop.permute.xlu0 %3966 }
 0x65f   : > { %4267 = vst [vmem:[#allocation1 + $0x3] ss:$4 sm:$0xff] %v10516_v5  ;;  %v1729_v5 = vrot.slane %v8149_v17, 6 }
 0x660   : > { %v4466_v27 = vld.sshfl [vmem:[#allocation1 + $0x20] sm:$0xff pattern:$0x73625140]  ;;  %14137 = vst [vmem:[#allocation186_spill] sm:$0xff] %v10662_v28 }
 0x661   : > { %4644 = vrot.lane.b32.xlu1 %v4466_v27, %s8434_s20  ;;  %4471 = vst [vmem:[#allocation1 + $0x20] ss:$4 sm:$0xff] %v8167_v55  ;;  %v10668_v55 = vld [vmem:[%s8496_s26 + $0xa9] sm:$0xff]  ;;  %v8169_v27 = vld [vmem:[%s8496_s26 + $0xa1] sm:$0x3]  ;;  %v10671_v63 = vpop.permute.xlu1 %3711 }
 0x662   : > { %4472 = vst [vmem:[#allocation1 + $0x21] ss:$4 sm:$0xff] %v1871_v20 }
 0x663   : > { %4473 = vst [vmem:[#allocation1 + $0x22] ss:$4 sm:$0xff] %v1872_v19  ;;  %v1877_v19 = vrot.slane %v10668_v55, 2 }
 0x664   : > { %4474 = vst [vmem:[#allocation1 + $0x23] ss:$4 sm:$0xff] %v1873_v41  ;;  %v1878_v41 = vrot.slane %v10668_v55, 4  ;;  %v10675_v28 = vpop.permute.xlu2 %3976 }
 0x665   : > { %14138 = vst [vmem:[#allocation187_spill] sm:$0xff] %v10671_v63 }
 0x666   : > { %v4272_v1 = vld.sshfl [vmem:[#allocation1] sm:$0xff pattern:$0x73625140]  ;;  %14139 = vst [vmem:[#allocation188_spill] sm:$0xff] %v10675_v28 }
 0x667   : > { %4365 = vrot.lane.b32.xlu2 %v4272_v1, %s8436_s22  ;;  %4274 = vst [vmem:[#allocation1] ss:$4 sm:$0xff] %v8149_v17  ;;  %v1733_v17 = vrot.slane %v10551_v29, 2  ;;  %v10681_v1 = vpop.permute.xlu0 %3703 }
 0x668   : > { %4275 = vst [vmem:[#allocation1 + $0x1] ss:$4 sm:$0xff] %v1727_v31  ;;  %v1734_v31 = vrot.slane %v10551_v29, 4 }
 0x669   : > { %4276 = vst [vmem:[#allocation1 + $0x2] ss:$4 sm:$0xff] %v1728_v47 }
 0x66a   : > { %4277 = vst [vmem:[#allocation1 + $0x3] ss:$4 sm:$0xff] %v1729_v5  ;;  %v8151_v5 = vld [vmem:[%s8496_s26 + $0x1c0] sm:$0x3] }
 0x66b   : > { %v4476_v20 = vld.sshfl [vmem:[#allocation1 + $0x20] sm:$0xff pattern:$0x73625140]  ;;  %14140 = vst [vmem:[#allocation189_spill] sm:$0xff] %v10681_v1  ;;  %v8172_v1 = vld [vmem:[%s8496_s26 + $0xb9] sm:$0x3] }
 0x66c   : > { %4648 = vrot.lane.b32.xlu0 %v4476_v20, %s8434_s20  ;;  %4481 = vst [vmem:[#allocation1 + $0x20] ss:$4 sm:$0xff] %v8169_v27  ;;  %v10687_v20 = vld [vmem:[%s8496_s26 + $0xb1] sm:$0xff]  ;;  %v10690_v27 = vld [vmem:[%s8496_s26 + $0xc1] sm:$0xff] }
 0x66d   : > { %4482 = vst [vmem:[#allocation1 + $0x21] ss:$4 sm:$0xff] %v10668_v55  ;;  %v1882_v63 = vrot.slane %v10687_v20, 6 }
 0x66e   : > { %4483 = vst [vmem:[#allocation1 + $0x22] ss:$4 sm:$0xff] %v1877_v19  ;;  %v10693_v19 = vpop.permute.xlu1 %3986 }
 0x66f   : > { %4484 = vst [vmem:[#allocation1 + $0x23] ss:$4 sm:$0xff] %v1878_v41  ;;  %v10695_v41 = vpop.permute.xlu2 %4006 }
 0x670   : > { %14141 = vst [vmem:[#allocation190_spill] sm:$0xff] %v10693_v19 }
 0x671   : > { %v4282_v47 = vld.sshfl [vmem:[#allocation1] sm:$0xff pattern:$0x73625140]  ;;  %14142 = vst [vmem:[#allocation191_spill] sm:$0xff] %v10695_v41  ;;  %v10707_v41 = vld [vmem:[%s8496_s26 + $0xc9] sm:$0xff] }
 0x672   : > { %4369 = vrot.lane.b32.xlu1 %v4282_v47, %s8436_s22  ;;  %4285 = vst [vmem:[#allocation1 + $0x1] ss:$4 sm:$0xff] %v10551_v29  ;;  %v1883_v29 = vrot.slane %v10690_v27, 2 }
 0x673   : > { %4286 = vst [vmem:[#allocation1 + $0x2] ss:$4 sm:$0xff] %v1733_v17  ;;  %v8154_v17 = vld [vmem:[%s8496_s26 + $0x1d8] sm:$0x3] }
 0x674   : > { %4287 = vst [vmem:[#allocation1 + $0x3] ss:$4 sm:$0xff] %v1734_v31  ;;  %v10703_v31 = vpop.permute.xlu0 %3978 }
 0x675   : > { %4284 = vst [vmem:[#allocation1] ss:$4 sm:$0xff] %v8151_v5 }
 0x676   : > { %v4486_v47 = vld.sshfl [vmem:[#allocation1 + $0x20] sm:$0xff pattern:$0x73625140]  ;;  %14143 = vst [vmem:[#allocation192_spill] sm:$0xff] %v10703_v31  ;;  %v10709_v19 = vpop.permute.xlu1 %3968 }
 0x677   : > { %4652 = vrot.lane.b32.xlu2 %v4486_v47, %s8434_s20  ;;  %4491 = vst [vmem:[#allocation1 + $0x20] ss:$4 sm:$0xff] %v1882_v63  ;;  %v10711_v54 = vpop.permute.xlu2 %3988  ;;  %v8155_v63 = vld [vmem:[%s8496_s26 + $0x31] sm:$0xff]  ;;  %v1888_v47 = vrot.slane %v10707_v41, 6 }
 0x678   : > { %4492 = vst [vmem:[#allocation1 + $0x21] ss:$4 sm:$0xff] %v8172_v1  ;;  %v1887_v1 = vrot.slane %v10707_v41, 4  ;;  %v1847_v31 = vrot.slane %v8155_v63, 2 }
 0x679   : > { %4493 = vst [vmem:[#allocation1 + $0x22] ss:$4 sm:$0xff] %v10690_v27 }
 0x67a   : > { %4494 = vst [vmem:[#allocation1 + $0x23] ss:$4 sm:$0xff] %v1883_v29 }
 0x67b   : > { %14144 = vst [vmem:[#allocation193_spill] sm:$0xff] %v10711_v54  ;;  %v8175_v54 = vld [vmem:[%s8496_s26 + $0xd1] sm:$0x3] }
 0x67c   : > { %v4292_v5 = vld.sshfl [vmem:[#allocation1] sm:$0xff pattern:$0x73625140]  ;;  %v10716_v29 = vpop.permute.xlu0 %3990 }
 0x67d   : > { %4373 = vrot.lane.b32.xlu0 %v4292_v5, %s8436_s22  ;;  %4294 = vst [vmem:[#allocation1] ss:$4 sm:$0xff] %v1738_v9  ;;  %v1848_v9 = vrot.slane %v8155_v63, 4  ;;  %v1849_v5 = vrot.slane %v8155_v63, 6 }
 0x67e   : > { %4295 = vst [vmem:[#allocation1 + $0x1] ss:$4 sm:$0xff] %v8154_v17  ;;  %v10721_v11 = vpop.permute.xlu1 %3998 }
 0x67f   : > { %14145 = vst [vmem:[#allocation194_spill] sm:$0xff] %v10716_v29  ;;  %v10723_v28 = vpop.permute.xlu2 %4018  ;;  %v10726_v29 = vld [vmem:[%s8496_s26 + $0xd9] sm:$0xff] }
 0x680   : > { %14146 = vst [vmem:[#allocation195_spill] sm:$0xff] %v10721_v11 }
 0x681   : > { %v4496_v39 = vld.sshfl [vmem:[#allocation1 + $0x20] sm:$0xff pattern:$0x73625140]  ;;  %14147 = vst [vmem:[#allocation196_spill] sm:$0xff] %v10723_v28 }
 0x682   : > { %4656 = vrot.lane.b32.xlu1 %v4496_v39, %s8434_s20  ;;  %4501 = vst [vmem:[#allocation1 + $0x20] ss:$4 sm:$0xff] %v1887_v1  ;;  %v1853_v1 = vrot.slane %v10586_v21, 2 }
 0x683   : > { %4502 = vst [vmem:[#allocation1 + $0x21] ss:$4 sm:$0xff] %v1888_v47 }
 0x684   : > { %4503 = vst [vmem:[#allocation1 + $0x22] ss:$4 sm:$0xff] %v8175_v54  ;;  %v10729_v39 = vpop.permute.xlu0 %3972 }
 0x685   : > { %v4296_v17 = vld.sshfl [vmem:[#allocation1] sm:$0xff pattern:$0x73625140]  ;;  %4504 = vst [vmem:[#allocation1 + $0x23] ss:$4 sm:$0xff] %v10726_v29 }
 0x686   : > { %4377 = vrot.lane.b32.xlu2 %v4296_v17, %s8436_s22  ;;  %4420 = vst [vmem:[#allocation1] ss:$4 sm:$0xff] %v8155_v63  ;;  %v10733_v63 = vld [vmem:[%s8496_s26 + $0xe1] sm:$0xff]  ;;  %v10740_v54 = vpop.permute.xlu1 %3980 }
 0x687   : > { %4422 = vst [vmem:[#allocation1 + $0x1] ss:$4 sm:$0xff] %v1847_v31  ;;  %v1854_v31 = vrot.slane %v10586_v21, 4  ;;  %v1892_v17 = vrot.slane %v10733_v63, 2  ;;  %v1893_v11 = vrot.slane %v10733_v63, 4  ;;  %v1894_v33 = vrot.slane %v10733_v63, 6 }
 0x688   : > { %4424 = vst [vmem:[#allocation1 + $0x2] ss:$4 sm:$0xff] %v1848_v9  ;;  %v8157_v9 = vld [vmem:[%s8496_s26 + $0x41] sm:$0x3] }
 0x689   : > { %4426 = vst [vmem:[#allocation1 + $0x3] ss:$4 sm:$0xff] %v1849_v5  ;;  %v10742_v5 = vpop.permute.xlu2 %4000 }
 0x68a   : > { %14148 = vst [vmem:[#allocation197_spill] sm:$0xff] %v10729_v39 }
 0x68b   : > { %14149 = vst [vmem:[#allocation198_spill] sm:$0xff] %v10740_v54  ;;  %v1858_v54 = vrot.slane %v10589_v10, 6 }
 0x68c   : > { %14150 = vst [vmem:[#allocation199_spill] sm:$0xff] %v10742_v5  ;;  %v4506_v28 = vld.sshfl [vmem:[#allocation1 + $0x20] sm:$0xff pattern:$0x73625140] }
 0x68d   : > { %4511 = vst [vmem:[#allocation1 + $0x20] ss:$4 sm:$0xff] %v1892_v17  ;;  %v8160_v17 = vld [vmem:[%s8496_s26 + $0x59] sm:$0x3] }
 0x68e   : > { %4512 = vst [vmem:[#allocation1 + $0x21] ss:$4 sm:$0xff] %v1893_v11  ;;  %v1899_v11 = vrot.slane %v8180_v32, 4 }
 0x68f   : > { %4513 = vst [vmem:[#allocation1 + $0x22] ss:$4 sm:$0xff] %v1894_v33  ;;  %v1898_v33 = vrot.slane %v8180_v32, 2 }
 0x690   : > { %v4435_v47 = vld.sshfl [vmem:[#allocation1] sm:$0xff pattern:$0x73625140] }
 0x691   : > { %4630 = vrot.lane.b32.xlu0 %v4435_v47, %s8434_s20  ;;  %4438 = vst [vmem:[#allocation1 + $0x1] ss:$4 sm:$0xff] %v10586_v21  ;;  %v8178_v47 = vld [vmem:[%s8496_s26 + $0xe9] sm:$0x3]  ;;  %v10747_v21 = vpop.permute.xlu0 %4002  ;;  %v10753_v5 = vpop.permute.xlu2 %4030 }
 0x692   : > { %4439 = vst [vmem:[#allocation1 + $0x2] ss:$4 sm:$0xff] %v1853_v1  ;;  %v10751_v1 = vpop.permute.xlu1 %4010 }
 0x693   : > { %4440 = vst [vmem:[#allocation1 + $0x3] ss:$4 sm:$0xff] %v1854_v31  ;;  %v1859_v31 = vrot.slane %v10607_v45, 2 }
 0x694   : > { %4437 = vst [vmem:[#allocation1] ss:$4 sm:$0xff] %v8157_v9 }
 0x695   : > { %14151 = vst [vmem:[#allocation200_spill] sm:$0xff] %v10747_v21 }
 0x696   : > { %4514 = vst [vmem:[#allocation1 + $0x23] ss:$4 sm:$0xff] %v8178_v47 }
 0x697   : > { %14152 = vst [vmem:[#allocation201_spill] sm:$0xff] %v10751_v1  ;;  %v10773_v1 = vld [vmem:[%s8496_s26 + $0x111] sm:$0xff] }
 0x698   : > { %14153 = vst [vmem:[#allocation202_spill] sm:$0xff] %v10753_v5  ;;  %v10770_v5 = vld [vmem:[%s8496_s26 + $0x109] sm:$0xff] }
 0x699   : > { %4660 = vrot.lane.b32.xlu0 %v4506_v28, %s8434_s20  ;;  %v1900_v28 = vrot.slane %v8180_v32, 6  ;;  %v10760_v47 = vpop.permute.xlu0 %3984 }
 0x69a   : > { %14154 = vst [vmem:[#allocation203_spill] sm:$0xff] %v10760_v47 }
 0x69b   : > { %v4445_v9 = vld.sshfl [vmem:[#allocation1] sm:$0xff pattern:$0x73625140] }
 0x69c   : > { %4634 = vrot.lane.b32.xlu2 %v4445_v9, %s8434_s20  ;;  %4447 = vst [vmem:[#allocation1] ss:$4 sm:$0xff] %v1858_v54  ;;  %v1863_v9 = vrot.slane %v10615_v48, 4  ;;  %v10763_v54 = vpop.permute.xlu1 %3992 }
 0x69d   : > { %4449 = vst [vmem:[#allocation1 + $0x2] ss:$4 sm:$0xff] %v10607_v45  ;;  %v4516_v10 = vld.sshfl [vmem:[#allocation1 + $0x20] sm:$0xff pattern:$0x73625140]  ;;  %v10765_v45 = vpop.permute.xlu2 %4012 }
 0x69e   : > { %4450 = vst [vmem:[#allocation1 + $0x3] ss:$4 sm:$0xff] %v1859_v31  ;;  %v1864_v31 = vrot.slane %v10615_v48, 6  ;;  %v1904_v48 = vrot.slane %v10773_v1, 2 }
 0x69f   : > { %4448 = vst [vmem:[#allocation1 + $0x1] ss:$4 sm:$0xff] %v8160_v17 }
 0x6a0   : > { %4521 = vst [vmem:[#allocation1 + $0x20] ss:$4 sm:$0xff] %v8180_v32  ;;  %v8163_v32 = vld [vmem:[%s8496_s26 + $0x71] sm:$0x3] }
 0x6a1   : > { %4522 = vst [vmem:[#allocation1 + $0x21] ss:$4 sm:$0xff] %v1898_v33  ;;  %v1903_v33 = vrot.slane %v10770_v5, 6 }
 0x6a2   : > { %4523 = vst [vmem:[#allocation1 + $0x22] ss:$4 sm:$0xff] %v1899_v11  ;;  %v10778_v11 = vpop.permute.xlu0 %4014 }
 0x6a3   : > { %4524 = vst [vmem:[#allocation1 + $0x23] ss:$4 sm:$0xff] %v1900_v28  ;;  %v1905_v28 = vrot.slane %v10773_v1, 4 }
 0x6a4   : > { %14155 = vst [vmem:[#allocation204_spill] sm:$0xff] %v10763_v54  ;;  %4664 = vrot.lane.b32.xlu2 %v4516_v10, %s8434_s20 }
 0x6a5   : > { %14156 = vst [vmem:[#allocation205_spill] sm:$0xff] %v10765_v45 }
 0x6a6   : > { %v4455_v17 = vld.sshfl [vmem:[#allocation1] sm:$0xff pattern:$0x73625140]  ;;  %14157 = vst [vmem:[#allocation206_spill] sm:$0xff] %v10778_v11  ;;  %v1870_v11 = vrot.slane %v10644_v30, 6 }
 0x6a7   : > { %4638 = vrot.lane.b32.xlu1 %v4455_v17, %s8434_s20  ;;  %4457 = vst [vmem:[#allocation1] ss:$4 sm:$0xff] %v1863_v9  ;;  %v10783_v17 = vpop.permute.xlu1 %4022  ;;  %v10785_v9 = vpop.permute.xlu2 %4042 }
 0x6a8   : > { %4458 = vst [vmem:[#allocation1 + $0x1] ss:$4 sm:$0xff] %v1864_v31  ;;  %v1868_v31 = vrot.slane %v10644_v30, 2 }
 0x6a9   : > { %4460 = vst [vmem:[#allocation1 + $0x3] ss:$4 sm:$0xff] %v10629_v25  ;;  %v1869_v25 = vrot.slane %v10644_v30, 4 }
 0x6aa   : > { %v4526_v10 = vld.sshfl [vmem:[#allocation1 + $0x20] sm:$0xff pattern:$0x73625140]  ;;  %4459 = vst [vmem:[#allocation1 + $0x2] ss:$4 sm:$0xff] %v8163_v32  ;;  %v10795_v45 = vpop.permute.xlu0 %3996 }
 0x6ab   : > { %4531 = vst [vmem:[#allocation1 + $0x20] ss:$4 sm:$0xff] %v1903_v33  ;;  %v10792_v32 = vld [vmem:[%s8496_s26 + $0x121] sm:$0xff] }
 0x6ac   : > { %14158 = vst [vmem:[#allocation207_spill] sm:$0xff] %v10783_v17 }
 0x6ad   : > { %14159 = vst [vmem:[#allocation208_spill] sm:$0xff] %v10785_v9  ;;  %v8166_v9 = vld [vmem:[%s8496_s26 + $0x89] sm:$0x3] }
 0x6ae   : > { %4532 = vst [vmem:[#allocation1 + $0x21] ss:$4 sm:$0xff] %v10773_v1 }
 0x6af   : > { %4533 = vst [vmem:[#allocation1 + $0x22] ss:$4 sm:$0xff] %v1904_v48  ;;  %4668 = vrot.lane.b32.xlu1 %v4526_v10, %s8434_s20  ;;  %v10800_v48 = vld [vmem:[%s8496_s26 + $0x129] sm:$0xff]  ;;  %v1909_v10 = vrot.slane %v10792_v32, 6  ;;  %v10805_v54 = vpop.permute.xlu1 %4004 }
 0x6b0   : > { %4534 = vst [vmem:[#allocation1 + $0x23] ss:$4 sm:$0xff] %v1905_v28  ;;  %v1908_v28 = vrot.slane %v10792_v32, 4  ;;  %v1910_v30 = vrot.slane %v10800_v48, 2 }
 0x6b1   : > { %v4465_v33 = vld.sshfl [vmem:[#allocation1] sm:$0xff pattern:$0x73625140]  ;;  %14160 = vst [vmem:[#allocation209_spill] sm:$0xff] %v10795_v45  ;;  %v10807_v45 = vpop.permute.xlu2 %4024 }
 0x6b2   : > { %4642 = vrot.lane.b32.xlu0 %v4465_v33, %s8434_s20  ;;  %4467 = vst [vmem:[#allocation1] ss:$4 sm:$0xff] %v1868_v31  ;;  %v8168_v31 = vld [vmem:[%s8496_s26 + $0x99] sm:$0xff]  ;;  %v10811_v33 = vpop.permute.xlu0 %4026 }
 0x6b3   : > { %4468 = vst [vmem:[#allocation1 + $0x1] ss:$4 sm:$0xff] %v1869_v25  ;;  %v1874_v25 = vrot.slane %v8168_v31, 2  ;;  %v1876_v21 = vrot.slane %v8168_v31, 6 }
 0x6b4   : > { %4469 = vst [vmem:[#allocation1 + $0x2] ss:$4 sm:$0xff] %v1870_v11  ;;  %v10815_v11 = vld [vmem:[%s8496_s26 + $0x139] sm:$0xff] }
 0x6b5   : > { %4470 = vst [vmem:[#allocation1 + $0x3] ss:$4 sm:$0xff] %v8166_v9  ;;  %v1875_v9 = vrot.slane %v8168_v31, 4 }
 0x6b6   : > { %14161 = vst [vmem:[#allocation210_spill] sm:$0xff] %v10805_v54  ;;  %v10826_v54 = vld [vmem:[%s8496_s26 + $0x141] sm:$0xff] }
 0x6b7   : > { %v4536_v17 = vld.sshfl [vmem:[#allocation1 + $0x20] sm:$0xff pattern:$0x73625140]  ;;  %14162 = vst [vmem:[#allocation211_spill] sm:$0xff] %v10807_v45 }
 0x6b8   : > { %4541 = vst [vmem:[#allocation1 + $0x20] ss:$4 sm:$0xff] %v1908_v28  ;;  %v1913_v28 = vrot.slane %v10815_v11, 2 }
 0x6b9   : > { %4542 = vst [vmem:[#allocation1 + $0x21] ss:$4 sm:$0xff] %v1909_v10  ;;  %v10819_v10 = vpop.permute.xlu1 %4034 }
 0x6ba   : > { %4543 = vst [vmem:[#allocation1 + $0x22] ss:$4 sm:$0xff] %v10800_v48  ;;  %4672 = vrot.lane.b32.xlu0 %v4536_v17, %s8434_s20  ;;  %v1915_v17 = vrot.slane %v10815_v11, 6 }
 0x6bb   : > { %4544 = vst [vmem:[#allocation1 + $0x23] ss:$4 sm:$0xff] %v1910_v30  ;;  %v1914_v30 = vrot.slane %v10815_v11, 4 }
 0x6bc   : > { %14163 = vst [vmem:[#allocation212_spill] sm:$0xff] %v10811_v33  ;;  %v4475_v47 = vld.sshfl [vmem:[#allocation1] sm:$0xff pattern:$0x73625140]  ;;  %v10823_v33 = vpop.permute.xlu2 %4299 }
 0x6bd   : > { %4646 = vrot.lane.b32.xlu2 %v4475_v47, %s8434_s20  ;;  %4477 = vst [vmem:[#allocation1] ss:$4 sm:$0xff] %v8168_v31  ;;  %v10828_v47 = vpop.permute.xlu0 %4008  ;;  %v1879_v31 = vrot.slane %v10668_v55, 6 }
 0x6be   : > { %14164 = vst [vmem:[#allocation213_spill] sm:$0xff] %v10819_v10  ;;  %v1881_v10 = vrot.slane %v10687_v20, 4 }
 0x6bf   : > { %4478 = vst [vmem:[#allocation1 + $0x1] ss:$4 sm:$0xff] %v1874_v25  ;;  %v1880_v25 = vrot.slane %v10687_v20, 2 }
 0x6c0   : > { %4479 = vst [vmem:[#allocation1 + $0x2] ss:$4 sm:$0xff] %v1875_v9  ;;  %v8191_v9 = vld [vmem:[%s8496_s26 + $0x151] sm:$0xff] }
 0x6c1   : > { %4480 = vst [vmem:[#allocation1 + $0x3] ss:$4 sm:$0xff] %v1876_v21  ;;  %v10836_v21 = vpop.permute.xlu1 %4016  ;;  %v1919_v55 = vrot.slane %v8191_v9, 2 }
 0x6c2   : > { %v4546_v45 = vld.sshfl [vmem:[#allocation1 + $0x20] sm:$0xff pattern:$0x73625140]  ;;  %14165 = vst [vmem:[#allocation214_spill] sm:$0xff] %v10828_v47 }
 0x6c3   : > { %4551 = vst [vmem:[#allocation1 + $0x20] ss:$4 sm:$0xff] %v1913_v28  ;;  %v1920_v28 = vrot.slane %v8191_v9, 4 }
 0x6c4   : > { %4552 = vst [vmem:[#allocation1 + $0x21] ss:$4 sm:$0xff] %v1914_v30  ;;  %v10838_v35 = vpop.permute.xlu2 %4036  ;;  %v1921_v30 = vrot.slane %v8191_v9, 6 }
 0x6c5   : > { %4553 = vst [vmem:[#allocation1 + $0x22] ss:$4 sm:$0xff] %v1915_v17  ;;  %4676 = vrot.lane.b32.xlu2 %v4546_v45, %s8434_s20  ;;  %v10842_v17 = vpop.permute.xlu0 %4038 }
 0x6c6   : > { %4554 = vst [vmem:[#allocation1 + $0x23] ss:$4 sm:$0xff] %v10826_v54 }
 0x6c7   : > { %14166 = vst [vmem:[#allocation215_spill] sm:$0xff] %v10836_v21  ;;  %v10853_v21 = vld [vmem:[%s8496_s26 + $0x169] sm:$0xff] }
 0x6c8   : > { %v4485_v6 = vld.sshfl [vmem:[#allocation1] sm:$0xff pattern:$0x73625140]  ;;  %14167 = vst [vmem:[#allocation216_spill] sm:$0xff] %v10838_v35  ;;  %v1884_v35 = vrot.slane %v10690_v27, 4 }
 0x6c9   : > { %4650 = vrot.lane.b32.xlu1 %v4485_v6, %s8434_s20  ;;  %4487 = vst [vmem:[#allocation1] ss:$4 sm:$0xff] %v1879_v31  ;;  %v10845_v6 = vpop.permute.xlu1 %4028 }
 0x6ca   : > { %4488 = vst [vmem:[#allocation1 + $0x1] ss:$4 sm:$0xff] %v10687_v20  ;;  %v1885_v20 = vrot.slane %v10690_v27, 6 }
 0x6cb   : > { %4489 = vst [vmem:[#allocation1 + $0x2] ss:$4 sm:$0xff] %v1880_v25 }
 0x6cc   : > { %4490 = vst [vmem:[#allocation1 + $0x3] ss:$4 sm:$0xff] %v1881_v10  ;;  %v10849_v31 = vpop.permute.xlu2 %4311  ;;  %v1886_v10 = vrot.slane %v10707_v41, 2 }
 0x6cd   : > { %v4556_v45 = vld.sshfl [vmem:[#allocation1 + $0x20] sm:$0xff pattern:$0x73625140]  ;;  %14168 = vst [vmem:[#allocation217_spill] sm:$0xff] %v10842_v17  ;;  %v10859_v27 = vpop.permute.xlu0 %4020 }
 0x6ce   : > { %4561 = vst [vmem:[#allocation1 + $0x20] ss:$4 sm:$0xff] %v8191_v9  ;;  %v8193_v9 = vld [vmem:[%s8496_s26 + $0x161] sm:$0x3] }
 0x6cf   : > { %4562 = vst [vmem:[#allocation1 + $0x21] ss:$4 sm:$0xff] %v1919_v55  ;;  %v1925_v55 = vrot.slane %v10853_v21, 2 }
 0x6d0   : > { %4563 = vst [vmem:[#allocation1 + $0x22] ss:$4 sm:$0xff] %v1920_v28 }
 0x6d1   : > { %4564 = vst [vmem:[#allocation1 + $0x23] ss:$4 sm:$0xff] %v1921_v30  ;;  %4680 = vrot.lane.b32.xlu1 %v4556_v45, %s8434_s20  ;;  %v1926_v45 = vrot.slane %v10853_v21, 4  ;;  %v10863_v30 = vpop.permute.xlu1 %4303 }
 0x6d2   : > { %14169 = vst [vmem:[#allocation218_spill] sm:$0xff] %v10845_v6 }
 0x6d3   : > { %14170 = vst [vmem:[#allocation219_spill] sm:$0xff] %v10849_v31  ;;  %v4495_v25 = vld.sshfl [vmem:[#allocation1] sm:$0xff pattern:$0x73625140] }
 0x6d4   : > { %4654 = vrot.lane.b32.xlu0 %v4495_v25, %s8434_s20  ;;  %4497 = vst [vmem:[#allocation1] ss:$4 sm:$0xff] %v1884_v35  ;;  %v10865_v35 = vpop.permute.xlu2 %4323  ;;  %v1891_v25 = vrot.slane %v10726_v29, 6 }
 0x6d5   : > { %4498 = vst [vmem:[#allocation1 + $0x1] ss:$4 sm:$0xff] %v1885_v20  ;;  %v1890_v20 = vrot.slane %v10726_v29, 4  ;;  %v10874_v6 = vpop.permute.xlu0 %4032 }
 0x6d6   : > { %4499 = vst [vmem:[#allocation1 + $0x2] ss:$4 sm:$0xff] %v10707_v41  ;;  %v1889_v41 = vrot.slane %v10726_v29, 2 }
 0x6d7   : > { %14171 = vst [vmem:[#allocation220_spill] sm:$0xff] %v10859_v27 }
 0x6d8   : > { %4500 = vst [vmem:[#allocation1 + $0x3] ss:$4 sm:$0xff] %v1886_v10  ;;  %v4566_v28 = vld.sshfl [vmem:[#allocation1 + $0x20] sm:$0xff pattern:$0x73625140]  ;;  %v10871_v10 = vld [vmem:[%s8496_s26 + $0x171] sm:$0xff] }
 0x6d9   : > { %4571 = vst [vmem:[#allocation1 + $0x20] ss:$4 sm:$0xff] %v8193_v9  ;;  %v1930_v27 = vrot.slane %v10871_v10, 6  ;;  %v10884_v47 = vpop.permute.xlu1 %4040 }
 0x6da   : > { %4572 = vst [vmem:[#allocation1 + $0x21] ss:$4 sm:$0xff] %v10853_v21 }
 0x6db   : > { %4573 = vst [vmem:[#allocation1 + $0x22] ss:$4 sm:$0xff] %v1925_v55  ;;  %v10878_v55 = vld [vmem:[%s8496_s26 + $0x181] sm:$0xff] }
 0x6dc   : > { %14172 = vst [vmem:[#allocation221_spill] sm:$0xff] %v10865_v35  ;;  %4684 = vrot.lane.b32.xlu0 %v4566_v28, %s8434_s20  ;;  %v1931_v29 = vrot.slane %v10878_v55, 2  ;;  %v10886_v17 = vpop.permute.xlu2 %4305 }
 0x6dd   : > { %4574 = vst [vmem:[#allocation1 + $0x23] ss:$4 sm:$0xff] %v1926_v45  ;;  %v8196_v45 = vld [vmem:[%s8496_s26 + $0x179] sm:$0x3] }
 0x6de   : > { %14173 = vst [vmem:[#allocation222_spill] sm:$0xff] %v10874_v6 }
 0x6df   : > { %v4505_v9 = vld.sshfl [vmem:[#allocation1] sm:$0xff pattern:$0x73625140]  ;;  %14174 = vst [vmem:[#allocation223_spill] sm:$0xff] %v10884_v47 }
 0x6e0   : > { %4658 = vrot.lane.b32.xlu2 %v4505_v9, %s8434_s20  ;;  %4507 = vst [vmem:[#allocation1] ss:$4 sm:$0xff] %v1889_v41  ;;  %v8179_v41 = vld [vmem:[%s8496_s26 + $0xf1] sm:$0xff]  ;;  %v10894_v9 = vpop.permute.xlu0 %4307 }
 0x6e1   : > { %4508 = vst [vmem:[#allocation1 + $0x1] ss:$4 sm:$0xff] %v1890_v20  ;;  %v1895_v20 = vrot.slane %v8179_v41, 2  ;;  %v1897_v47 = vrot.slane %v8179_v41, 6 }
 0x6e2   : > { %4509 = vst [vmem:[#allocation1 + $0x2] ss:$4 sm:$0xff] %v1891_v25  ;;  %v10892_v25 = vld [vmem:[%s8496_s26 + $0x189] sm:$0xff] }
 0x6e3   : > { %4510 = vst [vmem:[#allocation1 + $0x3] ss:$4 sm:$0xff] %v10733_v63  ;;  %v1896_v63 = vrot.slane %v8179_v41, 4 }
 0x6e4   : > { %v4576_v28 = vld.sshfl [vmem:[#allocation1 + $0x20] sm:$0xff pattern:$0x73625140]  ;;  %14175 = vst [vmem:[#allocation224_spill] sm:$0xff] %v10886_v17  ;;  %v10902_v35 = vpop.permute.xlu2 %4335 }
 0x6e5   : > { %4581 = vst [vmem:[#allocation1 + $0x20] ss:$4 sm:$0xff] %v1930_v27  ;;  %v1935_v27 = vrot.slane %v10892_v25, 4 }
 0x6e6   : > { %4582 = vst [vmem:[#allocation1 + $0x21] ss:$4 sm:$0xff] %v8196_v45  ;;  %v1936_v45 = vrot.slane %v10892_v25, 6 }
 0x6e7   : > { %4583 = vst [vmem:[#allocation1 + $0x22] ss:$4 sm:$0xff] %v10878_v55 }
 0x6e8   : > { %4584 = vst [vmem:[#allocation1 + $0x23] ss:$4 sm:$0xff] %v1931_v29  ;;  %4688 = vrot.lane.b32.xlu2 %v4576_v28, %s8434_s20  ;;  %v8199_v28 = vld [vmem:[%s8496_s26 + $0x191] sm:$0x3]  ;;  %v10900_v29 = vpop.permute.xlu1 %4315 }
 0x6e9   : > { %14176 = vst [vmem:[#allocation225_spill] sm:$0xff] %v10894_v9  ;;  %v8204_v9 = vld [vmem:[%s8496_s26 + $0x1b9] sm:$0xff] }
 0x6ea   : > { %v4515_v6 = vld.sshfl [vmem:[#allocation1] sm:$0xff pattern:$0x73625140]  ;;  %14177 = vst [vmem:[#allocation226_spill] sm:$0xff] %v10900_v29 }
 0x6eb   : > { %4662 = vrot.lane.b32.xlu1 %v4515_v6, %s8434_s20  ;;  %4517 = vst [vmem:[#allocation1] ss:$4 sm:$0xff] %v8179_v41  ;;  %v10907_v6 = vpop.permute.xlu0 %4044  ;;  %v1901_v41 = vrot.slane %v10770_v5, 2 }
 0x6ec   : > { %4518 = vst [vmem:[#allocation1 + $0x1] ss:$4 sm:$0xff] %v1895_v20  ;;  %v10913_v20 = vld [vmem:[%s8496_s26 + $0x1a1] sm:$0xff] }
 0x6ed   : > { %4519 = vst [vmem:[#allocation1 + $0x2] ss:$4 sm:$0xff] %v1896_v63  ;;  %v1902_v63 = vrot.slane %v10770_v5, 4 }
 0x6ee   : > { %14178 = vst [vmem:[#allocation227_spill] sm:$0xff] %v10902_v35 }
 0x6ef   : > { %v4586_v31 = vld.sshfl [vmem:[#allocation1 + $0x20] sm:$0xff pattern:$0x73625140]  ;;  %4520 = vst [vmem:[#allocation1 + $0x3] ss:$4 sm:$0xff] %v1897_v47  ;;  %v10916_v47 = vpop.permute.xlu2 %4317 }
 0x6f0   : > { %4591 = vst [vmem:[#allocation1 + $0x20] ss:$4 sm:$0xff] %v1935_v27  ;;  %v8181_v27 = vld [vmem:[%s8496_s26 + $0x101] sm:$0x3] }
 0x6f1   : > { %4592 = vst [vmem:[#allocation1 + $0x21] ss:$4 sm:$0xff] %v1936_v45  ;;  %v1940_v45 = vrot.slane %v10913_v20, 2 }
 0x6f2   : > { %4593 = vst [vmem:[#allocation1 + $0x22] ss:$4 sm:$0xff] %v8199_v28  ;;  %v1941_v28 = vrot.slane %v10913_v20, 4 }
 0x6f3   : > { %14179 = vst [vmem:[#allocation228_spill] sm:$0xff] %v10907_v6  ;;  %4692 = vrot.lane.b32.xlu1 %v4586_v31, %s8434_s20  ;;  %v10923_v31 = vpop.permute.xlu1 %4297  ;;  %v1942_v6 = vrot.slane %v10913_v20, 6 }
 0x6f4   : > { %4594 = vst [vmem:[#allocation1 + $0x23] ss:$4 sm:$0xff] %v10905_v3 }
 0x6f5   : > { %14180 = vst [vmem:[#allocation229_spill] sm:$0xff] %v10916_v47  ;;  %v8202_v47 = vld [vmem:[%s8496_s26 + $0x1a9] sm:$0x3] }
 0x6f6   : > { %v4525_v35 = vld.sshfl [vmem:[#allocation1] sm:$0xff pattern:$0x73625140] }
 0x6f7   : > { %4666 = vrot.lane.b32.xlu0 %v4525_v35, %s8434_s20  ;;  %4528 = vst [vmem:[#allocation1 + $0x1] ss:$4 sm:$0xff] %v10770_v5  ;;  %v10927_v35 = vpop.permute.xlu0 %4319  ;;  %v1906_v5 = vrot.slane %v10773_v1, 6  ;;  %v1947_v1 = vrot.slane %v8204_v9, 4 }
 0x6f8   : > { %4529 = vst [vmem:[#allocation1 + $0x2] ss:$4 sm:$0xff] %v1901_v41  ;;  %v1907_v41 = vrot.slane %v10792_v32, 2 }
 0x6f9   : > { %4530 = vst [vmem:[#allocation1 + $0x3] ss:$4 sm:$0xff] %v1902_v63  ;;  %v10933_v63 = vpop.permute.xlu2 %4347 }
 0x6fa   : > { %4527 = vst [vmem:[#allocation1] ss:$4 sm:$0xff] %v8181_v27  ;;  %v8184_v27 = vld [vmem:[%s8496_s26 + $0x119] sm:$0x3] }
 0x6fb   : > { %v4596_v29 = vld.sshfl [vmem:[#allocation1 + $0x20] sm:$0xff pattern:$0x73625140]  ;;  %14181 = vst [vmem:[#allocation230_spill] sm:$0xff] %v10927_v35 }
 0x6fc   : > { %4601 = vst [vmem:[#allocation1 + $0x20] ss:$4 sm:$0xff] %v1940_v45  ;;  %v10937_v45 = vpop.permute.xlu1 %4327 }
 0x6fd   : > { %4602 = vst [vmem:[#allocation1 + $0x21] ss:$4 sm:$0xff] %v1941_v28 }
 0x6fe   : > { %4603 = vst [vmem:[#allocation1 + $0x22] ss:$4 sm:$0xff] %v1942_v6  ;;  %v1946_v6 = vrot.slane %v8204_v9, 2 }
 0x6ff   : > { %4604 = vst [vmem:[#allocation1 + $0x23] ss:$4 sm:$0xff] %v8202_v47  ;;  %4696 = vrot.lane.b32.xlu0 %v4596_v29, %s8434_s20  ;;  %v1948_v47 = vrot.slane %v8204_v9, 6  ;;  %v10940_v28 = vpop.permute.xlu0 %4301 }
 0x700   : > { %14182 = vst [vmem:[#allocation231_spill] sm:$0xff] %v10933_v63 }
 0x701   : > { %v4535_v42 = vld.sshfl [vmem:[#allocation1] sm:$0xff pattern:$0x73625140]  ;;  %14183 = vst [vmem:[#allocation232_spill] sm:$0xff] %v10937_v45  ;;  %v10953_v45 = vld [vmem:[%s8496_s26 + $0x1d1] sm:$0xff] }
 0x702   : > { %4670 = vrot.lane.b32.xlu2 %v4535_v42, %s8434_s20  ;;  %4537 = vst [vmem:[#allocation1] ss:$4 sm:$0xff] %v1906_v5  ;;  %v10942_v42 = vpop.permute.xlu2 %4329  ;;  %v1911_v5 = vrot.slane %v10800_v48, 4 }
 0x703   : > { %4539 = vst [vmem:[#allocation1 + $0x2] ss:$4 sm:$0xff] %v10792_v32  ;;  %v1912_v32 = vrot.slane %v10800_v48, 6  ;;  %v1952_v48 = vrot.slane %v10953_v45, 2 }
 0x704   : > { %4540 = vst [vmem:[#allocation1 + $0x3] ss:$4 sm:$0xff] %v1907_v41  ;;  %v10948_v41 = vld [vmem:[%s8496_s26 + $0x1c9] sm:$0xff]  ;;  %v10950_v63 = vpop.permute.xlu1 %4309 }
 0x705   : > { %4538 = vst [vmem:[#allocation1 + $0x1] ss:$4 sm:$0xff] %v8184_v27 }
 0x706   : > { %v4606_v29 = vld.sshfl [vmem:[#allocation1 + $0x20] sm:$0xff pattern:$0x73625140]  ;;  %14184 = vst [vmem:[#allocation233_spill] sm:$0xff] %v10942_v42 }
 0x707   : > { %4611 = vst [vmem:[#allocation1 + $0x20] ss:$4 sm:$0xff] %v8204_v9  ;;  %v8187_v9 = vld [vmem:[%s8496_s26 + $0x131] sm:$0x3]  ;;  %v8210_v42 = vld [vmem:[%s8496_s26 + $0x3a] sm:$0xff] }
 0x708   : > { %4612 = vst [vmem:[#allocation1 + $0x21] ss:$4 sm:$0xff] %v1946_v6  ;;  %v1951_v6 = vrot.slane %v10948_v41, 6 }
 0x709   : > { %4613 = vst [vmem:[#allocation1 + $0x22] ss:$4 sm:$0xff] %v1947_v1 }
 0x70a   : > { %4614 = vst [vmem:[#allocation1 + $0x23] ss:$4 sm:$0xff] %v1948_v47  ;;  %4700 = vrot.lane.b32.xlu2 %v4606_v29, %s8434_s20  ;;  %v1953_v29 = vrot.slane %v10953_v45, 4  ;;  %v10961_v47 = vpop.permute.xlu0 %4331 }
 0x70b   : > { %14185 = vst [vmem:[#allocation234_spill] sm:$0xff] %v10950_v63  ;;  %v10987_v63 = vld [vmem:[%s8496_s26 + $0x52] sm:$0xff] }
 0x70c   : > { %v4545_v27 = vld.sshfl [vmem:[#allocation1] sm:$0xff pattern:$0x73625140]  ;;  %14186 = vst [vmem:[#allocation235_spill] sm:$0xff] %v10961_v47 }
 0x70d   : > { %4674 = vrot.lane.b32.xlu1 %v4545_v27, %s8434_s20  ;;  %4547 = vst [vmem:[#allocation1] ss:$4 sm:$0xff] %v1911_v5  ;;  %v10964_v5 = vpop.permute.xlu2 %4359  ;;  %v1917_v27 = vrot.slane %v10826_v54, 4 }
 0x70e   : > { %4548 = vst [vmem:[#allocation1 + $0x1] ss:$4 sm:$0xff] %v1912_v32  ;;  %v1916_v32 = vrot.slane %v10826_v54, 2 }
 0x70f   : > { %4550 = vst [vmem:[#allocation1 + $0x3] ss:$4 sm:$0xff] %v10815_v11  ;;  %v10967_v11 = vpop.permute.xlu1 %4339 }
 0x710   : > { %4549 = vst [vmem:[#allocation1 + $0x2] ss:$4 sm:$0xff] %v8187_v9  ;;  %v1918_v9 = vrot.slane %v10826_v54, 6  ;;  %v2068_v54 = vrot.slane %v8210_v42, 6 }
 0x711   : > { %v4616_v1 = vld.sshfl [vmem:[#allocation1 + $0x20] sm:$0xff pattern:$0x73625140]  ;;  %14187 = vst [vmem:[#allocation236_spill] sm:$0xff] %v10964_v5 }
 0x712   : > { %4621 = vst [vmem:[#allocation1 + $0x20] ss:$4 sm:$0xff] %v1951_v6  ;;  %v8190_v6 = vld [vmem:[%s8496_s26 + $0x149] sm:$0x3]  ;;  %v10975_v5 = vpop.permute.xlu0 %4313 }
 0x713   : > { %4622 = vst [vmem:[#allocation1 + $0x21] ss:$4 sm:$0xff] %v10953_v45 }
 0x714   : > { %4623 = vst [vmem:[#allocation1 + $0x22] ss:$4 sm:$0xff] %v1952_v48  ;;  %v2066_v48 = vrot.slane %v8210_v42, 2 }
 0x715   : > { %4624 = vst [vmem:[#allocation1 + $0x23] ss:$4 sm:$0xff] %v1953_v29  ;;  %4704 = vrot.lane.b32.xlu1 %v4616_v1, %s8434_s20  ;;  %v2067_v29 = vrot.slane %v8210_v42, 4  ;;  %v10977_v47 = vpop.permute.xlu2 %4341 }
 0x716   : > { %14188 = vst [vmem:[#allocation237_spill] sm:$0xff] %v10967_v11 }
 0x717   : > { %v4555_v35 = vld.sshfl [vmem:[#allocation1] sm:$0xff pattern:$0x73625140]  ;;  %14189 = vst [vmem:[#allocation238_spill] sm:$0xff] %v10975_v5  ;;  %v10979_v11 = vpop.permute.xlu1 %4321 }
 0x718   : > { %4678 = vrot.lane.b32.xlu0 %v4555_v35, %s8434_s20  ;;  %4557 = vst [vmem:[#allocation1] ss:$4 sm:$0xff] %v1916_v32  ;;  %v8192_v35 = vld [vmem:[%s8496_s26 + $0x159] sm:$0xff]  ;;  %v10984_v32 = vld [vmem:[%s8496_s26 + $0x4a] sm:$0xff] }
 0x719   : > { %4558 = vst [vmem:[#allocation1 + $0x1] ss:$4 sm:$0xff] %v1917_v27  ;;  %v1922_v27 = vrot.slane %v8192_v35, 2 }
 0x71a   : > { %4559 = vst [vmem:[#allocation1 + $0x2] ss:$4 sm:$0xff] %v1918_v9  ;;  %v1923_v9 = vrot.slane %v8192_v35, 4  ;;  %v10989_v4 = vpop.permute.xlu0 %4343 }
 0x71b   : > { %14190 = vst [vmem:[#allocation239_spill] sm:$0xff] %v10977_v47  ;;  %v1924_v47 = vrot.slane %v8192_v35, 6 }
 0x71c   : > { %v4626_v1 = vld.sshfl [vmem:[#allocation1 + $0x20] sm:$0xff pattern:$0x73625140]  ;;  %4560 = vst [vmem:[#allocation1 + $0x3] ss:$4 sm:$0xff] %v8190_v6 }
 0x71d   : > { %4761 = vst [vmem:[#allocation1 + $0x20] ss:$4 sm:$0xff] %v8210_v42  ;;  %v2071_v42 = vrot.slane %v10984_v32, 6  ;;  %v10993_v6 = vpop.permute.xlu2 %4371 }
 0x71e   : > { %14191 = vst [vmem:[#allocation240_spill] sm:$0xff] %v10979_v11 }
 0x71f   : > { %4763 = vst [vmem:[#allocation1 + $0x21] ss:$4 sm:$0xff] %v2066_v48  ;;  %v2072_v48 = vrot.slane %v10987_v63, 2 }
 0x720   : > { %4765 = vst [vmem:[#allocation1 + $0x22] ss:$4 sm:$0xff] %v2067_v29  ;;  %4708 = vrot.lane.b32.xlu0 %v4626_v1, %s8434_s20  ;;  %v2073_v1 = vrot.slane %v10987_v63, 4 }
 0x721   : > { %4767 = vst [vmem:[#allocation1 + $0x23] ss:$4 sm:$0xff] %v2068_v54  ;;  %v10997_v54 = vpop.permute.xlu1 %4351 }
 0x722   : > { %14192 = vst [vmem:[#allocation241_spill] sm:$0xff] %v10989_v4 }
 0x723   : > { %v4565_v5 = vld.sshfl [vmem:[#allocation1] sm:$0xff pattern:$0x73625140]  ;;  %14193 = vst [vmem:[#allocation242_spill] sm:$0xff] %v10993_v6 }
 0x724   : > { %4682 = vrot.lane.b32.xlu2 %v4565_v5, %s8434_s20  ;;  %4567 = vst [vmem:[#allocation1] ss:$4 sm:$0xff] %v8192_v35  ;;  %v1927_v5 = vrot.slane %v10853_v21, 6  ;;  %v11002_v35 = vpop.permute.xlu0 %4325 }
 0x725   : > { %4568 = vst [vmem:[#allocation1 + $0x1] ss:$4 sm:$0xff] %v1922_v27  ;;  %v11005_v27 = vld [vmem:[%s8496_s26 + $0x62] sm:$0xff] }
 0x726   : > { %4569 = vst [vmem:[#allocation1 + $0x2] ss:$4 sm:$0xff] %v1923_v9  ;;  %v1928_v9 = vrot.slane %v10871_v10, 2 }
 0x727   : > { %4570 = vst [vmem:[#allocation1 + $0x3] ss:$4 sm:$0xff] %v1924_v47  ;;  %v11008_v47 = vpop.permute.xlu2 %4353 }
 0x728   : > { %v4769_v29 = vld.sshfl [vmem:[#allocation1 + $0x20] sm:$0xff pattern:$0x73625140]  ;;  %14194 = vst [vmem:[#allocation243_spill] sm:$0xff] %v10997_v54  ;;  %v1929_v54 = vrot.slane %v10871_v10, 4 }
 0x729   : > { %4774 = vst [vmem:[#allocation1 + $0x20] ss:$4 sm:$0xff] %v2071_v42  ;;  %4965 = vrot.lane.b32.xlu0 %v4769_v29, %s8441_s6  ;;  %v11013_v29 = vld [vmem:[%s8496_s26 + $0x6a] sm:$0xff]  ;;  %v11016_v21 = vpop.permute.xlu1 %4333 }
 0x72a   : > { %4775 = vst [vmem:[#allocation1 + $0x21] ss:$4 sm:$0xff] %v10987_v63 }
 0x72b   : > { %4776 = vst [vmem:[#allocation1 + $0x22] ss:$4 sm:$0xff] %v2072_v48  ;;  %v2076_v48 = vrot.slane %v11005_v27, 4 }
 0x72c   : > { %4777 = vst [vmem:[#allocation1 + $0x23] ss:$4 sm:$0xff] %v2073_v1  ;;  %v2077_v1 = vrot.slane %v11005_v27, 6 }
 0x72d   : > { %14195 = vst [vmem:[#allocation244_spill] sm:$0xff] %v11002_v35  ;;  %v1932_v35 = vrot.slane %v10878_v55, 4 }
 0x72e   : > { %14196 = vst [vmem:[#allocation245_spill] sm:$0xff] %v11008_v47  ;;  %v4575_v42 = vld.sshfl [vmem:[#allocation1] sm:$0xff pattern:$0x73625140]  ;;  %v2078_v47 = vrot.slane %v11013_v29, 2 }
 0x72f   : > { %4686 = vrot.lane.b32.xlu1 %v4575_v42, %s8434_s20  ;;  %4577 = vst [vmem:[#allocation1] ss:$4 sm:$0xff] %v1927_v5  ;;  %v11023_v5 = vpop.permute.xlu0 %4355  ;;  %v11025_v42 = vpop.permute.xlu2 %4640 }
 0x730   : > { %14197 = vst [vmem:[#allocation246_spill] sm:$0xff] %v11016_v21 }
 0x731   : > { %4578 = vst [vmem:[#allocation1 + $0x1] ss:$4 sm:$0xff] %v10871_v10  ;;  %v1933_v10 = vrot.slane %v10878_v55, 6 }
 0x732   : > { %4579 = vst [vmem:[#allocation1 + $0x2] ss:$4 sm:$0xff] %v1928_v9  ;;  %v11030_v9 = vld [vmem:[%s8496_s26 + $0x7a] sm:$0xff] }
 0x733   : > { %v4779_v4 = vld.sshfl [vmem:[#allocation1 + $0x20] sm:$0xff pattern:$0x73625140]  ;;  %4580 = vst [vmem:[#allocation1 + $0x3] ss:$4 sm:$0xff] %v1929_v54  ;;  %v1934_v54 = vrot.slane %v10892_v25, 2 }
 0x734   : > { %4969 = vrot.lane.b32.xlu2 %v4779_v4, %s8441_s6  ;;  %4784 = vst [vmem:[#allocation1 + $0x20] ss:$4 sm:$0xff] %v2076_v48  ;;  %v11033_v4 = vpop.permute.xlu1 %4363  ;;  %v2081_v48 = vrot.slane %v11030_v9, 2  ;;  %v2083_v55 = vrot.slane %v11030_v9, 6 }
 0x735   : > { %4785 = vst [vmem:[#allocation1 + $0x21] ss:$4 sm:$0xff] %v2077_v1  ;;  %v2082_v1 = vrot.slane %v11030_v9, 4 }
 0x736   : > { %4786 = vst [vmem:[#allocation1 + $0x22] ss:$4 sm:$0xff] %v11013_v29 }
 0x737   : > { %14198 = vst [vmem:[#allocation247_spill] sm:$0xff] %v11023_v5  ;;  %v11040_v5 = vpop.permute.xlu0 %4337 }
 0x738   : > { %14199 = vst [vmem:[#allocation248_spill] sm:$0xff] %v11025_v42 }
 0x739   : > { %4787 = vst [vmem:[#allocation1 + $0x23] ss:$4 sm:$0xff] %v2078_v47 }
 0x73a   : > { %v4585_v6 = vld.sshfl [vmem:[#allocation1] sm:$0xff pattern:$0x73625140]  ;;  %14200 = vst [vmem:[#allocation249_spill] sm:$0xff] %v11033_v4 }
 0x73b   : > { %4690 = vrot.lane.b32.xlu0 %v4585_v6, %s8434_s20  ;;  %4587 = vst [vmem:[#allocation1] ss:$4 sm:$0xff] %v1932_v35  ;;  %v11044_v4 = vld [vmem:[%s8496_s26 + $0x82] sm:$0xff]  ;;  %v11046_v6 = vpop.permute.xlu2 %4365  ;;  %v1937_v35 = vrot.slane %v10905_v3, 2 }
 0x73c   : > { %4588 = vst [vmem:[#allocation1 + $0x1] ss:$4 sm:$0xff] %v1933_v10  ;;  %v1938_v10 = vrot.slane %v10905_v3, 4 }
 0x73d   : > { %4589 = vst [vmem:[#allocation1 + $0x2] ss:$4 sm:$0xff] %v10892_v25  ;;  %v11050_v25 = vpop.permute.xlu1 %4345 }
 0x73e   : > { %4590 = vst [vmem:[#allocation1 + $0x3] ss:$4 sm:$0xff] %v1934_v54  ;;  %v1939_v54 = vrot.slane %v10905_v3, 6  ;;  %v8203_v3 = vld [vmem:[%s8496_s26 + $0x1b1] sm:$0xff] }
 0x73f   : > { %14201 = vst [vmem:[#allocation250_spill] sm:$0xff] %v11040_v5  ;;  %v8221_v5 = vld [vmem:[%s8496_s26 + $0x92] sm:$0xff] }
 0x740   : > { %v4789_v47 = vld.sshfl [vmem:[#allocation1 + $0x20] sm:$0xff pattern:$0x73625140]  ;;  %14202 = vst [vmem:[#allocation251_spill] sm:$0xff] %v11046_v6  ;;  %v2089_v11 = vrot.slane %v8221_v5, 6 }
 0x741   : > { %4973 = vrot.lane.b32.xlu1 %v4789_v47, %s8441_s6  ;;  %4794 = vst [vmem:[#allocation1 + $0x20] ss:$4 sm:$0xff] %v2081_v48  ;;  %v2087_v48 = vrot.slane %v8221_v5, 2 }
 0x742   : > { %4795 = vst [vmem:[#allocation1 + $0x21] ss:$4 sm:$0xff] %v2082_v1  ;;  %v2088_v1 = vrot.slane %v8221_v5, 4 }
 0x743   : > { %4796 = vst [vmem:[#allocation1 + $0x22] ss:$4 sm:$0xff] %v2083_v55  ;;  %v11056_v55 = vpop.permute.xlu0 %4367  ;;  %v11058_v6 = vpop.permute.xlu2 %4652 }
 0x744   : > { %4797 = vst [vmem:[#allocation1 + $0x23] ss:$4 sm:$0xff] %v11044_v4 }
 0x745   : > { %14203 = vst [vmem:[#allocation252_spill] sm:$0xff] %v11050_v25  ;;  %v4595_v47 = vld.sshfl [vmem:[#allocation1] sm:$0xff pattern:$0x73625140] }
 0x746   : > { %4694 = vrot.lane.b32.xlu2 %v4595_v47, %s8434_s20  ;;  %4597 = vst [vmem:[#allocation1] ss:$4 sm:$0xff] %v1937_v35  ;;  %v11063_v35 = vpop.permute.xlu1 %4375 }
 0x747   : > { %4598 = vst [vmem:[#allocation1 + $0x1] ss:$4 sm:$0xff] %v1938_v10  ;;  %v1943_v10 = vrot.slane %v8203_v3, 2 }
 0x748   : > { %4599 = vst [vmem:[#allocation1 + $0x2] ss:$4 sm:$0xff] %v1939_v54  ;;  %v1944_v54 = vrot.slane %v8203_v3, 4 }
 0x749   : > { %14204 = vst [vmem:[#allocation253_spill] sm:$0xff] %v11056_v55  ;;  %v11066_v55 = vld [vmem:[%s8496_s26 + $0xaa] sm:$0xff] }
 0x74a   : > { %14205 = vst [vmem:[#allocation254_spill] sm:$0xff] %v11058_v6  ;;  %v1945_v6 = vrot.slane %v8203_v3, 6 }
 0x74b   : > { %v4799_v25 = vld.sshfl [vmem:[#allocation1 + $0x20] sm:$0xff pattern:$0x73625140]  ;;  %4600 = vst [vmem:[#allocation1 + $0x3] ss:$4 sm:$0xff] %v10913_v20  ;;  %v11068_v21 = vpop.permute.xlu0 %4349 }
 0x74c   : > { %4977 = vrot.lane.b32.xlu0 %v4799_v25, %s8441_s6  ;;  %4804 = vst [vmem:[#allocation1 + $0x20] ss:$4 sm:$0xff] %v8221_v5  ;;  %v8223_v20 = vld [vmem:[%s8496_s26 + $0xa2] sm:$0x3]  ;;  %v11072_v5 = vpop.permute.xlu2 %4377  ;;  %v2093_v25 = vrot.slane %v11066_v55, 2 }
 0x74d   : > { %4805 = vst [vmem:[#allocation1 + $0x21] ss:$4 sm:$0xff] %v2087_v48  ;;  %v2094_v48 = vrot.slane %v11066_v55, 4 }
 0x74e   : > { %4806 = vst [vmem:[#allocation1 + $0x22] ss:$4 sm:$0xff] %v2088_v1  ;;  %v11078_v1 = vpop.permute.xlu1 %4632 }
 0x74f   : > { %14206 = vst [vmem:[#allocation255_spill] sm:$0xff] %v11063_v35 }
 0x750   : > { %4807 = vst [vmem:[#allocation1 + $0x23] ss:$4 sm:$0xff] %v2089_v11 }
 0x751   : > { %14207 = vst [vmem:[#allocation256_spill] sm:$0xff] %v11068_v21 }
 0x752   : > { %v4605_v47 = vld.sshfl [vmem:[#allocation1] sm:$0xff pattern:$0x73625140]  ;;  %14208 = vst [vmem:[#allocation257_spill] sm:$0xff] %v11072_v5  ;;  %v8226_v5 = vld [vmem:[%s8496_s26 + $0xba] sm:$0x3] }
 0x753   : > { %4698 = vrot.lane.b32.xlu1 %v4605_v47, %s8434_s20  ;;  %4607 = vst [vmem:[#allocation1] ss:$4 sm:$0xff] %v8203_v3  ;;  %v11080_v3 = vpop.permute.xlu0 %4636  ;;  %v1950_v47 = vrot.slane %v10948_v41, 4 }
 0x754   : > { %4608 = vst [vmem:[#allocation1 + $0x1] ss:$4 sm:$0xff] %v1943_v10  ;;  %v1949_v10 = vrot.slane %v10948_v41, 2 }
 0x755   : > { %4609 = vst [vmem:[#allocation1 + $0x2] ss:$4 sm:$0xff] %v1944_v54  ;;  %v11084_v54 = vld [vmem:[%s8496_s26 + $0xb2] sm:$0xff] }
 0x756   : > { %4610 = vst [vmem:[#allocation1 + $0x3] ss:$4 sm:$0xff] %v1945_v6  ;;  %v11087_v6 = vpop.permute.xlu2 %4634 }
 0x757   : > { %v4809_v11 = vld.sshfl [vmem:[#allocation1 + $0x20] sm:$0xff pattern:$0x73625140] }
 0x758   : > { %4981 = vrot.lane.b32.xlu2 %v4809_v11, %s8441_s6  ;;  %4814 = vst [vmem:[#allocation1 + $0x20] ss:$4 sm:$0xff] %v8223_v20  ;;  %v11092_v20 = vld [vmem:[%s8496_s26 + $0xc2] sm:$0xff] }
 0x759   : > { %4815 = vst [vmem:[#allocation1 + $0x21] ss:$4 sm:$0xff] %v11066_v55  ;;  %v2099_v21 = vrot.slane %v11092_v20, 2 }
 0x75a   : > { %4816 = vst [vmem:[#allocation1 + $0x22] ss:$4 sm:$0xff] %v2093_v25  ;;  %v2098_v25 = vrot.slane %v11084_v54, 6 }
 0x75b   : > { %4817 = vst [vmem:[#allocation1 + $0x23] ss:$4 sm:$0xff] %v2094_v48  ;;  %v8205_v48 = vld [vmem:[%s8496_s26 + $0x1c1] sm:$0x3] }
 0x75d   : > { %v4615_v11 = vld.sshfl [vmem:[#allocation1] sm:$0xff pattern:$0x73625140] }
 0x75e   : > { %4702 = vrot.lane.b32.xlu0 %v4615_v11, %s8434_s20  ;;  %4618 = vst [vmem:[#allocation1 + $0x1] ss:$4 sm:$0xff] %v10948_v41  ;;  %v11099_v11 = vpop.permute.xlu1 %4357  ;;  %v11102_v41 = vpop.permute.xlu0 %4361 }
 0x75f   : > { %4619 = vst [vmem:[#allocation1 + $0x2] ss:$4 sm:$0xff] %v1949_v10  ;;  %v1954_v10 = vrot.slane %v10953_v45, 6  ;;  %v11108_v42 = vpop.permute.xlu2 %4664 }
 0x760   : > { %4620 = vst [vmem:[#allocation1 + $0x3] ss:$4 sm:$0xff] %v1950_v47  ;;  %v11106_v47 = vld [vmem:[%s8496_s26 + $0xca] sm:$0xff] }
 0x761   : > { %4617 = vst [vmem:[#allocation1] ss:$4 sm:$0xff] %v8205_v48  ;;  %v8208_v48 = vld [vmem:[%s8496_s26 + $0x1d9] sm:$0x3] }
 0x762   : > { %v4819_v35 = vld.sshfl [vmem:[#allocation1 + $0x20] sm:$0xff pattern:$0x73625140]  ;;  %14209 = vst [vmem:[#allocation258_spill] sm:$0xff] %v11099_v11  ;;  %v8209_v11 = vld [vmem:[%s8496_s26 + $0x32] sm:$0xff] }
 0x763   : > { %4985 = vrot.lane.b32.xlu1 %v4819_v35, %s8441_s6  ;;  %4824 = vst [vmem:[#allocation1 + $0x20] ss:$4 sm:$0xff] %v2098_v25  ;;  %v2104_v25 = vrot.slane %v11106_v47, 6  ;;  %v2065_v7 = vrot.slane %v8209_v11, 6 }
 0x764   : > { %4825 = vst [vmem:[#allocation1 + $0x21] ss:$4 sm:$0xff] %v8226_v5  ;;  %v2103_v5 = vrot.slane %v11106_v47, 4 }
 0x765   : > { %4826 = vst [vmem:[#allocation1 + $0x22] ss:$4 sm:$0xff] %v11092_v20 }
 0x766   : > { %14210 = vst [vmem:[#allocation259_spill] sm:$0xff] %v11102_v41  ;;  %v11114_v41 = vpop.permute.xlu1 %4644  ;;  %v11118_v22 = vpop.permute.xlu0 %4648 }
 0x767   : > { %4827 = vst [vmem:[#allocation1 + $0x23] ss:$4 sm:$0xff] %v2099_v21  ;;  %v8229_v21 = vld [vmem:[%s8496_s26 + $0xd2] sm:$0x3] }
 0x768   : > { %14211 = vst [vmem:[#allocation260_spill] sm:$0xff] %v11108_v42  ;;  %v4625_v35 = vld.sshfl [vmem:[#allocation1] sm:$0xff pattern:$0x73625140] }
 0x769   : > { %4706 = vrot.lane.b32.xlu2 %v4625_v35, %s8434_s20  ;;  %4627 = vst [vmem:[#allocation1] ss:$4 sm:$0xff] %v1954_v10  ;;  %v11122_v42 = vld [vmem:[%s8496_s26 + $0xda] sm:$0xff]  ;;  %v11124_v10 = vpop.permute.xlu2 %4646  ;;  %v2063_v35 = vrot.slane %v8209_v11, 2 }
 0x76a   : > { %4628 = vst [vmem:[#allocation1 + $0x1] ss:$4 sm:$0xff] %v8208_v48  ;;  %v2064_v48 = vrot.slane %v8209_v11, 4 }
 0x76b   : > { %14212 = vst [vmem:[#allocation261_spill] sm:$0xff] %v11114_v41 }
 0x76c   : > { %14213 = vst [vmem:[#allocation262_spill] sm:$0xff] %v11118_v22 }
 0x76d   : > { %14214 = vst [vmem:[#allocation263_spill] sm:$0xff] %v11124_v10 }
 0x76e   : > { %v4829_v45 = vld.sshfl [vmem:[#allocation1 + $0x20] sm:$0xff pattern:$0x73625140]  ;;  %v11136_v22 = vpop.permute.xlu0 %4373 }
 0x76f   : > { %4989 = vrot.lane.b32.xlu0 %v4829_v45, %s8441_s6  ;;  %4834 = vst [vmem:[#allocation1 + $0x20] ss:$4 sm:$0xff] %v2103_v5  ;;  %v2108_v45 = vrot.slane %v11128_v26, 2  ;;  %v11132_v5 = vpop.permute.xlu1 %4369 }
 0x770   : > { %4835 = vst [vmem:[#allocation1 + $0x21] ss:$4 sm:$0xff] %v2104_v25  ;;  %v2109_v25 = vrot.slane %v11128_v26, 4 }
 0x771   : > { %4836 = vst [vmem:[#allocation1 + $0x22] ss:$4 sm:$0xff] %v8229_v21  ;;  %v4629_v41 = vld.sshfl [vmem:[#allocation1] sm:$0xff pattern:$0x73625140]  ;;  %v2110_v21 = vrot.slane %v11128_v26, 6 }
 0x772   : > { %4837 = vst [vmem:[#allocation1 + $0x23] ss:$4 sm:$0xff] %v11122_v42  ;;  %4710 = vrot.lane.b32.xlu1 %v4629_v41, %s8434_s20  ;;  %v8232_v41 = vld [vmem:[%s8496_s26 + $0xea] sm:$0x3] }
 0x773   : > { %4753 = vst [vmem:[#allocation1] ss:$4 sm:$0xff] %v8209_v11  ;;  %v11140_v11 = vpop.permute.xlu2 %4676 }
 0x774   : > { %4755 = vst [vmem:[#allocation1 + $0x1] ss:$4 sm:$0xff] %v2063_v35  ;;  %v2069_v35 = vrot.slane %v10984_v32, 2 }
 0x775   : > { %4757 = vst [vmem:[#allocation1 + $0x2] ss:$4 sm:$0xff] %v2064_v48  ;;  %v2070_v48 = vrot.slane %v10984_v32, 4 }
 0x776   : > { %14215 = vst [vmem:[#allocation264_spill] sm:$0xff] %v11132_v5 }
 0x777   : > { %4759 = vst [vmem:[#allocation1 + $0x3] ss:$4 sm:$0xff] %v2065_v7  ;;  %v11144_v5 = vpop.permute.xlu1 %4656 }
 0x778   : > { %14216 = vst [vmem:[#allocation265_spill] sm:$0xff] %v11136_v22  ;;  %v8234_v22 = vld [vmem:[%s8496_s26 + $0xfa] sm:$0xff] }
 0x779   : > { %v4839_v10 = vld.sshfl [vmem:[#allocation1 + $0x20] sm:$0xff pattern:$0x73625140]  ;;  %14217 = vst [vmem:[#allocation266_spill] sm:$0xff] %v11140_v11  ;;  %v2116_v11 = vrot.slane %v8234_v22, 6 }
 0x77a   : > { %4993 = vrot.lane.b32.xlu2 %v4839_v10, %s8441_s6  ;;  %4844 = vst [vmem:[#allocation1 + $0x20] ss:$4 sm:$0xff] %v2108_v45  ;;  %v11149_v10 = vpop.permute.xlu0 %4630  ;;  %v2114_v45 = vrot.slane %v8234_v22, 2 }
 0x77b   : > { %4845 = vst [vmem:[#allocation1 + $0x21] ss:$4 sm:$0xff] %v2109_v25  ;;  %v11152_v25 = vpop.permute.xlu2 %4658 }
 0x77c   : > { %4846 = vst [vmem:[#allocation1 + $0x22] ss:$4 sm:$0xff] %v2110_v21  ;;  %v2115_v21 = vrot.slane %v8234_v22, 4 }
 0x77d   : > { %4847 = vst [vmem:[#allocation1 + $0x23] ss:$4 sm:$0xff] %v8232_v41 }
 0x77e   : > { %v4768_v7 = vld.sshfl [vmem:[#allocation1] sm:$0xff pattern:$0x73625140]  ;;  %14218 = vst [vmem:[#allocation267_spill] sm:$0xff] %v11144_v5 }
 0x77f   : > { %4771 = vst [vmem:[#allocation1 + $0x1] ss:$4 sm:$0xff] %v10984_v32  ;;  %v2074_v32 = vrot.slane %v10987_v63, 6 }
 0x780   : > { %4772 = vst [vmem:[#allocation1 + $0x2] ss:$4 sm:$0xff] %v2069_v35  ;;  %v11156_v35 = vpop.permute.xlu1 %4638 }
 0x781   : > { %4773 = vst [vmem:[#allocation1 + $0x3] ss:$4 sm:$0xff] %v2070_v48  ;;  %v2075_v48 = vrot.slane %v11005_v27, 2 }
 0x782   : > { %4963 = vrot.lane.b32.xlu2 %v4768_v7, %s8441_s6  ;;  %4770 = vst [vmem:[#allocation1] ss:$4 sm:$0xff] %v8211_v44  ;;  %v11160_v7 = vld [vmem:[%s8496_s26 + $0x10a] sm:$0xff]  ;;  %v11163_v5 = vpop.permute.xlu0 %4660 }
 0x783   : > { %14219 = vst [vmem:[#allocation268_spill] sm:$0xff] %v11152_v25  ;;  %v8214_v25 = vld [vmem:[%s8496_s26 + $0x5a] sm:$0x3]  ;;  %v11170_v63 = vpop.permute.xlu2 %4688 }
 0x784   : > { %v4849_v41 = vld.sshfl [vmem:[#allocation1 + $0x20] sm:$0xff pattern:$0x73625140]  ;;  %14220 = vst [vmem:[#allocation269_spill] sm:$0xff] %v11156_v35 }
 0x785   : > { %4997 = vrot.lane.b32.xlu1 %v4849_v41, %s8441_s6  ;;  %4854 = vst [vmem:[#allocation1 + $0x20] ss:$4 sm:$0xff] %v8234_v22  ;;  %v11167_v41 = vld [vmem:[%s8496_s26 + $0x112] sm:$0xff]  ;;  %v2119_v22 = vrot.slane %v11160_v7, 6  ;;  %v8222_v35 = vld [vmem:[%s8496_s26 + $0x9a] sm:$0xff] }
 0x786   : > { %4855 = vst [vmem:[#allocation1 + $0x21] ss:$4 sm:$0xff] %v2114_v45 }
 0x787   : > { %4856 = vst [vmem:[#allocation1 + $0x22] ss:$4 sm:$0xff] %v2115_v21  ;;  %v2121_v21 = vrot.slane %v11167_v41, 4 }
 0x788   : > { %4857 = vst [vmem:[#allocation1 + $0x23] ss:$4 sm:$0xff] %v2116_v11  ;;  %v2120_v11 = vrot.slane %v11167_v41, 2 }
 0x789   : > { %v4778_v44 = vld.sshfl [vmem:[#allocation1] sm:$0xff pattern:$0x73625140]  ;;  %14221 = vst [vmem:[#allocation270_spill] sm:$0xff] %v11163_v5 }
 0x78a   : > { %4780 = vst [vmem:[#allocation1] ss:$4 sm:$0xff] %v2074_v32  ;;  %v11177_v32 = vpop.permute.xlu1 %4668 }
 0x78b   : > { %4782 = vst [vmem:[#allocation1 + $0x2] ss:$4 sm:$0xff] %v11005_v27  ;;  %v2079_v27 = vrot.slane %v11013_v29, 4  ;;  %v11186_v5 = vpop.permute.xlu2 %4670 }
 0x78c   : > { %4783 = vst [vmem:[#allocation1 + $0x3] ss:$4 sm:$0xff] %v2075_v48  ;;  %v2080_v48 = vrot.slane %v11013_v29, 6 }
 0x78d   : > { %14222 = vst [vmem:[#allocation271_spill] sm:$0xff] %v11170_v63  ;;  %4967 = vrot.lane.b32.xlu1 %v4778_v44, %s8441_s6  ;;  %v11184_v63 = vld [vmem:[%s8496_s26 + $0x122] sm:$0xff] }
 0x78e   : > { %4781 = vst [vmem:[#allocation1 + $0x1] ss:$4 sm:$0xff] %v8214_v25  ;;  %v11181_v25 = vpop.permute.xlu0 %4642  ;;  %v2125_v29 = vrot.slane %v11184_v63, 6 }
 0x78f   : > { %v4859_v45 = vld.sshfl [vmem:[#allocation1 + $0x20] sm:$0xff pattern:$0x73625140]  ;;  %14223 = vst [vmem:[#allocation272_spill] sm:$0xff] %v11177_v32  ;;  %v2124_v32 = vrot.slane %v11184_v63, 4 }
 0x790   : > { %5001 = vrot.lane.b32.xlu0 %v4859_v45, %s8441_s6  ;;  %4864 = vst [vmem:[#allocation1 + $0x20] ss:$4 sm:$0xff] %v2119_v22  ;;  %v8217_v45 = vld [vmem:[%s8496_s26 + $0x72] sm:$0x3]  ;;  %v11191_v22 = vld [vmem:[%s8496_s26 + $0x12a] sm:$0xff] }
 0x791   : > { %4865 = vst [vmem:[#allocation1 + $0x21] ss:$4 sm:$0xff] %v11167_v41 }
 0x792   : > { %4866 = vst [vmem:[#allocation1 + $0x22] ss:$4 sm:$0xff] %v2120_v11  ;;  %v11196_v11 = vpop.permute.xlu1 %4650 }
 0x793   : > { %14224 = vst [vmem:[#allocation273_spill] sm:$0xff] %v11181_v25  ;;  %v11209_v25 = vld [vmem:[%s8496_s26 + $0x13a] sm:$0xff] }
 0x794   : > { %4867 = vst [vmem:[#allocation1 + $0x23] ss:$4 sm:$0xff] %v2121_v21 }
 0x795   : > { %v4788_v44 = vld.sshfl [vmem:[#allocation1] sm:$0xff pattern:$0x73625140]  ;;  %14225 = vst [vmem:[#allocation274_spill] sm:$0xff] %v11186_v5 }
 0x796   : > { %4790 = vst [vmem:[#allocation1] ss:$4 sm:$0xff] %v2079_v27  ;;  %v2126_v27 = vrot.slane %v11191_v22, 2  ;;  %v11202_v5 = vpop.permute.xlu0 %4672 }
 0x797   : > { %4791 = vst [vmem:[#allocation1 + $0x1] ss:$4 sm:$0xff] %v2080_v48  ;;  %v2085_v48 = vrot.slane %v11044_v4, 4 }
 0x798   : > { %4793 = vst [vmem:[#allocation1 + $0x3] ss:$4 sm:$0xff] %v11030_v9  ;;  %4971 = vrot.lane.b32.xlu0 %v4788_v44, %s8441_s6  ;;  %v2084_v9 = vrot.slane %v11044_v4, 2  ;;  %v2086_v44 = vrot.slane %v11044_v4, 6  ;;  %v2130_v4 = vrot.slane %v11209_v25, 4 }
 0x799   : > { %4792 = vst [vmem:[#allocation1 + $0x2] ss:$4 sm:$0xff] %v8217_v45  ;;  %v11206_v45 = vpop.permute.xlu2 %4700 }
 0x79a   : > { %14226 = vst [vmem:[#allocation275_spill] sm:$0xff] %v11196_v11 }
 0x79b   : > { %v4869_v21 = vld.sshfl [vmem:[#allocation1 + $0x20] sm:$0xff pattern:$0x73625140]  ;;  %14227 = vst [vmem:[#allocation276_spill] sm:$0xff] %v11202_v5 }
 0x79c   : > { %5005 = vrot.lane.b32.xlu2 %v4869_v21, %s8441_s6  ;;  %4874 = vst [vmem:[#allocation1 + $0x20] ss:$4 sm:$0xff] %v2124_v32  ;;  %v8220_v32 = vld [vmem:[%s8496_s26 + $0x8a] sm:$0x3]  ;;  %v11213_v21 = vpop.permute.xlu1 %4680 }
 0x79d   : > { %4875 = vst [vmem:[#allocation1 + $0x21] ss:$4 sm:$0xff] %v2125_v29  ;;  %v2129_v29 = vrot.slane %v11209_v25, 2 }
 0x79e   : > { %4876 = vst [vmem:[#allocation1 + $0x22] ss:$4 sm:$0xff] %v11191_v22 }
 0x79f   : > { %4877 = vst [vmem:[#allocation1 + $0x23] ss:$4 sm:$0xff] %v2126_v27  ;;  %v2131_v27 = vrot.slane %v11209_v25, 6 }
 0x7a0   : > { %14228 = vst [vmem:[#allocation277_spill] sm:$0xff] %v11206_v45  ;;  %v4798_v11 = vld.sshfl [vmem:[#allocation1] sm:$0xff pattern:$0x73625140]  ;;  %v11218_v45 = vpop.permute.xlu0 %4654 }
 0x7a1   : > { %4800 = vst [vmem:[#allocation1] ss:$4 sm:$0xff] %v2084_v9  ;;  %v11223_v9 = vld [vmem:[%s8496_s26 + $0x142] sm:$0xff] }
 0x7a2   : > { %4801 = vst [vmem:[#allocation1 + $0x1] ss:$4 sm:$0xff] %v2085_v48  ;;  %v11225_v48 = vpop.permute.xlu2 %4682 }
 0x7a3   : > { %4802 = vst [vmem:[#allocation1 + $0x2] ss:$4 sm:$0xff] %v2086_v44  ;;  %v2091_v44 = vrot.slane %v8222_v35, 4 }
 0x7a4   : > { %14229 = vst [vmem:[#allocation278_spill] sm:$0xff] %v11213_v21  ;;  %4975 = vrot.lane.b32.xlu2 %v4798_v11, %s8441_s6  ;;  %v2090_v11 = vrot.slane %v8222_v35, 2  ;;  %v2092_v21 = vrot.slane %v8222_v35, 6  ;;  %v11228_v17 = vpop.permute.xlu1 %4662 }
 0x7a5   : > { %4803 = vst [vmem:[#allocation1 + $0x3] ss:$4 sm:$0xff] %v8220_v32 }
 0x7a6   : > { %14230 = vst [vmem:[#allocation279_spill] sm:$0xff] %v11218_v45  ;;  %v4879_v5 = vld.sshfl [vmem:[#allocation1 + $0x20] sm:$0xff pattern:$0x73625140]  ;;  %v8245_v45 = vld [vmem:[%s8496_s26 + $0x152] sm:$0xff] }
 0x7a7   : > { %5009 = vrot.lane.b32.xlu1 %v4879_v5, %s8441_s6  ;;  %4884 = vst [vmem:[#allocation1 + $0x20] ss:$4 sm:$0xff] %v2129_v29  ;;  %v2135_v5 = vrot.slane %v8245_v45, 2 }
 0x7a8   : > { %14231 = vst [vmem:[#allocation280_spill] sm:$0xff] %v11225_v48  ;;  %v11232_v29 = vpop.permute.xlu0 %4684  ;;  %v2137_v48 = vrot.slane %v8245_v45, 6 }
 0x7a9   : > { %4885 = vst [vmem:[#allocation1 + $0x21] ss:$4 sm:$0xff] %v2130_v4  ;;  %v2136_v4 = vrot.slane %v8245_v45, 4 }
 0x7aa   : > { %4886 = vst [vmem:[#allocation1 + $0x22] ss:$4 sm:$0xff] %v2131_v27  ;;  %v11235_v39 = vpop.permute.xlu2 %4969 }
 0x7ab   : > { %4887 = vst [vmem:[#allocation1 + $0x23] ss:$4 sm:$0xff] %v11223_v9 }
 0x7ac   : > { %v4808_v32 = vld.sshfl [vmem:[#allocation1] sm:$0xff pattern:$0x73625140]  ;;  %14232 = vst [vmem:[#allocation281_spill] sm:$0xff] %v11228_v17 }
 0x7ad   : > { %4810 = vst [vmem:[#allocation1] ss:$4 sm:$0xff] %v8222_v35  ;;  %v2095_v35 = vrot.slane %v11066_v55, 6  ;;  %v8247_v55 = vld [vmem:[%s8496_s26 + $0x162] sm:$0x3] }
 0x7ae   : > { %4811 = vst [vmem:[#allocation1 + $0x1] ss:$4 sm:$0xff] %v2090_v11  ;;  %v2096_v11 = vrot.slane %v11084_v54, 2 }
 0x7af   : > { %4812 = vst [vmem:[#allocation1 + $0x2] ss:$4 sm:$0xff] %v2091_v44  ;;  %4979 = vrot.lane.b32.xlu1 %v4808_v32, %s8441_s6  ;;  %v11240_v44 = vpop.permute.xlu1 %4692 }
 0x7b0   : > { %4813 = vst [vmem:[#allocation1 + $0x3] ss:$4 sm:$0xff] %v2092_v21  ;;  %v2097_v21 = vrot.slane %v11084_v54, 4 }
 0x7b1   : > { %14233 = vst [vmem:[#allocation282_spill] sm:$0xff] %v11232_v29  ;;  %v11242_v29 = vpop.permute.xlu0 %4666 }
 0x7b2   : > { %v4889_v27 = vld.sshfl [vmem:[#allocation1 + $0x20] sm:$0xff pattern:$0x73625140]  ;;  %14234 = vst [vmem:[#allocation283_spill] sm:$0xff] %v11240_v44 }
 0x7b3   : > { %5013 = vrot.lane.b32.xlu0 %v4889_v27, %s8441_s6  ;;  %4894 = vst [vmem:[#allocation1 + $0x20] ss:$4 sm:$0xff] %v8245_v45  ;;  %v11246_v27 = vld [vmem:[%s8496_s26 + $0x16a] sm:$0xff]  ;;  %v11250_v45 = vpop.permute.xlu2 %4694 }
 0x7b4   : > { %4895 = vst [vmem:[#allocation1 + $0x21] ss:$4 sm:$0xff] %v2135_v5 }
 0x7b5   : > { %4896 = vst [vmem:[#allocation1 + $0x22] ss:$4 sm:$0xff] %v2136_v4  ;;  %v2142_v4 = vrot.slane %v11246_v27, 4 }
 0x7b6   : > { %4897 = vst [vmem:[#allocation1 + $0x23] ss:$4 sm:$0xff] %v2137_v48  ;;  %v2141_v48 = vrot.slane %v11246_v27, 2 }
 0x7b7   : > { %v4818_v32 = vld.sshfl [vmem:[#allocation1] sm:$0xff pattern:$0x73625140]  ;;  %14235 = vst [vmem:[#allocation284_spill] sm:$0xff] %v11250_v45  ;;  %v11262_v45 = vld [vmem:[%s8496_s26 + $0x172] sm:$0xff] }
 0x7b8   : > { %4820 = vst [vmem:[#allocation1] ss:$4 sm:$0xff] %v2095_v35  ;;  %v11256_v35 = vpop.permute.xlu1 %4674 }
 0x7b9   : > { %4821 = vst [vmem:[#allocation1 + $0x1] ss:$4 sm:$0xff] %v11084_v54  ;;  %v2100_v54 = vrot.slane %v11092_v20, 4  ;;  %v11264_v44 = vpop.permute.xlu0 %4696 }
 0x7ba   : > { %4822 = vst [vmem:[#allocation1 + $0x2] ss:$4 sm:$0xff] %v2096_v11  ;;  %v2101_v11 = vrot.slane %v11092_v20, 6  ;;  %v8250_v20 = vld [vmem:[%s8496_s26 + $0x17a] sm:$0x3] }
 0x7bb   : > { %4983 = vrot.lane.b32.xlu0 %v4818_v32, %s8441_s6  ;;  %4823 = vst [vmem:[#allocation1 + $0x3] ss:$4 sm:$0xff] %v2097_v21  ;;  %v2102_v21 = vrot.slane %v11106_v47, 2  ;;  %v11271_v17 = vpop.permute.xlu2 %4981 }
 0x7bc   : > { %14236 = vst [vmem:[#allocation285_spill] sm:$0xff] %v11256_v35 }
 0x7bd   : > { %v4899_v5 = vld.sshfl [vmem:[#allocation1 + $0x20] sm:$0xff pattern:$0x73625140]  ;;  %14237 = vst [vmem:[#allocation286_spill] sm:$0xff] %v11264_v44  ;;  %v11286_v44 = vld [vmem:[%s8496_s26 + $0x18a] sm:$0xff] }
 0x7be   : > { %5017 = vrot.lane.b32.xlu2 %v4899_v5, %s8441_s6  ;;  %4904 = vst [vmem:[#allocation1 + $0x20] ss:$4 sm:$0xff] %v8247_v55  ;;  %v11268_v55 = vld [vmem:[%s8496_s26 + $0x182] sm:$0xff]  ;;  %v2146_v5 = vrot.slane %v11262_v45, 6 }
 0x7bf   : > { %4905 = vst [vmem:[#allocation1 + $0x21] ss:$4 sm:$0xff] %v11246_v27 }
 0x7c0   : > { %4906 = vst [vmem:[#allocation1 + $0x22] ss:$4 sm:$0xff] %v2141_v48  ;;  %v11276_v35 = vpop.permute.xlu1 %4704 }
 0x7c1   : > { %4907 = vst [vmem:[#allocation1 + $0x23] ss:$4 sm:$0xff] %v2142_v4  ;;  %v2147_v4 = vrot.slane %v11268_v55, 2 }
 0x7c2   : > { %v4828_v32 = vld.sshfl [vmem:[#allocation1] sm:$0xff pattern:$0x73625140]  ;;  %14238 = vst [vmem:[#allocation287_spill] sm:$0xff] %v11271_v17 }
 0x7c3   : > { %4830 = vst [vmem:[#allocation1] ss:$4 sm:$0xff] %v2100_v54  ;;  %v2106_v54 = vrot.slane %v11122_v42, 4  ;;  %v11300_v17 = vld [vmem:[%s8496_s26 + $0x19a] sm:$0xff] }
 0x7c4   : > { %4831 = vst [vmem:[#allocation1 + $0x1] ss:$4 sm:$0xff] %v2101_v11  ;;  %v11281_v11 = vpop.permute.xlu0 %4678 }
 0x7c5   : > { %4832 = vst [vmem:[#allocation1 + $0x2] ss:$4 sm:$0xff] %v11106_v47  ;;  %v2105_v47 = vrot.slane %v11122_v42, 2 }
 0x7c6   : > { %4987 = vrot.lane.b32.xlu2 %v4828_v32, %s8441_s6  ;;  %4833 = vst [vmem:[#allocation1 + $0x3] ss:$4 sm:$0xff] %v2102_v21  ;;  %v2107_v21 = vrot.slane %v11122_v42, 6  ;;  %v2152_v42 = vrot.slane %v11286_v44, 6 }
 0x7c7   : > { %14239 = vst [vmem:[#allocation288_spill] sm:$0xff] %v11276_v35  ;;  %v8233_v35 = vld [vmem:[%s8496_s26 + $0xf2] sm:$0xff] }
 0x7c8   : > { %v4909_v48 = vld.sshfl [vmem:[#allocation1 + $0x20] sm:$0xff pattern:$0x73625140]  ;;  %14240 = vst [vmem:[#allocation289_spill] sm:$0xff] %v11281_v11  ;;  %v8253_v11 = vld [vmem:[%s8496_s26 + $0x192] sm:$0x3] }
 0x7c9   : > { %5021 = vrot.lane.b32.xlu1 %v4909_v48, %s8441_s6  ;;  %4914 = vst [vmem:[#allocation1 + $0x20] ss:$4 sm:$0xff] %v2146_v5  ;;  %v11288_v48 = vpop.permute.xlu2 %4706  ;;  %v2151_v5 = vrot.slane %v11286_v44, 4 }
 0x7ca   : > { %4915 = vst [vmem:[#allocation1 + $0x21] ss:$4 sm:$0xff] %v8250_v20  ;;  %v11293_v20 = vpop.permute.xlu1 %4686 }
 0x7cb   : > { %4916 = vst [vmem:[#allocation1 + $0x22] ss:$4 sm:$0xff] %v11268_v55 }
 0x7cc   : > { %4917 = vst [vmem:[#allocation1 + $0x23] ss:$4 sm:$0xff] %v2147_v4 }
 0x7cd   : > { %v4838_v32 = vld.sshfl [vmem:[#allocation1] sm:$0xff pattern:$0x73625140]  ;;  %14241 = vst [vmem:[#allocation290_spill] sm:$0xff] %v11288_v48  ;;  %v2113_v48 = vrot.slane %v8233_v35, 6 }
 0x7ce   : > { %4840 = vst [vmem:[#allocation1] ss:$4 sm:$0xff] %v2105_v47  ;;  %v11302_v47 = vpop.permute.xlu0 %4708 }
 0x7cf   : > { %4841 = vst [vmem:[#allocation1 + $0x1] ss:$4 sm:$0xff] %v2106_v54  ;;  %v5425_v54 = vld [vmem:[%s13934_s1 + $0x18] sm:$0xff] }
 0x7d0   : > { %4842 = vst [vmem:[#allocation1 + $0x2] ss:$4 sm:$0xff] %v2107_v21  ;;  %v2111_v21 = vrot.slane %v8233_v35, 2 }
 0x7d1   : > { %4991 = vrot.lane.b32.xlu1 %v4838_v32, %s8441_s6  ;;  %4843 = vst [vmem:[#allocation1 + $0x3] ss:$4 sm:$0xff] %v11128_v26  ;;  %v5426_v26 = vld [vmem:[%s13934_s1 + $0x20] sm:$0xf]  ;;  %v5087_v32 = vsel %vm5086_vm1, %v8537_v37, %v9770_v13 }
 0x7d2   : > { %14242 = vst [vmem:[#allocation291_spill] sm:$0xff] %v11293_v20  ;;  %8263 = vmatpush.msk.msra.mxu0 %vm5555_vm0, %v5426_v26  ;;  %8373 = vmatpush.msk.msra.mxu2 %vm5555_vm0, %v5426_v26  ;;  %v5129_v37 = vsel %vm5128_vm2, %v5087_v32, %v9940_v2  ;;  %v11327_v13 = vpop.permute.xlu1 %4973 }
 0x7d3   : > { %v4919_v4 = vld.sshfl [vmem:[#allocation1 + $0x20] sm:$0xff pattern:$0x73625140]  ;;  %14243 = vst [vmem:[#allocation292_spill] sm:$0xff] %v11302_v47  ;;  %8374 = vmatpush.msk.msra.mxu3 %vm5555_vm0, %v5426_v26 }
 0x7d4   : > { %5025 = vrot.lane.b32.xlu0 %v4919_v4, %s8441_s6  ;;  %4924 = vst [vmem:[#allocation1 + $0x20] ss:$4 sm:$0xff] %v2151_v5  ;;  %v2112_v5 = vrot.slane %v8233_v35, 4  ;;  %v5424_v4 = vld [vmem:[%s13934_s1 + $0x10] sm:$0xff]  ;;  %v11323_v47 = vld [vmem:[%s8496_s26 + $0x1a2] sm:$0xff]  ;;  %5571 = vmatpush.msra.mxu0 %v5425_v54 }
 0x7d5   : > { %4925 = vst [vmem:[#allocation1 + $0x21] ss:$4 sm:$0xff] %v2152_v42  ;;  %v11316_v42 = vpop.permute.xlu2 %4993  ;;  %8375 = vmatpush.msra.mxu2 %v5425_v54  ;;  %8376 = vmatpush.msra.mxu3 %v5425_v54  ;;  %v2156_v20 = vrot.slane %v11323_v47, 2  ;;  %v2157_v26 = vrot.slane %v11323_v47, 4  ;;  %v2158_v2 = vrot.slane %v11323_v47, 6 }
 0x7d6   : > { %4926 = vst [vmem:[#allocation1 + $0x22] ss:$4 sm:$0xff] %v8253_v11  ;;  %5572 = vmatpush.msra.mxu0 %v5424_v4 }
 0x7d7   : > { %4927 = vst [vmem:[#allocation1 + $0x23] ss:$4 sm:$0xff] %v11300_v17  ;;  %8377 = vmatpush.msra.mxu2 %v5424_v4  ;;  %8378 = vmatpush.msra.mxu3 %v5424_v4  ;;  %v8256_v4 = vld [vmem:[%s8496_s26 + $0x1aa] sm:$0x3] }
 0x7d8   : > { %v4848_v11 = vld.sshfl [vmem:[#allocation1] sm:$0xff pattern:$0x73625140] }
 0x7d9   : > { %4850 = vst [vmem:[#allocation1] ss:$4 sm:$0xff] %v8233_v35  ;;  %v5171_v35 = vsel %vm5170_vm3, %v5129_v37, %v10229_v40  ;;  %v5088_v40 = vsel %vm5086_vm1, %v8505_v12, %v9728_v8  ;;  %v2118_v8 = vrot.slane %v11160_v7, 4 }
 0x7da   : > { %4851 = vst [vmem:[#allocation1 + $0x1] ss:$4 sm:$0xff] %v2111_v21  ;;  %v5213_v54 = vsel %vm5212_vm4, %v5171_v35, %v10474_v38  ;;  %v5423_v38 = vld [vmem:[%s13934_s1 + $0x8] sm:$0xff]  ;;  %v5130_v37 = vsel %vm5128_vm2, %v5088_v40, %v9991_v23  ;;  %v8258_v35 = vld [vmem:[%s8496_s26 + $0x1ba] sm:$0xff] }
 0x7db   : > { %4852 = vst [vmem:[#allocation1 + $0x2] ss:$4 sm:$0xff] %v2112_v5  ;;  %v5255_v32 = vsel %vm5254_vm5, %v5213_v54, %v10651_v53  ;;  %v4966_v5 = vpop.permute.xlu0 %4965  ;;  %v5422_v53 = vld [vmem:[%s13934_s1] sm:$0xff]  ;;  %5573 = vmatpush.msra.mxu0 %v5423_v38  ;;  %8379 = vmatpush.msra.mxu2 %v5423_v38  ;;  %v5172_v54 = vsel %vm5170_vm3, %v5130_v37, %v10163_v36  ;;  %v2164_v36 = vrot.slane %v8258_v35, 6 }
 0x7dc   : > { %4995 = vrot.lane.b32.xlu0 %v4848_v11, %s8441_s6  ;;  %4853 = vst [vmem:[#allocation1 + $0x3] ss:$4 sm:$0xff] %v2113_v48  ;;  %v5297_v48 = vsel %vm5296_vm6, %v5255_v32, %v10923_v31  ;;  %v2117_v11 = vrot.slane %v11160_v7, 2  ;;  %8380 = vmatpush.msra.mxu3 %v5423_v38  ;;  %v5214_v23 = vsel %vm5212_vm4, %v5172_v54, %v10437_v0  ;;  %v2163_v32 = vrot.slane %v8258_v35, 4  ;;  %v8241_v54 = vld [vmem:[%s8496_s26 + $0x132] sm:$0x3] }
 0x7dd   : > { %v4964_v12 = vpop.permute.xlu2 %4963  ;;  %5574 = vmatpush.msra.mxu0 %v5422_v53  ;;  %8381 = vmatpush.msra.mxu2 %v5422_v53  ;;  %v2122_v38 = vrot.slane %v11167_v41, 6 }
 0x7de   : > { %v4929_v21 = vld.sshfl [vmem:[#allocation1 + $0x20] sm:$0xff pattern:$0x73625140]  ;;  %8382 = vmatpush.msra.mxu3 %v5422_v53 }
 0x7df   : > { %5029 = vrot.lane.b32.xlu2 %v4929_v21, %s8441_s6  ;;  %4934 = vst [vmem:[#allocation1 + $0x20] ss:$4 sm:$0xff] %v2156_v20  ;;  %v5339_v20 = vsel %vm5338_vm7, %v5297_v48, %v11149_v10  ;;  %v2162_v21 = vrot.slane %v8258_v35, 2 }
 0x7e0   : > { %4935 = vst [vmem:[#allocation1 + $0x21] ss:$4 sm:$0xff] %v2157_v26  ;;  %v5381_v31 = vsel %vm5380_vm8, %v5339_v20, %v4964_v12  ;;  %v11359_v26 = vpop.permute.xlu1 %4698  ;;  %v11391_v12 = vld [vmem:[%s8496_s26 + $0x1d2] sm:$0xff] }
 0x7e1   : > { %4936 = vst [vmem:[#allocation1 + $0x22] ss:$4 sm:$0xff] %v2158_v2  ;;  %v8235_v2 = vld [vmem:[%s8496_s26 + $0x102] sm:$0x3]  ;;  %8264 = vmatmul.msk.f32.vlgmr.msra.gmra.mxu0 %vm5431_vm9, %v5381_v31  ;;  %v2169_v37 = vrot.slane %v11391_v12, 4 }
 0x7e2   : > { %4937 = vst [vmem:[#allocation1 + $0x23] ss:$4 sm:$0xff] %v8256_v4 }
 0x7e3   : > { %v4858_v10 = vld.sshfl [vmem:[#allocation1] sm:$0xff pattern:$0x73625140]  ;;  %v11374_v40 = vpop.permute.xlu0 %4690 }
 0x7e4   : > { %4861 = vst [vmem:[#allocation1 + $0x1] ss:$4 sm:$0xff] %v11160_v7  ;;  %v5256_v7 = vsel %vm5254_vm5, %v5214_v23, %v10665_v16 }
 0x7e5   : > { %4862 = vst [vmem:[#allocation1 + $0x2] ss:$4 sm:$0xff] %v2117_v11  ;;  %v5298_v4 = vsel %vm5296_vm6, %v5256_v7, %v10823_v33  ;;  %v2123_v33 = vrot.slane %v11184_v63, 2  ;;  %v11386_v11 = vld [vmem:[%s8496_s26 + $0x1ca] sm:$0xff] }
 0x7e6   : > { %4863 = vst [vmem:[#allocation1 + $0x3] ss:$4 sm:$0xff] %v2118_v8  ;;  %v5340_v0 = vsel %vm5338_vm7, %v5298_v4, %v11078_v1  ;;  %v8238_v1 = vld [vmem:[%s8496_s26 + $0x11a] sm:$0x3]  ;;  %v2167_v41 = vrot.slane %v11386_v11, 6  ;;  %v2168_v8 = vrot.slane %v11391_v12, 2 }
 0x7e7   : > { %4999 = vrot.lane.b32.xlu2 %v4858_v10, %s8441_s6  ;;  %4860 = vst [vmem:[#allocation1] ss:$4 sm:$0xff] %v8235_v2  ;;  %v5382_v16 = vsel %vm5380_vm8, %v5340_v0, %v4966_v5  ;;  %v2127_v10 = vrot.slane %v11191_v22, 4 }
 0x7e8   : > { %v11383_v53 = vpop.permute.xlu1 %4985 }
 0x7e9   : > { %v4939_v48 = vld.sshfl [vmem:[#allocation1 + $0x20] sm:$0xff pattern:$0x73625140]  ;;  %8265 = vmatmul.msk.f32.gmra.mxu0 %vm5431_vm9, %v5382_v16 }
 0x7ea   : > { %5033 = vrot.lane.b32.xlu1 %v4939_v48, %s8441_s6  ;;  %4944 = vst [vmem:[#allocation1 + $0x20] ss:$4 sm:$0xff] %v8258_v35  ;;  %v2128_v35 = vrot.slane %v11191_v22, 6  ;;  %v2133_v48 = vrot.slane %v11223_v9, 4 }
 0x7eb   : > { %4945 = vst [vmem:[#allocation1 + $0x21] ss:$4 sm:$0xff] %v2162_v21  ;;  %v11395_v5 = vpop.permute.xlu0 %4977  ;;  %v5089_v21 = vsel %vm5086_vm1, %v8551_v46, %v9766_v51  ;;  %v8244_v51 = vld [vmem:[%s8496_s26 + $0x14a] sm:$0x3] }
 0x7ec   : > { %4946 = vst [vmem:[#allocation1 + $0x22] ss:$4 sm:$0xff] %v2163_v32  ;;  %v2132_v32 = vrot.slane %v11223_v9, 2  ;;  %v5131_v4 = vsel %vm5128_vm2, %v5089_v21, %v10004_v60  ;;  %v5090_v60 = vsel %vm5086_vm1, %v8517_v18, %v9750_v14  ;;  %v14246_v21 = vld [vmem:[#allocation269_spill] sm:$0xff] }
 0x7ed   : > { %4947 = vst [vmem:[#allocation1 + $0x23] ss:$4 sm:$0xff] %v2164_v36  ;;  %v5173_v0 = vsel %vm5170_vm3, %v5131_v4, %v10255_v52  ;;  %v2145_v4 = vrot.slane %v11262_v45, 4 }
 0x7ee   : > { %v4868_v20 = vld.sshfl [vmem:[#allocation1] sm:$0xff pattern:$0x73625140] }
 0x7ef   : > { %4870 = vst [vmem:[#allocation1] ss:$4 sm:$0xff] %v2122_v38  ;;  %v5215_v38 = vsel %vm5212_vm4, %v5173_v0, %v10420_v61  ;;  %v5132_v61 = vsel %vm5128_vm2, %v5090_v60, %v9918_v15  ;;  %v14250_v0 = vld [vmem:[#allocation47_spill] sm:$0xff]  ;;  %v14252_v60 = vld [vmem:[#allocation185_spill] sm:$0xff] }
 0x7f0   : > { %4872 = vst [vmem:[#allocation1 + $0x2] ss:$4 sm:$0xff] %v11184_v63  ;;  %v11400_v63 = vpop.permute.xlu1 %4710  ;;  %v5174_v14 = vsel %vm5170_vm3, %v5132_v61, %v10208_v58 }
 0x7f1   : > { %4873 = vst [vmem:[#allocation1 + $0x3] ss:$4 sm:$0xff] %v2123_v33 }
 0x7f2   : > { %5003 = vrot.lane.b32.xlu1 %v4868_v20, %s8441_s6  ;;  %4871 = vst [vmem:[#allocation1 + $0x1] ss:$4 sm:$0xff] %v8238_v1  ;;  %v8246_v20 = vld [vmem:[%s8496_s26 + $0x15a] sm:$0xff]  ;;  %v5216_v1 = vsel %vm5212_vm4, %v5174_v14, %v10441_v50  ;;  %v2148_v14 = vrot.slane %v11268_v55, 4 }
 0x7f3   : > { %v11406_v23 = vpop.permute.xlu0 %4702  ;;  %v5258_v15 = vsel %vm5254_vm5, %v5216_v1, %v10594_v57  ;;  %v2149_v1 = vrot.slane %v11268_v55, 6 }
 0x7f4   : > { %v4949_v31 = vld.sshfl [vmem:[#allocation1 + $0x20] sm:$0xff pattern:$0x73625140] }
 0x7f5   : > { %5037 = vrot.lane.b32.xlu0 %v4949_v31, %s8441_s6  ;;  %4954 = vst [vmem:[#allocation1 + $0x20] ss:$4 sm:$0xff] %v2167_v41  ;;  %v2139_v41 = vrot.slane %v8246_v20, 4  ;;  %v2140_v31 = vrot.slane %v8246_v20, 6 }
 0x7f6   : > { %4955 = vst [vmem:[#allocation1 + $0x21] ss:$4 sm:$0xff] %v11391_v12  ;;  %v11466_v57 = vpop.permute.xlu2 %5005 }
 0x7f7   : > { %4956 = vst [vmem:[#allocation1 + $0x22] ss:$4 sm:$0xff] %v2168_v8 }
 0x7f8   : > { %4957 = vst [vmem:[#allocation1 + $0x23] ss:$4 sm:$0xff] %v2169_v37  ;;  %v11413_v22 = vpop.permute.xlu1 %4997  ;;  %v5300_v37 = vsel %vm5296_vm6, %v5258_v15, %v10863_v30  ;;  %v2150_v15 = vrot.slane %v11286_v44, 2 }
 0x7f9   : > { %v4878_v2 = vld.sshfl [vmem:[#allocation1] sm:$0xff pattern:$0x73625140]  ;;  %v5342_v58 = vsel %vm5338_vm7, %v5300_v37, %v11080_v3  ;;  %v5092_v3 = vsel %vm5086_vm1, %v8527_v24, %v9700_v49 }
 0x7fa   : > { %4880 = vst [vmem:[#allocation1] ss:$4 sm:$0xff] %v2127_v10 }
 0x7fb   : > { %4881 = vst [vmem:[#allocation1 + $0x1] ss:$4 sm:$0xff] %v2128_v35  ;;  %v11423_v46 = vpop.permute.xlu0 %4989 }
 0x7fc   : > { %4883 = vst [vmem:[#allocation1 + $0x3] ss:$4 sm:$0xff] %v11209_v25  ;;  %v2134_v25 = vrot.slane %v11223_v9, 6  ;;  %v5257_v9 = vsel %vm5254_vm5, %v5215_v38, %v10709_v19  ;;  %v2138_v19 = vrot.slane %v8246_v20, 2 }
 0x7fd   : > { %5007 = vrot.lane.b32.xlu0 %v4878_v2, %s8441_s6  ;;  %4882 = vst [vmem:[#allocation1 + $0x2] ss:$4 sm:$0xff] %v8241_v54  ;;  %v5299_v16 = vsel %vm5296_vm6, %v5257_v9, %v10940_v28  ;;  %v14245_v2 = vld [vmem:[#allocation224_spill] sm:$0xff] }
 0x7fe   : > { %v5341_v52 = vsel %vm5338_vm7, %v5299_v16, %v11087_v6  ;;  %v5091_v6 = vsel %vm5086_vm1, %v8569_v56, %v9719_v62  ;;  %v5384_v56 = vsel %vm5380_vm8, %v5342_v58, %v11235_v39  ;;  %v2143_v39 = vrot.slane %v11246_v27, 6  ;;  %v14248_v27 = vld [vmem:[#allocation117_spill] sm:$0xff]  ;;  %v4976_v16 = vpop.permute.xlu2 %4975  ;;  %v14258_v58 = vld [vmem:[#allocation46_spill] sm:$0xff] }
 0x7ff   : > { %v4959_v7 = vld.sshfl [vmem:[#allocation1 + $0x20] sm:$0xff pattern:$0x73625140]  ;;  %v5133_v50 = vsel %vm5128_vm2, %v5091_v6, %v10029_v59 }
 0x800   : > { %5041 = vrot.lane.b32.xlu2 %v4959_v7, %s8441_s6  ;;  %v4968_v33 = vpop.permute.xlu1 %4967  ;;  %v5175_v62 = vsel %vm5170_vm3, %v5133_v50, %v10193_v34  ;;  %v14244_v59 = vld [vmem:[#allocation197_spill] sm:$0xff]  ;;  %v2144_v7 = vrot.slane %v11262_v45, 2  ;;  %v14259_v50 = vld [vmem:[#allocation3_spill] sm:$0xff] }
 0x801   : > { %v5383_v18 = vsel %vm5380_vm8, %v5341_v52, %v4968_v33  ;;  %v5217_v30 = vsel %vm5212_vm4, %v5175_v62, %v10484_v43  ;;  %v14253_v52 = vld [vmem:[#allocation225_spill] sm:$0xff] }
 0x802   : > { %8266 = vmatmul.msk.f32.gmra.mxu0 %vm5431_vm9, %v5383_v18  ;;  %v5259_v10 = vsel %vm5254_vm5, %v5217_v30, %v14244_v59  ;;  %v14261_v30 = vld [vmem:[#allocation234_spill] sm:$0xff]  ;;  %v14262_v59 = vld [vmem:[#allocation273_spill] sm:$0xff] }
 0x803   : > { %v11445_v28 = vpop.permute.xlu0 %5001  ;;  %v5301_v54 = vsel %vm5296_vm6, %v5259_v10, %v14245_v2 }
 0x804   : > { %v4888_v36 = vld.sshfl [vmem:[#allocation1] sm:$0xff pattern:$0x73625140]  ;;  %v5343_v34 = vsel %vm5338_vm7, %v5301_v54, %v14246_v21  ;;  %v14264_v54 = vld [vmem:[#allocation110_spill] sm:$0xff] }
 0x805   : > { %4890 = vst [vmem:[#allocation1] ss:$4 sm:$0xff] %v2132_v32  ;;  %v14247_v32 = vld [vmem:[#allocation80_spill] sm:$0xff] }
 0x806   : > { %4891 = vst [vmem:[#allocation1 + $0x1] ss:$4 sm:$0xff] %v2133_v48  ;;  %v5134_v43 = vsel %vm5128_vm2, %v5092_v3, %v14247_v32  ;;  %v14265_v32 = vld [vmem:[#allocation153_spill] sm:$0xff] }
 0x807   : > { %4892 = vst [vmem:[#allocation1 + $0x2] ss:$4 sm:$0xff] %v2134_v25  ;;  %v5176_v48 = vsel %vm5170_vm3, %v5134_v43, %v14248_v27  ;;  %v14249_v25 = vld [vmem:[#allocation142_spill] sm:$0xff]  ;;  %v2154_v43 = vrot.slane %v11300_v17, 4  ;;  %v14268_v27 = vld [vmem:[#allocation192_spill] sm:$0xff] }
 0x808   : > { %5011 = vrot.lane.b32.xlu2 %v4888_v36, %s8441_s6  ;;  %4893 = vst [vmem:[#allocation1 + $0x3] ss:$4 sm:$0xff] %v8244_v51  ;;  %v5218_v36 = vsel %vm5212_vm4, %v5176_v48, %v14249_v25  ;;  %v14251_v51 = vld [vmem:[#allocation7_spill] sm:$0xff]  ;;  %v2155_v25 = vrot.slane %v11300_v17, 6 }
 0x809   : > { %v5093_v38 = vsel %vm5086_vm1, %v14251_v51, %v14250_v0  ;;  %v5260_v9 = vsel %vm5254_vm5, %v5218_v36, %v14252_v60  ;;  %v14269_v36 = vld [vmem:[#allocation219_spill] sm:$0xff] }
 0x80a   : > { %8267 = vmatmul.msk.f32.gmra.mxu0 %vm5431_vm9, %v5384_v56  ;;  %v5302_v33 = vsel %vm5296_vm6, %v5260_v9, %v14253_v52  ;;  %v14260_v56 = vld [vmem:[#allocation188_spill] sm:$0xff] }
 0x80b   : > { %v4972_v35 = vpop.permute.xlu0 %4971 }
 0x80c   : > { %v5385_v49 = vsel %vm5380_vm8, %v5343_v34, %v4972_v35  ;;  %v2153_v34 = vrot.slane %v11300_v17, 2  ;;  %v14272_v17 = vld [vmem:[#allocation125_spill] sm:$0xff] }
 0x80f   : > { %v4898_v8 = vld.sshfl [vmem:[#allocation1] sm:$0xff pattern:$0x73625140] }
 0x810   : > { %5015 = vrot.lane.b32.xlu1 %v4898_v8, %s8441_s6  ;;  %4900 = vst [vmem:[#allocation1] ss:$4 sm:$0xff] %v8246_v20  ;;  %v14255_v20 = vld [vmem:[#allocation78_spill] sm:$0xff] }
 0x811   : > { %4901 = vst [vmem:[#allocation1 + $0x1] ss:$4 sm:$0xff] %v2138_v19  ;;  %v5135_v18 = vsel %vm5128_vm2, %v5093_v38, %v14255_v20  ;;  %v14270_v38 = vld [vmem:[#allocation261_spill] sm:$0xff] }
 0x812   : > { %4902 = vst [vmem:[#allocation1 + $0x2] ss:$4 sm:$0xff] %v2139_v41  ;;  %8268 = vmatmul.msk.f32.gmra.mxu0 %vm5431_vm9, %v5385_v49  ;;  %v14256_v41 = vld [vmem:[#allocation120_spill] sm:$0xff] }
 0x813   : > { %4903 = vst [vmem:[#allocation1 + $0x3] ss:$4 sm:$0xff] %v2140_v31  ;;  %v5177_v6 = vsel %vm5170_vm3, %v5135_v18, %v14256_v41  ;;  %v14257_v31 = vld [vmem:[#allocation159_spill] sm:$0xff]  ;;  %v14276_v41 = vld [vmem:[#allocation60_spill] sm:$0xff] }
 0x814   : > { %v5219_v37 = vsel %vm5212_vm4, %v5177_v6, %v14257_v31  ;;  %v8257_v18 = vld [vmem:[%s8496_s26 + $0x1b2] sm:$0xff] }
 0x815   : > { %v5261_v55 = vsel %vm5254_vm5, %v5219_v37, %v14260_v56  ;;  %v14277_v6 = vld [vmem:[#allocation19_spill] sm:$0xff] }
 0x816   : > { %v5303_v3 = vsel %vm5296_vm6, %v5261_v55, %v14261_v30  ;;  %v14281_v55 = vld [vmem:[#allocation75_spill] sm:$0xff] }
 0x817   : > { %v5345_v10 = vsel %vm5338_vm7, %v5303_v3, %v14262_v59  ;;  %v14282_v3 = vld [vmem:[#allocation87_spill] sm:$0xff] }
 0x818   : > { %v11519_v62 = vpop.permute.xlu2 %5017  ;;  %v5387_v2 = vsel %vm5380_vm8, %v5345_v10, %v4976_v16  ;;  %v14271_v16 = vld [vmem:[#allocation86_spill] sm:$0xff]  ;;  %v2160_v10 = vrot.slane %v8257_v18, 4 }
 0x81a   : > { %v4908_v24 = vld.sshfl [vmem:[#allocation1] sm:$0xff pattern:$0x73625140] }
 0x81b   : > { %5019 = vrot.lane.b32.xlu0 %v4908_v24, %s8441_s6  ;;  %4910 = vst [vmem:[#allocation1] ss:$4 sm:$0xff] %v2143_v39  ;;  %v14263_v39 = vld [vmem:[#allocation83_spill] sm:$0xff]  ;;  %v14267_v24 = vld [vmem:[#allocation9_spill] sm:$0xff] }
 0x81c   : > { %4911 = vst [vmem:[#allocation1 + $0x1] ss:$4 sm:$0xff] %v11262_v45  ;;  %v14254_v45 = vld [vmem:[#allocation248_spill] sm:$0xff] }
 0x81d   : > { %4912 = vst [vmem:[#allocation1 + $0x2] ss:$4 sm:$0xff] %v2144_v7  ;;  %v5344_v61 = vsel %vm5338_vm7, %v5302_v33, %v14254_v45  ;;  %v11533_v7 = vpop.permute.xlu1 %5009 }
 0x81e   : > { %4913 = vst [vmem:[#allocation1 + $0x3] ss:$4 sm:$0xff] %v2145_v4  ;;  %v5386_v19 = vsel %vm5380_vm8, %v5344_v61, %v11327_v13  ;;  %v5094_v13 = vsel %vm5086_vm1, %v14259_v50, %v14258_v58  ;;  %v14266_v4 = vld [vmem:[#allocation43_spill] sm:$0xff] }
 0x81f   : > { %8269 = vmatmul.msk.f32.gmra.mxu0 %vm5431_vm9, %v5386_v19  ;;  %v5136_v35 = vsel %vm5128_vm2, %v5094_v13, %v14263_v39  ;;  %v5095_v49 = vsel %vm5086_vm1, %v14267_v24, %v14266_v4  ;;  %v14273_v61 = vld [vmem:[#allocation151_spill] sm:$0xff]  ;;  %v14275_v19 = vld [vmem:[#allocation4_spill] sm:$0xff]  ;;  %v2159_v13 = vrot.slane %v8257_v18, 2 }
 0x820   : > { %v5178_v21 = vsel %vm5170_vm3, %v5136_v35, %v14264_v54  ;;  %v11549_v9 = vpop.permute.xlu2 %4987  ;;  %v5137_v52 = vsel %vm5128_vm2, %v5095_v49, %v14271_v16  ;;  %v14280_v58 = vld [vmem:[#allocation263_spill] sm:$0xff]  ;;  %v14283_v54 = vld [vmem:[#allocation118_spill] sm:$0xff] }
 0x821   : > { %v5179_v45 = vsel %vm5170_vm3, %v5137_v52, %v14272_v17  ;;  %v14286_v24 = vld [vmem:[#allocation171_spill] sm:$0xff] }
 0x822   : > { %v5221_v20 = vsel %vm5212_vm4, %v5179_v45, %v14273_v61  ;;  %v14292_v16 = vld [vmem:[#allocation199_spill] sm:$0xff]  ;;  %v14294_v45 = vld [vmem:[#allocation246_spill] sm:$0xff] }
 0x825   : > { %v4918_v8 = vld.sshfl [vmem:[#allocation1] sm:$0xff pattern:$0x73625140]  ;;  %v4980_v31 = vpop.permute.xlu1 %4979 }
 0x826   : > { %5023 = vrot.lane.b32.xlu2 %v4918_v8, %s8441_s6  ;;  %4920 = vst [vmem:[#allocation1] ss:$4 sm:$0xff] %v2148_v14  ;;  %v14274_v14 = vld [vmem:[#allocation51_spill] sm:$0xff] }
 0x827   : > { %4921 = vst [vmem:[#allocation1 + $0x1] ss:$4 sm:$0xff] %v2149_v1  ;;  %8270 = vmatmul.msk.f32.gmra.mxu0 %vm5431_vm9, %v5387_v2  ;;  %v5096_v1 = vsel %vm5086_vm1, %v14275_v19, %v14274_v14  ;;  %v2161_v2 = vrot.slane %v8257_v18, 6 }
 0x828   : > { %4922 = vst [vmem:[#allocation1 + $0x2] ss:$4 sm:$0xff] %v11286_v44  ;;  %v5220_v44 = vsel %vm5212_vm4, %v5178_v21, %v14265_v32  ;;  %v5138_v30 = vsel %vm5128_vm2, %v5096_v1, %v14281_v55  ;;  %v14296_v1 = vld [vmem:[#allocation91_spill] sm:$0xff]  ;;  %v14301_v55 = vld [vmem:[#allocation160_spill] sm:$0xff] }
 0x829   : > { %4923 = vst [vmem:[#allocation1 + $0x3] ss:$4 sm:$0xff] %v2150_v15  ;;  %v5262_v48 = vsel %vm5254_vm5, %v5220_v44, %v14268_v27  ;;  %v14278_v15 = vld [vmem:[#allocation198_spill] sm:$0xff]  ;;  %v5180_v21 = vsel %vm5170_vm3, %v5138_v30, %v14283_v54  ;;  %v11587_v44 = vpop.permute.xlu0 %5013  ;;  %v14287_v27 = vld [vmem:[#allocation49_spill] sm:$0xff]  ;;  %v14305_v54 = vld [vmem:[#allocation200_spill] sm:$0xff] }
 0x82a   : > { %v5304_v0 = vsel %vm5296_vm6, %v5262_v48, %v14269_v36  ;;  %v5263_v8 = vsel %vm5254_vm5, %v5221_v20, %v14278_v15  ;;  %v14288_v48 = vld [vmem:[#allocation11_spill] sm:$0xff]  ;;  %v14289_v36 = vld [vmem:[#allocation58_spill] sm:$0xff] }
 0x82b   : > { %v5346_v60 = vsel %vm5338_vm7, %v5304_v0, %v14270_v38  ;;  %v14290_v0 = vld [vmem:[#allocation12_spill] sm:$0xff]  ;;  %v14291_v38 = vld [vmem:[#allocation181_spill] sm:$0xff]  ;;  %v14295_v20 = vld [vmem:[#allocation262_spill] sm:$0xff] }
 0x82c   : > { %v5388_v33 = vsel %vm5380_vm8, %v5346_v60, %v11395_v5  ;;  %v5105_v5 = vsel %vm5086_vm1, %v14277_v6, %v14276_v41  ;;  %v14297_v6 = vld [vmem:[#allocation94_spill] sm:$0xff] }
 0x82d   : > { %v5147_v59 = vsel %vm5128_vm2, %v5105_v5, %v14282_v3  ;;  %v14302_v3 = vld [vmem:[#allocation163_spill] sm:$0xff] }
 0x82f   : > { %8271 = vmatmul.msk.f32.gmra.mxu0 %vm5431_vm9, %v5388_v33  ;;  %v14293_v33 = vld [vmem:[#allocation226_spill] sm:$0xff] }
 0x830   : > { %v4928_v51 = vld.sshfl [vmem:[#allocation1] sm:$0xff pattern:$0x73625140] }
 0x831   : > { %5027 = vrot.lane.b32.xlu1 %v4928_v51, %s8441_s6  ;;  %4930 = vst [vmem:[#allocation1] ss:$4 sm:$0xff] %v2153_v34  ;;  %v14284_v34 = vld [vmem:[#allocation132_spill] sm:$0xff]  ;;  %v5106_v51 = vsel %vm5086_vm1, %v14290_v0, %v14289_v36  ;;  %v14310_v0 = vld [vmem:[#allocation275_spill] sm:$0xff] }
 0x832   : > { %4931 = vst [vmem:[#allocation1 + $0x1] ss:$4 sm:$0xff] %v2154_v43  ;;  %v5189_v32 = vsel %vm5170_vm3, %v5147_v59, %v14284_v34  ;;  %v14285_v43 = vld [vmem:[#allocation156_spill] sm:$0xff]  ;;  %v5148_v5 = vsel %vm5128_vm2, %v5106_v51, %v14297_v6  ;;  %v14306_v34 = vld [vmem:[#allocation203_spill] sm:$0xff] }
 0x833   : > { %4932 = vst [vmem:[#allocation1 + $0x2] ss:$4 sm:$0xff] %v2155_v25  ;;  %v5222_v4 = vsel %vm5212_vm4, %v5180_v21, %v14285_v43  ;;  %v5231_v49 = vsel %vm5212_vm4, %v5189_v32, %v14286_v24  ;;  %v5097_v25 = vsel %vm5086_vm1, %v14288_v48, %v14287_v27  ;;  %v8259_v43 = vld [vmem:[%s8496_s26 + $0x1c2] sm:$0x3]  ;;  %v14307_v24 = vld [vmem:[#allocation227_spill] sm:$0xff] }
 0x834   : > { %4933 = vst [vmem:[#allocation1 + $0x3] ss:$4 sm:$0xff] %v11323_v47  ;;  %v14279_v47 = vld [vmem:[#allocation238_spill] sm:$0xff]  ;;  %v5264_v60 = vsel %vm5254_vm5, %v5222_v4, %v14291_v38  ;;  %v5273_v52 = vsel %vm5254_vm5, %v5231_v49, %v14292_v16  ;;  %v5139_v41 = vsel %vm5128_vm2, %v5097_v25, %v14296_v1  ;;  %v4984_v4 = vpop.permute.xlu0 %4983  ;;  %v14308_v27 = vld [vmem:[#allocation229_spill] sm:$0xff]  ;;  %v14309_v25 = vld [vmem:[#allocation272_spill] sm:$0xff] }
 0x835   : > { %v5305_v37 = vsel %vm5296_vm6, %v5263_v8, %v14279_v47  ;;  %v5306_v17 = vsel %vm5296_vm6, %v5264_v60, %v14293_v33  ;;  %v5315_v61 = vsel %vm5296_vm6, %v5273_v52, %v14294_v45  ;;  %v14298_v8 = vld [vmem:[#allocation287_spill] sm:$0xff]  ;;  %v2165_v47 = vrot.slane %v11386_v11, 2  ;;  %v14311_v38 = vld [vmem:[#allocation84_spill] sm:$0xff]  ;;  %v14312_v33 = vld [vmem:[#allocation122_spill] sm:$0xff] }
 0x836   : > { %v5347_v50 = vsel %vm5338_vm7, %v5305_v37, %v14280_v58  ;;  %v5357_v14 = vsel %vm5338_vm7, %v5315_v61, %v11242_v29  ;;  %v14299_v29 = vld [vmem:[#allocation116_spill] sm:$0xff]  ;;  %v14300_v58 = vld [vmem:[#allocation119_spill] sm:$0xff]  ;;  %v14313_v45 = vld [vmem:[#allocation149_spill] sm:$0xff] }
 0x837   : > { %v5389_v39 = vsel %vm5380_vm8, %v5347_v50, %v4980_v31  ;;  %v5181_v37 = vsel %vm5170_vm3, %v5139_v41, %v14299_v29  ;;  %v5190_v50 = vsel %vm5170_vm3, %v5148_v5, %v14300_v58  ;;  %v14316_v1 = vld [vmem:[#allocation190_spill] sm:$0xff]  ;;  %v8262_v5 = vld [vmem:[%s8496_s26 + $0x1da] sm:$0x3] }
 0x838   : > { %8272 = vmatmul.msk.f32.gmra.mxu0 %vm5431_vm9, %v5389_v39  ;;  %v5223_v30 = vsel %vm5212_vm4, %v5181_v37, %v14301_v55  ;;  %v5232_v59 = vsel %vm5212_vm4, %v5190_v50, %v14302_v3  ;;  %v14303_v39 = vld [vmem:[#allocation44_spill] sm:$0xff]  ;;  %v14317_v41 = vld [vmem:[#allocation230_spill] sm:$0xff]  ;;  %v14321_v55 = vld [vmem:[#allocation165_spill] sm:$0xff] }
 0x839   : > { %v11574_v56 = vpop.permute.xlu2 %5029  ;;  %v5274_v21 = vsel %vm5254_vm5, %v5232_v59, %v14305_v54  ;;  %v5265_v32 = vsel %vm5254_vm5, %v5223_v30, %v14306_v34  ;;  %v14320_v58 = vld [vmem:[#allocation126_spill] sm:$0xff]  ;;  %v14322_v3 = vld [vmem:[#allocation52_spill] sm:$0xff]  ;;  %v14326_v54 = vld [vmem:[#allocation279_spill] sm:$0xff] }
 0x83a   : > { %v5316_v49 = vsel %vm5296_vm6, %v5274_v21, %v14307_v24  ;;  %v5307_v48 = vsel %vm5296_vm6, %v5265_v32, %v14308_v27  ;;  %v14323_v59 = vld [vmem:[#allocation6_spill] sm:$0xff]  ;;  %v14328_v32 = vld [vmem:[#allocation21_spill] sm:$0xff] }
 0x83b   : > { %v4938_v35 = vld.sshfl [vmem:[#allocation1] sm:$0xff pattern:$0x73625140]  ;;  %v5358_v36 = vsel %vm5338_vm7, %v5316_v49, %v14309_v25  ;;  %v5349_v51 = vsel %vm5338_vm7, %v5307_v48, %v14310_v0  ;;  %v11650_v60 = vpop.permute.xlu1 %5021  ;;  %v14327_v34 = vld [vmem:[#allocation50_spill] sm:$0xff] }
 0x83c   : > { %5031 = vrot.lane.b32.xlu0 %v4938_v35, %s8441_s6  ;;  %4940 = vst [vmem:[#allocation1] ss:$4 sm:$0xff] %v8257_v18  ;;  %v5348_v18 = vsel %vm5338_vm7, %v5306_v17, %v14295_v20  ;;  %v14304_v35 = vld [vmem:[#allocation5_spill] sm:$0xff]  ;;  %v5400_v16 = vsel %vm5380_vm8, %v5358_v36, %v11445_v28  ;;  %v5391_v52 = vsel %vm5380_vm8, %v5349_v51, %v4984_v4  ;;  %v2170_v20 = vrot.slane %v11391_v12, 6  ;;  %v14329_v4 = vld [vmem:[#allocation88_spill] sm:$0xff]  ;;  %v14330_v25 = vld [vmem:[#allocation74_spill] sm:$0xff] }
 0x83d   : > { %4941 = vst [vmem:[#allocation1 + $0x1] ss:$4 sm:$0xff] %v2159_v13  ;;  %v5390_v31 = vsel %vm5380_vm8, %v5348_v18, %v14298_v8  ;;  %v2166_v13 = vrot.slane %v11386_v11, 4  ;;  %v14314_v18 = vld [vmem:[#allocation54_spill] sm:$0xff] }
 0x83e   : > { %4942 = vst [vmem:[#allocation1 + $0x2] ss:$4 sm:$0xff] %v2160_v10  ;;  %v14331_v36 = vld [vmem:[#allocation30_spill] sm:$0xff] }
 0x83f   : > { %4943 = vst [vmem:[#allocation1 + $0x3] ss:$4 sm:$0xff] %v2161_v2  ;;  %v5098_v2 = vsel %vm5086_vm1, %v14304_v35, %v14303_v39  ;;  %v14324_v39 = vld [vmem:[#allocation193_spill] sm:$0xff]  ;;  %v14325_v35 = vld [vmem:[#allocation240_spill] sm:$0xff]  ;;  %v5124_v0 = vsel %vm5086_vm1, %v14331_v36, %v14330_v25  ;;  %v14332_v51 = vld [vmem:[#allocation98_spill] sm:$0xff] }
 0x840   : > { %8273 = vmatmul.msk.f32.gmra.mxu0 %vm5431_vm9, %v5390_v31  ;;  %v14353_v36 = vld [vmem:[#allocation155_spill] sm:$0xff] }
 0x841   : > { %v5000_v19 = vpop.permute.xlu2 %4999 }
 0x842   : > { %v5399_v15 = vsel %vm5380_vm8, %v5357_v14, %v5000_v19  ;;  %v14315_v14 = vld [vmem:[#allocation13_spill] sm:$0xff] }
 0x843   : > { %8282 = vmatmul.msk.f32.vlgmr.msra.gmra.mxu2 %vm5431_vm9, %v5399_v15  ;;  %v5099_v19 = vsel %vm5086_vm1, %v14315_v14, %v14314_v18  ;;  %v14318_v15 = vld [vmem:[#allocation254_spill] sm:$0xff]  ;;  %v11678_v37 = vpop.permute.xlu1 %4991  ;;  %v14338_v14 = vld [vmem:[#allocation111_spill] sm:$0xff] }
 0x846   : > { %v4948_v10 = vld.sshfl [vmem:[#allocation1] sm:$0xff pattern:$0x73625140] }
 0x847   : > { %5035 = vrot.lane.b32.xlu2 %v4948_v10, %s8441_s6  ;;  %4951 = vst [vmem:[#allocation1 + $0x1] ss:$4 sm:$0xff] %v11386_v11  ;;  %v5140_v11 = vsel %vm5128_vm2, %v5098_v2, %v14311_v38  ;;  %v5100_v10 = vsel %vm5086_vm1, %v14323_v59, %v14322_v3  ;;  %v14346_v3 = vld [vmem:[#allocation210_spill] sm:$0xff] }
 0x848   : > { %4952 = vst [vmem:[#allocation1 + $0x2] ss:$4 sm:$0xff] %v2165_v47  ;;  %8274 = vmatmul.msk.f32.gmra.mxu0 %vm5431_vm9, %v5391_v52  ;;  %v5182_v17 = vsel %vm5170_vm3, %v5140_v11, %v14312_v33  ;;  %v14319_v47 = vld [vmem:[#allocation82_spill] sm:$0xff]  ;;  %v5142_v24 = vsel %vm5128_vm2, %v5100_v10, %v14329_v4  ;;  %v14334_v52 = vld [vmem:[#allocation45_spill] sm:$0xff]  ;;  %v14335_v33 = vld [vmem:[#allocation15_spill] sm:$0xff] }
 0x849   : > { %4953 = vst [vmem:[#allocation1 + $0x3] ss:$4 sm:$0xff] %v2166_v13  ;;  %v5224_v61 = vsel %vm5212_vm4, %v5182_v17, %v14313_v45  ;;  %v5141_v29 = vsel %vm5128_vm2, %v5099_v19, %v14319_v47  ;;  %v11682_v13 = vpop.permute.xlu0 %5025  ;;  %v14333_v11 = vld [vmem:[#allocation114_spill] sm:$0xff]  ;;  %v14336_v17 = vld [vmem:[#allocation157_spill] sm:$0xff]  ;;  %v5166_v19 = vsel %vm5128_vm2, %v5124_v0, %v14338_v14  ;;  %v14358_v14 = vld [vmem:[#allocation204_spill] sm:$0xff] }
 0x84a   : > { %4950 = vst [vmem:[#allocation1] ss:$4 sm:$0xff] %v8259_v43  ;;  %v5266_v28 = vsel %vm5254_vm5, %v5224_v61, %v14316_v1  ;;  %v5183_v50 = vsel %vm5170_vm3, %v5141_v29, %v14320_v58  ;;  %v5107_v43 = vsel %vm5086_vm1, %v14328_v32, %v14327_v34  ;;  %v14337_v61 = vld [vmem:[#allocation194_spill] sm:$0xff]  ;;  %v14339_v1 = vld [vmem:[#allocation137_spill] sm:$0xff]  ;;  %v14343_v29 = vld [vmem:[#allocation267_spill] sm:$0xff] }
 0x84b   : > { %8283 = vmatmul.msk.f32.gmra.mxu2 %vm5431_vm9, %v5400_v16  ;;  %v5308_v6 = vsel %vm5296_vm6, %v5266_v28, %v14317_v41  ;;  %v5225_v30 = vsel %vm5212_vm4, %v5183_v50, %v14321_v55  ;;  %v5149_v38 = vsel %vm5128_vm2, %v5107_v43, %v14332_v51  ;;  %v5184_v16 = vsel %vm5170_vm3, %v5142_v24, %v14333_v11  ;;  %v14340_v41 = vld [vmem:[#allocation221_spill] sm:$0xff]  ;;  %v14344_v50 = vld [vmem:[#allocation63_spill] sm:$0xff]  ;;  %v14345_v55 = vld [vmem:[#allocation14_spill] sm:$0xff] }
 0x84c   : > { %v5350_v8 = vsel %vm5338_vm7, %v5308_v6, %v14318_v15  ;;  %v5226_v45 = vsel %vm5212_vm4, %v5184_v16, %v14336_v17  ;;  %v5191_v28 = vsel %vm5170_vm3, %v5149_v38, %v14339_v1  ;;  %v14341_v15 = vld [vmem:[#allocation92_spill] sm:$0xff]  ;;  %v14351_v4 = vld [vmem:[#allocation274_spill] sm:$0xff]  ;;  %v14354_v51 = vld [vmem:[#allocation217_spill] sm:$0xff] }
 0x84d   : > { %v5392_v12 = vsel %vm5380_vm8, %v5350_v8, %v11383_v53  ;;  %v5267_v53 = vsel %vm5254_vm5, %v5225_v30, %v14324_v39  ;;  %v5108_v30 = vsel %vm5086_vm1, %v14345_v55, %v14344_v50  ;;  %v14350_v32 = vld [vmem:[#allocation180_spill] sm:$0xff]  ;;  %v14355_v16 = vld [vmem:[#allocation242_spill] sm:$0xff] }
 0x84e   : > { %v5309_v2 = vsel %vm5296_vm6, %v5267_v53, %v14325_v35  ;;  %v14347_v53 = vld [vmem:[#allocation136_spill] sm:$0xff] }
 0x84f   : > { %v5351_v21 = vsel %vm5338_vm7, %v5309_v2, %v14326_v54  ;;  %v5208_v35 = vsel %vm5170_vm3, %v5166_v19, %v14347_v53  ;;  %v14348_v2 = vld [vmem:[#allocation250_spill] sm:$0xff]  ;;  %v14359_v1 = vld [vmem:[#allocation288_spill] sm:$0xff]  ;;  %v14367_v53 = vld [vmem:[#allocation191_spill] sm:$0xff] }
 0x850   : > { %8275 = vmatmul.msk.f32.gmra.mxu0 %vm5431_vm9, %v5392_v12  ;;  %v5393_v27 = vsel %vm5380_vm8, %v5351_v21, %v11549_v9  ;;  %v5101_v9 = vsel %vm5086_vm1, %v14335_v33, %v14334_v52  ;;  %v14349_v21 = vld [vmem:[#allocation131_spill] sm:$0xff]  ;;  %v5250_v43 = vsel %vm5212_vm4, %v5208_v35, %v14350_v32  ;;  %v14364_v50 = vld [vmem:[#allocation168_spill] sm:$0xff] }
 0x851   : > { %v4958_v31 = vld.sshfl [vmem:[#allocation1] sm:$0xff pattern:$0x73625140]  ;;  %v11720_v18 = vpop.permute.xlu0 %4995  ;;  %v5143_v8 = vsel %vm5128_vm2, %v5101_v9, %v14341_v15  ;;  %v5292_v38 = vsel %vm5254_vm5, %v5250_v43, %v14354_v51  ;;  %v14369_v32 = vld [vmem:[#allocation276_spill] sm:$0xff] }
 0x852   : > { %5039 = vrot.lane.b32.xlu1 %v4958_v31, %s8441_s6  ;;  %4960 = vst [vmem:[#allocation1] ss:$4 sm:$0xff] %v2170_v20  ;;  %v5268_v20 = vsel %vm5254_vm5, %v5226_v45, %v14337_v61  ;;  %v14342_v31 = vld [vmem:[#allocation161_spill] sm:$0xff]  ;;  %v5185_v34 = vsel %vm5170_vm3, %v5143_v8, %v14349_v21  ;;  %v5334_v52 = vsel %vm5296_vm6, %v5292_v38, %v14355_v16  ;;  %v14357_v61 = vld [vmem:[#allocation8_spill] sm:$0xff] }
 0x853   : > { %4961 = vst [vmem:[#allocation1 + $0x1] ss:$4 sm:$0xff] %v8262_v5  ;;  %v5310_v6 = vsel %vm5296_vm6, %v5268_v20, %v14340_v41  ;;  %v11731_v5 = vld [vmem:[%s13935_s2] ss:$0 sm:$0xff]  ;;  %v5233_v47 = vsel %vm5212_vm4, %v5191_v28, %v14342_v31  ;;  %v5227_v0 = vsel %vm5212_vm4, %v5185_v34, %v14353_v36  ;;  %v5376_v28 = vsel %vm5338_vm7, %v5334_v52, %v14359_v1  ;;  %v14361_v8 = vld [vmem:[#allocation244_spill] sm:$0xff] }
 0x854   : > { %v5352_v12 = vsel %vm5338_vm7, %v5310_v6, %v14343_v29  ;;  %v5275_v59 = vsel %vm5254_vm5, %v5233_v47, %v14346_v3  ;;  %v14356_v45 = vld [vmem:[#allocation57_spill] sm:$0xff]  ;;  %v5269_v19 = vsel %vm5254_vm5, %v5227_v0, %v14358_v14 }
 0x855   : > { %v5394_v10 = vsel %vm5380_vm8, %v5352_v12, %v11423_v46  ;;  %v5317_v54 = vsel %vm5296_vm6, %v5275_v59, %v14348_v2  ;;  %v5102_v20 = vsel %vm5086_vm1, %v14357_v61, %v14356_v45  ;;  %v14360_v6 = vld [vmem:[#allocation129_spill] sm:$0xff]  ;;  %v5311_v31 = vsel %vm5296_vm6, %v5269_v19, %v14361_v8  ;;  %v14363_v12 = vld [vmem:[#allocation23_spill] sm:$0xff]  ;;  %v14379_v19 = vld [vmem:[#allocation270_spill] sm:$0xff] }
 0x856   : > { %v5359_v24 = vsel %vm5338_vm7, %v5317_v54, %v14351_v4  ;;  %v14362_v29 = vld [vmem:[#allocation61_spill] sm:$0xff] }
 0x857   : > { %v14368_v21 = vld [vmem:[#allocation237_spill] sm:$0xff] }
 0x858   : > { %8276 = vmatmul.msk.f32.gmra.mxu0 %vm5431_vm9, %v5393_v27  ;;  %v14352_v27 = vld [vmem:[#allocation85_spill] sm:$0xff] }
 0x859   : > { %v5150_v25 = vsel %vm5128_vm2, %v5108_v30, %v14352_v27  ;;  %v14365_v30 = vld [vmem:[#allocation268_spill] sm:$0xff]  ;;  %v14374_v16 = vld [vmem:[#allocation17_spill] sm:$0xff] }
 0x85a   : > { %v4962_v49 = vld.sshfl [vmem:[#allocation1] sm:$0xff pattern:$0x73625140]  ;;  %v5192_v15 = vsel %vm5170_vm3, %v5150_v25, %v14360_v6  ;;  %v5353_v3 = vsel %vm5338_vm7, %v5311_v31, %v14365_v30  ;;  %v14372_v25 = vld [vmem:[#allocation162_spill] sm:$0xff] }
 0x85b   : > { %5043 = vrot.lane.b32.xlu0 %v4962_v49, %s8441_s6  ;;  %v5234_v55 = vsel %vm5212_vm4, %v5192_v15, %v14364_v50  ;;  %v5395_v2 = vsel %vm5380_vm8, %v5353_v3, %v11678_v37  ;;  %v14382_v15 = vld [vmem:[#allocation97_spill] sm:$0xff]  ;;  %v14383_v31 = vld [vmem:[#allocation214_spill] sm:$0xff]  ;;  %v14386_v3 = vld [vmem:[#allocation95_spill] sm:$0xff] }
 0x85c   : > { %v11704_v48 = vpop.permute.xlu1 %5033  ;;  %v5276_v35 = vsel %vm5254_vm5, %v5234_v55, %v14367_v53  ;;  %v14385_v55 = vld [vmem:[#allocation285_spill] sm:$0xff] }
 0x85d   : > { %v5318_v34 = vsel %vm5296_vm6, %v5276_v35, %v14368_v21  ;;  %v14388_v35 = vld [vmem:[#allocation166_spill] sm:$0xff] }
 0x85e   : > { %v5576_v58 = vpop.f32.mrf.mxu0  ;;  %v5360_v43 = vsel %vm5338_vm7, %v5318_v34, %v14369_v32  ;;  %v14391_v34 = vld [vmem:[#allocation209_spill] sm:$0xff] }
 0x85f   : > { %v5577_v39 = vadd.f32 %v11731_v5, %v5576_v58  ;;  %v5109_v58 = vsel %vm5086_vm1, %v14363_v12, %v14362_v29  ;;  %v5402_v37 = vsel %vm5380_vm8, %v5360_v43, %v11466_v57  ;;  %v14377_v57 = vld [vmem:[#allocation232_spill] sm:$0xff]  ;;  %v14392_v43 = vld [vmem:[#allocation134_spill] sm:$0xff] }
 0x860   : > { %8277 = vmatmul.msk.f32.gmra.mxu0 %vm5431_vm9, %v5394_v10  ;;  %v14366_v10 = vld [vmem:[#allocation81_spill] sm:$0xff] }
 0x861   : > { %v5699_v49 = vmax.f32 %v5577_v39, 0.0  ;;  %v5144_v39 = vsel %vm5128_vm2, %v5102_v20, %v14366_v10  ;;  %v14378_v20 = vld [vmem:[#allocation172_spill] sm:$0xff]  ;;  %v14387_v10 = vld [vmem:[#allocation121_spill] sm:$0xff] }
 0x863   : > { %v5781_v33 = vrot.slane %v5699_v49, 2  ;;  %v5782_v9 = vrot.slane %v5699_v49, 4  ;;  %v5783_v17 = vrot.slane %v5699_v49, 6  ;;  %5936 = vst [vmem:[#allocation1] ss:$4 sm:$0xff] %v5699_v49  ;;  %v14371_v49 = vld [vmem:[#allocation123_spill] sm:$0xff] }
 0x864   : > { %v5004_v46 = vpop.permute.xlu1 %5003  ;;  %v5186_v27 = vsel %vm5170_vm3, %v5144_v39, %v14371_v49  ;;  %v11853_v49 = vpop.permute.xlu2 %5041 }
 0x865   : > { %v5401_v11 = vsel %vm5380_vm8, %v5359_v24, %v5004_v46  ;;  %5938 = vst [vmem:[#allocation1 + $0x1] ss:$4 sm:$0xff] %v5781_v33  ;;  %v14370_v24 = vld [vmem:[#allocation103_spill] sm:$0xff]  ;;  %v5228_v36 = vsel %vm5212_vm4, %v5186_v27, %v14372_v25  ;;  %v14375_v33 = vld [vmem:[#allocation186_spill] sm:$0xff]  ;;  %v14395_v25 = vld [vmem:[#allocation281_spill] sm:$0xff] }
 0x866   : > { %8284 = vmatmul.msk.f32.gmra.mxu2 %vm5431_vm9, %v5401_v11  ;;  %5940 = vst [vmem:[#allocation1 + $0x2] ss:$4 sm:$0xff] %v5782_v9  ;;  %v5579_v59 = vpop.f32.mrf.mxu0  ;;  %v5151_v46 = vsel %vm5128_vm2, %v5109_v58, %v14370_v24  ;;  %v14373_v11 = vld [vmem:[#allocation55_spill] sm:$0xff]  ;;  %v5270_v9 = vsel %vm5254_vm5, %v5228_v36, %v14375_v33  ;;  %v14393_v24 = vld [vmem:[#allocation233_spill] sm:$0xff]  ;;  %v14394_v27 = vld [vmem:[#allocation158_spill] sm:$0xff] }
 0x867   : > { %v5038_v41 = vpop.permute.xlu0 %5037  ;;  %5942 = vst [vmem:[#allocation1 + $0x3] ss:$4 sm:$0xff] %v5783_v17  ;;  %v5580_v54 = vadd.f32 %v11731_v5, %v5579_v59  ;;  %v5103_v52 = vsel %vm5086_vm1, %v14374_v16, %v14373_v11  ;;  %v14376_v17 = vld [vmem:[#allocation127_spill] sm:$0xff]  ;;  %v5312_v61 = vsel %vm5296_vm6, %v5270_v9, %v14377_v57  ;;  %v14398_v11 = vld [vmem:[#allocation89_spill] sm:$0xff]  ;;  %v14401_v57 = vld [vmem:[#allocation266_spill] sm:$0xff] }
 0x868   : > { %v5418_v47 = vsel %vm5380_vm8, %v5376_v28, %v5038_v41  ;;  %8278 = vmatmul.msk.f32.gmra.mxu0 %vm5431_vm9, %v5395_v2  ;;  %v5193_v45 = vsel %vm5170_vm3, %v5151_v46, %v14376_v17  ;;  %v5354_v1 = vsel %vm5338_vm7, %v5312_v61, %v14379_v19  ;;  %v14380_v28 = vld [vmem:[#allocation53_spill] sm:$0xff]  ;;  %v14381_v41 = vld [vmem:[#allocation16_spill] sm:$0xff]  ;;  %v5145_v8 = vsel %vm5128_vm2, %v5103_v52, %v14382_v15  ;;  %v14384_v58 = vld [vmem:[#allocation239_spill] sm:$0xff] }
 0x869   : > { %8301 = vmatmul.msk.f32.vlgmr.msra.gmra.mxu3 %vm5431_vm9, %v5418_v47  ;;  %v5700_v4 = vmax.f32 %v5580_v54, 0.0  ;;  %v5235_v14 = vsel %vm5212_vm4, %v5193_v45, %v14378_v20  ;;  %v5110_v6 = vsel %vm5086_vm1, %v14381_v41, %v14380_v28  ;;  %v5396_v12 = vsel %vm5380_vm8, %v5354_v1, %v11316_v42  ;;  %v14389_v42 = vld [vmem:[#allocation48_spill] sm:$0xff]  ;;  %v14390_v54 = vld [vmem:[#allocation10_spill] sm:$0xff]  ;;  %v14399_v52 = vld [vmem:[#allocation201_spill] sm:$0xff] }
 0x86a   : > { %v5277_v47 = vsel %vm5254_vm5, %v5235_v14, %v14383_v31  ;;  %v5152_v59 = vsel %vm5128_vm2, %v5110_v6, %v14386_v3  ;;  %v5187_v39 = vsel %vm5170_vm3, %v5145_v8, %v14387_v10  ;;  %v5104_v21 = vsel %vm5086_vm1, %v14390_v54, %v14389_v42  ;;  %v14400_v17 = vld [vmem:[#allocation241_spill] sm:$0xff]  ;;  %v14403_v19 = vld [vmem:[#allocation128_spill] sm:$0xff]  ;;  %v14404_v41 = vld [vmem:[#allocation154_spill] sm:$0xff] }
 0x86b   : > { %v5784_v0 = vrot.slane %v5700_v4, 2  ;;  %v5785_v51 = vrot.slane %v5700_v4, 4  ;;  %v5786_v38 = vrot.slane %v5700_v4, 6  ;;  %5944 = vst [vmem:[#allocation1 + $0x20] ss:$4 sm:$0xff] %v5700_v4  ;;  %v5319_v50 = vsel %vm5296_vm6, %v5277_v47, %v14384_v58  ;;  %v14402_v20 = vld [vmem:[#allocation93_spill] sm:$0xff] }
 0x86c   : > { %v5361_v30 = vsel %vm5338_vm7, %v5319_v50, %v14385_v55  ;;  %v5229_v2 = vsel %vm5212_vm4, %v5187_v39, %v14388_v35  ;;  %v5194_v4 = vsel %vm5170_vm3, %v5152_v59, %v14392_v43  ;;  %v5146_v16 = vsel %vm5128_vm2, %v5104_v21, %v14398_v11  ;;  %v14405_v6 = vld [vmem:[#allocation195_spill] sm:$0xff]  ;;  %v14406_v8 = vld [vmem:[#allocation138_spill] sm:$0xff]  ;;  %v14409_v50 = vld [vmem:[#allocation260_spill] sm:$0xff]  ;;  %v5012_v39 = vpop.permute.xlu2 %5011 }
 0x86d   : > { %5946 = vst [vmem:[#allocation1 + $0x21] ss:$4 sm:$0xff] %v5784_v0  ;;  %v5271_v32 = vsel %vm5254_vm5, %v5229_v2, %v14391_v34  ;;  %v14396_v0 = vld [vmem:[#allocation66_spill] sm:$0xff]  ;;  %v5188_v1 = vsel %vm5170_vm3, %v5146_v16, %v14403_v19  ;;  %v14407_v47 = vld [vmem:[#allocation235_spill] sm:$0xff]  ;;  %v14410_v55 = vld [vmem:[#allocation64_spill] sm:$0xff] }
 0x86e   : > { %8285 = vmatmul.msk.f32.gmra.mxu2 %vm5431_vm9, %v5402_v37  ;;  %5948 = vst [vmem:[#allocation1 + $0x22] ss:$4 sm:$0xff] %v5785_v51  ;;  %v5313_v46 = vsel %vm5296_vm6, %v5271_v32, %v14393_v24  ;;  %v5236_v37 = vsel %vm5212_vm4, %v5194_v4, %v14394_v27  ;;  %v14397_v51 = vld [vmem:[#allocation25_spill] sm:$0xff]  ;;  %v14413_v35 = vld [vmem:[#allocation252_spill] sm:$0xff] }
 0x86f   : > { %v5008_v29 = vpop.permute.xlu0 %5007  ;;  %5950 = vst [vmem:[#allocation1 + $0x23] ss:$4 sm:$0xff] %v5786_v38  ;;  %v5355_v36 = vsel %vm5338_vm7, %v5313_v46, %v14395_v25  ;;  %v5111_v38 = vsel %vm5086_vm1, %v14397_v51, %v14396_v0  ;;  %v5278_v33 = vsel %vm5254_vm5, %v5236_v37, %v14399_v52  ;;  %v14412_v59 = vld [vmem:[#allocation205_spill] sm:$0xff]  ;;  %v14415_v21 = vld [vmem:[#allocation100_spill] sm:$0xff]  ;;  %v14418_v46 = vld [vmem:[#allocation27_spill] sm:$0xff] }
 0x870   : > { %8279 = vmatmul.msk.f32.gmra.mxu0 %vm5431_vm9, %v5396_v12  ;;  %v5403_v53 = vsel %vm5380_vm8, %v5361_v30, %v5008_v29  ;;  %v5397_v9 = vsel %vm5380_vm8, %v5355_v36, %v11720_v18  ;;  %v5320_v45 = vsel %vm5296_vm6, %v5278_v33, %v14400_v17  ;;  %v5153_v14 = vsel %vm5128_vm2, %v5111_v38, %v14402_v20  ;;  %v14408_v12 = vld [vmem:[#allocation176_spill] sm:$0xff]  ;;  %v14411_v30 = vld [vmem:[#allocation18_spill] sm:$0xff]  ;;  %v14414_v42 = vld [vmem:[#allocation289_spill] sm:$0xff] }
 0x871   : > { %v5362_v61 = vsel %vm5338_vm7, %v5320_v45, %v14401_v57  ;;  %v5230_v18 = vsel %vm5212_vm4, %v5188_v1, %v14404_v41  ;;  %v5195_v31 = vsel %vm5170_vm3, %v5153_v14, %v14406_v8  ;;  %v5112_v3 = vsel %vm5086_vm1, %v14411_v30, %v14410_v55  ;;  %v14416_v43 = vld [vmem:[#allocation124_spill] sm:$0xff]  ;;  %v14419_v37 = vld [vmem:[#allocation169_spill] sm:$0xff]  ;;  %v14420_v0 = vld [vmem:[#allocation206_spill] sm:$0xff] }
 0x872   : > { %v5404_v28 = vsel %vm5380_vm8, %v5362_v61, %v11533_v7  ;;  %v5272_v15 = vsel %vm5254_vm5, %v5230_v18, %v14405_v6  ;;  %v5237_v58 = vsel %vm5212_vm4, %v5195_v31, %v14408_v12  ;;  %v5154_v34 = vsel %vm5128_vm2, %v5112_v3, %v14415_v21  ;;  %v14421_v38 = vld [vmem:[#allocation231_spill] sm:$0xff]  ;;  %v14422_v52 = vld [vmem:[#allocation104_spill] sm:$0xff] }
 0x873   : > { %v5314_v29 = vsel %vm5296_vm6, %v5272_v15, %v14407_v47  ;;  %v5279_v10 = vsel %vm5254_vm5, %v5237_v58, %v14412_v59  ;;  %v5196_v4 = vsel %vm5170_vm3, %v5154_v34, %v14416_v43  ;;  %v14424_v14 = vld [vmem:[#allocation143_spill] sm:$0xff]  ;;  %v14426_v41 = vld [vmem:[#allocation20_spill] sm:$0xff] }
 0x874   : > { %v5356_v7 = vsel %vm5338_vm7, %v5314_v29, %v14409_v50  ;;  %v5321_v2 = vsel %vm5296_vm6, %v5279_v10, %v14413_v35  ;;  %v5238_v25 = vsel %vm5212_vm4, %v5196_v4, %v14419_v37  ;;  %v14427_v6 = vld [vmem:[#allocation167_spill] sm:$0xff]  ;;  %v14429_v29 = vld [vmem:[#allocation256_spill] sm:$0xff]  ;;  %v14430_v50 = vld [vmem:[#allocation90_spill] sm:$0xff] }
 0x875   : > { %v5363_v54 = vsel %vm5338_vm7, %v5321_v2, %v14414_v42  ;;  %v5280_v51 = vsel %vm5254_vm5, %v5238_v25, %v14420_v0  ;;  %v14428_v8 = vld [vmem:[#allocation215_spill] sm:$0xff]  ;;  %v14431_v55 = vld [vmem:[#allocation280_spill] sm:$0xff]  ;;  %v14433_v42 = vld [vmem:[#allocation174_spill] sm:$0xff] }
 0x876   : > { %8286 = vmatmul.msk.f32.gmra.mxu2 %vm5431_vm9, %v5403_v53  ;;  %v5398_v53 = vsel %vm5380_vm8, %v5356_v7, %v11413_v22  ;;  %v5405_v32 = vsel %vm5380_vm8, %v5363_v54, %v5012_v39  ;;  %v14417_v22 = vld [vmem:[#allocation56_spill] sm:$0xff]  ;;  %v5322_v11 = vsel %vm5296_vm6, %v5280_v51, %v14421_v38  ;;  %v14434_v34 = vld [vmem:[#allocation67_spill] sm:$0xff]  ;;  %v14438_v37 = vld [vmem:[#allocation282_spill] sm:$0xff] }
 0x877   : > { %v5113_v27 = vsel %vm5086_vm1, %v14418_v46, %v14417_v22  ;;  %v14436_v4 = vld [vmem:[#allocation196_spill] sm:$0xff]  ;;  %v14437_v22 = vld [vmem:[#allocation243_spill] sm:$0xff]  ;;  %v14440_v38 = vld [vmem:[#allocation133_spill] sm:$0xff] }
 0x878   : > { %8280 = vmatmul.msk.f32.gmra.mxu0 %vm5431_vm9, %v5397_v9  ;;  %v5155_v33 = vsel %vm5128_vm2, %v5113_v27, %v14422_v52  ;;  %v14423_v9 = vld [vmem:[#allocation278_spill] sm:$0xff] }
 0x879   : > { %v5364_v17 = vsel %vm5338_vm7, %v5322_v11, %v14423_v9  ;;  %v5197_v19 = vsel %vm5170_vm3, %v5155_v33, %v14424_v14  ;;  %v14442_v52 = vld [vmem:[#allocation22_spill] sm:$0xff]  ;;  %v14443_v9 = vld [vmem:[#allocation177_spill] sm:$0xff] }
 0x87a   : > { %v5406_v45 = vsel %vm5380_vm8, %v5364_v17, %v11587_v44  ;;  %v5239_v15 = vsel %vm5212_vm4, %v5197_v19, %v14427_v6  ;;  %v14446_v19 = vld [vmem:[#allocation101_spill] sm:$0xff] }
 0x87b   : > { %v5281_v31 = vsel %vm5254_vm5, %v5239_v15, %v14428_v8 }
 0x87c   : > { %v5323_v12 = vsel %vm5296_vm6, %v5281_v31, %v14429_v29  ;;  %v14448_v31 = vld [vmem:[#allocation140_spill] sm:$0xff] }
 0x87d   : > { %v5365_v30 = vsel %vm5338_vm7, %v5323_v12, %v14431_v55  ;;  %v14449_v12 = vld [vmem:[#allocation164_spill] sm:$0xff] }
 0x87e   : > { %8287 = vmatmul.msk.f32.gmra.mxu2 %vm5431_vm9, %v5404_v28  ;;  %v14425_v28 = vld [vmem:[#allocation69_spill] sm:$0xff] }
 0x87f   : > { %v5582_v24 = vpop.f32.mrf.mxu0  ;;  %v5114_v18 = vsel %vm5086_vm1, %v14426_v41, %v14425_v28  ;;  %v14447_v28 = vld [vmem:[#allocation291_spill] sm:$0xff] }
 0x880   : > { %8281 = vmatmul.msk.f32.gmra.mxu0 %vm5431_vm9, %v5398_v53  ;;  %v5583_v36 = vadd.f32 %v11731_v5, %v5582_v24  ;;  %v5156_v7 = vsel %vm5128_vm2, %v5114_v18, %v14430_v50  ;;  %v14432_v53 = vld [vmem:[#allocation135_spill] sm:$0xff]  ;;  %v5902_v18 = vlaneseq }
 0x881   : > { %v5198_v35 = vsel %vm5170_vm3, %v5156_v7, %v14432_v53  ;;  %v14450_v50 = vld [vmem:[#allocation71_spill] sm:$0xff] }
 0x882   : > { %v5701_v16 = vmax.f32 %v5583_v36, 0.0  ;;  %v5016_v47 = vpop.permute.xlu1 %5015  ;;  %v5240_v54 = vsel %vm5212_vm4, %v5198_v35, %v14433_v42  ;;  %v14439_v36 = vld [vmem:[#allocation108_spill] sm:$0xff]  ;;  %v11981_v15 = vshrl.u32 %v5902_v18, 7  ;;  %v14451_v7 = vld [vmem:[#allocation31_spill] sm:$0xff] }
 0x883   : > { %v5407_v3 = vsel %vm5380_vm8, %v5365_v30, %v5016_v47  ;;  %v5282_v24 = vsel %vm5254_vm5, %v5240_v54, %v14436_v4  ;;  %v5117_v55 = vsel %vm5086_vm1, %v14451_v7, %v14450_v50  ;;  %v14452_v30 = vld [vmem:[#allocation207_spill] sm:$0xff] }
 0x884   : > { %v5787_v57 = vrot.slane %v5701_v16, 2  ;;  %v5788_v61 = vrot.slane %v5701_v16, 4  ;;  %v5789_v20 = vrot.slane %v5701_v16, 6  ;;  %5953 = vst [vmem:[#allocation1] ss:$4 sm:$0xff] %v5701_v16  ;;  %v5324_v46 = vsel %vm5296_vm6, %v5282_v24, %v14437_v22  ;;  %v14441_v16 = vld [vmem:[#allocation59_spill] sm:$0xff] }
 0x885   : > { %v5366_v25 = vsel %vm5338_vm7, %v5324_v46, %v14438_v37  ;;  %v5116_v33 = vsel %vm5086_vm1, %v14442_v52, %v14441_v16  ;;  %vm5906_vm10 = vcmp.ge.s32.totalorder %v11981_v15, 1  ;;  %v14454_v35 = vld [vmem:[#allocation271_spill] sm:$0xff] }
 0x886   : > { %8288 = vmatmul.msk.f32.gmra.mxu2 %vm5431_vm9, %v5405_v32  ;;  %5955 = vst [vmem:[#allocation1 + $0x20] ss:$4 sm:$0xff] %v5787_v57  ;;  %v14435_v32 = vld [vmem:[#allocation29_spill] sm:$0xff]  ;;  %v5408_v51 = vsel %vm5380_vm8, %v5366_v25, %v11519_v62  ;;  %v14455_v42 = vld [vmem:[#allocation99_spill] sm:$0xff] }
 0x887   : > { %5956 = vst [vmem:[#allocation1 + $0x21] ss:$4 sm:$0xff] %v5788_v61  ;;  %v5585_v1 = vpop.f32.mrf.mxu0  ;;  %v5115_v43 = vsel %vm5086_vm1, %v14435_v32, %v14434_v34  ;;  %v5159_v54 = vsel %vm5128_vm2, %v5117_v55, %v14455_v42  ;;  %v12009_v34 = vadd.s32 16, %v11981_v15  ;;  %v14464_v50 = vld [vmem:[#allocation175_spill] sm:$0xff] }
 0x888   : > { %5957 = vst [vmem:[#allocation1 + $0x22] ss:$4 sm:$0xff] %v5789_v20  ;;  %v5586_v44 = vadd.f32 %v11731_v5, %v5585_v1  ;;  %v5157_v0 = vsel %vm5128_vm2, %v5115_v43, %v14439_v36  ;;  %v14445_v20 = vld [vmem:[#allocation245_spill] sm:$0xff]  ;;  %v5158_v1 = vsel %vm5128_vm2, %v5116_v33, %v14446_v19  ;;  %v14461_v19 = vld [vmem:[#allocation258_spill] sm:$0xff] }
 0x889   : > { %v5199_v11 = vsel %vm5170_vm3, %v5157_v0, %v14440_v38  ;;  %v5200_v47 = vsel %vm5170_vm3, %v5158_v1, %v14448_v31  ;;  %v14456_v0 = vld [vmem:[#allocation144_spill] sm:$0xff]  ;;  %vm5917_vm13 = vcmp.le.s32.totalorder %v12009_v34, 16 }
 0x88a   : > { %v5702_v58 = vmax.f32 %v5586_v44, 0.0  ;;  %v5241_v17 = vsel %vm5212_vm4, %v5199_v11, %v14443_v9  ;;  %v14457_v11 = vld [vmem:[#allocation182_spill] sm:$0xff] }
 0x88c   : > { %v5790_v59 = vrot.slane %v5702_v58, 2  ;;  %v5791_v10 = vrot.slane %v5702_v58, 4  ;;  %v5792_v39 = vrot.slane %v5702_v58, 6  ;;  %5958 = vst [vmem:[#allocation1 + $0x23] ss:$4 sm:$0xff] %v5702_v58  ;;  %v5242_v58 = vsel %vm5212_vm4, %v5200_v47, %v14449_v12 }
 0x88d   : > { %v5020_v61 = vpop.permute.xlu0 %5019 }
 0x88e   : > { %8289 = vmatmul.msk.f32.gmra.mxu2 %vm5431_vm9, %v5406_v45  ;;  %5960 = vst [vmem:[#allocation1] ss:$4 sm:$0xff] %v5790_v59  ;;  %v14444_v45 = vld [vmem:[#allocation220_spill] sm:$0xff] }
 0x88f   : > { %5961 = vst [vmem:[#allocation1 + $0x1] ss:$4 sm:$0xff] %v5791_v10  ;;  %v5588_v2 = vpop.f32.mrf.mxu0  ;;  %v5283_v57 = vsel %vm5254_vm5, %v5241_v17, %v14444_v45  ;;  %v14453_v10 = vld [vmem:[#allocation247_spill] sm:$0xff]  ;;  %v14458_v17 = vld [vmem:[#allocation70_spill] sm:$0xff]  ;;  %v14459_v45 = vld [vmem:[#allocation24_spill] sm:$0xff] }
 0x890   : > { %5962 = vst [vmem:[#allocation1 + $0x2] ss:$4 sm:$0xff] %v5792_v39  ;;  %v5589_v21 = vadd.f32 %v11731_v5, %v5588_v2  ;;  %v5325_v62 = vsel %vm5296_vm6, %v5283_v57, %v14445_v20  ;;  %v5118_v57 = vsel %vm5086_vm1, %v14459_v45, %v14458_v17 }
 0x891   : > { %v5367_v41 = vsel %vm5338_vm7, %v5325_v62, %v14447_v28  ;;  %v5024_v62 = vpop.permute.xlu2 %5023 }
 0x892   : > { %v5703_v27 = vmax.f32 %v5589_v21, 0.0  ;;  %v5409_v6 = vsel %vm5380_vm8, %v5367_v41, %v5020_v61  ;;  %v14460_v61 = vld [vmem:[#allocation211_spill] sm:$0xff] }
 0x893   : > { %v5959_v44 = vld.sshfl [vmem:[#allocation1 + $0x20] sm:$0xff pattern:$0x73625140] }
 0x894   : > { %5963 = vst [vmem:[#allocation1 + $0x3] ss:$4 sm:$0xff] %v5703_v27  ;;  %v5793_v14 = vrot.slane %v5703_v27, 2  ;;  %v11996_v59 = vsel %vm5906_vm10, %v5959_v44, 0.0  ;;  %v5794_v32 = vrot.slane %v5703_v27, 4  ;;  %v5795_v43 = vrot.slane %v5703_v27, 6 }
 0x895   : > { %6695 = vrot.lane.b32.xlu0 %v11996_v59, %s8438_s28  ;;  %v6321_v4 = vrot.slane %v11996_v59, 1  ;;  %v6402_v24 = vrot.slane %v11996_v59, 2 }
 0x896   : > { %8290 = vmatmul.msk.f32.gmra.mxu2 %vm5431_vm9, %v5407_v3  ;;  %5964 = vst [vmem:[#allocation1 + $0x20] ss:$4 sm:$0xff] %v5793_v14  ;;  %v5284_v3 = vsel %vm5254_vm5, %v5242_v58, %v14452_v30  ;;  %v14463_v58 = vld [vmem:[#allocation130_spill] sm:$0xff] }
 0x897   : > { %v5326_v39 = vsel %vm5296_vm6, %v5284_v3, %v14453_v10  ;;  %v14465_v10 = vld [vmem:[#allocation62_spill] sm:$0xff] }
 0x898   : > { %v5368_v2 = vsel %vm5338_vm7, %v5326_v39, %v14454_v35  ;;  %v14466_v39 = vld [vmem:[#allocation33_spill] sm:$0xff]  ;;  %v14467_v35 = vld [vmem:[#allocation212_spill] sm:$0xff] }
 0x899   : > { %v5410_v21 = vsel %vm5380_vm8, %v5368_v2, %v11650_v60 }
 0x89b   : > { %v12014_v46 = vld.sshfl [vmem:[#allocation1] sm:$0xff pattern:$0x73625140] }
 0x89c   : > { %v5591_v8 = vpop.f32.mrf.mxu0  ;;  %6697 = vrot.lane.b32.xlu1 %v12014_v46, %s8438_s28  ;;  %5967 = vst [vmem:[#allocation1] ss:$4 sm:$0xff] %v5794_v32  ;;  %v6403_v27 = vrot.slane %v12014_v46, 2  ;;  %v6322_v36 = vrot.slane %v12014_v46, 1  ;;  %v14469_v32 = vld [vmem:[#allocation68_spill] sm:$0xff] }
 0x89d   : > { %v5592_v29 = vadd.f32 %v11731_v5, %v5591_v8  ;;  %5968 = vst [vmem:[#allocation1 + $0x1] ss:$4 sm:$0xff] %v5795_v43  ;;  %v5966_v14 = vld.sshfl [vmem:[#allocation1 + $0x20] sm:$0xff pattern:$0x73625140] }
 0x89e   : > { %8291 = vmatmul.msk.f32.gmra.mxu2 %vm5431_vm9, %v5408_v51  ;;  %v5201_v51 = vsel %vm5170_vm3, %v5159_v54, %v14456_v0  ;;  %v6404_v33 = vsel %vm6396_vm11, %v6402_v24, %v6403_v27  ;;  %v6323_v9 = vsel %vm6315_vm12, %v6321_v4, %v6322_v36  ;;  %v6218_v41 = vsel %vm5917_vm13, %v5966_v14, 0.0  ;;  %v14468_v54 = vld [vmem:[#allocation236_spill] sm:$0xff]  ;;  %v14470_v43 = vld [vmem:[#allocation37_spill] sm:$0xff]  ;;  %v14471_v24 = vld [vmem:[#allocation283_spill] sm:$0xff] }
 0x89f   : > { %v5704_v53 = vmax.f32 %v5592_v29, 0.0  ;;  %v5243_v16 = vsel %vm5212_vm4, %v5201_v51, %v14457_v11  ;;  %6603 = vrot.lane.b32.xlu0 %v6404_v33, %s8437_s27  ;;  %6507 = vrot.lane.b32.xlu2 %v6323_v9, %s8435_s21  ;;  %v6324_v31 = vrot.slane %v6218_v41, 1  ;;  %v6405_v42 = vrot.slane %v6218_v41, 2  ;;  %v14477_v14 = vld [vmem:[#allocation152_spill] sm:$0xff] }
 0x8a0   : > { %v5285_v20 = vsel %vm5254_vm5, %v5243_v16, %v14460_v61  ;;  %v5125_v4 = vsel %vm5086_vm1, %v14470_v43, %v14469_v32  ;;  %v14488_v32 = vld [vmem:[#allocation96_spill] sm:$0xff] }
 0x8a1   : > { %v5796_v22 = vrot.slane %v5704_v53, 2  ;;  %v5797_v25 = vrot.slane %v5704_v53, 4  ;;  %v5798_v38 = vrot.slane %v5704_v53, 6  ;;  %5969 = vst [vmem:[#allocation1 + $0x2] ss:$4 sm:$0xff] %v5704_v53  ;;  %v5327_v1 = vsel %vm5296_vm6, %v5285_v20, %v14461_v19  ;;  %v14476_v20 = vld [vmem:[#allocation148_spill] sm:$0xff] }
 0x8a2   : > { %v5369_v18 = vsel %vm5338_vm7, %v5327_v1, %v11374_v40  ;;  %v6325_v30 = vsel %vm6315_vm12, %v6322_v36, %v6324_v31  ;;  %v5119_v53 = vsel %vm5086_vm1, %v14466_v39, %v14465_v10  ;;  %v14472_v36 = vld [vmem:[#allocation109_spill] sm:$0xff]  ;;  %v6406_v16 = vsel %vm6396_vm11, %v6403_v27, %v6405_v42  ;;  %v14487_v42 = vld [vmem:[#allocation290_spill] sm:$0xff] }
 0x8a3   : > { %5970 = vst [vmem:[#allocation1 + $0x3] ss:$4 sm:$0xff] %v5796_v22  ;;  %v5411_v8 = vsel %vm5380_vm8, %v5369_v18, %v5024_v62  ;;  %v5161_v0 = vsel %vm5128_vm2, %v5119_v53, %v14472_v36  ;;  %v14478_v19 = vld [vmem:[#allocation173_spill] sm:$0xff] }
 0x8a4   : > { %v5594_v37 = vpop.f32.mrf.mxu0  ;;  %5971 = vst [vmem:[#allocation1 + $0x20] ss:$4 sm:$0xff] %v5797_v25  ;;  %6887 = vrot.lane.b32.xlu1 %v6404_v33, %s8440_s30  ;;  %v5203_v62 = vsel %vm5170_vm3, %v5161_v0, %v14476_v20  ;;  %v14496_v20 = vld [vmem:[#allocation77_spill] sm:$0xff] }
 0x8a5   : > { %v5595_v60 = vadd.f32 %v11731_v5, %v5594_v37  ;;  %5972 = vst [vmem:[#allocation1 + $0x21] ss:$4 sm:$0xff] %v5798_v38  ;;  %v5028_v37 = vpop.permute.xlu1 %5027  ;;  %v5245_v1 = vsel %vm5212_vm4, %v5203_v62, %v14478_v19  ;;  %v14497_v62 = vld [vmem:[#allocation38_spill] sm:$0xff] }
 0x8a6   : > { %8292 = vmatmul.msk.f32.gmra.mxu2 %vm5431_vm9, %v5409_v6  ;;  %v14462_v6 = vld [vmem:[#allocation106_spill] sm:$0xff] }
 0x8a7   : > { %v5705_v52 = vmax.f32 %v5595_v60, 0.0  ;;  %v5160_v44 = vsel %vm5128_vm2, %v5118_v57, %v14462_v6  ;;  %6509 = vrot.lane.b32.xlu0 %v6325_v30, %s8435_s21  ;;  %6791 = vrot.lane.b32.xlu2 %v6323_v9, %s8439_s29  ;;  %v14473_v9 = vld [vmem:[#allocation112_spill] sm:$0xff]  ;;  %v14474_v57 = vld [vmem:[#allocation73_spill] sm:$0xff] }
 0x8a8   : > { %v5202_v40 = vsel %vm5170_vm3, %v5160_v44, %v14463_v58  ;;  %v5167_v17 = vsel %vm5128_vm2, %v5125_v4, %v14473_v9  ;;  %v14480_v44 = vld [vmem:[#allocation79_spill] sm:$0xff]  ;;  %v14489_v4 = vld [vmem:[#allocation102_spill] sm:$0xff]  ;;  %v14492_v9 = vld [vmem:[#allocation72_spill] sm:$0xff] }
 0x8a9   : > { %v5799_v28 = vrot.slane %v5705_v52, 2  ;;  %5973 = vst [vmem:[#allocation1 + $0x22] ss:$4 sm:$0xff] %v5705_v52  ;;  %v5800_v47 = vrot.slane %v5705_v52, 4  ;;  %v5244_v7 = vsel %vm5212_vm4, %v5202_v40, %v14464_v50  ;;  %v5801_v25 = vrot.slane %v5705_v52, 6 }
 0x8aa   : > { %v5975_v3 = vld.sshfl [vmem:[#allocation1] sm:$0xff pattern:$0x73625140]  ;;  %v5286_v2 = vsel %vm5254_vm5, %v5244_v7, %v14467_v35  ;;  %v5209_v27 = vsel %vm5170_vm3, %v5167_v17, %v14477_v14  ;;  %v14484_v7 = vld [vmem:[#allocation259_spill] sm:$0xff]  ;;  %v14486_v35 = vld [vmem:[#allocation284_spill] sm:$0xff]  ;;  %v5127_v14 = vsel %vm5086_vm1, %v14497_v62, %v14496_v20 }
 0x8ab   : > { %5974 = vst [vmem:[#allocation1 + $0x23] ss:$4 sm:$0xff] %v5799_v28  ;;  %v14479_v28 = vld [vmem:[#allocation178_spill] sm:$0xff]  ;;  %v12091_v6 = vsel %vm5906_vm10, %v5975_v3, 0.0  ;;  %v14485_v3 = vld [vmem:[#allocation265_spill] sm:$0xff]  ;;  %v14514_v20 = vld [vmem:[#allocation251_spill] sm:$0xff] }
 0x8ac   : > { %v5597_v29 = vpop.f32.mrf.mxu0  ;;  %5977 = vst [vmem:[#allocation1] ss:$4 sm:$0xff] %v5800_v47  ;;  %6605 = vrot.lane.b32.xlu1 %v6406_v16, %s8437_s27  ;;  %v5251_v41 = vsel %vm5212_vm4, %v5209_v27, %v14479_v28  ;;  %v14482_v47 = vld [vmem:[#allocation218_spill] sm:$0xff] }
 0x8ad   : > { %v5598_v12 = vadd.f32 %v11731_v5, %v5597_v29  ;;  %v5287_v29 = vsel %vm5254_vm5, %v5245_v1, %v14482_v47  ;;  %v14493_v17 = vld [vmem:[#allocation34_spill] sm:$0xff]  ;;  %v14499_v1 = vld [vmem:[#allocation208_spill] sm:$0xff] }
 0x8ae   : > { %8293 = vmatmul.msk.f32.gmra.mxu2 %vm5431_vm9, %v5410_v21  ;;  %v5328_v21 = vsel %vm5296_vm6, %v5286_v2, %v14468_v54  ;;  %v14498_v27 = vld [vmem:[#allocation202_spill] sm:$0xff] }
 0x8af   : > { %v5706_v55 = vmax.f32 %v5598_v12, 0.0  ;;  %v5370_v22 = vsel %vm5338_vm7, %v5328_v21, %v14471_v24  ;;  %v14483_v12 = vld [vmem:[#allocation223_spill] sm:$0xff]  ;;  %6793 = vrot.lane.b32.xlu0 %v6325_v30, %s8439_s29  ;;  %6889 = vrot.lane.b32.xlu2 %v6406_v16, %s8440_s30  ;;  %v6326_v21 = vrot.slane %v12091_v6, 1 }
 0x8b0   : > { %v5412_v51 = vsel %vm5380_vm8, %v5370_v22, %v11682_v13  ;;  %v14475_v13 = vld [vmem:[#allocation26_spill] sm:$0xff]  ;;  %v5293_v58 = vsel %vm5254_vm5, %v5251_v41, %v14483_v12  ;;  %v5032_v41 = vpop.permute.xlu0 %5031 }
 0x8b1   : > { %v5802_v60 = vrot.slane %v5706_v55, 2  ;;  %v5803_v38 = vrot.slane %v5706_v55, 4  ;;  %v5804_v52 = vrot.slane %v5706_v55, 6  ;;  %v5120_v61 = vsel %vm5086_vm1, %v14475_v13, %v14474_v57  ;;  %v14495_v13 = vld [vmem:[#allocation184_spill] sm:$0xff] }
 0x8b2   : > { %v12070_v11 = vld.sshfl [vmem:[#allocation1 + $0x20] sm:$0xff pattern:$0x73625140]  ;;  %v5335_v10 = vsel %vm5296_vm6, %v5293_v58, %v14485_v3  ;;  %v5162_v43 = vsel %vm5128_vm2, %v5120_v61, %v14488_v32  ;;  %v14503_v58 = vld [vmem:[#allocation286_spill] sm:$0xff] }
 0x8b3   : > { %5979 = vst [vmem:[#allocation1 + $0x20] ss:$4 sm:$0xff] %v5801_v25  ;;  %v6327_v40 = vrot.slane %v12070_v11, 1  ;;  %v12103_v50 = vld.sshfl [vmem:[#allocation1] sm:$0xff pattern:$0x73625140]  ;;  %v5377_v30 = vsel %vm5338_vm7, %v5335_v10, %v14487_v42 }
 0x8b4   : > { %5980 = vst [vmem:[#allocation1 + $0x21] ss:$4 sm:$0xff] %v5706_v55  ;;  %v5329_v55 = vsel %vm5296_vm6, %v5287_v29, %v14484_v7  ;;  %v14502_v29 = vld [vmem:[#allocation113_spill] sm:$0xff]  ;;  %v6408_v42 = vrot.slane %v12070_v11, 2 }
 0x8b5   : > { %v5600_v33 = vpop.f32.mrf.mxu0  ;;  %5981 = vst [vmem:[#allocation1 + $0x22] ss:$4 sm:$0xff] %v5802_v60  ;;  %v5371_v2 = vsel %vm5338_vm7, %v5329_v55, %v14486_v35  ;;  %v12125_v60 = vsel %vm6315_vm12, %v6326_v21, %v6327_v40  ;;  %v14504_v55 = vld [vmem:[#allocation292_spill] sm:$0xff] }
 0x8b6   : > { %8294 = vmatmul.msk.f32.gmra.mxu2 %vm5431_vm9, %v5411_v8  ;;  %v5601_v45 = vadd.f32 %v11731_v5, %v5600_v33  ;;  %5982 = vst [vmem:[#allocation1 + $0x23] ss:$4 sm:$0xff] %v5803_v38  ;;  %v14481_v8 = vld [vmem:[#allocation32_spill] sm:$0xff]  ;;  %v5413_v25 = vsel %vm5380_vm8, %v5371_v2, %v5028_v37  ;;  %6511 = vrot.lane.b32.xlu1 %v12125_v60, %s8435_s21  ;;  %v14491_v37 = vld [vmem:[#allocation147_spill] sm:$0xff] }
 0x8b7   : > { %v5126_v31 = vsel %vm5086_vm1, %v14481_v8, %v14480_v44  ;;  %5984 = vst [vmem:[#allocation1] ss:$4 sm:$0xff] %v5804_v52  ;;  %v5121_v52 = vsel %vm5086_vm1, %v14493_v17, %v14492_v9  ;;  %6701 = vrot.lane.b32.xlu0 %v12070_v11, %s8438_s28  ;;  %6699 = vrot.lane.b32.xlu2 %v12091_v6, %s8438_s28  ;;  %v14500_v44 = vld [vmem:[#allocation249_spill] sm:$0xff]  ;;  %v14512_v9 = vld [vmem:[#allocation222_spill] sm:$0xff] }
 0x8b8   : > { %v5707_v18 = vmax.f32 %v5601_v45, 0.0  ;;  %v5168_v24 = vsel %vm5128_vm2, %v5126_v31, %v14489_v4  ;;  %v14494_v45 = vld [vmem:[#allocation179_spill] sm:$0xff]  ;;  %v5163_v12 = vsel %vm5128_vm2, %v5121_v52, %v14502_v29  ;;  %v14513_v52 = vld [vmem:[#allocation228_spill] sm:$0xff] }
 0x8b9   : > { %v5210_v16 = vsel %vm5170_vm3, %v5168_v24, %v14491_v37  ;;  %v14501_v31 = vld [vmem:[#allocation255_spill] sm:$0xff]  ;;  %v14510_v37 = vld [vmem:[#allocation65_spill] sm:$0xff] }
 0x8ba   : > { %v5805_v39 = vrot.slane %v5707_v18, 2  ;;  %v5806_v53 = vrot.slane %v5707_v18, 4  ;;  %5985 = vst [vmem:[#allocation1 + $0x1] ss:$4 sm:$0xff] %v5707_v18  ;;  %v5807_v0 = vrot.slane %v5707_v18, 6  ;;  %v5252_v61 = vsel %vm5212_vm4, %v5210_v16, %v14495_v13  ;;  %v14508_v4 = vld [vmem:[#allocation183_spill] sm:$0xff] }
 0x8bb   : > { %v5294_v28 = vsel %vm5254_vm5, %v5252_v61, %v14499_v1  ;;  %v14511_v16 = vld [vmem:[#allocation28_spill] sm:$0xff] }
 0x8bc   : > { %5986 = vst [vmem:[#allocation1 + $0x2] ss:$4 sm:$0xff] %v5805_v39  ;;  %v5336_v47 = vsel %vm5296_vm6, %v5294_v28, %v14501_v31  ;;  %v14505_v39 = vld [vmem:[#allocation115_spill] sm:$0xff] }
 0x8bd   : > { %v5603_v36 = vpop.f32.mrf.mxu0  ;;  %5987 = vst [vmem:[#allocation1 + $0x3] ss:$4 sm:$0xff] %v5806_v53  ;;  %v12152_v18 = vld.sshfl [vmem:[#allocation1 + $0x20] sm:$0xff pattern:$0x73625140]  ;;  %v5378_v3 = vsel %vm5338_vm7, %v5336_v47, %v14504_v55  ;;  %v5169_v53 = vsel %vm5128_vm2, %v5127_v14, %v14505_v39  ;;  %v14517_v55 = vld [vmem:[#allocation146_spill] sm:$0xff] }
 0x8be   : > { %8295 = vmatmul.msk.f32.gmra.mxu2 %vm5431_vm9, %v5412_v51  ;;  %v14490_v51 = vld [vmem:[#allocation141_spill] sm:$0xff]  ;;  %v5604_v33 = vadd.f32 %v11731_v5, %v5603_v36  ;;  %5988 = vst [vmem:[#allocation1 + $0x20] ss:$4 sm:$0xff] %v5807_v0  ;;  %v5420_v35 = vsel %vm5380_vm8, %v5378_v3, %v11853_v49  ;;  %6795 = vrot.lane.b32.xlu1 %v12125_v60, %s8439_s29  ;;  %v6407_v49 = vrot.slane %v12091_v6, 2 }
 0x8bf   : > { %v5204_v38 = vsel %vm5170_vm3, %v5162_v43, %v14490_v51  ;;  %v14507_v43 = vld [vmem:[#allocation145_spill] sm:$0xff]  ;;  %6983 = vrot.lane.b32.xlu2 %v12091_v6, %s8436_s22 }
 0x8c0   : > { %v5246_v57 = vsel %vm5212_vm4, %v5204_v38, %v14494_v45  ;;  %v5708_v10 = vmax.f32 %v5604_v33, 0.0  ;;  %v12188_v38 = vsel %vm6396_vm11, %v6407_v49, %v6408_v42  ;;  %v5122_v33 = vsel %vm5086_vm1, %v14511_v16, %v14510_v37  ;;  %v14515_v14 = vld [vmem:[#allocation257_spill] sm:$0xff]  ;;  %v14525_v37 = vld [vmem:[#allocation150_spill] sm:$0xff] }
 0x8c1   : > { %v5288_v19 = vsel %vm5254_vm5, %v5246_v57, %v14498_v27  ;;  %6891 = vrot.lane.b32.xlu0 %v12188_v38, %s8440_s30 }
 0x8c2   : > { %v5330_v8 = vsel %vm5296_vm6, %v5288_v19, %v14500_v44  ;;  %v5809_v0 = vrot.slane %v5708_v10, 4  ;;  %v5810_v13 = vrot.slane %v5708_v10, 6  ;;  %v14516_v44 = vld [vmem:[#allocation107_spill] sm:$0xff] }
 0x8c3   : > { %v5372_v7 = vsel %vm5338_vm7, %v5330_v8, %v14503_v58  ;;  %v5164_v8 = vsel %vm5128_vm2, %v5122_v33, %v14516_v44 }
 0x8c4   : > { %v5040_v54 = vpop.permute.xlu1 %5039  ;;  %v5414_v2 = vsel %vm5380_vm8, %v5372_v7, %v11574_v56  ;;  %v5211_v56 = vsel %vm5170_vm3, %v5169_v53, %v14507_v43  ;;  %v12201_v61 = vld.sshfl [vmem:[#allocation1] sm:$0xff pattern:$0x73625140]  ;;  %v5206_v3 = vsel %vm5170_vm3, %v5164_v8, %v14517_v55  ;;  %v14519_v53 = vld [vmem:[#allocation76_spill] sm:$0xff] }
 0x8c5   : > { %v5419_v22 = vsel %vm5380_vm8, %v5377_v30, %v5040_v54  ;;  %v5606_v30 = vpop.f32.mrf.mxu0  ;;  %v14506_v54 = vld [vmem:[#allocation139_spill] sm:$0xff]  ;;  %5991 = vst [vmem:[#allocation1] ss:$4 sm:$0xff] %v5708_v10  ;;  %v12217_v58 = vld.sshfl [vmem:[#allocation1 + $0x20] sm:$0xff pattern:$0x73625140] }
 0x8c6   : > { %8302 = vmatmul.msk.f32.gmra.mxu3 %vm5431_vm9, %v5419_v22  ;;  %8296 = vmatmul.msk.f32.gmra.mxu2 %vm5431_vm9, %v5413_v25  ;;  %v5205_v21 = vsel %vm5170_vm3, %v5163_v12, %v14506_v54  ;;  %v5607_v32 = vadd.f32 %v11731_v5, %v5606_v30  ;;  %v5808_v22 = vrot.slane %v5708_v10, 2  ;;  %v14509_v25 = vld [vmem:[#allocation187_spill] sm:$0xff]  ;;  %5993 = vst [vmem:[#allocation1 + $0x2] ss:$4 sm:$0xff] %v5809_v0  ;;  %v14518_v10 = vld [vmem:[#allocation170_spill] sm:$0xff]  ;;  %v14521_v30 = vld [vmem:[#allocation213_spill] sm:$0xff] }
 0x8c7   : > { %v5247_v24 = vsel %vm5212_vm4, %v5205_v21, %v14508_v4  ;;  %v5253_v36 = vsel %vm5212_vm4, %v5211_v56, %v14509_v25  ;;  %5994 = vst [vmem:[#allocation1 + $0x3] ss:$4 sm:$0xff] %v5810_v13  ;;  %7175 = vrot.lane.b32.xlu1 %v12188_v38, %s8441_s6  ;;  %v5248_v39 = vsel %vm5212_vm4, %v5206_v3, %v14518_v10  ;;  %v14523_v43 = vld [vmem:[#allocation277_spill] sm:$0xff]  ;;  %v5036_v13 = vpop.permute.xlu2 %5035 }
 0x8c8   : > { %v5709_v51 = vmax.f32 %v5607_v32, 0.0  ;;  %v5289_v17 = vsel %vm5254_vm5, %v5247_v24, %v14512_v9  ;;  %v5295_v45 = vsel %vm5254_vm5, %v5253_v36, %v14513_v52  ;;  %5992 = vst [vmem:[#allocation1 + $0x1] ss:$4 sm:$0xff] %v5808_v22  ;;  %v5290_v54 = vsel %vm5254_vm5, %v5248_v39, %v14521_v30  ;;  %6985 = vrot.lane.b32.xlu2 %v12070_v11, %s8436_s22  ;;  %v14522_v32 = vld [vmem:[#allocation253_spill] sm:$0xff] }
 0x8c9   : > { %v5331_v62 = vsel %vm5296_vm6, %v5289_v17, %v14514_v20  ;;  %v5337_v27 = vsel %vm5296_vm6, %v5295_v45, %v14515_v14  ;;  %7079 = vrot.lane.b32.xlu0 %v12125_v60, %s8434_s20  ;;  %v5332_v49 = vsel %vm5296_vm6, %v5290_v54, %v14522_v32  ;;  %v14524_v4 = vld [vmem:[#allocation105_spill] sm:$0xff] }
 0x8ca   : > { %v5373_v19 = vsel %vm5338_vm7, %v5331_v62, %v11359_v26  ;;  %v5379_v1 = vsel %vm5338_vm7, %v5337_v27, %v11400_v63  ;;  %v5811_v28 = vrot.slane %v5709_v51, 2  ;;  %v5812_v29 = vrot.slane %v5709_v51, 4  ;;  %v12219_v63 = vpop.f32.mrf.mxu2  ;;  %5995 = vst [vmem:[#allocation1 + $0x20] ss:$4 sm:$0xff] %v5709_v51  ;;  %v14529_v62 = vld [vmem:[#allocation264_spill] sm:$0xff] }
 0x8cb   : > { %v5415_v47 = vsel %vm5380_vm8, %v5373_v19, %v5032_v41  ;;  %v5813_v12 = vrot.slane %v5709_v51, 6  ;;  %v6221_v41 = vsel %vm5917_vm13, %v12103_v50, 0.0  ;;  %v5374_v56 = vsel %vm5338_vm7, %v5332_v49, %v14523_v43 }
 0x8cc   : > { %5996 = vst [vmem:[#allocation1 + $0x21] ss:$4 sm:$0xff] %v5811_v28  ;;  %v6410_v50 = vrot.slane %v6221_v41, 2  ;;  %v5416_v22 = vsel %vm5380_vm8, %v5374_v56, %v11704_v48  ;;  %v14526_v48 = vld [vmem:[#allocation189_spill] sm:$0xff]  ;;  %v6329_v28 = vrot.slane %v6221_v41, 1  ;;  %v6332_v41 = vrot.slane %v12201_v61, 1 }
 0x8cd   : > { %v5044_v57 = vpop.permute.xlu0 %5043  ;;  %v5609_v26 = vpop.f32.mrf.mxu0  ;;  %5997 = vst [vmem:[#allocation1 + $0x22] ss:$4 sm:$0xff] %v5812_v29 }
 0x8ce   : > { %8303 = vmatmul.msk.f32.gmra.mxu3 %vm5431_vm9, %v5420_v35  ;;  %8297 = vmatmul.msk.f32.gmra.mxu2 %vm5431_vm9, %v5414_v2  ;;  %v5421_v31 = vsel %vm5380_vm8, %v5379_v1, %v5044_v57  ;;  %v5610_v7 = vadd.f32 %v11731_v5, %v5609_v26  ;;  %v14520_v35 = vld [vmem:[#allocation35_spill] sm:$0xff]  ;;  %5998 = vst [vmem:[#allocation1 + $0x23] ss:$4 sm:$0xff] %v5813_v12  ;;  %v14527_v57 = vld [vmem:[#allocation216_spill] sm:$0xff]  ;;  %v12289_v26 = vsel %vm5906_vm10, %v12152_v18, 0.0  ;;  %v6413_v18 = vrot.slane %v12201_v61, 2 }
 0x8cf   : > { %v5123_v2 = vsel %vm5086_vm1, %v14520_v35, %v14519_v53  ;;  %v12248_v25 = vld.sshfl [vmem:[#allocation1] sm:$0xff pattern:$0x73625140]  ;;  %v6411_v60 = vsel %vm6396_vm11, %v6408_v42, %v6410_v50  ;;  %v6330_v12 = vsel %vm6315_vm12, %v6327_v40, %v6329_v28  ;;  %v6331_v40 = vrot.slane %v12289_v26, 1 }
 0x8d0   : > { %v5710_v21 = vmax.f32 %v5610_v7, 0.0  ;;  %v5165_v24 = vsel %vm5128_vm2, %v5123_v2, %v14524_v4  ;;  %6893 = vrot.lane.b32.xlu1 %v6411_v60, %s8440_s30  ;;  %6607 = vrot.lane.b32.xlu2 %v12188_v38, %s8437_s27  ;;  %v6412_v2 = vrot.slane %v12289_v26, 2 }
 0x8d1   : > { %v5207_v16 = vsel %vm5170_vm3, %v5165_v24, %v14525_v37  ;;  %6609 = vrot.lane.b32.xlu0 %v6411_v60, %s8437_s27  ;;  %v6333_v53 = vsel %vm6315_vm12, %v6331_v40, %v6332_v41 }
 0x8d2   : > { %6001 = vst [vmem:[#allocation1] ss:$4 sm:$0xff] %v5710_v21  ;;  %v5814_v0 = vrot.slane %v5710_v21, 2  ;;  %v5815_v33 = vrot.slane %v5710_v21, 4  ;;  %v5249_v9 = vsel %vm5212_vm4, %v5207_v16, %v14526_v48  ;;  %v12260_v17 = vpop.f32.mrf.mxu2  ;;  %v5816_v52 = vrot.slane %v5710_v21, 6 }
 0x8d3   : > { %v5291_v42 = vsel %vm5254_vm5, %v5249_v9, %v14527_v57  ;;  %v12306_v30 = vsel %vm6396_vm11, %v6412_v2, %v6413_v18 }
 0x8d4   : > { %v5333_v14 = vsel %vm5296_vm6, %v5291_v42, %v14529_v62 }
 0x8d5   : > { %v5612_v36 = vpop.f32.mrf.mxu0  ;;  %v12267_v20 = vld.sshfl [vmem:[#allocation1 + $0x20] sm:$0xff pattern:$0x73625140]  ;;  %v5375_v27 = vsel %vm5338_vm7, %v5333_v14, %v11406_v23 }
 0x8d6   : > { %8304 = vmatmul.msk.f32.gmra.mxu3 %vm5431_vm9, %v5421_v31  ;;  %8298 = vmatmul.msk.f32.gmra.mxu2 %vm5431_vm9, %v5415_v47  ;;  %v5613_v51 = vadd.f32 %v11731_v5, %v5612_v36  ;;  %14528 = vst [vmem:[#allocation197_spill] sm:$0xff] %v12267_v20  ;;  %v5417_v19 = vsel %vm5380_vm8, %v5375_v27, %v5036_v13 }
 0x8d7   : > { %6003 = vst [vmem:[#allocation1 + $0x20] ss:$4 sm:$0xff] %v5814_v0 }
 0x8d8   : > { %v5711_v45 = vmax.f32 %v5613_v51, 0.0  ;;  %6004 = vst [vmem:[#allocation1 + $0x21] ss:$4 sm:$0xff] %v5815_v33  ;;  %7177 = vrot.lane.b32.xlu1 %v6411_v60, %s8441_s6  ;;  %6513 = vrot.lane.b32.xlu2 %v6330_v12, %s8435_s21  ;;  %v6224_v51 = vsel %vm5917_vm13, %v12217_v58, 0.0 }
 0x8d9   : > { %6005 = vst [vmem:[#allocation1 + $0x22] ss:$4 sm:$0xff] %v5816_v52  ;;  %v12277_v47 = vld.sshfl [vmem:[#allocation1] sm:$0xff pattern:$0x73625140]  ;;  %7081 = vrot.lane.b32.xlu0 %v6330_v12, %s8434_s20  ;;  %v6334_v33 = vrot.slane %v6224_v51, 1 }
 0x8da   : > { %v5817_v1 = vrot.slane %v5711_v45, 2  ;;  %v5818_v38 = vrot.slane %v5711_v45, 4  ;;  %6006 = vst [vmem:[#allocation1 + $0x23] ss:$4 sm:$0xff] %v5711_v45  ;;  %v5819_v8 = vrot.slane %v5711_v45, 6  ;;  %v6415_v45 = vrot.slane %v6224_v51, 2 }
 0x8db   : > { %v6335_v58 = vsel %vm6315_vm12, %v6332_v41, %v6334_v33 }
 0x8dc   : > { %6008 = vst [vmem:[#allocation1] ss:$4 sm:$0xff] %v5817_v1  ;;  %v6416_v27 = vsel %vm6396_vm11, %v6413_v18, %v6415_v45 }
 0x8dd   : > { %v5615_v44 = vpop.f32.mrf.mxu0  ;;  %6009 = vst [vmem:[#allocation1 + $0x1] ss:$4 sm:$0xff] %v5818_v38 }
 0x8de   : > { %8299 = vmatmul.msk.f32.gmra.mxu2 %vm5431_vm9, %v5416_v22  ;;  %v5616_v31 = vadd.f32 %v11731_v5, %v5615_v44  ;;  %6010 = vst [vmem:[#allocation1 + $0x2] ss:$4 sm:$0xff] %v5819_v8 }
 0x8e0   : > { %v5712_v23 = vmax.f32 %v5616_v31, 0.0  ;;  %6703 = vrot.lane.b32.xlu1 %v12289_v26, %s8438_s28  ;;  %6797 = vrot.lane.b32.xlu2 %v6330_v12, %s8439_s29 }
 0x8e1   : > { %v12296_v10 = vld.sshfl [vmem:[#allocation1 + $0x20] sm:$0xff pattern:$0x73625140]  ;;  %6515 = vrot.lane.b32.xlu0 %v6333_v53, %s8435_s21 }
 0x8e2   : > { %6011 = vst [vmem:[#allocation1 + $0x3] ss:$4 sm:$0xff] %v5712_v23  ;;  %v5820_v7 = vrot.slane %v5712_v23, 2  ;;  %v5821_v21 = vrot.slane %v5712_v23, 4  ;;  %v5822_v32 = vrot.slane %v5712_v23, 6 }
 0x8e3   : > { %v12352_v23 = vld [vmem:[%s13935_s2] ss:$0 sm:$0xff] }
 0x8e4   : > { %6012 = vst [vmem:[#allocation1 + $0x20] ss:$4 sm:$0xff] %v5820_v7  ;;  %v5631_v12 = vadd.f32 %v12352_v23, %v12219_v63  ;;  %v12371_v63 = vsel %vm5906_vm10, %v12248_v25, 0.0  ;;  %v6418_v25 = vrot.slane %v12267_v20, 2 }
 0x8e5   : > { %v5618_v55 = vpop.f32.mrf.mxu0  ;;  %14530 = vst [vmem:[#allocation224_spill] sm:$0xff] %v12371_v63 }
 0x8e6   : > { %8300 = vmatmul.msk.f32.gmra.mxu2 %vm5431_vm9, %v5417_v19  ;;  %v5619_v3 = vadd.f32 %v11731_v5, %v5618_v55  ;;  %v5717_v40 = vmax.f32 %v5631_v12, 0.0 }
 0x8e8   : > { %v5713_v35 = vmax.f32 %v5619_v3, 0.0  ;;  %6611 = vrot.lane.b32.xlu1 %v12306_v30, %s8437_s27  ;;  %6987 = vrot.lane.b32.xlu2 %v12289_v26, %s8436_s22  ;;  %v5634_v3 = vadd.f32 %v12352_v23, %v12260_v17  ;;  %v5835_v18 = vrot.slane %v5717_v40, 2  ;;  %v5836_v17 = vrot.slane %v5717_v40, 4 }
 0x8e9   : > { %v12279_v29 = vpop.f32.mrf.mxu2  ;;  %v12311_v43 = vld.sshfl [vmem:[#allocation1] sm:$0xff pattern:$0x73625140]  ;;  %6799 = vrot.lane.b32.xlu0 %v6333_v53, %s8439_s29 }
 0x8ea   : > { %v5823_v49 = vrot.slane %v5713_v35, 2  ;;  %v5824_v56 = vrot.slane %v5713_v35, 4  ;;  %6015 = vst [vmem:[#allocation1] ss:$4 sm:$0xff] %v5821_v21  ;;  %v5825_v24 = vrot.slane %v5713_v35, 6 }
 0x8eb   : > { %6016 = vst [vmem:[#allocation1 + $0x1] ss:$4 sm:$0xff] %v5822_v32  ;;  %v12316_v22 = vld.sshfl [vmem:[#allocation1 + $0x20] sm:$0xff pattern:$0x73625140] }
 0x8ec   : > { %6017 = vst [vmem:[#allocation1 + $0x2] ss:$4 sm:$0xff] %v5713_v35  ;;  %v5718_v35 = vmax.f32 %v5634_v3, 0.0 }
 0x8ed   : > { %v5621_v54 = vpop.f32.mrf.mxu0  ;;  %6018 = vst [vmem:[#allocation1 + $0x3] ss:$4 sm:$0xff] %v5823_v49 }
 0x8ee   : > { %v5622_v50 = vadd.f32 %v11731_v5, %v5621_v54  ;;  %6019 = vst [vmem:[#allocation1 + $0x20] ss:$4 sm:$0xff] %v5824_v56  ;;  %v5838_v32 = vrot.slane %v5718_v35, 2  ;;  %v5839_v49 = vrot.slane %v5718_v35, 4  ;;  %v6417_v56 = vrot.slane %v12371_v63, 2 }
 0x8ef   : > { %6020 = vst [vmem:[#allocation1 + $0x21] ss:$4 sm:$0xff] %v5825_v24  ;;  %v5637_v24 = vadd.f32 %v12352_v23, %v12279_v29 }
 0x8f0   : > { %v5714_v4 = vmax.f32 %v5622_v50, 0.0  ;;  %7179 = vrot.lane.b32.xlu1 %v12306_v30, %s8441_s6  ;;  %6705 = vrot.lane.b32.xlu2 %v12201_v61, %s8438_s28 }
 0x8f1   : > { %v12298_v39 = vpop.f32.mrf.mxu2  ;;  %7083 = vrot.lane.b32.xlu0 %v6333_v53, %s8434_s20 }
 0x8f2   : > { %v5826_v36 = vrot.slane %v5714_v4, 2  ;;  %6021 = vst [vmem:[#allocation1 + $0x22] ss:$4 sm:$0xff] %v5714_v4  ;;  %v5827_v37 = vrot.slane %v5714_v4, 4  ;;  %v5828_v13 = vrot.slane %v5714_v4, 6  ;;  %v5840_v4 = vrot.slane %v5718_v35, 6 }
 0x8f3   : > { %v5640_v29 = vadd.f32 %v12352_v23, %v12298_v39  ;;  %v6227_v39 = vsel %vm5917_vm13, %v12277_v47, 0.0 }
 0x8f4   : > { %6022 = vst [vmem:[#allocation1 + $0x23] ss:$4 sm:$0xff] %v5826_v36  ;;  %v12329_v48 = vld.sshfl [vmem:[#allocation1] sm:$0xff pattern:$0x73625140] }
 0x8f5   : > { %v5624_v0 = vpop.f32.mrf.mxu0  ;;  %6025 = vst [vmem:[#allocation1] ss:$4 sm:$0xff] %v5827_v37  ;;  %v5719_v37 = vmax.f32 %v5637_v24, 0.0 }
 0x8f6   : > { %v5625_v16 = vadd.f32 %v11731_v5, %v5624_v0  ;;  %v6419_v0 = vsel %vm6396_vm11, %v6417_v56, %v6418_v25 }
 0x8f8   : > { %v5715_v52 = vmax.f32 %v5625_v16, 0.0  ;;  %6517 = vrot.lane.b32.xlu1 %v6335_v58, %s8435_s21  ;;  %6989 = vrot.lane.b32.xlu2 %v12201_v61, %s8436_s22 }
 0x8f9   : > { %v12318_v60 = vpop.f32.mrf.mxu2  ;;  %6897 = vrot.lane.b32.xlu0 %v6416_v27, %s8440_s30  ;;  %v12342_v38 = vpop.permute.xlu2 %6507 }
 0x8fa   : > { %v5829_v62 = vrot.slane %v5715_v52, 2  ;;  %v5830_v19 = vrot.slane %v5715_v52, 4  ;;  %v5831_v28 = vrot.slane %v5715_v52, 6 }
 0x8fb   : > { %v12340_v1 = vld.sshfl [vmem:[#allocation1 + $0x20] sm:$0xff pattern:$0x73625140] }
 0x8fc   : > { %6027 = vst [vmem:[#allocation1 + $0x20] ss:$4 sm:$0xff] %v5828_v13  ;;  %v5842_v13 = vrot.slane %v5719_v37, 4 }
 0x8fd   : > { %v5627_v57 = vpop.f32.mrf.mxu0  ;;  %6028 = vst [vmem:[#allocation1 + $0x21] ss:$4 sm:$0xff] %v5715_v52  ;;  %v6337_v52 = vrot.slane %v12267_v20, 1 }
 0x8fe   : > { %v5628_v42 = vadd.f32 %v11731_v5, %v5627_v57  ;;  %6029 = vst [vmem:[#allocation1 + $0x22] ss:$4 sm:$0xff] %v5829_v62  ;;  %v12344_v5 = vld.sshfl [vmem:[#allocation1] sm:$0xff pattern:$0x73625140]  ;;  %v5841_v57 = vrot.slane %v5719_v37, 2 }
 0x8ff   : > { %6030 = vst [vmem:[#allocation1 + $0x23] ss:$4 sm:$0xff] %v5830_v19  ;;  %v5643_v19 = vadd.f32 %v12352_v23, %v12318_v60 }
 0x900   : > { %v5716_v14 = vmax.f32 %v5628_v42, 0.0  ;;  %6801 = vrot.lane.b32.xlu1 %v6335_v58, %s8439_s29  ;;  %6032 = vst [vmem:[#allocation1] ss:$4 sm:$0xff] %v5831_v28  ;;  %6895 = vrot.lane.b32.xlu2 %v12306_v30, %s8440_s30  ;;  %v5837_v30 = vrot.slane %v5717_v40, 6  ;;  %v5720_v42 = vmax.f32 %v5640_v29, 0.0 }
 0x901   : > { %v12331_v9 = vpop.f32.mrf.mxu2  ;;  %7085 = vrot.lane.b32.xlu0 %v6335_v58, %s8434_s20  ;;  %v12359_v41 = vpop.permute.xlu2 %6791  ;;  %v6336_v58 = vrot.slane %v12371_v63, 1 }
 0x902   : > { %v5832_v44 = vrot.slane %v5716_v14, 2  ;;  %v5833_v8 = vrot.slane %v5716_v14, 4  ;;  %6033 = vst [vmem:[#allocation1 + $0x1] ss:$4 sm:$0xff] %v5716_v14  ;;  %v5834_v7 = vrot.slane %v5716_v14, 6  ;;  %v5845_v12 = vrot.slane %v5720_v42, 4 }
 0x903   : > { %v6338_v62 = vsel %vm6315_vm12, %v6336_v58, %v6337_v52 }
 0x904   : > { %6034 = vst [vmem:[#allocation1 + $0x2] ss:$4 sm:$0xff] %v5832_v44  ;;  %v5844_v44 = vrot.slane %v5720_v42, 2 }
 0x905   : > { %6035 = vst [vmem:[#allocation1 + $0x3] ss:$4 sm:$0xff] %v5833_v8  ;;  %v6339_v8 = vrot.slane %v6227_v39, 1 }
 0x906   : > { %v12361_v55 = vld.sshfl [vmem:[#allocation1 + $0x20] sm:$0xff pattern:$0x73625140] }
 0x907   : > { %6036 = vst [vmem:[#allocation1 + $0x20] ss:$4 sm:$0xff] %v5834_v7  ;;  %v12378_v54 = vpop.permute.xlu0 %6695  ;;  %v6340_v60 = vsel %vm6315_vm12, %v6337_v52, %v6339_v8 }
 0x908   : > { %7181 = vrot.lane.b32.xlu1 %v6416_v27, %s8441_s6  ;;  %6613 = vrot.lane.b32.xlu2 %v6416_v27, %s8437_s27  ;;  %v5843_v27 = vrot.slane %v5719_v37, 6 }
 0x909   : > { %v12346_v31 = vpop.f32.mrf.mxu2  ;;  %6707 = vrot.lane.b32.xlu0 %v12371_v63, %s8438_s28  ;;  %v12380_v21 = vpop.permute.xlu2 %6889 }
 0x90a   : > { %v5649_v29 = vadd.f32 %v12352_v23, %v12346_v31  ;;  %v13945_v31 = vrot.slane %v12311_v43, 1 }
 0x90c   : > { %v12376_v2 = vld.sshfl [vmem:[#allocation1] sm:$0xff pattern:$0x73625140] }
 0x90d   : > { %6039 = vst [vmem:[#allocation1] ss:$4 sm:$0xff] %v5717_v40  ;;  %v5846_v40 = vrot.slane %v5720_v42, 6 }
 0x90e   : > { %6040 = vst [vmem:[#allocation1 + $0x1] ss:$4 sm:$0xff] %v5835_v18  ;;  %v12383_v50 = vld.sshfl [vmem:[#allocation1 + $0x20] sm:$0xff pattern:$0x73625140]  ;;  %v12390_v36 = vpop.permute.xlu1 %6697 }
 0x90f   : > { %6041 = vst [vmem:[#allocation1 + $0x2] ss:$4 sm:$0xff] %v5836_v17  ;;  %v5646_v17 = vadd.f32 %v12352_v23, %v12331_v9 }
 0x910   : > { %6042 = vst [vmem:[#allocation1 + $0x3] ss:$4 sm:$0xff] %v5837_v30  ;;  %6709 = vrot.lane.b32.xlu1 %v12267_v20, %s8438_s28  ;;  %6991 = vrot.lane.b32.xlu2 %v12371_v63, %s8436_s22  ;;  %v6420_v30 = vrot.slane %v6227_v39, 2  ;;  %v5723_v39 = vmax.f32 %v5649_v29, 0.0 }
 0x911   : > { %v12366_v53 = vpop.f32.mrf.mxu2  ;;  %6043 = vst [vmem:[#allocation1 + $0x20] ss:$4 sm:$0xff] %v5718_v35  ;;  %6615 = vrot.lane.b32.xlu0 %v6419_v0, %s8437_s27  ;;  %v12402_v16 = vpop.permute.xlu0 %6603  ;;  %v5721_v35 = vmax.f32 %v5643_v19, 0.0 }
 0x912   : > { %6044 = vst [vmem:[#allocation1 + $0x21] ss:$4 sm:$0xff] %v5838_v32  ;;  %v12404_v33 = vpop.permute.xlu2 %6699  ;;  %v12449_v9 = vsel %vm6396_vm11, %v6418_v25, %v6420_v30  ;;  %v7529_v30 = vld [vmem:[%s13936_s3 + $0x10] sm:$0xff] }
 0x913   : > { %6045 = vst [vmem:[#allocation1 + $0x22] ss:$4 sm:$0xff] %v5839_v49  ;;  %v5847_v32 = vrot.slane %v5721_v35, 2  ;;  %v5849_v58 = vrot.slane %v5721_v35, 6 }
 0x914   : > { %6046 = vst [vmem:[#allocation1 + $0x23] ss:$4 sm:$0xff] %v5840_v4  ;;  %v5722_v4 = vmax.f32 %v5646_v17, 0.0  ;;  %v5853_v17 = vrot.slane %v5723_v39, 2 }
 0x916   : > { %v12422_v28 = vpop.permute.xlu1 %6887  ;;  %v5850_v25 = vrot.slane %v5722_v4, 2 }
 0x917   : > { %v12407_v45 = vld.sshfl [vmem:[#allocation1] sm:$0xff pattern:$0x73625140] }
 0x918   : > { %6049 = vst [vmem:[#allocation1] ss:$4 sm:$0xff] %v5719_v37  ;;  %6899 = vrot.lane.b32.xlu1 %v6419_v0, %s8440_s30  ;;  %6993 = vrot.lane.b32.xlu2 %v12267_v20, %s8436_s22  ;;  %v5848_v37 = vrot.slane %v5721_v35, 4 }
 0x919   : > { %v12398_v51 = vpop.f32.mrf.mxu2  ;;  %7087 = vrot.lane.b32.xlu0 %v6338_v62, %s8434_s20  ;;  %v12428_v3 = vpop.permute.xlu0 %6509 }
 0x91a   : > { %v12430_v18 = vpop.permute.xlu2 %6983 }
 0x91b   : > { %v12415_v14 = vld.sshfl [vmem:[#allocation1 + $0x20] sm:$0xff pattern:$0x73625140] }
 0x91c   : > { %6051 = vst [vmem:[#allocation1 + $0x20] ss:$4 sm:$0xff] %v5841_v57 }
 0x91d   : > { %6052 = vst [vmem:[#allocation1 + $0x21] ss:$4 sm:$0xff] %v5842_v13  ;;  %v5851_v13 = vrot.slane %v5722_v4, 4 }
 0x91e   : > { %6053 = vst [vmem:[#allocation1 + $0x22] ss:$4 sm:$0xff] %v5843_v27  ;;  %v12438_v49 = vpop.permute.xlu1 %6605 }
 0x91f   : > { %6054 = vst [vmem:[#allocation1 + $0x23] ss:$4 sm:$0xff] %v5720_v42  ;;  %v12426_v7 = vld.sshfl [vmem:[#allocation1] sm:$0xff pattern:$0x73625140]  ;;  %v12462_v42 = vsel %vm5906_vm10, %v12296_v10, 0.0 }
 0x920   : > { %6056 = vst [vmem:[#allocation1] ss:$4 sm:$0xff] %v5844_v44  ;;  %7183 = vrot.lane.b32.xlu1 %v6419_v0, %s8441_s6  ;;  %6519 = vrot.lane.b32.xlu2 %v6338_v62, %s8435_s21  ;;  %v6341_v19 = vrot.slane %v12462_v42, 1  ;;  %v5852_v10 = vrot.slane %v5722_v4, 6 }
 0x921   : > { %v12424_v47 = vpop.f32.mrf.mxu2  ;;  %6057 = vst [vmem:[#allocation1 + $0x1] ss:$4 sm:$0xff] %v5845_v12  ;;  %6521 = vrot.lane.b32.xlu0 %v6340_v60, %s8435_s21  ;;  %v12442_v24 = vpop.permute.xlu0 %6793 }
 0x922   : > { %6058 = vst [vmem:[#allocation1 + $0x2] ss:$4 sm:$0xff] %v5846_v40  ;;  %v12444_v0 = vpop.permute.xlu2 %6985  ;;  %v12479_v12 = vsel %vm6315_vm12, %v6341_v19, %v13945_v31  ;;  %v7531_v40 = vld [vmem:[%s13936_s3 + $0x20] sm:$0xf]  ;;  %v5655_v31 = vadd.f32 %v12352_v23, %v12398_v51 }
 0x923   : > { %6059 = vst [vmem:[#allocation1 + $0x3] ss:$4 sm:$0xff] %v5721_v35  ;;  %v7530_v35 = vld [vmem:[%s13936_s3 + $0x18] sm:$0xff]  ;;  %8337 = vmatpush.msk.msra.mxu1 %vm5555_vm0, %v7531_v40  ;;  %8383 = vmatpush.msk.msrb.mxu3 %vm5555_vm0, %v7531_v40  ;;  %v7527_v40 = vld [vmem:[%s13936_s3] sm:$0xff] }
 0x925   : > { %7679 = vmatpush.msra.mxu1 %v7530_v35  ;;  %8384 = vmatpush.msrb.mxu3 %v7530_v35  ;;  %v5855_v35 = vrot.slane %v5723_v39, 6 }
 0x926   : > { %v12440_v56 = vld.sshfl [vmem:[#allocation1 + $0x20] sm:$0xff pattern:$0x73625140] }
 0x927   : > { %6060 = vst [vmem:[#allocation1 + $0x20] ss:$4 sm:$0xff] %v5847_v32  ;;  %v14532_v32 = vld [vmem:[#allocation40_spill] sm:$0xff]  ;;  %7680 = vmatpush.msra.mxu1 %v7529_v30  ;;  %8385 = vmatpush.msrb.mxu3 %v7529_v30  ;;  %v5725_v30 = vmax.f32 %v5655_v31, 0.0 }
 0x928   : > { %6617 = vrot.lane.b32.xlu1 %v12449_v9, %s8437_s27  ;;  %6803 = vrot.lane.b32.xlu2 %v6338_v62, %s8439_s29  ;;  %v12467_v27 = vpop.permute.xlu1 %6511 }
 0x929   : > { %v12453_v52 = vpop.f32.mrf.mxu2  ;;  %6805 = vrot.lane.b32.xlu0 %v6340_v60, %s8439_s29  ;;  %v12472_v8 = vpop.permute.xlu0 %6701 }
 0x92a   : > { %v12457_v57 = vld.sshfl [vmem:[#allocation1] sm:$0xff pattern:$0x73625140]  ;;  %v12474_v62 = vpop.permute.xlu2 %6607 }
 0x92b   : > { %6063 = vst [vmem:[#allocation1] ss:$4 sm:$0xff] %v5848_v37  ;;  %v5652_v37 = vadd.f32 %v12352_v23, %v12366_v53  ;;  %v14534_v53 = vld [vmem:[#allocation39_spill] sm:$0xff] }
 0x92c   : > { %6064 = vst [vmem:[#allocation1 + $0x1] ss:$4 sm:$0xff] %v5849_v58  ;;  %v5854_v58 = vrot.slane %v5723_v39, 4 }
 0x92d   : > { %6065 = vst [vmem:[#allocation1 + $0x2] ss:$4 sm:$0xff] %v5722_v4  ;;  %v8409_v4 = vunpack.i.l.bf16 %v14532_v32 }
 0x92e   : > { %6066 = vst [vmem:[#allocation1 + $0x3] ss:$4 sm:$0xff] %v5850_v25  ;;  %v12470_v44 = vld.sshfl [vmem:[#allocation1 + $0x20] sm:$0xff pattern:$0x73625140]  ;;  %v7528_v25 = vld [vmem:[%s13936_s3 + $0x8] sm:$0xff] }
 0x92f   : > { %14531 = vst [vmem:[#allocation269_spill] sm:$0xff] %v12470_v44  ;;  %7681 = vmatpush.msra.mxu1 %v7528_v25  ;;  %8386 = vmatpush.msrb.mxu3 %v7528_v25 }
 0x930   : > { %6067 = vst [vmem:[#allocation1 + $0x20] ss:$4 sm:$0xff] %v5851_v13  ;;  %6523 = vrot.lane.b32.xlu1 %v12479_v12, %s8435_s21  ;;  %6901 = vrot.lane.b32.xlu2 %v12449_v9, %s8440_s30  ;;  %v12505_v13 = vpop.permute.xlu1 %6795 }
 0x931   : > { %6068 = vst [vmem:[#allocation1 + $0x21] ss:$4 sm:$0xff] %v5852_v10  ;;  %v12497_v29 = vpop.f32.mrf.mxu2  ;;  %7089 = vrot.lane.b32.xlu0 %v6340_v60, %s8434_s20  ;;  %v8414_v10 = vunpack.i.l.bf16 %v14534_v53  ;;  %v5724_v60 = vmax.f32 %v5652_v37, 0.0  ;;  %7682 = vmatpush.msra.mxu1 %v7527_v40 }
 0x932   : > { %6069 = vst [vmem:[#allocation1 + $0x22] ss:$4 sm:$0xff] %v5723_v39  ;;  %v12518_v63 = vpop.permute.xlu2 %6513  ;;  %8387 = vmatpush.msrb.mxu3 %v7527_v40 }
 0x933   : > { %6070 = vst [vmem:[#allocation1 + $0x23] ss:$4 sm:$0xff] %v5853_v17  ;;  %v7271_v17 = vsel %vm5086_vm1, 0.0, %v8409_v4  ;;  %v12516_v20 = vpop.permute.xlu0 %6891  ;;  %v5856_v51 = vrot.slane %v5724_v60, 2  ;;  %v5857_v39 = vrot.slane %v5724_v60, 4 }
 0x934   : > { %v7303_v4 = vsel %vm5128_vm2, %v7271_v17, %v8414_v10  ;;  %v5858_v10 = vrot.slane %v5724_v60, 6 }
 0x935   : > { %v12507_v19 = vld.sshfl [vmem:[#allocation1] sm:$0xff pattern:$0x73625140] }
 0x936   : > { %14533 = vst [vmem:[#allocation80_spill] sm:$0xff] %v12507_v19  ;;  %v7335_v19 = vsel %vm5170_vm3, %v7303_v4, %v12378_v54 }
 0x937   : > { %6073 = vst [vmem:[#allocation1] ss:$4 sm:$0xff] %v5854_v58  ;;  %v12525_v58 = vsel %vm5917_vm13, %v12316_v22, 0.0  ;;  %v7367_v54 = vsel %vm5212_vm4, %v7335_v19, %v12359_v41  ;;  %v8410_v41 = vunpack.i.h.bf16 %v14532_v32  ;;  %v5658_v19 = vadd.f32 %v12352_v23, %v12424_v47 }
 0x938   : > { %6807 = vrot.lane.b32.xlu1 %v12479_v12, %s8439_s29  ;;  %7185 = vrot.lane.b32.xlu2 %v12449_v9, %s8441_s6  ;;  %v6425_v22 = vrot.slane %v12525_v58, 2  ;;  %v5859_v9 = vrot.slane %v5725_v30, 2  ;;  %v7399_v4 = vsel %vm5254_vm5, %v7367_v54, %v12422_v28  ;;  %v6422_v28 = vrot.slane %v12462_v42, 2 }
 0x939   : > { %6713 = vrot.lane.b32.xlu0 %v12311_v43, %s8438_s28  ;;  %v12537_v17 = vpop.f32.mrf.mxu2  ;;  %v7176_v25 = vpop.permute.xlu1 %7175  ;;  %v8415_v32 = vunpack.i.h.bf16 %v14534_v53  ;;  %v7272_v47 = vsel %vm5086_vm1, 0.0, %v8410_v41 }
 0x93a   : > { %v12528_v37 = vld.sshfl [vmem:[#allocation1 + $0x20] sm:$0xff pattern:$0x73625140] }
 0x93b   : > { %14535 = vst [vmem:[#allocation117_spill] sm:$0xff] %v12528_v37  ;;  %v5860_v37 = vrot.slane %v5725_v30, 4  ;;  %v7080_v44 = vpop.permute.xlu0 %7079  ;;  %v7304_v53 = vsel %vm5128_vm2, %v7272_v47, %v8415_v32 }
 0x93c   : > { %6075 = vst [vmem:[#allocation1 + $0x20] ss:$4 sm:$0xff] %v5855_v35  ;;  %v6423_v35 = vrot.slane %v12311_v43, 2 }
 0x93d   : > { %6076 = vst [vmem:[#allocation1 + $0x21] ss:$4 sm:$0xff] %v5724_v60  ;;  %v7431_v60 = vsel %vm5296_vm6, %v7399_v4, %v12430_v18  ;;  %v12585_v4 = vsel %vm5906_vm10, %v12329_v48, 0.0  ;;  %v13949_v48 = vrot.slane %v12340_v1, 2 }
 0x93e   : > { %6077 = vst [vmem:[#allocation1 + $0x22] ss:$4 sm:$0xff] %v5856_v51  ;;  %v12539_v31 = vld.sshfl [vmem:[#allocation1] sm:$0xff pattern:$0x73625140]  ;;  %v12548_v51 = vpop.permute.xlu2 %6797  ;;  %v12551_v40 = vsel %vm6396_vm11, %v6423_v35, %v6425_v22  ;;  %v12563_v22 = vsel %vm6396_vm11, %v6422_v28, %v6423_v35 }
 0x93f   : > { %6078 = vst [vmem:[#allocation1 + $0x23] ss:$4 sm:$0xff] %v5857_v39  ;;  %v7463_v39 = vsel %vm5338_vm7, %v7431_v60, %v7080_v44  ;;  %v5726_v44 = vmax.f32 %v5658_v19, 0.0 }
 0x940   : > { %6080 = vst [vmem:[#allocation1] ss:$4 sm:$0xff] %v5858_v10  ;;  %6905 = vrot.lane.b32.xlu1 %v12551_v40, %s8440_s30  ;;  %v7495_v18 = vsel %vm5380_vm8, %v7463_v39, %v7176_v25  ;;  %v5861_v10 = vrot.slane %v5725_v30, 6  ;;  %6711 = vrot.lane.b32.xlu2 %v12462_v42, %s8438_s28 }
 0x941   : > { %6081 = vst [vmem:[#allocation1 + $0x1] ss:$4 sm:$0xff] %v5725_v30  ;;  %8338 = vmatmul.msk.f32.vlgmr.msra.gmra.mxu1 %vm5431_vm9, %v7495_v18  ;;  %6903 = vrot.lane.b32.xlu0 %v12563_v22, %s8440_s30  ;;  %v5669_v35 = vpop.f32.mrf.mxu2  ;;  %v5862_v60 = vrot.slane %v5726_v44, 2  ;;  %v5863_v39 = vrot.slane %v5726_v44, 4  ;;  %v5864_v18 = vrot.slane %v5726_v44, 6 }
 0x942   : > { %6082 = vst [vmem:[#allocation1 + $0x2] ss:$4 sm:$0xff] %v5859_v9  ;;  %v12573_v25 = vpop.permute.xlu1 %6893 }
 0x943   : > { %6083 = vst [vmem:[#allocation1 + $0x3] ss:$4 sm:$0xff] %v5860_v37  ;;  %v5661_v37 = vadd.f32 %v12352_v23, %v12453_v52  ;;  %v12578_v30 = vpop.permute.xlu0 %6609  ;;  %v7336_v52 = vsel %vm5170_vm3, %v7304_v53, %v12390_v36  ;;  %v5664_v53 = vadd.f32 %v12352_v23, %v12497_v29 }
 0x944   : > { %v7368_v28 = vsel %vm5212_vm4, %v7336_v52, %v12442_v24 }
 0x945   : > { %v5727_v41 = vmax.f32 %v5661_v37, 0.0  ;;  %v7400_v32 = vsel %vm5254_vm5, %v7368_v28, %v12380_v21 }
 0x946   : > { %v12575_v54 = vld.sshfl [vmem:[#allocation1 + $0x20] sm:$0xff pattern:$0x73625140]  ;;  %v12580_v9 = vpop.permute.xlu2 %6987 }
 0x947   : > { %14536 = vst [vmem:[#allocation142_spill] sm:$0xff] %v12575_v54  ;;  %v5865_v36 = vrot.slane %v5727_v41, 2  ;;  %v5866_v24 = vrot.slane %v5727_v41, 4  ;;  %v5867_v37 = vrot.slane %v5727_v41, 6 }
 0x948   : > { %6084 = vst [vmem:[#allocation1 + $0x20] ss:$4 sm:$0xff] %v5861_v10  ;;  %6715 = vrot.lane.b32.xlu1 %v12585_v4, %s8438_s28  ;;  %6995 = vrot.lane.b32.xlu2 %v12462_v42, %s8436_s22 }
 0x949   : > { %7091 = vrot.lane.b32.xlu0 %v12479_v12, %s8434_s20  ;;  %v7432_v12 = vsel %vm5296_vm6, %v7400_v32, %v12444_v0  ;;  %v5667_v0 = vadd.f32 %v12352_v23, %v12537_v17  ;;  %v6344_v17 = vrot.slane %v12525_v58, 1  ;;  %v5670_v58 = vadd.f32 %v12352_v23, %v5669_v35 }
 0x94a   : > { %v12591_v19 = vld.sshfl [vmem:[#allocation1] sm:$0xff pattern:$0x73625140]  ;;  %v7178_v10 = vpop.permute.xlu1 %7177 }
 0x94b   : > { %6087 = vst [vmem:[#allocation1] ss:$4 sm:$0xff] %v5726_v44  ;;  %v6427_v44 = vrot.slane %v12585_v4, 2 }
 0x94c   : > { %6088 = vst [vmem:[#allocation1 + $0x1] ss:$4 sm:$0xff] %v5862_v60  ;;  %v7082_v60 = vpop.permute.xlu0 %7081 }
 0x94d   : > { %6089 = vst [vmem:[#allocation1 + $0x2] ss:$4 sm:$0xff] %v5863_v39  ;;  %v12614_v21 = vsel %vm6396_vm11, %v6427_v44, %v13949_v48  ;;  %v5672_v39 = vpop.f32.mrf.mxu2  ;;  %v7464_v28 = vsel %vm5338_vm7, %v7432_v12, %v7082_v60  ;;  %v5729_v44 = vmax.f32 %v5667_v0, 0.0 }
 0x94e   : > { %6090 = vst [vmem:[#allocation1 + $0x3] ss:$4 sm:$0xff] %v5864_v18  ;;  %v12609_v52 = vpop.permute.xlu2 %6705  ;;  %v7496_v29 = vsel %vm5380_vm8, %v7464_v28, %v7178_v10  ;;  %v6347_v18 = vrot.slane %v12340_v1, 1  ;;  %v6346_v10 = vrot.slane %v12585_v4, 1  ;;  %v12644_v28 = vsel %vm5917_vm13, %v12344_v5, 0.0 }
 0x94f   : > { %v12602_v47 = vld.sshfl [vmem:[#allocation1 + $0x20] sm:$0xff pattern:$0x73625140]  ;;  %8339 = vmatmul.msk.f32.gmra.mxu1 %vm5431_vm9, %v7496_v29  ;;  %v5871_v0 = vrot.slane %v5729_v44, 2  ;;  %v6349_v5 = vrot.slane %v12644_v28, 1  ;;  %v5872_v54 = vrot.slane %v5729_v44, 4 }
 0x950   : > { %14537 = vst [vmem:[#allocation47_spill] sm:$0xff] %v12602_v47  ;;  %6623 = vrot.lane.b32.xlu1 %v12614_v21, %s8437_s27  ;;  %6997 = vrot.lane.b32.xlu2 %v12311_v43, %s8436_s22  ;;  %v12639_v60 = vsel %vm6315_vm12, %v6346_v10, %v6347_v18  ;;  %v14540_v10 = vrot.slane %v12311_v43, 1 }
 0x951   : > { %6091 = vst [vmem:[#allocation1 + $0x20] ss:$4 sm:$0xff] %v5727_v41  ;;  %v5728_v41 = vmax.f32 %v5664_v53, 0.0  ;;  %6621 = vrot.lane.b32.xlu0 %v12551_v40, %s8437_s27 }
 0x952   : > { %6092 = vst [vmem:[#allocation1 + $0x21] ss:$4 sm:$0xff] %v5865_v36  ;;  %v12630_v32 = vpop.permute.xlu1 %6703  ;;  %v12654_v47 = vsel %vm6315_vm12, %v14540_v10, %v6344_v17  ;;  %v12670_v10 = vsel %vm6315_vm12, %v6347_v18, %v6349_v5 }
 0x953   : > { %6093 = vst [vmem:[#allocation1 + $0x22] ss:$4 sm:$0xff] %v5866_v24  ;;  %v5868_v24 = vrot.slane %v5728_v41, 2  ;;  %v5870_v48 = vrot.slane %v5728_v41, 6 }
 0x954   : > { %6094 = vst [vmem:[#allocation1 + $0x23] ss:$4 sm:$0xff] %v5867_v37  ;;  %v5869_v37 = vrot.slane %v5728_v41, 4  ;;  %v12636_v12 = vpop.permute.xlu0 %6515 }
 0x955   : > { %v12628_v36 = vld.sshfl [vmem:[#allocation1] sm:$0xff pattern:$0x73625140] }
 0x956   : > { %14538 = vst [vmem:[#allocation7_spill] sm:$0xff] %v12628_v36  ;;  %v12634_v53 = vpop.permute.xlu2 %6989  ;;  %v5675_v36 = vpop.f32.mrf.mxu2 }
 0x957   : > { %6097 = vst [vmem:[#allocation1] ss:$4 sm:$0xff] %v5728_v41  ;;  %v5873_v41 = vrot.slane %v5729_v44, 6 }
 0x958   : > { %7095 = vrot.lane.b32.xlu1 %v12639_v60, %s8434_s20  ;;  %6619 = vrot.lane.b32.xlu2 %v12563_v22, %s8437_s27 }
 0x959   : > { %7093 = vrot.lane.b32.xlu0 %v12654_v47, %s8434_s20 }
 0x95b   : > { %v12646_v29 = vld.sshfl [vmem:[#allocation1 + $0x20] sm:$0xff pattern:$0x73625140] }
 0x95c   : > { %14539 = vst [vmem:[#allocation185_spill] sm:$0xff] %v12646_v29  ;;  %v7273_v29 = vsel %vm5086_vm1, %v11996_v59, %v12342_v38 }
 0x95d   : > { %6099 = vst [vmem:[#allocation1 + $0x20] ss:$4 sm:$0xff] %v5868_v24  ;;  %v12663_v24 = vpop.permute.xlu1 %6611 }
 0x95e   : > { %6100 = vst [vmem:[#allocation1 + $0x21] ss:$4 sm:$0xff] %v5869_v37  ;;  %v12661_v35 = vld.sshfl [vmem:[#allocation1] sm:$0xff pattern:$0x73625140]  ;;  %v5730_v37 = vmax.f32 %v5670_v58, 0.0  ;;  %v12665_v17 = vpop.permute.xlu2 %6895  ;;  %v5678_v18 = vpop.f32.mrf.mxu2 }
 0x95f   : > { %6101 = vst [vmem:[#allocation1 + $0x22] ss:$4 sm:$0xff] %v5870_v48  ;;  %v12667_v48 = vpop.permute.xlu0 %6799 }
 0x960   : > { %6102 = vst [vmem:[#allocation1 + $0x23] ss:$4 sm:$0xff] %v5729_v44  ;;  %v5673_v44 = vadd.f32 %v12352_v23, %v5672_v39  ;;  %6529 = vrot.lane.b32.xlu1 %v12670_v10, %s8435_s21  ;;  %v5874_v58 = vrot.slane %v5730_v37, 2  ;;  %7187 = vrot.lane.b32.xlu2 %v12563_v22, %s8441_s6  ;;  %v5676_v39 = vadd.f32 %v12352_v23, %v5675_v36 }
 0x961   : > { %14541 = vst [vmem:[#allocation225_spill] sm:$0xff] %v12661_v35  ;;  %7001 = vrot.lane.b32.xlu0 %v12340_v1, %s8436_s22 }
 0x962   : > { %6104 = vst [vmem:[#allocation1] ss:$4 sm:$0xff] %v5871_v0  ;;  %v5731_v38 = vmax.f32 %v5673_v44, 0.0  ;;  %v5732_v44 = vmax.f32 %v5676_v39, 0.0 }
 0x963   : > { %6105 = vst [vmem:[#allocation1 + $0x1] ss:$4 sm:$0xff] %v5872_v54  ;;  %v7305_v54 = vsel %vm5128_vm2, %v7273_v29, %v12402_v16  ;;  %v5876_v29 = vrot.slane %v5730_v37, 6 }
 0x964   : > { %6106 = vst [vmem:[#allocation1 + $0x2] ss:$4 sm:$0xff] %v5873_v41  ;;  %v7337_v59 = vsel %vm5170_vm3, %v7305_v54, %v12404_v33  ;;  %v5875_v41 = vrot.slane %v5730_v37, 4  ;;  %v5877_v36 = vrot.slane %v5731_v38, 2  ;;  %v5880_v39 = vrot.slane %v5732_v44, 2 }
 0x965   : > { %6107 = vst [vmem:[#allocation1 + $0x3] ss:$4 sm:$0xff] %v5730_v37  ;;  %v7180_v5 = vpop.permute.xlu1 %7179  ;;  %v7369_v16 = vsel %vm5212_vm4, %v7337_v59, %v12505_v13  ;;  %v5878_v13 = vrot.slane %v5731_v38, 4  ;;  %v5879_v37 = vrot.slane %v5731_v38, 6  ;;  %v6430_v59 = vrot.slane %v12644_v28, 2 }
 0x966   : > { %v7401_v22 = vsel %vm5254_vm5, %v7369_v16, %v12516_v20  ;;  %v12697_v35 = vpop.permute.xlu2 %6613  ;;  %v5681_v16 = vpop.f32.mrf.mxu2  ;;  %v5881_v28 = vrot.slane %v5732_v44, 4 }
 0x967   : > { %v12680_v0 = vld.sshfl [vmem:[#allocation1 + $0x20] sm:$0xff pattern:$0x73625140]  ;;  %v7084_v33 = vpop.permute.xlu0 %7083 }
 0x968   : > { %14542 = vst [vmem:[#allocation248_spill] sm:$0xff] %v12680_v0  ;;  %6813 = vrot.lane.b32.xlu1 %v12670_v10, %s8439_s29  ;;  %6525 = vrot.lane.b32.xlu2 %v12654_v47, %s8435_s21 }
 0x969   : > { %6108 = vst [vmem:[#allocation1 + $0x20] ss:$4 sm:$0xff] %v5874_v58  ;;  %v7433_v58 = vsel %vm5296_vm6, %v7401_v22, %v12580_v9  ;;  %6527 = vrot.lane.b32.xlu0 %v12639_v60, %s8435_s21 }
 0x96a   : > { %v7465_v54 = vsel %vm5338_vm7, %v7433_v58, %v7084_v33  ;;  %v14543_v58 = vrot.slane %v12340_v1, 2 }
 0x96b   : > { %v7497_v20 = vsel %vm5380_vm8, %v7465_v54, %v7180_v5  ;;  %v5679_v5 = vadd.f32 %v12352_v23, %v5678_v18  ;;  %v5682_v18 = vadd.f32 %v12352_v23, %v5681_v16 }
 0x96c   : > { %v12693_v0 = vld.sshfl [vmem:[#allocation1] sm:$0xff pattern:$0x73625140]  ;;  %8340 = vmatmul.msk.f32.gmra.mxu1 %vm5431_vm9, %v7497_v20  ;;  %v12721_v33 = vsel %vm6396_vm11, %v14543_v58, %v6430_v59 }
 0x96d   : > { %6111 = vst [vmem:[#allocation1] ss:$4 sm:$0xff] %v5875_v41  ;;  %v12711_v41 = vpop.permute.xlu1 %6517  ;;  %v5733_v54 = vmax.f32 %v5679_v5, 0.0  ;;  %v5734_v16 = vmax.f32 %v5682_v18, 0.0 }
 0x96e   : > { %6112 = vst [vmem:[#allocation1 + $0x1] ss:$4 sm:$0xff] %v5876_v29  ;;  %v12716_v22 = vpop.permute.xlu2 %6991 }
 0x96f   : > { %6113 = vst [vmem:[#allocation1 + $0x2] ss:$4 sm:$0xff] %v5731_v38  ;;  %v5687_v38 = vpop.f32.mrf.mxu3  ;;  %v12714_v29 = vpop.permute.xlu0 %6897  ;;  %v5883_v5 = vrot.slane %v5733_v54, 2  ;;  %v5884_v58 = vrot.slane %v5733_v54, 4 }
 0x970   : > { %6114 = vst [vmem:[#allocation1 + $0x3] ss:$4 sm:$0xff] %v5877_v36  ;;  %v12704_v9 = vld.sshfl [vmem:[#allocation1 + $0x20] sm:$0xff pattern:$0x73625140]  ;;  %7193 = vrot.lane.b32.xlu1 %v12721_v33, %s8441_s6  ;;  %6809 = vrot.lane.b32.xlu2 %v12654_v47, %s8439_s29 }
 0x971   : > { %6115 = vst [vmem:[#allocation1 + $0x20] ss:$4 sm:$0xff] %v5878_v13  ;;  %6811 = vrot.lane.b32.xlu0 %v12639_v60, %s8439_s29  ;;  %v5882_v13 = vrot.slane %v5732_v44, 6 }
 0x972   : > { %6116 = vst [vmem:[#allocation1 + $0x21] ss:$4 sm:$0xff] %v5879_v37 }
 0x973   : > { %6117 = vst [vmem:[#allocation1 + $0x22] ss:$4 sm:$0xff] %v5732_v44  ;;  %v12748_v44 = vsel %vm5906_vm10, %v12361_v55, 0.0 }
 0x974   : > { %6118 = vst [vmem:[#allocation1 + $0x23] ss:$4 sm:$0xff] %v5880_v39  ;;  %v7274_v39 = vsel %vm5086_vm1, %v12014_v46, %v12428_v3  ;;  %v5885_v46 = vrot.slane %v5733_v54, 6 }
 0x975   : > { %v12732_v20 = vpop.permute.xlu1 %6801  ;;  %v7306_v47 = vsel %vm5128_vm2, %v7274_v39, %v12438_v49  ;;  %v5684_v49 = vpop.f32.mrf.mxu2  ;;  %v5887_v39 = vrot.slane %v5734_v16, 4 }
 0x976   : > { %v12743_v60 = vpop.permute.xlu2 %6993 }
 0x977   : > { %v12725_v36 = vld.sshfl [vmem:[#allocation1] sm:$0xff pattern:$0x73625140]  ;;  %v12736_v59 = vpop.f32.mrf.mxu3 }
 0x978   : > { %14544 = vst [vmem:[#allocation78_spill] sm:$0xff] %v12725_v36  ;;  %7003 = vrot.lane.b32.xlu1 %v12748_v44, %s8436_s22  ;;  %7189 = vrot.lane.b32.xlu2 %v12551_v40, %s8441_s6 }
 0x979   : > { %6121 = vst [vmem:[#allocation1] ss:$4 sm:$0xff] %v5881_v28  ;;  %v7086_v28 = vpop.permute.xlu0 %7085  ;;  %7191 = vrot.lane.b32.xlu0 %v12614_v21, %s8441_s6 }
 0x97b   : > { %v12734_v37 = vld.sshfl [vmem:[#allocation1 + $0x20] sm:$0xff pattern:$0x73625140] }
 0x97c   : > { %14545 = vst [vmem:[#allocation120_spill] sm:$0xff] %v12734_v37  ;;  %v7338_v37 = vsel %vm5170_vm3, %v7306_v47, %v12472_v8 }
 0x97d   : > { %6123 = vst [vmem:[#allocation1 + $0x20] ss:$4 sm:$0xff] %v5882_v13  ;;  %v7370_v3 = vsel %vm5212_vm4, %v7338_v37, %v12548_v51  ;;  %v5886_v13 = vrot.slane %v5734_v16, 2  ;;  %v5685_v51 = vadd.f32 %v12352_v23, %v5684_v49  ;;  %v7182_v37 = vpop.permute.xlu1 %7181 }
 0x97e   : > { %6124 = vst [vmem:[#allocation1 + $0x21] ss:$4 sm:$0xff] %v5733_v54  ;;  %v7402_v55 = vsel %vm5254_vm5, %v7370_v3, %v12573_v25  ;;  %v12773_v40 = vpop.permute.xlu2 %6519 }
 0x97f   : > { %6125 = vst [vmem:[#allocation1 + $0x22] ss:$4 sm:$0xff] %v5883_v5  ;;  %v7434_v8 = vsel %vm5296_vm6, %v7402_v55, %v12634_v53  ;;  %v5688_v53 = vadd.f32 %v12352_v23, %v5687_v38  ;;  %v5888_v5 = vrot.slane %v5734_v16, 6  ;;  %v6433_v38 = vrot.slane %v12376_v2, 2 }
 0x980   : > { %6126 = vst [vmem:[#allocation1 + $0x23] ss:$4 sm:$0xff] %v5884_v58  ;;  %v12756_v18 = vld.sshfl [vmem:[#allocation1] sm:$0xff pattern:$0x73625140]  ;;  %v7466_v54 = vsel %vm5338_vm7, %v7434_v8, %v7086_v28  ;;  %v5735_v58 = vmax.f32 %v5685_v51, 0.0  ;;  %6721 = vrot.lane.b32.xlu1 %v12376_v2, %s8438_s28  ;;  %v5693_v28 = vpop.f32.mrf.mxu3  ;;  %6999 = vrot.lane.b32.xlu2 %v12585_v4, %s8436_s22 }
 0x981   : > { %14546 = vst [vmem:[#allocation159_spill] sm:$0xff] %v12756_v18  ;;  %v7498_v25 = vsel %vm5380_vm8, %v7466_v54, %v7182_v37  ;;  %v12771_v47 = vpop.permute.xlu0 %6707  ;;  %v5736_v3 = vmax.f32 %v5688_v53, 0.0  ;;  %6909 = vrot.lane.b32.xlu0 %v12721_v33, %s8440_s30  ;;  %v6236_v53 = vsel %vm5917_vm13, %v12383_v50, 0.0  ;;  %v7275_v50 = vsel %vm5086_vm1, %v12091_v6, %v12467_v27 }
 0x982   : > { %6128 = vst [vmem:[#allocation1] ss:$4 sm:$0xff] %v5885_v46  ;;  %8341 = vmatmul.msk.f32.gmra.mxu1 %vm5431_vm9, %v7498_v25  ;;  %v5891_v8 = vrot.slane %v5735_v58, 6 }
 0x983   : > { %6129 = vst [vmem:[#allocation1 + $0x1] ss:$4 sm:$0xff] %v5734_v16  ;;  %v5889_v16 = vrot.slane %v5735_v58, 2  ;;  %v5892_v51 = vrot.slane %v5736_v3, 2 }
 0x984   : > { %6130 = vst [vmem:[#allocation1 + $0x2] ss:$4 sm:$0xff] %v5886_v13  ;;  %v5890_v13 = vrot.slane %v5735_v58, 4 }
 0x985   : > { %6131 = vst [vmem:[#allocation1 + $0x3] ss:$4 sm:$0xff] %v5887_v39  ;;  %v12784_v49 = vpop.permute.xlu1 %6709  ;;  %v6432_v39 = vrot.slane %v12748_v44, 2 }
 0x986   : > { %v12791_v37 = vpop.permute.xlu2 %6803 }
 0x987   : > { %v12777_v46 = vld.sshfl [vmem:[#allocation1 + $0x20] sm:$0xff pattern:$0x73625140]  ;;  %v12794_v25 = vsel %vm6396_vm11, %v6432_v39, %v6433_v38 }
 0x988   : > { %14547 = vst [vmem:[#allocation46_spill] sm:$0xff] %v12777_v46  ;;  %6911 = vrot.lane.b32.xlu1 %v12794_v25, %s8440_s30  ;;  %v5696_v39 = vpop.f32.mrf.mxu3  ;;  %6717 = vrot.lane.b32.xlu2 %v12340_v1, %s8438_s28  ;;  %v5694_v46 = vadd.f32 %v12352_v23, %v5693_v28 }
 0x989   : > { %6132 = vst [vmem:[#allocation1 + $0x20] ss:$4 sm:$0xff] %v5888_v5  ;;  %v12789_v54 = vpop.permute.xlu0 %6615  ;;  %6719 = vrot.lane.b32.xlu0 %v12748_v44, %s8438_s28 }
 0x98a   : > { %v5738_v28 = vmax.f32 %v5694_v46, 0.0 }
 0x98c   : > { %v12786_v55 = vld.sshfl [vmem:[#allocation1] sm:$0xff pattern:$0x73625140] }
 0x98d   : > { %14548 = vst [vmem:[#allocation3_spill] sm:$0xff] %v12786_v55  ;;  %v5691_v55 = vadd.f32 %v12352_v23, %v12736_v59  ;;  %v7307_v59 = vsel %vm5128_vm2, %v7275_v50, %v12474_v62 }
 0x98e   : > { %6135 = vst [vmem:[#allocation1] ss:$4 sm:$0xff] %v5735_v58  ;;  %v5893_v58 = vrot.slane %v5736_v3, 4  ;;  %v12822_v36 = vpop.permute.xlu2 %6901 }
 0x98f   : > { %6136 = vst [vmem:[#allocation1 + $0x1] ss:$4 sm:$0xff] %v5889_v16  ;;  %v5894_v16 = vrot.slane %v5736_v3, 6 }
 0x990   : > { %6137 = vst [vmem:[#allocation1 + $0x2] ss:$4 sm:$0xff] %v5890_v13  ;;  %v12801_v5 = vld.sshfl [vmem:[#allocation1 + $0x20] sm:$0xff pattern:$0x73625140]  ;;  %v6435_v13 = vrot.slane %v6236_v53, 2  ;;  %6907 = vrot.lane.b32.xlu2 %v12614_v21, %s8440_s30 }
 0x991   : > { %6138 = vst [vmem:[#allocation1 + $0x3] ss:$4 sm:$0xff] %v5891_v8  ;;  %v12812_v8 = vpop.permute.xlu1 %6899  ;;  %v7088_v18 = vpop.permute.xlu0 %7087  ;;  %6627 = vrot.lane.b32.xlu0 %v12794_v25, %s8437_s27 }
 0x992   : > { %14549 = vst [vmem:[#allocation188_spill] sm:$0xff] %v12801_v5  ;;  %v7339_v5 = vsel %vm5170_vm3, %v7307_v59, %v12630_v32  ;;  %v12825_v6 = vsel %vm6396_vm11, %v6433_v38, %v6435_v13  ;;  %v6352_v32 = vrot.slane %v12376_v2, 1  ;;  %v6354_v38 = vrot.slane %v6236_v53, 1 }
 0x993   : > { %6139 = vst [vmem:[#allocation1 + $0x20] ss:$4 sm:$0xff] %v5736_v3  ;;  %v5737_v3 = vmax.f32 %v5691_v55, 0.0  ;;  %6629 = vrot.lane.b32.xlu1 %v12825_v6, %s8437_s27 }
 0x994   : > { %6140 = vst [vmem:[#allocation1 + $0x21] ss:$4 sm:$0xff] %v5892_v51  ;;  %v5697_v51 = vadd.f32 %v12352_v23, %v5696_v39  ;;  %v6355_v53 = vsel %vm6315_vm12, %v6352_v32, %v6354_v38 }
 0x995   : > { %6141 = vst [vmem:[#allocation1 + $0x22] ss:$4 sm:$0xff] %v5893_v58  ;;  %v7371_v58 = vsel %vm5212_vm4, %v7339_v5, %v12667_v48  ;;  %v5895_v62 = vrot.slane %v5737_v3, 2  ;;  %v5896_v48 = vrot.slane %v5737_v3, 4  ;;  %v5897_v39 = vrot.slane %v5737_v3, 6 }
 0x996   : > { %6142 = vst [vmem:[#allocation1 + $0x23] ss:$4 sm:$0xff] %v5894_v16  ;;  %v5739_v55 = vmax.f32 %v5697_v51, 0.0  ;;  %v7403_v23 = vsel %vm5254_vm5, %v7371_v58, %v12665_v17  ;;  %v7186_v21 = vpop.permute.xlu2 %7185  ;;  %v5900_v58 = vrot.slane %v5738_v28, 6 }
 0x997   : > { %v7435_v5 = vsel %vm5296_vm6, %v7403_v23, %v12716_v22  ;;  %v5898_v22 = vrot.slane %v5738_v28, 2 }
 0x998   : > { %v12827_v27 = vld.sshfl [vmem:[#allocation1] sm:$0xff pattern:$0x73625140]  ;;  %v7467_v13 = vsel %vm5338_vm7, %v7435_v5, %v7088_v18  ;;  %v5901_v46 = vrot.slane %v5739_v55, 2  ;;  %v6351_v18 = vrot.slane %v12748_v44, 1  ;;  %6625 = vrot.lane.b32.xlu2 %v12721_v33, %s8437_s27 }
 0x999   : > { %6145 = vst [vmem:[#allocation1] ss:$4 sm:$0xff] %v5737_v3  ;;  %v7184_v17 = vpop.permute.xlu1 %7183  ;;  %v12845_v59 = vpop.permute.xlu0 %6521  ;;  %v5899_v3 = vrot.slane %v5738_v28, 4 }
 0x99a   : > { %v7499_v50 = vsel %vm5380_vm8, %v7467_v13, %v7184_v17 }
 0x99b   : > { %8342 = vmatmul.msk.f32.gmra.mxu1 %vm5431_vm9, %v7499_v50  ;;  %7101 = vrot.lane.b32.xlu1 %v6355_v53, %s8434_s20 }
 0x99d   : > { %v12840_v16 = vld.sshfl [vmem:[#allocation1 + $0x20] sm:$0xff pattern:$0x73625140] }
 0x99e   : > { %6147 = vst [vmem:[#allocation1 + $0x20] ss:$4 sm:$0xff] %v5895_v62  ;;  %v6353_v62 = vsel %vm6315_vm12, %v6351_v18, %v6352_v32  ;;  %v12863_v5 = vpop.permute.xlu2 %6711 }
 0x99f   : > { %6148 = vst [vmem:[#allocation1 + $0x21] ss:$4 sm:$0xff] %v5896_v48  ;;  %7099 = vrot.lane.b32.xlu0 %v6353_v62, %s8434_s20  ;;  %v7276_v48 = vsel %vm5086_vm1, %v12070_v11, %v12518_v63 }
 0x9a0   : > { %6149 = vst [vmem:[#allocation1 + $0x22] ss:$4 sm:$0xff] %v5897_v39  ;;  %v12848_v51 = vld.sshfl [vmem:[#allocation1] sm:$0xff pattern:$0x73625140]  ;;  %7097 = vrot.lane.b32.xlu2 %v12670_v10, %s8434_s20 }
 0x9a1   : > { %6150 = vst [vmem:[#allocation1 + $0x23] ss:$4 sm:$0xff] %v5738_v28  ;;  %v12856_v23 = vpop.permute.xlu1 %6617  ;;  %v7308_v28 = vsel %vm5128_vm2, %v7276_v48, %v12578_v30  ;;  %v12865_v32 = vpop.permute.xlu0 %6805  ;;  %v6357_v30 = vrot.slane %v12415_v14, 1 }
 0x9a2   : > { %6156 = vst [vmem:[#allocation1 + $0x20] ss:$4 sm:$0xff] %v5901_v46  ;;  %v7340_v33 = vsel %vm5170_vm3, %v7308_v28, %v12609_v52 }
 0x9a3   : > { %6152 = vst [vmem:[#allocation1] ss:$4 sm:$0xff] %v5898_v22  ;;  %7009 = vrot.lane.b32.xlu1 %v12415_v14, %s8436_s22  ;;  %v7372_v11 = vsel %vm5212_vm4, %v7340_v33, %v12732_v20  ;;  %v6438_v22 = vrot.slane %v12415_v14, 2  ;;  %v12939_v33 = vld [vmem:[%s13937_s4] ss:$0 sm:$0xff] }
 0x9a4   : > { %6153 = vst [vmem:[#allocation1 + $0x1] ss:$4 sm:$0xff] %v5899_v3  ;;  %v7404_v52 = vsel %vm5254_vm5, %v7372_v11, %v12714_v29 }
 0x9a5   : > { %6154 = vst [vmem:[#allocation1 + $0x2] ss:$4 sm:$0xff] %v5900_v58  ;;  %v7277_v58 = vsel %vm5086_vm1, %v12289_v26, %v12636_v12 }
 0x9a6   : > { %6155 = vst [vmem:[#allocation1 + $0x3] ss:$4 sm:$0xff] %v5739_v55  ;;  %v12874_v55 = vsel %vm5906_vm10, %v12407_v45, 0.0  ;;  %v7436_v45 = vsel %vm5296_vm6, %v7404_v52, %v12743_v60  ;;  %v6996_v39 = vpop.permute.xlu2 %6995  ;;  %v7309_v48 = vsel %vm5128_vm2, %v7277_v58, %v12663_v24  ;;  %v12951_v24 = vsel %vm5906_vm10, %v12440_v56, 0.0 }
 0x9a7   : > { %6533 = vrot.lane.b32.xlu0 %v6355_v53, %s8435_s21  ;;  %v6356_v63 = vrot.slane %v12874_v55, 1  ;;  %v6437_v46 = vrot.slane %v12874_v55, 2  ;;  %v7341_v11 = vsel %vm5170_vm3, %v7309_v48, %v12771_v47 }
 0x9a8   : > { %7005 = vrot.lane.b32.xlu2 %v12376_v2, %s8436_s22  ;;  %v7373_v26 = vsel %vm5212_vm4, %v7341_v11, %v12791_v37  ;;  %v6239_v37 = vsel %vm5917_vm13, %v12426_v7, 0.0 }
 0x9a9   : > { %v12885_v38 = vpop.permute.xlu1 %6523  ;;  %v7090_v13 = vpop.permute.xlu0 %7089  ;;  %v12892_v10 = vsel %vm6315_vm12, %v6356_v63, %v6357_v30  ;;  %v12922_v18 = vsel %vm6396_vm11, %v6437_v46, %v6438_v22  ;;  %v7405_v12 = vsel %vm5254_vm5, %v7373_v26, %v12812_v8  ;;  %v6440_v56 = vrot.slane %v6239_v37, 2 }
 0x9aa   : > { %v7468_v20 = vsel %vm5338_vm7, %v7436_v45, %v7090_v13  ;;  %v7437_v45 = vsel %vm5296_vm6, %v7405_v12, %v6996_v39  ;;  %v6442_v26 = vrot.slane %v12951_v24, 2  ;;  %v8306_v12 = vld [vmem:[%s8496_s26 + $0x3a] sm:$0xff] }
 0x9ab   : > { %6535 = vrot.lane.b32.xlu1 %v12892_v10, %s8435_s21  ;;  %v7500_v17 = vsel %vm5380_vm8, %v7468_v20, %v7186_v21  ;;  %v12980_v58 = vsel %vm6396_vm11, %v6438_v22, %v6440_v56  ;;  %v7278_v22 = vsel %vm5086_vm1, %v12201_v61, %v12711_v41 }
 0x9ac   : > { %8343 = vmatmul.msk.f32.gmra.mxu1 %vm5431_vm9, %v7500_v17 }
 0x9ae   : > { %v12904_v60 = vpop.permute.xlu2 %6997 }
 0x9af   : > { %6817 = vrot.lane.b32.xlu0 %v6355_v53, %s8439_s29 }
 0x9b0   : > { %6531 = vrot.lane.b32.xlu2 %v6353_v62, %s8435_s21 }
 0x9b1   : > { %v12902_v29 = vpop.permute.xlu1 %6807  ;;  %v12906_v50 = vpop.permute.xlu0 %6713 }
 0x9b3   : > { %6819 = vrot.lane.b32.xlu1 %v12892_v10, %s8439_s29 }
 0x9b6   : > { %v12919_v3 = vpop.permute.xlu2 %6619 }
 0x9b7   : > { %7197 = vrot.lane.b32.xlu0 %v12825_v6, %s8441_s6 }
 0x9b8   : > { %6815 = vrot.lane.b32.xlu2 %v6353_v62, %s8439_s29  ;;  %v8305_v62 = vld [vmem:[%s8496_s26 + $0x32] sm:$0xff] }
 0x9b9   : > { %v12915_v21 = vpop.permute.xlu1 %6905  ;;  %v12917_v53 = vpop.permute.xlu0 %6903 }
 0x9bb   : > { %7199 = vrot.lane.b32.xlu1 %v12922_v18, %s8441_s6 }
 0x9be   : > { %v7684_v63 = vpop.f32.mrf.mxu1  ;;  %v7188_v52 = vpop.permute.xlu2 %7187 }
 0x9bf   : > { %6725 = vrot.lane.b32.xlu0 %v12415_v14, %s8438_s28  ;;  %v7685_v13 = vadd.f32 %v12939_v33, %v7684_v63 }
 0x9c0   : > { %7195 = vrot.lane.b32.xlu2 %v12794_v25, %s8441_s6  ;;  %v6443_v25 = vrot.slane %v12457_v57, 2 }
 0x9c1   : > { %v12934_v28 = vpop.permute.xlu1 %6715  ;;  %v7092_v47 = vpop.permute.xlu0 %7091  ;;  %v7780_v20 = vadd.f32 %v8305_v62, %v7685_v13 }
 0x9c2   : > { %v7469_v8 = vsel %vm5338_vm7, %v7437_v45, %v7092_v47 }
 0x9c3   : > { %6727 = vrot.lane.b32.xlu1 %v12951_v24, %s8438_s28  ;;  %v7501_v17 = vsel %vm5380_vm8, %v7469_v8, %v7188_v52  ;;  %v7812_v39 = vmax.f32 %v7780_v20, 0.0  ;;  %v7310_v52 = vsel %vm5128_vm2, %v7278_v22, %v12697_v35  ;;  %v6362_v8 = vrot.slane %v12457_v57, 1 }
 0x9c4   : > { %8344 = vmatmul.msk.f32.gmra.mxu1 %vm5431_vm9, %v7501_v17  ;;  %v7342_v61 = vsel %vm5170_vm3, %v7310_v52, %v12784_v49  ;;  %v6361_v49 = vrot.slane %v12951_v24, 1 }
 0x9c5   : > { %7844 = vst.msk [vmem:[%s12966_s8] sm:$0xff] %vm5086_vm1, %v7812_v39  ;;  %v7374_v41 = vsel %vm5212_vm4, %v7342_v61, %v12865_v32 }
 0x9c6   : > { %v12977_v46 = vpop.permute.xlu2 %6525  ;;  %v7406_v17 = vsel %vm5254_vm5, %v7374_v41, %v12822_v36  ;;  %v6363_v22 = vsel %vm6315_vm12, %v6361_v49, %v6362_v8  ;;  %v14550_v36 = vld [vmem:[#allocation269_spill] sm:$0xff] }
 0x9c7   : > { %7007 = vrot.lane.b32.xlu0 %v12874_v55, %s8436_s22  ;;  %v7438_v32 = vsel %vm5296_vm6, %v7406_v17, %v12904_v60  ;;  %v6242_v52 = vsel %vm5917_vm13, %v14550_v36, 0.0  ;;  %v14551_v17 = vld [vmem:[#allocation224_spill] sm:$0xff] }
 0x9c8   : > { %6913 = vrot.lane.b32.xlu2 %v12825_v6, %s8440_s30  ;;  %v13003_v6 = vsel %vm6396_vm11, %v6442_v26, %v6443_v25  ;;  %v6359_v26 = vrot.slane %v6239_v37, 1  ;;  %v6364_v37 = vrot.slane %v6242_v52, 1 }
 0x9c9   : > { %v12971_v7 = vpop.permute.xlu1 %6623  ;;  %v12982_v48 = vpop.permute.xlu0 %6621 }
 0x9ca   : > { %v6360_v60 = vsel %vm6315_vm12, %v6357_v30, %v6359_v26  ;;  %v13045_v61 = vsel %vm6315_vm12, %v6362_v8, %v6364_v37  ;;  %v8307_v30 = vld [vmem:[%s8496_s26 + $0x4a] sm:$0xff]  ;;  %v7279_v8 = vsel %vm5086_vm1, %v14551_v17, %v12773_v40  ;;  %v6445_v40 = vrot.slane %v6242_v52, 2 }
 0x9cb   : > { %6917 = vrot.lane.b32.xlu1 %v12980_v58, %s8440_s30 }
 0x9cc   : > { %v7687_v62 = vpop.f32.mrf.mxu1 }
 0x9cd   : > { %v7688_v45 = vadd.f32 %v12939_v33, %v7687_v62 }
 0x9ce   : > { %v12998_v63 = vpop.permute.xlu2 %6809 }
 0x9cf   : > { %6915 = vrot.lane.b32.xlu0 %v12922_v18, %s8440_s30  ;;  %v7781_v47 = vadd.f32 %v8306_v12, %v7688_v45 }
 0x9d0   : > { %6723 = vrot.lane.b32.xlu2 %v12874_v55, %s8438_s28 }
 0x9d1   : > { %v12989_v11 = vpop.permute.xlu1 %7095  ;;  %v7094_v13 = vpop.permute.xlu0 %7093  ;;  %v7813_v20 = vmax.f32 %v7781_v47, 0.0 }
 0x9d2   : > { %v7470_v56 = vsel %vm5338_vm7, %v7438_v32, %v7094_v13 }
 0x9d3   : > { %6635 = vrot.lane.b32.xlu1 %v13003_v6, %s8437_s27  ;;  %7845 = vst.msk [vmem:[%s12966_s8 + $0x8] sm:$0xff] %vm5086_vm1, %v7813_v20 }
 0x9d6   : > { %v7190_v39 = vpop.permute.xlu2 %7189 }
 0x9d7   : > { %6633 = vrot.lane.b32.xlu0 %v12980_v58, %s8437_s27  ;;  %v7502_v62 = vsel %vm5380_vm8, %v7470_v56, %v7190_v39 }
 0x9d8   : > { %8345 = vmatmul.msk.f32.gmra.mxu1 %vm5431_vm9, %v7502_v62  ;;  %6631 = vrot.lane.b32.xlu2 %v12922_v18, %s8437_s27 }
 0x9d9   : > { %v13017_v35 = vpop.permute.xlu1 %6529  ;;  %v7002_v12 = vpop.permute.xlu0 %7001 }
 0x9db   : > { %7107 = vrot.lane.b32.xlu1 %v6363_v22, %s8434_s20 }
 0x9de   : > { %v7000_v13 = vpop.permute.xlu2 %6999 }
 0x9df   : > { %7105 = vrot.lane.b32.xlu0 %v6360_v60, %s8434_s20 }
 0x9e0   : > { %7103 = vrot.lane.b32.xlu2 %v12892_v10, %s8434_s20  ;;  %v7311_v10 = vsel %vm5128_vm2, %v7279_v8, %v12789_v54  ;;  %v14553_v8 = vld [vmem:[#allocation117_spill] sm:$0xff] }
 0x9e1   : > { %v13041_v45 = vpop.permute.xlu1 %6813  ;;  %v13047_v41 = vpop.permute.xlu0 %6527  ;;  %v7343_v56 = vsel %vm5170_vm3, %v7311_v10, %v12863_v5 }
 0x9e2   : > { %v7375_v26 = vsel %vm5212_vm4, %v7343_v56, %v12902_v29  ;;  %v13087_v29 = vsel %vm6396_vm11, %v6443_v25, %v6445_v40  ;;  %v8308_v56 = vld [vmem:[%s8496_s26 + $0x52] sm:$0xff] }
 0x9e3   : > { %6541 = vrot.lane.b32.xlu1 %v13045_v61, %s8435_s21  ;;  %v7407_v62 = vsel %vm5254_vm5, %v7375_v26, %v12917_v53 }
 0x9e4   : > { %v7439_v54 = vsel %vm5296_vm6, %v7407_v62, %v7000_v13 }
 0x9e5   : > { %v7471_v53 = vsel %vm5338_vm7, %v7439_v54, %v12989_v11 }
 0x9e6   : > { %v13056_v20 = vpop.permute.xlu2 %6717 }
 0x9e7   : > { %7013 = vrot.lane.b32.xlu0 %v12457_v57, %s8436_s22 }
 0x9e8   : > { %7011 = vrot.lane.b32.xlu2 %v12951_v24, %s8436_s22 }
 0x9e9   : > { %v7194_v18 = vpop.permute.xlu1 %7193  ;;  %v7690_v47 = vpop.f32.mrf.mxu1 }
 0x9ea   : > { %v7691_v49 = vadd.f32 %v12939_v33, %v7690_v47  ;;  %v13062_v32 = vpop.permute.xlu0 %6811  ;;  %v14552_v47 = vld [vmem:[#allocation197_spill] sm:$0xff] }
 0x9eb   : > { %6825 = vrot.lane.b32.xlu1 %v13045_v61, %s8439_s29  ;;  %v7280_v17 = vsel %vm5086_vm1, %v14552_v47, %v12845_v59 }
 0x9ec   : > { %v7782_v39 = vadd.f32 %v8307_v30, %v7691_v49  ;;  %v7312_v49 = vsel %vm5128_vm2, %v7280_v17, %v12856_v23 }
 0x9ed   : > { %v7344_v10 = vsel %vm5170_vm3, %v7312_v49, %v12906_v50 }
 0x9ee   : > { %v7814_v36 = vmax.f32 %v7782_v39, 0.0  ;;  %v13082_v5 = vpop.permute.xlu2 %6907 }
 0x9ef   : > { %6539 = vrot.lane.b32.xlu0 %v6363_v22, %s8435_s21 }
 0x9f0   : > { %7846 = vst.msk [vmem:[%s12966_s8 + $0x10] sm:$0xff] %vm5086_vm1, %v7814_v36  ;;  %6537 = vrot.lane.b32.xlu2 %v6360_v60, %s8435_s21 }
 0x9f1   : > { %v13076_v37 = vpop.permute.xlu1 %7003 }
 0x9f2   : > { %v7192_v52 = vpop.permute.xlu0 %7191 }
 0x9f3   : > { %7205 = vrot.lane.b32.xlu1 %v13087_v29, %s8441_s6  ;;  %v7503_v30 = vsel %vm5380_vm8, %v7471_v53, %v7192_v52 }
 0x9f4   : > { %8346 = vmatmul.msk.f32.gmra.mxu1 %vm5431_vm9, %v7503_v30 }
 0x9f6   : > { %v13099_v25 = vpop.permute.xlu2 %6625 }
 0x9f7   : > { %6823 = vrot.lane.b32.xlu0 %v6363_v22, %s8439_s29  ;;  %v7376_v22 = vsel %vm5212_vm4, %v7344_v10, %v12998_v63  ;;  %v14554_v63 = vld [vmem:[#allocation80_spill] sm:$0xff] }
 0x9f8   : > { %6821 = vrot.lane.b32.xlu2 %v6360_v60, %s8439_s29  ;;  %v7408_v23 = vsel %vm5254_vm5, %v7376_v22, %v12915_v21  ;;  %v13127_v36 = vsel %vm5906_vm10, %v14554_v63, 0.0 }
 0x9f9   : > { %v13096_v13 = vpop.permute.xlu1 %6721  ;;  %v7440_v50 = vsel %vm5296_vm6, %v7408_v23, %v7002_v12  ;;  %v6447_v21 = vrot.slane %v13127_v36, 2  ;;  %v6448_v12 = vrot.slane %v14553_v8, 2 }
 0x9fa   : > { %v13104_v11 = vpop.permute.xlu0 %6909 }
 0x9fb   : > { %6733 = vrot.lane.b32.xlu1 %v14553_v8, %s8438_s28 }
 0x9fe   : > { %v7098_v62 = vpop.permute.xlu2 %7097 }
 0x9ff   : > { %v7693_v39 = vpop.f32.mrf.mxu1  ;;  %7203 = vrot.lane.b32.xlu0 %v13003_v6, %s8441_s6  ;;  %v7472_v52 = vsel %vm5338_vm7, %v7440_v50, %v7098_v62  ;;  %v7281_v62 = vsel %vm5086_vm1, %v12462_v42, %v12885_v38  ;;  %v14555_v38 = vld [vmem:[#allocation142_spill] sm:$0xff] }
 0xa00   : > { %v7694_v59 = vadd.f32 %v12939_v33, %v7693_v39  ;;  %v7504_v53 = vsel %vm5380_vm8, %v7472_v52, %v7194_v18  ;;  %7201 = vrot.lane.b32.xlu2 %v12980_v58, %s8441_s6  ;;  %v13147_v18 = vsel %vm6396_vm11, %v6447_v21, %v6448_v12  ;;  %v6245_v58 = vsel %vm5917_vm13, %v12539_v31, 0.0 }
 0xa01   : > { %v13117_v26 = vpop.permute.xlu1 %6911  ;;  %8347 = vmatmul.msk.f32.gmra.mxu1 %vm5431_vm9, %v7504_v53  ;;  %v6450_v49 = vrot.slane %v6245_v58, 2  ;;  %v6367_v52 = vrot.slane %v14553_v8, 1 }
 0xa02   : > { %v7783_v40 = vadd.f32 %v8308_v56, %v7694_v59  ;;  %v13129_v54 = vpop.permute.xlu0 %6719  ;;  %v8309_v59 = vld [vmem:[%s8496_s26 + $0x62] sm:$0xff] }
 0xa03   : > { %7015 = vrot.lane.b32.xlu1 %v13127_v36, %s8436_s22  ;;  %v13163_v56 = vsel %vm6396_vm11, %v6448_v12, %v6450_v49  ;;  %v13197_v49 = vsel %vm5906_vm10, %v14555_v38, 0.0 }
 0xa04   : > { %v7815_v60 = vmax.f32 %v7783_v40, 0.0 }
 0xa06   : > { %7847 = vst.msk [vmem:[%s12966_s8 + $0x18] sm:$0xff] %vm5086_vm1, %v7815_v60  ;;  %v7006_v47 = vpop.permute.xlu2 %7005  ;;  %v6366_v60 = vrot.slane %v13127_v36, 1 }
 0xa07   : > { %6921 = vrot.lane.b32.xlu0 %v13087_v29, %s8440_s30 }
 0xa08   : > { %6729 = vrot.lane.b32.xlu2 %v12457_v57, %s8438_s28 }
 0xa09   : > { %v13142_v30 = vpop.permute.xlu1 %6629 }
 0xa0a   : > { %v13149_v17 = vpop.permute.xlu0 %6627 }
 0xa0b   : > { %6923 = vrot.lane.b32.xlu1 %v13147_v18, %s8440_s30 }
 0xa0e   : > { %v13160_v22 = vpop.permute.xlu2 %6531 }
 0xa0f   : > { %6731 = vrot.lane.b32.xlu0 %v13127_v36, %s8438_s28 }
 0xa10   : > { %6919 = vrot.lane.b32.xlu2 %v13003_v6, %s8440_s30  ;;  %v7313_v6 = vsel %vm5128_vm2, %v7281_v62, %v12919_v3 }
 0xa11   : > { %v7102_v10 = vpop.permute.xlu1 %7101  ;;  %v7345_v12 = vsel %vm5170_vm3, %v7313_v6, %v12934_v28  ;;  %v6372_v28 = vrot.slane %v12591_v19, 1 }
 0xa12   : > { %v7100_v39 = vpop.permute.xlu0 %7099  ;;  %v7377_v42 = vsel %vm5212_vm4, %v7345_v12, %v13062_v32  ;;  %v6371_v32 = vrot.slane %v13197_v49, 1 }
 0xa13   : > { %6641 = vrot.lane.b32.xlu1 %v13163_v56, %s8437_s27  ;;  %v7409_v3 = vsel %vm5254_vm5, %v7377_v42, %v13082_v5  ;;  %v8310_v42 = vld [vmem:[%s8496_s26 + $0x6a] sm:$0xff] }
 0xa16   : > { %v13178_v63 = vpop.permute.xlu2 %6815 }
 0xa17   : > { %6639 = vrot.lane.b32.xlu0 %v13147_v18, %s8437_s27 }
 0xa18   : > { %v7696_v23 = vpop.f32.mrf.mxu1  ;;  %6637 = vrot.lane.b32.xlu2 %v13087_v29, %s8437_s27  ;;  %v13216_v29 = vsel %vm6315_vm12, %v6371_v32, %v6372_v28  ;;  %v14556_v32 = vld [vmem:[#allocation47_spill] sm:$0xff] }
 0xa19   : > { %v7697_v31 = vadd.f32 %v12939_v33, %v7696_v23  ;;  %v13171_v40 = vpop.permute.xlu1 %7009 }
 0xa1a   : > { %v13184_v21 = vpop.permute.xlu0 %6533 }
 0xa1b   : > { %v7784_v50 = vadd.f32 %v8309_v59, %v7697_v31  ;;  %7021 = vrot.lane.b32.xlu1 %v12591_v19, %s8436_s22  ;;  %v6368_v59 = vsel %vm6315_vm12, %v6366_v60, %v6367_v52  ;;  %v7282_v31 = vsel %vm5086_vm1, %v12311_v43, %v12977_v46  ;;  %v6369_v60 = vrot.slane %v6245_v58, 1 }
 0xa1c   : > { %v7314_v43 = vsel %vm5128_vm2, %v7282_v31, %v12982_v48  ;;  %v6453_v31 = vrot.slane %v12591_v19, 2 }
 0xa1d   : > { %v7816_v53 = vmax.f32 %v7784_v50, 0.0  ;;  %v7441_v50 = vsel %vm5296_vm6, %v7409_v3, %v13076_v37  ;;  %v7346_v46 = vsel %vm5170_vm3, %v7314_v43, %v13056_v20  ;;  %v13231_v37 = vsel %vm6315_vm12, %v6367_v52, %v6369_v60 }
 0xa1e   : > { %v7473_v5 = vsel %vm5338_vm7, %v7441_v50, %v7100_v39  ;;  %v7196_v62 = vpop.permute.xlu2 %7195  ;;  %v7378_v39 = vsel %vm5212_vm4, %v7346_v46, %v13041_v45  ;;  %v6248_v45 = vsel %vm5917_vm13, %v14556_v32, 0.0  ;;  %v7285_v50 = vsel %vm5086_vm1, %v12748_v44, %v13160_v22 }
 0xa1f   : > { %7848 = vst.msk [vmem:[%s12966_s8 + $0x20] sm:$0xff] %vm5086_vm1, %v7816_v53  ;;  %7111 = vrot.lane.b32.xlu0 %v6368_v59, %s8434_s20  ;;  %v7505_v53 = vsel %vm5380_vm8, %v7473_v5, %v7196_v62  ;;  %v7410_v48 = vsel %vm5254_vm5, %v7378_v39, %v13104_v11  ;;  %v7317_v60 = vsel %vm5128_vm2, %v7285_v50, %v13149_v17 }
 0xa20   : > { %8348 = vmatmul.msk.f32.gmra.mxu1 %vm5431_vm9, %v7505_v53  ;;  %7109 = vrot.lane.b32.xlu2 %v13045_v61, %s8434_s20  ;;  %v7442_v12 = vsel %vm5296_vm6, %v7410_v48, %v7006_v47  ;;  %v7283_v17 = vsel %vm5086_vm1, %v12585_v4, %v13047_v41 }
 0xa21   : > { %v6536_v23 = vpop.permute.xlu1 %6535  ;;  %v7474_v61 = vsel %vm5338_vm7, %v7442_v12, %v7102_v10  ;;  %v6455_v10 = vrot.slane %v6248_v45, 2 }
 0xa22   : > { %v13218_v6 = vpop.permute.xlu0 %6817  ;;  %v7287_v48 = vsel %vm5086_vm1, %v12874_v55, %v6536_v23 }
 0xa23   : > { %6547 = vrot.lane.b32.xlu1 %v13216_v29, %s8435_s21  ;;  %v6456_v43 = vsel %vm6396_vm11, %v6453_v31, %v6455_v10 }
 0xa26   : > { %v13241_v38 = vpop.permute.xlu2 %6913 }
 0xa27   : > { %6545 = vrot.lane.b32.xlu0 %v13231_v37, %s8435_s21 }
 0xa28   : > { %6543 = vrot.lane.b32.xlu2 %v6368_v59, %s8435_s21 }
 0xa29   : > { %v6820_v58 = vpop.permute.xlu1 %6819  ;;  %v7699_v20 = vpop.f32.mrf.mxu1 }
 0xa2a   : > { %v7700_v52 = vadd.f32 %v12939_v33, %v7699_v20  ;;  %v7198_v3 = vpop.permute.xlu0 %7197 }
 0xa2b   : > { %6831 = vrot.lane.b32.xlu1 %v13216_v29, %s8439_s29  ;;  %v7506_v11 = vsel %vm5380_vm8, %v7474_v61, %v7198_v3  ;;  %v8311_v3 = vld [vmem:[%s8496_s26 + $0x7a] sm:$0xff] }
 0xa2c   : > { %v7785_v47 = vadd.f32 %v8310_v42, %v7700_v52  ;;  %8349 = vmatmul.msk.f32.gmra.mxu1 %vm5431_vm9, %v7506_v11  ;;  %v14557_v11 = vld [vmem:[#allocation185_spill] sm:$0xff] }
 0xa2e   : > { %v7817_v5 = vmax.f32 %v7785_v47, 0.0  ;;  %v6724_v53 = vpop.permute.xlu2 %6723 }
 0xa2f   : > { %6829 = vrot.lane.b32.xlu0 %v13231_v37, %s8439_s29  ;;  %v7349_v39 = vsel %vm5170_vm3, %v7317_v60, %v6724_v53  ;;  %v14558_v60 = vld [vmem:[#allocation7_spill] sm:$0xff] }
 0xa30   : > { %7849 = vst.msk [vmem:[%s12966_s8 + $0x28] sm:$0xff] %vm5086_vm1, %v7817_v5  ;;  %v13269_v44 = vsel %vm5212_vm4, %v7349_v39, %v6820_v58  ;;  %6827 = vrot.lane.b32.xlu2 %v6368_v59, %s8439_s29  ;;  %v7315_v59 = vsel %vm5128_vm2, %v7283_v17, %v12971_v7  ;;  %v6452_v58 = vrot.slane %v13197_v49, 2  ;;  %v13320_v53 = vsel %vm5906_vm10, %v14558_v60, 0.0 }
 0xa31   : > { %v7200_v62 = vpop.permute.xlu1 %7199  ;;  %v7347_v4 = vsel %vm5170_vm3, %v7315_v59, %v13129_v54 }
 0xa32   : > { %v13264_v46 = vpop.permute.xlu0 %6725  ;;  %v7379_v55 = vsel %vm5212_vm4, %v7347_v4, %v13178_v63  ;;  %v13294_v41 = vsel %vm6396_vm11, %v6452_v58, %v6453_v31  ;;  %v6457_v58 = vrot.slane %v13320_v53, 2  ;;  %v6458_v4 = vrot.slane %v14557_v11, 2 }
 0xa33   : > { %6929 = vrot.lane.b32.xlu1 %v6456_v43, %s8440_s30  ;;  %v7411_v7 = vsel %vm5254_vm5, %v7379_v55, %v13117_v26 }
 0xa36   : > { %v6632_v12 = vpop.permute.xlu2 %6631 }
 0xa37   : > { %6737 = vrot.lane.b32.xlu0 %v12591_v19, %s8438_s28  ;;  %v7319_v20 = vsel %vm5128_vm2, %v7287_v48, %v6632_v12  ;;  %v6376_v48 = vrot.slane %v13320_v53, 1 }
 0xa38   : > { %7207 = vrot.lane.b32.xlu2 %v13147_v18, %s8441_s6 }
 0xa39   : > { %v6728_v22 = vpop.permute.xlu1 %6727 }
 0xa3a   : > { %v7008_v42 = vpop.permute.xlu0 %7007  ;;  %v13285_v61 = vsel %vm5170_vm3, %v7319_v20, %v6728_v22 }
 0xa3b   : > { %7213 = vrot.lane.b32.xlu1 %v6456_v43, %s8441_s6  ;;  %v7443_v52 = vsel %vm5296_vm6, %v7411_v7, %v7008_v42  ;;  %v8312_v7 = vld [vmem:[%s8496_s26 + $0x82] sm:$0xff] }
 0xa3e   : > { %v7104_v54 = vpop.permute.xlu2 %7103 }
 0xa3f   : > { %6927 = vrot.lane.b32.xlu0 %v13294_v41, %s8440_s30  ;;  %v7475_v18 = vsel %vm5338_vm7, %v7443_v52, %v7104_v54 }
 0xa40   : > { %v7507_v31 = vsel %vm5380_vm8, %v7475_v18, %v7200_v62  ;;  %6735 = vrot.lane.b32.xlu2 %v13197_v49, %s8438_s28  ;;  %v6374_v62 = vrot.slane %v6248_v45, 1  ;;  %v6377_v45 = vrot.slane %v14557_v11, 1  ;;  %v6459_v18 = vsel %vm6396_vm11, %v6457_v58, %v6458_v4 }
 0xa41   : > { %v6918_v23 = vpop.permute.xlu1 %6917  ;;  %v7702_v32 = vpop.f32.mrf.mxu1  ;;  %8350 = vmatmul.msk.f32.gmra.mxu1 %vm5431_vm9, %v7507_v31 }
 0xa42   : > { %v13302_v63 = vpop.permute.xlu0 %6915  ;;  %v7703_v47 = vadd.f32 %v12939_v33, %v7702_v32  ;;  %v6378_v59 = vsel %vm6315_vm12, %v6376_v48, %v6377_v45 }
 0xa43   : > { %7025 = vrot.lane.b32.xlu1 %v14557_v11, %s8436_s22 }
 0xa44   : > { %v7786_v26 = vadd.f32 %v8311_v3, %v7703_v47 }
 0xa46   : > { %v7818_v50 = vmax.f32 %v7786_v26, 0.0  ;;  %v13315_v5 = vpop.permute.xlu2 %7011 }
 0xa47   : > { %6645 = vrot.lane.b32.xlu0 %v6456_v43, %s8437_s27  ;;  %v6375_v43 = vsel %vm6315_vm12, %v6372_v28, %v6374_v62  ;;  %v7286_v28 = vsel %vm5086_vm1, %v12376_v2, %v13184_v21 }
 0xa48   : > { %7850 = vst.msk [vmem:[%s12966_s8 + $0x30] sm:$0xff] %vm5086_vm1, %v7818_v50  ;;  %6925 = vrot.lane.b32.xlu2 %v13163_v56, %s8440_s30  ;;  %v7318_v21 = vsel %vm5128_vm2, %v7286_v28, %v13142_v30 }
 0xa49   : > { %v6636_v10 = vpop.permute.xlu1 %6635  ;;  %v7350_v54 = vsel %vm5170_vm3, %v7318_v21, %v13264_v46 }
 0xa4a   : > { %v6634_v39 = vpop.permute.xlu0 %6633 }
 0xa4b   : > { %6739 = vrot.lane.b32.xlu1 %v13320_v53, %s8438_s28 }
 0xa4e   : > { %v6538_v17 = vpop.permute.xlu2 %6537 }
 0xa4f   : > { %7117 = vrot.lane.b32.xlu0 %v6375_v43, %s8434_s20  ;;  %v7288_v42 = vsel %vm5086_vm1, %v12415_v14, %v6538_v17  ;;  %v7284_v14 = vsel %vm5086_vm1, %v12340_v1, %v13017_v35 }
 0xa50   : > { %v7320_v20 = vsel %vm5128_vm2, %v7288_v42, %v6634_v39  ;;  %6643 = vrot.lane.b32.xlu2 %v13294_v41, %s8437_s27  ;;  %v7316_v2 = vsel %vm5128_vm2, %v7284_v14, %v13099_v25 }
 0xa51   : > { %v13329_v22 = vpop.permute.xlu1 %7107  ;;  %v7348_v25 = vsel %vm5170_vm3, %v7316_v2, %v13096_v13 }
 0xa52   : > { %v7106_v12 = vpop.permute.xlu0 %7105  ;;  %v7380_v47 = vsel %vm5212_vm4, %v7348_v25, %v13218_v6 }
 0xa53   : > { %7023 = vrot.lane.b32.xlu1 %v13320_v53, %s8436_s22  ;;  %v7412_v31 = vsel %vm5254_vm5, %v7380_v47, %v13241_v38  ;;  %v14559_v38 = vld [vmem:[#allocation225_spill] sm:$0xff] }
 0xa54   : > { %v7444_v13 = vsel %vm5296_vm6, %v7412_v31, %v13171_v40  ;;  %v6251_v39 = vsel %vm5917_vm13, %v14559_v38, 0.0 }
 0xa55   : > { %v7705_v52 = vpop.f32.mrf.mxu1  ;;  %v6379_v40 = vrot.slane %v6251_v39, 1 }
 0xa56   : > { %v7706_v3 = vadd.f32 %v12939_v33, %v7705_v52  ;;  %v6822_v32 = vpop.permute.xlu2 %6821 }
 0xa57   : > { %6551 = vrot.lane.b32.xlu0 %v6378_v59, %s8435_s21  ;;  %v7382_v1 = vsel %vm5212_vm4, %v7350_v54, %v6822_v32  ;;  %v6380_v28 = vsel %vm6315_vm12, %v6377_v45, %v6379_v40 }
 0xa58   : > { %v7787_v30 = vadd.f32 %v8312_v7, %v7706_v3  ;;  %v13371_v46 = vsel %vm5254_vm5, %v7382_v1, %v6918_v23  ;;  %6549 = vrot.lane.b32.xlu2 %v6375_v43, %s8435_s21  ;;  %v7476_v23 = vsel %vm5338_vm7, %v7444_v13, %v7106_v12 }
 0xa59   : > { %v13347_v55 = vpop.permute.xlu1 %6541 }
 0xa5a   : > { %v13365_v35 = vpop.permute.xlu0 %7013  ;;  %v7819_v26 = vmax.f32 %v7787_v30, 0.0 }
 0xa5b   : > { %6647 = vrot.lane.b32.xlu1 %v6459_v18, %s8437_s27 }
 0xa5c   : > { %7851 = vst.msk [vmem:[%s12966_s8 + $0x38] sm:$0xff] %vm5086_vm1, %v7819_v26 }
 0xa5e   : > { %v7202_v60 = vpop.permute.xlu2 %7201 }
 0xa5f   : > { %6835 = vrot.lane.b32.xlu0 %v6378_v59, %s8439_s29  ;;  %v7508_v6 = vsel %vm5380_vm8, %v7476_v23, %v7202_v60 }
 0xa60   : > { %8351 = vmatmul.msk.f32.gmra.mxu1 %vm5431_vm9, %v7508_v6  ;;  %6833 = vrot.lane.b32.xlu2 %v6375_v43, %s8439_s29  ;;  %v7413_v43 = vsel %vm5254_vm5, %v13269_v44, %v13302_v63  ;;  %v14560_v44 = vld [vmem:[#allocation248_spill] sm:$0xff] }
 0xa61   : > { %v6826_v50 = vpop.permute.xlu1 %6825  ;;  %v7445_v45 = vsel %vm5296_vm6, %v7413_v43, %v13315_v5  ;;  %v13421_v63 = vsel %vm5906_vm10, %v14560_v44, 0.0  ;;  %v6460_v5 = vrot.slane %v6251_v39, 2 }
 0xa62   : > { %v6540_v62 = vpop.permute.xlu0 %6539  ;;  %v7477_v21 = vsel %vm5338_vm7, %v7445_v45, %v13329_v22  ;;  %v6381_v38 = vrot.slane %v13421_v63, 1 }
 0xa63   : > { %7215 = vrot.lane.b32.xlu1 %v6459_v18, %s8441_s6  ;;  %v7289_v17 = vsel %vm5086_vm1, %v12951_v24, %v6540_v62  ;;  %v6461_v25 = vsel %vm6396_vm11, %v6458_v4, %v6460_v5  ;;  %v7446_v4 = vsel %vm5296_vm6, %v13371_v46, %v13365_v35 }
 0xa64   : > { %v7321_v48 = vsel %vm5128_vm2, %v7289_v17, %v6636_v10 }
 0xa66   : > { %v6730_v42 = vpop.permute.xlu2 %6729 }
 0xa67   : > { %7119 = vrot.lane.b32.xlu0 %v6378_v59, %s8434_s20  ;;  %v7352_v58 = vsel %vm5170_vm3, %v7320_v20, %v6730_v42  ;;  %v8313_v20 = vld [vmem:[%s8496_s26 + $0x92] sm:$0xff] }
 0xa68   : > { %v7384_v24 = vsel %vm5212_vm4, %v7352_v58, %v6826_v50  ;;  %6741 = vrot.lane.b32.xlu2 %v14557_v11, %s8438_s28  ;;  %v6463_v58 = vrot.slane %v12693_v0, 2 }
 0xa69   : > { %v7206_v12 = vpop.permute.xlu1 %7205 }
 0xa6a   : > { %v13397_v14 = vpop.permute.xlu0 %6823 }
 0xa6b   : > { %6553 = vrot.lane.b32.xlu1 %v6380_v28, %s8435_s21 }
 0xa6e   : > { %v13410_v2 = vpop.permute.xlu2 %6919 }
 0xa6f   : > { %6931 = vrot.lane.b32.xlu0 %v6459_v18, %s8440_s30  ;;  %v7290_v18 = vsel %vm5086_vm1, %v12457_v57, %v13347_v55  ;;  %v6382_v57 = vrot.slane %v12693_v0, 1  ;;  %v8314_v55 = vld [vmem:[%s8496_s26 + $0x9a] sm:$0xff] }
 0xa70   : > { %7027 = vrot.lane.b32.xlu2 %v13421_v63, %s8436_s22 }
 0xa71   : > { %v6734_v10 = vpop.permute.xlu1 %6733  ;;  %v7708_v59 = vpop.f32.mrf.mxu1  ;;  %v6383_v35 = vsel %vm6315_vm12, %v6381_v38, %v6382_v57  ;;  %v14562_v38 = vld [vmem:[#allocation120_spill] sm:$0xff] }
 0xa72   : > { %v7709_v7 = vadd.f32 %v12939_v33, %v7708_v59  ;;  %v7204_v52 = vpop.permute.xlu0 %7203 }
 0xa73   : > { %6837 = vrot.lane.b32.xlu1 %v6380_v28, %s8439_s29  ;;  %v7509_v54 = vsel %vm5380_vm8, %v7477_v21, %v7204_v52 }
 0xa74   : > { %v7788_v3 = vadd.f32 %v8313_v20, %v7709_v7  ;;  %8352 = vmatmul.msk.f32.gmra.mxu1 %vm5431_vm9, %v7509_v54 }
 0xa76   : > { %v7820_v22 = vmax.f32 %v7788_v3, 0.0  ;;  %v6638_v1 = vpop.permute.xlu2 %6637  ;;  %v7383_v3 = vsel %vm5212_vm4, %v13285_v61, %v13397_v14 }
 0xa77   : > { %6743 = vrot.lane.b32.xlu0 %v13421_v63, %s8438_s28  ;;  %v7322_v30 = vsel %vm5128_vm2, %v7290_v18, %v6638_v1  ;;  %v7415_v5 = vsel %vm5254_vm5, %v7383_v3, %v13410_v2 }
 0xa78   : > { %7852 = vst.msk [vmem:[%s12966_s8 + $0x40] sm:$0xff] %vm5086_vm1, %v7820_v22  ;;  %v13441_v26 = vsel %vm5170_vm3, %v7322_v30, %v6734_v10  ;;  %6649 = vrot.lane.b32.xlu2 %v6461_v25, %s8437_s27 }
 0xa79   : > { %v7016_v32 = vpop.permute.xlu1 %7015 }
 0xa7a   : > { %v6922_v47 = vpop.permute.xlu0 %6921  ;;  %v7447_v22 = vsel %vm5296_vm6, %v7415_v5, %v7016_v32  ;;  %v8315_v32 = vld [vmem:[%s8496_s26 + $0xaa] sm:$0xff] }
 0xa7b   : > { %7217 = vrot.lane.b32.xlu1 %v6461_v25, %s8441_s6  ;;  %v13438_v31 = vsel %vm5254_vm5, %v7384_v24, %v6922_v47  ;;  %v6462_v24 = vrot.slane %v13421_v63, 2 }
 0xa7d   : > { %v6464_v43 = vsel %vm6396_vm11, %v6462_v24, %v6463_v58 }
 0xa7e   : > { %v7711_v13 = vpop.f32.mrf.mxu1  ;;  %v7110_v23 = vpop.permute.xlu2 %7109 }
 0xa7f   : > { %7121 = vrot.lane.b32.xlu0 %v6380_v28, %s8434_s20  ;;  %v7712_v60 = vadd.f32 %v12939_v33, %v7711_v13  ;;  %v7478_v62 = vsel %vm5338_vm7, %v7446_v4, %v7110_v23 }
 0xa80   : > { %v7510_v17 = vsel %vm5380_vm8, %v7478_v62, %v7206_v12  ;;  %6555 = vrot.lane.b32.xlu2 %v6383_v35, %s8435_s21 }
 0xa81   : > { %v6924_v50 = vpop.permute.xlu1 %6923  ;;  %v7789_v40 = vadd.f32 %v8314_v55, %v7712_v60  ;;  %8353 = vmatmul.msk.f32.gmra.mxu1 %vm5431_vm9, %v7510_v17  ;;  %v14561_v55 = vld [vmem:[#allocation78_spill] sm:$0xff] }
 0xa82   : > { %v6732_v6 = vpop.permute.xlu0 %6731  ;;  %v13513_v13 = vsel %vm5906_vm10, %v14561_v55, 0.0 }
 0xa83   : > { %6933 = vrot.lane.b32.xlu1 %v6461_v25, %s8440_s30  ;;  %v7353_v39 = vsel %vm5170_vm3, %v7321_v48, %v6732_v6  ;;  %v7821_v46 = vmax.f32 %v7789_v40, 0.0  ;;  %v6386_v6 = vrot.slane %v13513_v13, 1  ;;  %v8316_v40 = vld [vmem:[%s8496_s26 + $0xb2] sm:$0xff] }
 0xa85   : > { %7853 = vst.msk [vmem:[%s12966_s8 + $0x48] sm:$0xff] %vm5086_vm1, %v7821_v46 }
 0xa86   : > { %v6544_v28 = vpop.permute.xlu2 %6543 }
 0xa87   : > { %7029 = vrot.lane.b32.xlu0 %v12693_v0, %s8436_s22  ;;  %v7291_v12 = vsel %vm5086_vm1, %v13127_v36, %v6544_v28  ;;  %v6254_v36 = vsel %vm5917_vm13, %v12704_v9, 0.0 }
 0xa88   : > { %6839 = vrot.lane.b32.xlu2 %v6383_v35, %s8439_s29  ;;  %v6384_v59 = vrot.slane %v6254_v36, 1  ;;  %v6465_v54 = vrot.slane %v6254_v36, 2 }
 0xa89   : > { %v6642_v42 = vpop.permute.xlu1 %6641 }
 0xa8a   : > { %v6640_v48 = vpop.permute.xlu0 %6639  ;;  %v6385_v52 = vsel %vm6315_vm12, %v6382_v57, %v6384_v59  ;;  %v6466_v25 = vsel %vm6396_vm11, %v6463_v58, %v6465_v54 }
 0xa8b   : > { %6745 = vrot.lane.b32.xlu1 %v12693_v0, %s8438_s28  ;;  %v13470_v10 = vsel %vm5128_vm2, %v7291_v12, %v6640_v48 }
 0xa8e   : > { %v6828_v20 = vpop.permute.xlu2 %6827 }
 0xa8f   : > { %6651 = vrot.lane.b32.xlu0 %v6464_v43, %s8437_s27  ;;  %v7385_v7 = vsel %vm5212_vm4, %v7353_v39, %v6828_v20  ;;  %v6387_v39 = vrot.slane %v14562_v38, 1 }
 0xa90   : > { %7219 = vrot.lane.b32.xlu2 %v6464_v43, %s8441_s6  ;;  %v13489_v9 = vsel %vm5254_vm5, %v7385_v7, %v6924_v50  ;;  %v6467_v7 = vrot.slane %v13513_v13, 2 }
 0xa91   : > { %v13474_v45 = vpop.permute.xlu1 %7021 }
 0xa92   : > { %v7112_v21 = vpop.permute.xlu0 %7111 }
 0xa93   : > { %7123 = vrot.lane.b32.xlu1 %v6383_v35, %s8434_s20  ;;  %v7479_v18 = vsel %vm5338_vm7, %v7447_v22, %v7112_v21 }
 0xa96   : > { %v7208_v1 = vpop.permute.xlu2 %7207 }
 0xa97   : > { %6557 = vrot.lane.b32.xlu0 %v6385_v52, %s8435_s21  ;;  %v7511_v61 = vsel %vm5380_vm8, %v7479_v18, %v7208_v1  ;;  %v14563_v1 = vld [vmem:[#allocation159_spill] sm:$0xff] }
 0xa98   : > { %8354 = vmatmul.msk.f32.gmra.mxu1 %vm5431_vm9, %v7511_v61  ;;  %6935 = vrot.lane.b32.xlu2 %v6464_v43, %s8440_s30 }
 0xa99   : > { %v6548_v44 = vpop.permute.xlu1 %6547 }
 0xa9a   : > { %v6546_v30 = vpop.permute.xlu0 %6545  ;;  %v7293_v36 = vsel %vm5086_vm1, %v13197_v49, %v6548_v44 }
 0xa9b   : > { %6653 = vrot.lane.b32.xlu1 %v6466_v25, %s8437_s27  ;;  %v7292_v14 = vsel %vm5086_vm1, %v14553_v8, %v6546_v30 }
 0xa9c   : > { %v7324_v47 = vsel %vm5128_vm2, %v7292_v14, %v6642_v42  ;;  %v6388_v42 = vsel %vm6315_vm12, %v6386_v6, %v6387_v39 }
 0xa9d   : > { %v7714_v50 = vpop.f32.mrf.mxu1 }
 0xa9e   : > { %v7715_v57 = vadd.f32 %v12939_v33, %v7714_v50  ;;  %v13508_v4 = vpop.permute.xlu2 %6735 }
 0xa9f   : > { %6841 = vrot.lane.b32.xlu0 %v6385_v52, %s8439_s29 }
 0xaa0   : > { %v7790_v60 = vadd.f32 %v8315_v32, %v7715_v57  ;;  %7125 = vrot.lane.b32.xlu2 %v6385_v52, %s8434_s20  ;;  %v6468_v52 = vrot.slane %v14562_v38, 2  ;;  %v8317_v32 = vld [vmem:[%s8496_s26 + $0xc2] sm:$0xff] }
 0xaa1   : > { %v13503_v2 = vpop.permute.xlu1 %6831 }
 0xaa2   : > { %v6830_v23 = vpop.permute.xlu0 %6829  ;;  %v7822_v62 = vmax.f32 %v7790_v60, 0.0  ;;  %v6469_v44 = vsel %vm6396_vm11, %v6467_v7, %v6468_v52 }
 0xaa3   : > { %7031 = vrot.lane.b32.xlu1 %v13513_v13, %s8436_s22  ;;  %v7386_v30 = vsel %vm5212_vm4, %v13441_v26, %v6830_v23 }
 0xaa4   : > { %7854 = vst.msk [vmem:[%s12966_s8 + $0x50] sm:$0xff] %vm5086_vm1, %v7822_v62 }
 0xaa6   : > { %v6926_v46 = vpop.permute.xlu2 %6925 }
 0xaa7   : > { %7221 = vrot.lane.b32.xlu0 %v6466_v25, %s8441_s6  ;;  %v7418_v14 = vsel %vm5254_vm5, %v7386_v30, %v6926_v46 }
 0xaa8   : > { %7033 = vrot.lane.b32.xlu2 %v14562_v38, %s8436_s22  ;;  %v7450_v60 = vsel %vm5296_vm6, %v7418_v14, %v13474_v45 }
 0xaa9   : > { %v6930_v17 = vpop.permute.xlu1 %6929  ;;  %v7717_v35 = vpop.f32.mrf.mxu1 }
 0xaaa   : > { %v7718_v28 = vadd.f32 %v12939_v33, %v7717_v35  ;;  %v6738_v58 = vpop.permute.xlu0 %6737 }
 0xaab   : > { %6559 = vrot.lane.b32.xlu1 %v6388_v42, %s8435_s21  ;;  %v7356_v48 = vsel %vm5170_vm3, %v7324_v47, %v6738_v58 }
 0xaac   : > { %v7791_v12 = vadd.f32 %v8316_v40, %v7718_v28 }
 0xaae   : > { %v7823_v24 = vmax.f32 %v7791_v12, 0.0  ;;  %v6644_v20 = vpop.permute.xlu2 %6643 }
 0xaaf   : > { %6937 = vrot.lane.b32.xlu0 %v6466_v25, %s8440_s30  ;;  %v7325_v21 = vsel %vm5128_vm2, %v7293_v36, %v6644_v20  ;;  %v6257_v25 = vsel %vm5917_vm13, %v14563_v1, 0.0  ;;  %v14565_v20 = vld [vmem:[#allocation3_spill] sm:$0xff] }
 0xab0   : > { %7855 = vst.msk [vmem:[%s12966_s8 + $0x58] sm:$0xff] %vm5086_vm1, %v7823_v24  ;;  %6747 = vrot.lane.b32.xlu2 %v13513_v13, %s8438_s28  ;;  %v6389_v47 = vrot.slane %v6257_v25, 1  ;;  %v6470_v58 = vrot.slane %v6257_v25, 2 }
 0xab1   : > { %v7214_v43 = vpop.permute.xlu1 %7213 }
 0xab2   : > { %v13535_v59 = vpop.permute.xlu0 %6927  ;;  %v6390_v46 = vsel %vm6315_vm12, %v6387_v39, %v6389_v47  ;;  %v8318_v47 = vld [vmem:[%s8496_s26 + $0xca] sm:$0xff] }
 0xab3   : > { %6843 = vrot.lane.b32.xlu1 %v6388_v42, %s8439_s29 }
 0xab6   : > { %v6550_v3 = vpop.permute.xlu2 %6549 }
 0xab7   : > { %6749 = vrot.lane.b32.xlu0 %v14562_v38, %s8438_s28  ;;  %v7294_v22 = vsel %vm5086_vm1, %v12591_v19, %v6550_v3  ;;  %v7355_v3 = vsel %vm5170_vm3, %v13470_v10, %v13508_v4 }
 0xab8   : > { %6655 = vrot.lane.b32.xlu2 %v6469_v44, %s8437_s27 }
 0xab9   : > { %v13543_v54 = vpop.permute.xlu1 %7025 }
 0xaba   : > { %v6646_v5 = vpop.permute.xlu0 %6645 }
 0xabb   : > { %7223 = vrot.lane.b32.xlu1 %v6469_v44, %s8441_s6  ;;  %v13552_v18 = vsel %vm5128_vm2, %v7294_v22, %v6646_v5  ;;  %v7387_v5 = vsel %vm5212_vm4, %v7355_v3, %v13503_v2  ;;  %v6473_v2 = vrot.slane %v14565_v20, 2 }
 0xabc   : > { %v7419_v22 = vsel %vm5254_vm5, %v7387_v5, %v13535_v59 }
 0xabe   : > { %v7720_v50 = vpop.f32.mrf.mxu1  ;;  %v6834_v57 = vpop.permute.xlu2 %6833 }
 0xabf   : > { %7127 = vrot.lane.b32.xlu0 %v6388_v42, %s8434_s20  ;;  %v7721_v55 = vadd.f32 %v12939_v33, %v7720_v50  ;;  %v7388_v26 = vsel %vm5212_vm4, %v7356_v48, %v6834_v57  ;;  %v14564_v33 = vld [vmem:[#allocation46_spill] sm:$0xff]  ;;  %v6471_v48 = vsel %vm6396_vm11, %v6468_v52, %v6470_v58  ;;  %v13632_v57 = vld [vmem:[%s13937_s4] ss:$0 sm:$0xff] }
 0xac0   : > { %v13573_v6 = vsel %vm5254_vm5, %v7388_v26, %v6930_v17  ;;  %v13581_v45 = vsel %vm5906_vm10, %v14564_v33, 0.0  ;;  %6561 = vrot.lane.b32.xlu2 %v6390_v46, %s8435_s21 }
 0xac1   : > { %v6740_v61 = vpop.permute.xlu1 %6739  ;;  %v7792_v40 = vadd.f32 %v8317_v32, %v7721_v55  ;;  %v6391_v52 = vrot.slane %v13581_v45, 1  ;;  %v6472_v14 = vrot.slane %v13581_v45, 2 }
 0xac2   : > { %v13563_v19 = vsel %vm5170_vm3, %v7325_v21, %v6740_v61  ;;  %v7118_v62 = vpop.permute.xlu0 %7117  ;;  %v6392_v21 = vrot.slane %v14565_v20, 1 }
 0xac3   : > { %6939 = vrot.lane.b32.xlu1 %v6469_v44, %s8440_s30  ;;  %v7482_v23 = vsel %vm5338_vm7, %v7450_v60, %v7118_v62  ;;  %v7824_v42 = vmax.f32 %v7792_v40, 0.0  ;;  %v6474_v62 = vsel %vm6396_vm11, %v6472_v14, %v6473_v2  ;;  %v8320_v14 = vld [vmem:[%s8496_s26 + $0xe2] sm:$0xff] }
 0xac4   : > { %v7514_v35 = vsel %vm5380_vm8, %v7482_v23, %v7214_v43 }
 0xac5   : > { %8357 = vmatmul.msk.f32.vlgmr.msrb.gmra.mxu3 %vm5431_vm9, %v7514_v35  ;;  %7856 = vst.msk [vmem:[%s12966_s8 + $0x60] sm:$0xff] %vm5086_vm1, %v7824_v42 }
 0xac6   : > { %v13588_v17 = vpop.permute.xlu2 %6741 }
 0xac7   : > { %7035 = vrot.lane.b32.xlu0 %v13581_v45, %s8436_s22 }
 0xac8   : > { %6845 = vrot.lane.b32.xlu2 %v6390_v46, %s8439_s29 }
 0xac9   : > { %v7024_v28 = vpop.permute.xlu1 %7023 }
 0xaca   : > { %v6552_v39 = vpop.permute.xlu0 %6551  ;;  %v7451_v25 = vsel %vm5296_vm6, %v7419_v22, %v7024_v28 }
 0xacb   : > { %6751 = vrot.lane.b32.xlu1 %v13581_v45, %s8438_s28  ;;  %v7295_v12 = vsel %vm5086_vm1, %v13320_v53, %v6552_v39  ;;  %v6393_v53 = vsel %vm6315_vm12, %v6391_v52, %v6392_v21 }
 0xace   : > { %v13598_v36 = vpop.permute.xlu2 %7027 }
 0xacf   : > { %6657 = vrot.lane.b32.xlu0 %v6471_v48, %s8437_s27 }
 0xad0   : > { %7225 = vrot.lane.b32.xlu2 %v6471_v48, %s8441_s6 }
 0xad1   : > { %v6648_v24 = vpop.permute.xlu1 %6647 }
 0xad2   : > { %v7327_v43 = vsel %vm5128_vm2, %v7295_v12, %v6648_v24  ;;  %v13601_v7 = vpop.permute.xlu0 %6835  ;;  %v8319_v24 = vld [vmem:[%s8496_s26 + $0xda] sm:$0xff] }
 0xad3   : > { %7129 = vrot.lane.b32.xlu1 %v6390_v46, %s8434_s20  ;;  %v7389_v15 = vsel %vm5212_vm4, %v13563_v19, %v13601_v7 }
 0xad6   : > { %v6650_v1 = vpop.permute.xlu2 %6649 }
 0xad7   : > { %6563 = vrot.lane.b32.xlu0 %v6393_v53, %s8435_s21 }
 0xad8   : > { %6941 = vrot.lane.b32.xlu2 %v6471_v48, %s8440_s30 }
 0xad9   : > { %v7216_v44 = vpop.permute.xlu1 %7215 }
 0xada   : > { %v7120_v30 = vpop.permute.xlu0 %7119 }
 0xadb   : > { %7037 = vrot.lane.b32.xlu1 %v14565_v20, %s8436_s22  ;;  %v7483_v10 = vsel %vm5338_vm7, %v7451_v25, %v7120_v30 }
 0xadc   : > { %v7515_v4 = vsel %vm5380_vm8, %v7483_v10, %v7216_v44  ;;  %v6261_v10 = vsel %vm5906_vm10, %v12827_v27, 0.0 }
 0xadd   : > { %8358 = vmatmul.msk.f32.gmra.mxu3 %vm5431_vm9, %v7515_v4  ;;  %v7723_v32 = vpop.f32.mrf.mxu1 }
 0xade   : > { %v7724_v55 = vadd.f32 %v13632_v57, %v7723_v32  ;;  %v6556_v60 = vpop.permute.xlu2 %6555 }
 0xadf   : > { %6847 = vrot.lane.b32.xlu0 %v6393_v53, %s8439_s29  ;;  %v7297_v27 = vsel %vm5086_vm1, %v13421_v63, %v6556_v60  ;;  %v6263_v60 = vsel %vm5917_vm13, %v12848_v51, 0.0 }
 0xae0   : > { %v7793_v40 = vadd.f32 %v8318_v47, %v7724_v55  ;;  %6753 = vrot.lane.b32.xlu2 %v14565_v20, %s8438_s28 }
 0xae1   : > { %v6554_v61 = vpop.permute.xlu1 %6553 }
 0xae2   : > { %v7296_v59 = vsel %vm5086_vm1, %v14557_v11, %v6554_v61  ;;  %v6932_v26 = vpop.permute.xlu0 %6931  ;;  %v14566_v11 = vld [vmem:[#allocation188_spill] sm:$0xff]  ;;  %v7825_v35 = vmax.f32 %v7793_v40, 0.0  ;;  %v6480_v61 = vrot.slane %v6261_v10, 1 }
 0xae3   : > { %v7328_v50 = vsel %vm5128_vm2, %v7296_v59, %v6650_v1  ;;  %6659 = vrot.lane.b32.xlu1 %v6474_v62, %s8437_s27  ;;  %v6260_v23 = vsel %vm5917_vm13, %v14566_v11, 0.0  ;;  %v6481_v59 = vrot.slane %v12840_v16, 1 }
 0xae4   : > { %v6394_v46 = vrot.slane %v6260_v23, 1  ;;  %7857 = vst.msk [vmem:[%s12966_s8 + $0x68] sm:$0xff] %vm5086_vm1, %v7825_v35  ;;  %v6475_v12 = vrot.slane %v6260_v23, 2  ;;  %v6485_v35 = vrot.slane %v6261_v10, 2 }
 0xae5   : > { %v6482_v40 = vsel %vm6315_vm12, %v6480_v61, %v6481_v59 }
 0xae6   : > { %v13647_v42 = vpop.permute.xlu2 %6839  ;;  %v6395_v28 = vsel %vm6315_vm12, %v6392_v21, %v6394_v46  ;;  %v7452_v21 = vsel %vm5296_vm6, %v13573_v6, %v13543_v54  ;;  %v6476_v1 = vsel %vm6396_vm11, %v6473_v2, %v6475_v12 }
 0xae7   : > { %7227 = vrot.lane.b32.xlu0 %v6474_v62, %s8441_s6 }
 0xae8   : > { %7131 = vrot.lane.b32.xlu2 %v6393_v53, %s8434_s20 }
 0xae9   : > { %v13642_v33 = vpop.permute.xlu1 %6837 }
 0xaea   : > { %v6744_v58 = vpop.permute.xlu0 %6743 }
 0xaeb   : > { %6565 = vrot.lane.b32.xlu1 %v6395_v28, %s8435_s21  ;;  %v13652_v39 = vsel %vm5170_vm3, %v7327_v43, %v6744_v58 }
 0xaee   : > { %v7220_v3 = vpop.permute.xlu2 %7219 }
 0xaef   : > { %6943 = vrot.lane.b32.xlu0 %v6474_v62, %s8440_s30 }
 0xaf0   : > { %6661 = vrot.lane.b32.xlu2 %v6476_v1, %s8437_s27 }
 0xaf1   : > { %v7218_v48 = vpop.permute.xlu1 %7217  ;;  %v7726_v52 = vpop.f32.mrf.mxu1 }
 0xaf2   : > { %v7727_v44 = vadd.f32 %v13632_v57, %v7726_v52  ;;  %v7122_v5 = vpop.permute.xlu0 %7121 }
 0xaf3   : > { %6849 = vrot.lane.b32.xlu1 %v6395_v28, %s8439_s29  ;;  %v7484_v43 = vsel %vm5338_vm7, %v7452_v21, %v7122_v5 }
 0xaf4   : > { %v7794_v53 = vadd.f32 %v8319_v24, %v7727_v44  ;;  %v7516_v22 = vsel %vm5380_vm8, %v7484_v43, %v7218_v48  ;;  %v6488_v44 = vrot.slane %v6263_v60, 2 }
 0xaf5   : > { %8359 = vmatmul.msk.f32.gmra.mxu3 %vm5431_vm9, %v7516_v22  ;;  %v8321_v22 = vld [vmem:[%s8496_s26 + $0xf2] sm:$0xff] }
 0xaf6   : > { %v7826_v25 = vmax.f32 %v7794_v53, 0.0  ;;  %v13670_v54 = vpop.permute.xlu2 %6935 }
 0xaf7   : > { %7133 = vrot.lane.b32.xlu0 %v6395_v28, %s8434_s20  ;;  %v6486_v28 = vrot.slane %v12840_v16, 2 }
 0xaf8   : > { %7858 = vst.msk [vmem:[%s12966_s8 + $0x70] sm:$0xff] %vm5086_vm1, %v7826_v25  ;;  %7039 = vrot.lane.b32.xlu2 %v6261_v10, %s8436_s22 }
 0xaf9   : > { %v6934_v30 = vpop.permute.xlu1 %6933  ;;  %v6487_v34 = vsel %vm6396_vm11, %v6485_v35, %v6486_v28  ;;  %v6489_v21 = vsel %vm6396_vm11, %v6486_v28, %v6488_v44 }
 0xafa   : > { %v7030_v6 = vpop.permute.xlu0 %7029 }
 0xafb   : > { %7229 = vrot.lane.b32.xlu1 %v6476_v1, %s8441_s6 }
 0xafe   : > { %v7729_v47 = vpop.f32.mrf.mxu1  ;;  %v7126_v32 = vpop.permute.xlu2 %7125 }
 0xaff   : > { %7041 = vrot.lane.b32.xlu0 %v12840_v16, %s8436_s22  ;;  %v7730_v55 = vadd.f32 %v13632_v57, %v7729_v47 }
 0xb00   : > { %6851 = vrot.lane.b32.xlu2 %v6482_v40, %s8439_s29 }
 0xb01   : > { %v6746_v4 = vpop.permute.xlu1 %6745  ;;  %v7795_v23 = vadd.f32 %v8320_v14, %v7730_v55 }
 0xb02   : > { %v13680_v2 = vsel %vm5170_vm3, %v7328_v50, %v6746_v4  ;;  %v6652_v62 = vpop.permute.xlu0 %6651  ;;  %v7421_v50 = vsel %vm5254_vm5, %v7389_v15, %v6932_v26 }
 0xb03   : > { %6945 = vrot.lane.b32.xlu1 %v6476_v1, %s8440_s30  ;;  %v13693_v11 = vsel %vm5128_vm2, %v7297_v27, %v6652_v62  ;;  %v7827_v19 = vmax.f32 %v7795_v23, 0.0  ;;  %v7453_v63 = vsel %vm5296_vm6, %v7421_v50, %v13598_v36  ;;  %v6483_v36 = vrot.slane %v6263_v60, 1 }
 0xb05   : > { %7859 = vst.msk [vmem:[%s12966_s8 + $0x78] sm:$0xff] %vm5086_vm1, %v7827_v19  ;;  %v6484_v51 = vsel %vm6315_vm12, %v6481_v59, %v6483_v36 }
 0xb06   : > { %v13709_v58 = vpop.permute.xlu2 %7033 }
 0xb07   : > { %6755 = vrot.lane.b32.xlu0 %v6261_v10, %s8438_s28 }
 0xb08   : > { %7231 = vrot.lane.b32.xlu2 %v6487_v34, %s8441_s6 }
 0xb09   : > { %v7124_v7 = vpop.permute.xlu1 %7123 }
 0xb0a   : > { %v7485_v26 = vsel %vm5338_vm7, %v7453_v63, %v7124_v7  ;;  %v6558_v48 = vpop.permute.xlu0 %6557 }
 0xb0b   : > { %v7517_v46 = vsel %vm5380_vm8, %v7485_v26, %v7220_v3  ;;  %6757 = vrot.lane.b32.xlu1 %v12840_v16, %s8438_s28  ;;  %v7298_v12 = vsel %vm5086_vm1, %v12693_v0, %v6558_v48  ;;  %v7358_v0 = vsel %vm5170_vm3, %v13552_v18, %v13588_v17  ;;  %v14567_v18 = vld [vmem:[#allocation36_spill] sm:$0xff] }
 0xb0c   : > { %8360 = vmatmul.msk.f32.gmra.mxu3 %vm5431_vm9, %v7517_v46  ;;  %v7390_v43 = vsel %vm5212_vm4, %v7358_v0, %v13642_v33 }
 0xb0d   : > { %v7422_v53 = vsel %vm5254_vm5, %v7390_v43, %v6934_v30 }
 0xb0e   : > { %v13722_v3 = vpop.permute.xlu2 %6747  ;;  %v7454_v25 = vsel %vm5296_vm6, %v7422_v53, %v7030_v6  ;;  %v14568_v6 = vld [vmem:[#allocation2_spill] sm:$0xff] }
 0xb0f   : > { %6853 = vrot.lane.b32.xlu0 %v6484_v51, %s8439_s29  ;;  %v7486_v61 = vsel %vm5338_vm7, %v7454_v25, %v7126_v32 }
 0xb10   : > { %6947 = vrot.lane.b32.xlu2 %v6487_v34, %s8440_s30  ;;  %v8324_v34 = vld [vmem:[%s8496_s26 + $0x112] sm:$0xff] }
 0xb11   : > { %v6654_v24 = vpop.permute.xlu1 %6653 }
 0xb12   : > { %v13720_v52 = vsel %vm5128_vm2, %v7298_v12, %v6654_v24  ;;  %v6842_v16 = vpop.permute.xlu0 %6841 }
 0xb13   : > { %7135 = vrot.lane.b32.xlu1 %v6482_v40, %s8434_s20 }
 0xb15   : > { %v7732_v1 = vpop.f32.mrf.mxu1 }
 0xb16   : > { %v7733_v10 = vadd.f32 %v13632_v57, %v7732_v1  ;;  %v6656_v4 = vpop.permute.xlu2 %6655 }
 0xb17   : > { %7233 = vrot.lane.b32.xlu0 %v6489_v21, %s8441_s6 }
 0xb18   : > { %v7796_v17 = vadd.f32 %v8321_v22, %v7733_v10  ;;  %7137 = vrot.lane.b32.xlu2 %v6484_v51, %s8434_s20 }
 0xb19   : > { %v7032_v5 = vpop.permute.xlu1 %7031 }
 0xb1a   : > { %v7222_v59 = vpop.permute.xlu0 %7221  ;;  %v7828_v33 = vmax.f32 %v7796_v17, 0.0 }
 0xb1b   : > { %7235 = vrot.lane.b32.xlu1 %v14567_v18, %s8441_s6  ;;  %v7518_v14 = vsel %vm5380_vm8, %v7486_v61, %v7222_v59 }
 0xb1c   : > { %8361 = vmatmul.msk.f32.gmra.mxu3 %vm5431_vm9, %v7518_v14  ;;  %7860 = vst.msk [vmem:[%s12966_s8 + $0x80] sm:$0xff] %vm5086_vm1, %v7828_v33 }
 0xb1e   : > { %v6562_v15 = vpop.permute.xlu2 %6561 }
 0xb1f   : > { %7141 = vrot.lane.b32.xlu0 %v14568_v6, %s8434_s20  ;;  %v7300_v26 = vsel %vm5086_vm1, %v14562_v38, %v6562_v15 }
 0xb20   : > { %7017 = vrot.lane.b32.xlu2 %v14553_v8, %s8436_s22  ;;  %v7391_v8 = vsel %vm5212_vm4, %v13652_v39, %v13647_v42 }
 0xb21   : > { %v6560_v30 = vpop.permute.xlu1 %6559 }
 0xb22   : > { %v7299_v47 = vsel %vm5086_vm1, %v13513_v13, %v6560_v30  ;;  %v6938_v27 = vpop.permute.xlu0 %6937 }
 0xb23   : > { %v7331_v32 = vsel %vm5128_vm2, %v7299_v47, %v6656_v4  ;;  %7113 = vrot.lane.b32.xlu1 %v13231_v37, %s8434_s20  ;;  %v7423_v37 = vsel %vm5254_vm5, %v7391_v8, %v13670_v54 }
 0xb24   : > { %v7455_v40 = vsel %vm5296_vm6, %v7423_v37, %v7032_v5  ;;  %v7361_v5 = vsel %vm5170_vm3, %v13693_v11, %v13722_v3 }
 0xb26   : > { %v13755_v62 = vpop.permute.xlu2 %6845 }
 0xb27   : > { %6949 = vrot.lane.b32.xlu0 %v6489_v21, %s8440_s30 }
 0xb28   : > { %7209 = vrot.lane.b32.xlu2 %v13163_v56, %s8441_s6 }
 0xb29   : > { %v6844_v55 = vpop.permute.xlu1 %6843 }
 0xb2a   : > { %v13757_v50 = vpop.permute.xlu0 %6749  ;;  %v7393_v53 = vsel %vm5212_vm4, %v7361_v5, %v6844_v55 }
 0xb2b   : > { %7237 = vrot.lane.b32.xlu1 %v14567_v18, %s8441_s6  ;;  %v8325_v18 = vld [vmem:[%s8496_s26 + $0x122] sm:$0xff]  ;;  %v7362_v47 = vsel %vm5170_vm3, %v13720_v52, %v13757_v50  ;;  %v8326_v52 = vld [vmem:[%s8496_s26 + $0x12a] sm:$0xff] }
 0xb2c   : > { %v7394_v15 = vsel %vm5212_vm4, %v7362_v47, %v13755_v62 }
 0xb2e   : > { %v7226_v23 = vpop.permute.xlu2 %7225 }
 0xb2f   : > { %7115 = vrot.lane.b32.xlu0 %v13216_v29, %s8434_s20 }
 0xb30   : > { %7019 = vrot.lane.b32.xlu2 %v13197_v49, %s8436_s22 }
 0xb31   : > { %v7224_v13 = vpop.permute.xlu1 %7223 }
 0xb32   : > { %v7128_v19 = vpop.permute.xlu0 %7127 }
 0xb33   : > { %7211 = vrot.lane.b32.xlu1 %v13294_v41, %s8441_s6  ;;  %v7487_v56 = vsel %vm5338_vm7, %v7455_v40, %v7128_v19  ;;  %v7392_v41 = vsel %vm5212_vm4, %v13680_v2, %v6842_v16 }
 0xb34   : > { %v7519_v63 = vsel %vm5380_vm8, %v7487_v56, %v7224_v13  ;;  %v7424_v46 = vsel %vm5254_vm5, %v7392_v41, %v6938_v27 }
 0xb35   : > { %8362 = vmatmul.msk.f32.gmra.mxu3 %vm5431_vm9, %v7519_v63  ;;  %v7456_v28 = vsel %vm5296_vm6, %v7424_v46, %v13709_v58 }
 0xb36   : > { %v6942_v42 = vpop.permute.xlu2 %6941 }
 0xb37   : > { %v7426_v27 = vsel %vm5254_vm5, %v7394_v15, %v6942_v42 }
 0xb39   : > { %v6940_v29 = vpop.permute.xlu1 %6939 }
 0xb3a   : > { %v7036_v39 = vpop.permute.xlu0 %7035  ;;  %v7425_v22 = vsel %vm5254_vm5, %v7393_v53, %v6940_v29 }
 0xb3b   : > { %v7457_v1 = vsel %vm5296_vm6, %v7425_v22, %v7036_v39 }
 0xb3e   : > { %v13781_v60 = vpop.permute.xlu2 %6753 }
 0xb41   : > { %v6752_v54 = vpop.permute.xlu1 %6751 }
 0xb42   : > { %v13779_v7 = vsel %vm5170_vm3, %v7331_v32, %v6752_v54  ;;  %v6658_v35 = vpop.permute.xlu0 %6657 }
 0xb43   : > { %v13789_v49 = vsel %vm5128_vm2, %v7300_v26, %v6658_v35 }
 0xb46   : > { %v7132_v38 = vpop.permute.xlu2 %7131 }
 0xb47   : > { %v7489_v25 = vsel %vm5338_vm7, %v7457_v1, %v7132_v38 }
 0xb48   : > { %v7741_v51 = vpop.f32.mrf.mxu3 }
 0xb49   : > { %v7130_v36 = vpop.permute.xlu1 %7129  ;;  %v7742_v12 = vadd.f32 %v13632_v57, %v7741_v51 }
 0xb4a   : > { %v7488_v48 = vsel %vm5338_vm7, %v7456_v28, %v7130_v36  ;;  %v6564_v24 = vpop.permute.xlu0 %6563  ;;  %v7364_v36 = vsel %vm5170_vm3, %v13789_v49, %v13781_v60  ;;  %v8327_v49 = vld [vmem:[%s8496_s26 + $0x13a] sm:$0xff] }
 0xb4b   : > { %v7520_v2 = vsel %vm5380_vm8, %v7488_v48, %v7226_v23  ;;  %v7799_v44 = vadd.f32 %v8324_v34, %v7742_v12 }
 0xb4c   : > { %8363 = vmatmul.msk.f32.gmra.mxu3 %vm5431_vm9, %v7520_v2 }
 0xb4d   : > { %v7831_v16 = vmax.f32 %v7799_v44, 0.0 }
 0xb4e   : > { %v13800_v58 = vpop.permute.xlu2 %6661 }
 0xb4f   : > { %7863 = vst.msk [vmem:[%s12966_s8 + $0x98] sm:$0xff] %vm5086_vm1, %v7831_v16 }
 0xb51   : > { %v7038_v21 = vpop.permute.xlu1 %7037 }
 0xb52   : > { %v6848_v0 = vpop.permute.xlu0 %6847  ;;  %v7458_v55 = vsel %vm5296_vm6, %v7426_v27, %v7038_v21 }
 0xb53   : > { %v7395_v54 = vsel %vm5212_vm4, %v13779_v7, %v6848_v0  ;;  %v7301_v7 = vsel %vm5086_vm1, %v13581_v45, %v6564_v24 }
 0xb56   : > { %v7040_v4 = vpop.permute.xlu2 %7039 }
 0xb59   : > { %v6660_v43 = vpop.permute.xlu1 %6659 }
 0xb5a   : > { %v7228_v10 = vpop.permute.xlu0 %7227  ;;  %v7333_v12 = vsel %vm5128_vm2, %v7301_v7, %v6660_v43 }
 0xb5b   : > { %v7521_v61 = vsel %vm5380_vm8, %v7489_v25, %v7228_v10  ;;  %v14569_v25 = vld [vmem:[#allocation41_spill] sm:$0xff] }
 0xb5c   : > { %8364 = vmatmul.msk.f32.gmra.mxu3 %vm5431_vm9, %v7521_v61  ;;  %v8419_v10 = vunpack.i.l.bf16 %v14569_v25 }
 0xb5e   : > { %v6852_v30 = vpop.permute.xlu2 %6851 }
 0xb60   : > { %v7744_v11 = vpop.f32.mrf.mxu3 }
 0xb61   : > { %v13811_v59 = vpop.permute.xlu1 %6565  ;;  %v7745_v3 = vadd.f32 %v13632_v57, %v7744_v11 }
 0xb62   : > { %v6944_v17 = vpop.permute.xlu0 %6943 }
 0xb63   : > { %v7800_v14 = vadd.f32 %v8325_v18, %v7745_v3  ;;  %v7427_v26 = vsel %vm5254_vm5, %v7395_v54, %v6944_v17  ;;  %v7302_v18 = vsel %vm5086_vm1, %v14565_v20, %v13811_v59 }
 0xb64   : > { %v7459_v46 = vsel %vm5296_vm6, %v7427_v26, %v7040_v4 }
 0xb65   : > { %v7832_v33 = vmax.f32 %v7800_v14, 0.0 }
 0xb66   : > { %v7232_v37 = vpop.permute.xlu2 %7231 }
 0xb67   : > { %7864 = vst.msk [vmem:[%s12966_s8 + $0xa0] sm:$0xff] %vm5086_vm1, %v7832_v33  ;;  %v14570_v33 = vld [vmem:[#allocation42_spill] sm:$0xff] }
 0xb69   : > { %v6850_v6 = vpop.permute.xlu1 %6849 }
 0xb6a   : > { %v7134_v32 = vpop.permute.xlu0 %7133  ;;  %v7396_v34 = vsel %vm5212_vm4, %v7364_v36, %v6850_v6  ;;  %v7334_v6 = vsel %vm5128_vm2, %v7302_v18, %v13800_v58 }
 0xb6b   : > { %v7490_v13 = vsel %vm5338_vm7, %v7458_v55, %v7134_v32 }
 0xb6e   : > { %v6948_v56 = vpop.permute.xlu2 %6947 }
 0xb71   : > { %v7230_v8 = vpop.permute.xlu1 %7229 }
 0xb72   : > { %v7522_v23 = vsel %vm5380_vm8, %v7490_v13, %v7230_v8  ;;  %v7042_v40 = vpop.permute.xlu0 %7041  ;;  %v8328_v8 = vld [vmem:[%s8496_s26 + $0x142] sm:$0xff] }
 0xb73   : > { %8365 = vmatmul.msk.f32.gmra.mxu3 %vm5431_vm9, %v7522_v23 }
 0xb76   : > { %v7138_v35 = vpop.permute.xlu2 %7137 }
 0xb78   : > { %v7747_v50 = vpop.f32.mrf.mxu3 }
 0xb79   : > { %v6946_v19 = vpop.permute.xlu1 %6945  ;;  %v7748_v62 = vadd.f32 %v13632_v57, %v7747_v50 }
 0xb7a   : > { %v6756_v63 = vpop.permute.xlu0 %6755  ;;  %v7428_v2 = vsel %vm5254_vm5, %v7396_v34, %v6946_v19  ;;  %v8331_v34 = vld [vmem:[%s8496_s26 + $0x16a] sm:$0xff] }
 0xb7b   : > { %v7801_v29 = vadd.f32 %v8326_v52, %v7748_v62  ;;  %v7365_v44 = vsel %vm5170_vm3, %v7333_v12, %v6756_v63  ;;  %v7460_v60 = vsel %vm5296_vm6, %v7428_v2, %v7042_v40 }
 0xb7c   : > { %v7397_v5 = vsel %vm5212_vm4, %v7365_v44, %v6852_v30  ;;  %v7492_v24 = vsel %vm5338_vm7, %v7460_v60, %v7138_v35 }
 0xb7d   : > { %v7833_v42 = vmax.f32 %v7801_v29, 0.0  ;;  %v7429_v43 = vsel %vm5254_vm5, %v7397_v5, %v6948_v56 }
 0xb7e   : > { %v7018_v21 = vpop.permute.xlu2 %7017  ;;  %v7461_v61 = vsel %vm5296_vm6, %v7429_v43, %v8419_v10 }
 0xb7f   : > { %7865 = vst.msk [vmem:[%s12966_s8 + $0xa8] sm:$0xff] %vm5086_vm1, %v7833_v42  ;;  %v7448_v11 = vsel %vm5296_vm6, %v13438_v31, %v7018_v21  ;;  %v7493_v30 = vsel %vm5338_vm7, %v7461_v61, %v14570_v33  ;;  %v8420_v31 = vunpack.i.h.bf16 %v14569_v25  ;;  %v8333_v21 = vld [vmem:[%s8496_s26 + $0x182] sm:$0xff] }
 0xb81   : > { %v6758_v39 = vpop.permute.xlu1 %6757 }
 0xb82   : > { %v6854_v41 = vpop.permute.xlu0 %6853  ;;  %v7366_v20 = vsel %vm5170_vm3, %v7334_v6, %v6758_v39  ;;  %v8329_v39 = vld [vmem:[%s8496_s26 + $0x152] sm:$0xff]  ;;  %v8336_v6 = vld [vmem:[%s8496_s26 + $0x1a2] sm:$0xff] }
 0xb83   : > { %v7398_v59 = vsel %vm5212_vm4, %v7366_v20, %v6854_v41  ;;  %v8323_v20 = vld [vmem:[%s8496_s26 + $0x10a] sm:$0xff] }
 0xb86   : > { %v7210_v17 = vpop.permute.xlu2 %7209 }
 0xb89   : > { %v7136_v28 = vpop.permute.xlu1 %7135 }
 0xb8a   : > { %v7491_v48 = vsel %vm5338_vm7, %v7459_v46, %v7136_v28  ;;  %v7234_v38 = vpop.permute.xlu0 %7233 }
 0xb8b   : > { %v7523_v51 = vsel %vm5380_vm8, %v7491_v48, %v7232_v37  ;;  %v7524_v22 = vsel %vm5380_vm8, %v7492_v24, %v7234_v38  ;;  %v8332_v38 = vld [vmem:[%s8496_s26 + $0x172] sm:$0xff] }
 0xb8c   : > { %8366 = vmatmul.msk.f32.gmra.mxu3 %vm5431_vm9, %v7523_v51 }
 0xb8e   : > { %v7020_v19 = vpop.permute.xlu2 %7019 }
 0xb8f   : > { %v7750_v16 = vpop.f32.mrf.mxu3  ;;  %v7449_v62 = vsel %vm5296_vm6, %v13489_v9, %v7020_v19  ;;  %v8330_v9 = vld [vmem:[%s8496_s26 + $0x15a] sm:$0xff] }
 0xb90   : > { %v7751_v0 = vadd.f32 %v13632_v57, %v7750_v16 }
 0xb91   : > { %v7236_v45 = vpop.permute.xlu1 %7235 }
 0xb92   : > { %v7802_v53 = vadd.f32 %v8327_v49, %v7751_v0  ;;  %v7142_v4 = vpop.permute.xlu0 %7141  ;;  %v7525_v32 = vsel %vm5380_vm8, %v7493_v30, %v7236_v45 }
 0xb94   : > { %v7834_v1 = vmax.f32 %v7802_v53, 0.0  ;;  %8367 = vmatmul.msk.f32.gmra.mxu3 %vm5431_vm9, %v7524_v22  ;;  %v8334_v53 = vld [vmem:[%s8496_s26 + $0x18a] sm:$0xff] }
 0xb96   : > { %7866 = vst.msk [vmem:[%s12966_s8 + $0xb0] sm:$0xff] %vm5086_vm1, %v7834_v1  ;;  %v8322_v1 = vld [vmem:[%s8496_s26 + $0xfa] sm:$0xff] }
 0xb99   : > { %v7114_v3 = vpop.permute.xlu1 %7113 }
 0xb9a   : > { %v7480_v14 = vsel %vm5338_vm7, %v7448_v11, %v7114_v3  ;;  %v6950_v15 = vpop.permute.xlu0 %6949  ;;  %v8335_v3 = vld [vmem:[%s8496_s26 + $0x19a] sm:$0xff] }
 0xb9b   : > { %v7512_v47 = vsel %vm5380_vm8, %v7480_v14, %v7210_v17  ;;  %v7430_v27 = vsel %vm5254_vm5, %v7398_v59, %v6950_v15 }
 0xb9c   : > { %8355 = vmatmul.msk.f32.gmra.mxu1 %vm5431_vm9, %v7512_v47  ;;  %8368 = vmatmul.msk.f32.gmra.mxu3 %vm5431_vm9, %v7525_v32  ;;  %v7462_v58 = vsel %vm5296_vm6, %v7430_v27, %v8420_v31 }
 0xb9d   : > { %v7494_v13 = vsel %vm5338_vm7, %v7462_v58, %v7142_v4 }
 0xb9f   : > { %v7753_v37 = vpop.f32.mrf.mxu3 }
 0xba0   : > { %v7754_v40 = vadd.f32 %v13632_v57, %v7753_v37 }
 0xba1   : > { %v7238_v55 = vpop.permute.xlu1 %7237 }
 0xba2   : > { %v7526_v23 = vsel %vm5380_vm8, %v7494_v13, %v7238_v55  ;;  %v7803_v52 = vadd.f32 %v8328_v8, %v7754_v40  ;;  %v7116_v50 = vpop.permute.xlu0 %7115 }
 0xba3   : > { %v7481_v63 = vsel %vm5338_vm7, %v7449_v62, %v7116_v50 }
 0xba4   : > { %8369 = vmatmul.msk.f32.gmra.mxu3 %vm5431_vm9, %v7526_v23  ;;  %v7835_v56 = vmax.f32 %v7803_v52, 0.0 }
 0xba6   : > { %7867 = vst.msk [vmem:[%s12966_s8 + $0xb8] sm:$0xff] %vm5086_vm1, %v7835_v56 }
 0xba9   : > { %v7212_v29 = vpop.permute.xlu1 %7211 }
 0xbaa   : > { %v7513_v42 = vsel %vm5380_vm8, %v7481_v63, %v7212_v29 }
 0xbab   : > { %8356 = vmatmul.msk.f32.gmra.mxu1 %vm5431_vm9, %v7513_v42 }
 0xbb8   : > { %v7756_v54 = vpop.f32.mrf.mxu3 }
 0xbb9   : > { %v7757_v41 = vadd.f32 %v13632_v57, %v7756_v54 }
 0xbbb   : > { %v7804_v26 = vadd.f32 %v8329_v39, %v7757_v41 }
 0xbbd   : > { %v7836_v35 = vmax.f32 %v7804_v26, 0.0 }
 0xbbf   : > { %7868 = vst.msk [vmem:[%s12966_s8 + $0xc0] sm:$0xff] %vm5086_vm1, %v7836_v35 }
 0xbcf   : > { %v7759_v46 = vpop.f32.mrf.mxu3 }
 0xbd0   : > { %v7760_v28 = vadd.f32 %v13632_v57, %v7759_v46 }
 0xbd2   : > { %v7805_v36 = vadd.f32 %v8330_v9, %v7760_v28 }
 0xbd4   : > { %v7837_v48 = vmax.f32 %v7805_v36, 0.0 }
 0xbd6   : > { %7869 = vst.msk [vmem:[%s12966_s8 + $0xc8] sm:$0xff] %vm5086_vm1, %v7837_v48 }
 0xbdf   : > { %v7762_v51 = vpop.f32.mrf.mxu3 }
 0xbe0   : > { %v7763_v7 = vadd.f32 %v13632_v57, %v7762_v51 }
 0xbe2   : > { %v7806_v2 = vadd.f32 %v8331_v34, %v7763_v7 }
 0xbe4   : > { %v7838_v12 = vmax.f32 %v7806_v2, 0.0 }
 0xbe6   : > { %7870 = vst.msk [vmem:[%s12966_s8 + $0xd0] sm:$0xff] %vm5086_vm1, %v7838_v12 }
 0xbf6   : > { %v7765_v44 = vpop.f32.mrf.mxu3 }
 0xbf7   : > { %v7766_v60 = vadd.f32 %v13632_v57, %v7765_v44 }
 0xbf9   : > { %v7807_v49 = vadd.f32 %v8332_v38, %v7766_v60 }
 0xbfb   : > { %v7839_v16 = vmax.f32 %v7807_v49, 0.0 }
 0xbfd   : > { %7871 = vst.msk [vmem:[%s12966_s8 + $0xd8] sm:$0xff] %vm5086_vm1, %v7839_v16 }
 0xc0f   : > { %v7768_v0 = vpop.f32.mrf.mxu3 }
 0xc10   : > { %v7769_v5 = vadd.f32 %v13632_v57, %v7768_v0 }
 0xc12   : > { %v7808_v45 = vadd.f32 %v8333_v21, %v7769_v5 }
 0xc14   : > { %v7840_v24 = vmax.f32 %v7808_v45, 0.0 }
 0xc16   : > { %7872 = vst.msk [vmem:[%s12966_s8 + $0xe0] sm:$0xff] %vm5086_vm1, %v7840_v24 }
 0xc17   : > { %v7771_v22 = vpop.f32.mrf.mxu3 }
 0xc18   : > { %v7772_v43 = vadd.f32 %v13632_v57, %v7771_v22 }
 0xc19   : > { %v7735_v25 = vpop.f32.mrf.mxu1 }
 0xc1a   : > { %v7809_v10 = vadd.f32 %v8334_v53, %v7772_v43  ;;  %v7736_v4 = vadd.f32 %v13632_v57, %v7735_v25 }
 0xc1c   : > { %v7841_v61 = vmax.f32 %v7809_v10, 0.0  ;;  %v7797_v18 = vadd.f32 %v8322_v1, %v7736_v4 }
 0xc1e   : > { %7873 = vst.msk [vmem:[%s12966_s8 + $0xe8] sm:$0xff] %vm5086_vm1, %v7841_v61  ;;  %v7829_v11 = vmax.f32 %v7797_v18, 0.0 }
 0xc1f   : > { %v7774_v17 = vpop.f32.mrf.mxu3 }
 0xc20   : > { %7861 = vst.msk [vmem:[%s12966_s8 + $0x88] sm:$0xff] %vm5086_vm1, %v7829_v11  ;;  %v7775_v14 = vadd.f32 %v13632_v57, %v7774_v17 }
 0xc22   : > { %v7810_v33 = vadd.f32 %v8335_v3, %v7775_v14 }
 0xc24   : > { %v7842_v30 = vmax.f32 %v7810_v33, 0.0 }
 0xc26   : > { %7874 = vst.msk [vmem:[%s12966_s8 + $0xf0] sm:$0xff] %vm5086_vm1, %v7842_v30 }
 0xc27   : > { %v7777_v47 = vpop.f32.mrf.mxu3 }
 0xc28   : > { %v7778_v32 = vadd.f32 %v13632_v57, %v7777_v47  ;;  %v7738_v31 = vpop.f32.mrf.mxu1 }
 0xc29   : > { %v7739_v59 = vadd.f32 %v13632_v57, %v7738_v31 }
 0xc2a   : > { %v7811_v15 = vadd.f32 %v8336_v6, %v7778_v32 }
 0xc2b   : > { %v7798_v27 = vadd.f32 %v8323_v20, %v7739_v59 }
 0xc2c   : > { %v7843_v58 = vmax.f32 %v7811_v15, 0.0 }
 0xc2d   : > { %v7830_v55 = vmax.f32 %v7798_v27, 0.0 }
 0xc2e   : > { %7875 = vst.msk [vmem:[%s12966_s8 + $0xf8] sm:$0xff] %vm5086_vm1, %v7843_v58 }
 0xc2f   : > { %7862 = vst.msk [vmem:[%s12966_s8 + $0x90] sm:$0xff] %vm5086_vm1, %v7830_v55 }
 0xc30 PF: > { %s15_s18 = sadd.s32 1, %s8431_s18  }
 0xc31   : > { %p12_p4 = scmp.ge.s32.totalorder %s15_s18, 4  }
 0xc33   :  { %14 = sbr.rel (!%p12_p4) target bundleno = 1 (0x1), region = 142 }

</bundles_post_ra>
